<compile_context>
chip_gen: v6e
topology: v6e:2x2x1
jax: 0.10.0
libtpu: 0.0.40
codegen_flags: <defaults>
</compile_context>

<pallas_src>
import functools

import jax
import jax.numpy as jnp
from jax import lax
from jax.experimental import pallas as pl
from jax.experimental.pallas import tpu as pltpu


# ------------------------------------------------------------------ kernel ---
def _encoder_kernel(p1_ref, w1_ref, wt_ref, pp_ref, o_ref, scr0, scr1,
                    *, time_h, w_sizes, use_bf16):
    H = time_h
    scr_refs = (scr0, scr1)

    def mxu_dot(a, b):
        if use_bf16:
            a = a.astype(jnp.bfloat16)      # weights / patches pre-cast in wrapper
        return jnp.dot(a, b, preferred_element_type=jnp.float32)

    def gate_norm_prelu(acc, layer):
        # acc: (rows, 128) = [conv | gate] pre-activations (bias not yet added).
        prm = pp_ref[layer]                                # (3, 128) f32
        r = acc + prm[0:1, :]                              # + [bc | bg]
        z = r[:, 0:64] * jax.nn.sigmoid(r[:, 64:128])      # gated conv (rows, 64)
        n = z.shape[0]
        s1 = jnp.sum(z, axis=0, keepdims=True)             # one-pass stats
        s2 = jnp.sum(z * z, axis=0, keepdims=True)
        mean = s1 * (1.0 / n)
        var = s2 * (1.0 / n) - mean * mean                 # biased (InstanceNorm2d)
        zn = (z - mean) * lax.rsqrt(var + 1e-5)
        zn = zn * prm[1:2, 0:64] + prm[1:2, 64:128]        # gamma, beta
        alpha = prm[2:3, 0:64]
        return jnp.where(zn >= 0, zn, alpha * zn)          # PReLU(64)

    def store_next_input(dst, act, w_out):
        # Scratch layout: (Wfreq, Htime, 128), lanes 0:64 = x[t-1] (row t=0 is the
        # causal zero pad, written once below), lanes 64:128 = x[t].
        dst[0:w_out, :, 64:128] = act
        dst[0:w_out, 1:H, 0:64] = act[:, 0:H - 1, :]

    # One-time zero of the causal time-pad row (only lanes 0:64 of row 0 must be
    # zero; lanes 64:128 of row 0 are overwritten by every layer's store anyway).
    scr0[:, 0:1, :] = jnp.zeros((scr0.shape[0], 1, 128), jnp.float32)
    scr1[:, 0:1, :] = jnp.zeros((scr1.shape[0], 1, 128), jnp.float32)

    # -------- layer 1: prebuilt 128-padded im2col patches -> one matmul -------
    w0 = w_sizes[0]
    z = gate_norm_prelu(mxu_dot(p1_ref[0], w1_ref[...]), 0)      # (w0*H, 64)
    act = z.reshape(w0, H, 64)                                   # (Wfreq, Htime, C)
    o_ref[0, 0:w0] = act
    store_next_input(scr_refs[0], act, w0)
    out_off = w0

    # -------- layers 2..5: single K=384 fused-tap matmul per layer ------------
    for ll in range(1, 5):
        w_in, w_out = w_sizes[ll - 1], w_sizes[ll]
        wp = w_in + (w_in % 2)                   # even #freq rows for the re-view
        src = scr_refs[(ll - 1) % 2]
        ap = src[0:wp, :, :]                     # (wp, H, 128) lane-dense read
        # Stride-2 frequency decimation as a re-view: freq 2q+p -> (q, p*H + t).
        # Copy-free when H % 8 == 0; correct (relaid out) otherwise.
        ar = ap.reshape(wp // 2, 2 * H, 128)
        views = []
        for kwi in range(3):                     # kernel freq width 3, layers 2..5
            sh, par = kwi // 2, kwi % 2
            views.append(ar[sh:sh + w_out, par * H:(par + 1) * H, :])
        a_big = jnp.concatenate(views, axis=-1).reshape(w_out * H, 3 * 128)
        acc = mxu_dot(a_big, wt_ref[ll - 1])     # one (.,384)@(384,128) matmul
        z = gate_norm_prelu(acc, ll)             # (w_out*H, 64)
        act = z.reshape(w_out, H, 64)
        o_ref[0, out_off:out_off + w_out] = act
        out_off += w_out
        if ll < 4:
            store_next_input(scr_refs[ll % 2], act, w_out)


# -------------------------------------------------------------- wrapper ------
def _layer1_patches(x_nchw, kw, kd_pad):
    """ConstantPad2d((0,0,1,0)) + im2col for kernel (2,kw), stride (1,2).

    Rows ordered (freq_out, time); columns (c, kh, kwi), matching the weight
    flattening, zero-padded to kd_pad so the layer-1 operand is lane-dense.
    """
    N, C, H, W = x_nchw.shape
    xp = jnp.pad(x_nchw, ((0, 0), (0, 0), (1, 0), (0, 0)))
    Wout = (W - kw) // 2 + 1
    cols = []
    for kh in range(2):
        for kwi in range(kw):
            cols.append(xp[:, :, kh:kh + H, kwi:kwi + 2 * (Wout - 1) + 1:2])
    p = jnp.stack(cols, axis=0)                    # (2kw, N, C, H, Wout)
    p = jnp.transpose(p, (1, 4, 3, 2, 0))          # (N, Wout, H, C, 2kw)
    p = p.reshape(N, Wout * H, C * 2 * kw)
    p = jnp.pad(p, ((0, 0), (0, 0), (0, kd_pad - C * 2 * kw)))
    return p, Wout


def _pack_params(params, c_in, kws, kd_pad, mxu_dtype):
    # Layer 1: fused [conv | gate] weight zero-padded to (kd_pad, 128).
    wc0, _, wg0, _, _, _, _ = params[0]
    kd1 = c_in * 2 * kws[0]
    w1 = jnp.concatenate([wc0, wg0], axis=0).reshape(128, kd1).T
    w1 = jnp.pad(w1, ((0, kd_pad - kd1), (0, 0))).astype(mxu_dtype)
    # Layers 2..5: all 3 freq taps fused along K, rows = kwi*128 + kh*64 + c.
    taps = []
    for l in range(1, 5):
        wc_l, _, wg_l, _, _, _, _ = params[l]
        wcat = jnp.concatenate([wc_l, wg_l], axis=0)          # (128, 64, 2, kw)
        taps.append(jnp.transpose(wcat, (3, 2, 1, 0)).reshape(kws[l] * 128, 128))
    wtaps = jnp.stack(taps, axis=0).astype(mxu_dtype)         # (4, 384, 128)
    # Small per-layer vectors packed into one (5, 3, 128) f32 array.
    rows = []
    for (_, bc_l, _, bg_l, gamma, beta, alpha) in params:
        rows.append(jnp.stack([
            jnp.concatenate([bc_l, bg_l]),
            jnp.concatenate([gamma, beta]),
            jnp.concatenate([alpha, jnp.zeros_like(alpha)]),
        ], axis=0))
    pp = jnp.stack(rows, axis=0)                              # (5, 3, 128)
    return w1, wtaps, pp


def encoder_forward(x, params, use_bf16_mxu=True):
    """Returns (x, x_list) like the PyTorch Encoder.forward (NCHW outputs)."""
    N, C, H, W = x.shape
    kws = (5, 3, 3, 3, 3)
    kd_pad = 128                                 # lane-dense layer-1 contraction
    mxu_dtype = jnp.bfloat16 if use_bf16_mxu else jnp.float32

    patches1, w0 = _layer1_patches(x, kws[0], kd_pad)
    patches1 = patches1.astype(mxu_dtype)
    w_sizes = [w0]
    for kw in kws[1:]:
        w_sizes.append((w_sizes[-1] - kw) // 2 + 1)
    w_sizes = tuple(w_sizes)
    w_total = sum(w_sizes)
    wmax_even = w_sizes[0] + (w_sizes[0] % 2)

    w1, wtaps, pp = _pack_params(params, C, kws, kd_pad, mxu_dtype)

    kernel = functools.partial(_encoder_kernel, time_h=H, w_sizes=w_sizes,
                               use_bf16=use_bf16_mxu)

    # NOTE(v7x): grid=(N,) is "parallel" -> keep N even to fill both TensorCores.
    out = pl.pallas_call(
        kernel,
        out_shape=jax.ShapeDtypeStruct((N, w_total, H, 64), jnp.float32),
        grid=(N,),
        in_specs=[
            pl.BlockSpec((1, w_sizes[0] * H, kd_pad), lambda n: (n, 0, 0)),
            pl.BlockSpec((kd_pad, 128), lambda n: (0, 0)),
            pl.BlockSpec(wtaps.shape, lambda n: (0, 0, 0)),
            pl.BlockSpec(pp.shape, lambda n: (0, 0, 0)),
        ],
        out_specs=pl.BlockSpec((1, w_total, H, 64), lambda n: (n, 0, 0, 0)),
        scratch_shapes=[
            pltpu.VMEM((wmax_even, H, 128), jnp.float32),
            pltpu.VMEM((wmax_even, H, 128), jnp.float32),
        ],
        compiler_params=pltpu.CompilerParams(
            dimension_semantics=("parallel",)),
    )(patches1, w1, wtaps, pp)

    # Split the consolidated slab and convert to NCHW like the PyTorch module.
    x_list = []
    off = 0
    for wl in w_sizes:
        x_list.append(out[:, off:off + wl].transpose(0, 3, 2, 1))
        off += wl
    return x_list[-1], x_list


# ------------------------------------------------------------------ params ---
def make_layer_params(key, cin, kw):
    ks = jax.random.split(key, 4)
    wc = jax.random.normal(ks[0], (64, cin, 2, kw), jnp.float32) * 0.05
    bc = jax.random.normal(ks[1], (64,), jnp.float32) * 0.05
    wg = jax.random.normal(ks[2], (64, cin, 2, kw), jnp.float32) * 0.05
    bg = jax.random.normal(ks[3], (64,), jnp.float32) * 0.05
    gamma = jnp.ones((64,), jnp.float32)           # InstanceNorm2d affine init
    beta = jnp.zeros((64,), jnp.float32)
    alpha = jnp.full((64,), 0.25, jnp.float32)     # PReLU default init
    return (wc, bc, wg, bg, gamma, beta, alpha)


def make_encoder_params(key, channels):
    keys = jax.random.split(key, 5)
    cfgs = [(channels, 5), (64, 3), (64, 3), (64, 3), (64, 3)]
    return [make_layer_params(k, cin, kw) for k, (cin, kw) in zip(keys, cfgs)]


# ------------------------------------------------------- pure-JAX reference ---
def _ref_layer(x, params, kw):
    wc, bc, wg, bg, gamma, beta, alpha = params
    xp = jnp.pad(x, ((0, 0), (0, 0), (1, 0), (0, 0)))
    conv = lambda w, b: lax.conv_general_dilated(
        xp, w, (1, 2), 'VALID',
        dimension_numbers=('NCHW', 'OIHW', 'NCHW')) + b[None, :, None, None]
    y = conv(wc, bc) * jax.nn.sigmoid(conv(wg, bg))
    mean = y.mean(axis=(2, 3), keepdims=True)
    var = ((y - mean) ** 2).mean(axis=(2, 3), keepdims=True)
    yn = (y - mean) * lax.rsqrt(var + 1e-5)
    yn = yn * gamma[None, :, None, None] + beta[None, :, None, None]
    return jnp.where(yn >= 0, yn, alpha[None, :, None, None] * yn)


def _ref_encoder(x, params):
    kws = [5, 3, 3, 3, 3]
    outs = []
    for p, kw in zip(params, kws):
        x = _ref_layer(x, p, kw)
        outs.append(x)
    return x, outs


# --------------------------------------------------------------------- main ---
if __name__ == "__main__":
    key = jax.random.PRNGKey(0)
    k_x, k_p = jax.random.split(key)

    N, C, H, W = 2, 4, 8, 101       # (batch, channels, time, freq)
    x = jax.random.normal(k_x, (N, C, H, W), jnp.float32)
    params = make_encoder_params(k_p, C)

    ref_out, ref_list = _ref_encoder(x, params)

    # Exact path (f32 MXU operands): tight check against the pure-JAX reference.
    fwd_f32 = jax.jit(functools.partial(encoder_forward, use_bf16_mxu=False))
    out32, list32 = jax.block_until_ready(fwd_f32(x, params))
    assert out32.shape == ref_out.shape == (N, 64, H, 2), out32.shape
    assert len(list32) == 5
    for a, b in zip(list32, ref_list):
        err = float(jnp.abs(a - b).max())
        assert jnp.allclose(a, b, atol=5e-4, rtol=5e-4), err

    # Default path (bf16 MXU operands, f32 accumulation / norm math): loose check.
    fwd = jax.jit(encoder_forward)
    out, out_list = jax.block_until_ready(fwd(x, params))
    assert out.shape == (N, 64, H, 2), out.shape
    assert len(out_list) == 5
    for a, b in zip(out_list, ref_list):
        err = float(jnp.abs(a - b).max())
        assert err < 2.5e-1, err

    print("KERNEL_OK")
</pallas_src>

<mosaic_0001>
module attributes {stable_mosaic.version = 11 : i64} {
  func.func @_encoder_kernel(%arg0: i32, %arg1: memref<1x392x128xf32, #tpu.memory_space<vmem>>, %arg2: memref<128x128xf32, #tpu.memory_space<vmem>>, %arg3: memref<4x384x128xf32, #tpu.memory_space<vmem>>, %arg4: memref<5x3x128xf32, #tpu.memory_space<vmem>>, %arg5: memref<1x91x8x64xf32, #tpu.memory_space<vmem>>, %arg6: memref<50x8x128xf32, #tpu.memory_space<vmem>>, %arg7: memref<50x8x128xf32, #tpu.memory_space<vmem>>) attributes {dimension_semantics = [#tpu.dimension_semantics<parallel>], iteration_bounds = array<i64: 2>, scalar_prefetch = 0 : i64, scratch_operands = 2 : i64, tpu.core_type = #tpu.core_type<tc>, window_params = [{transform_indices = @transform_0, window_bounds = array<i64: 1, 392, 128>}, {pipeline_mode = #tpu.pipeline_mode<synchronous>, transform_indices = @transform_1, window_bounds = array<i64: 128, 128>}, {pipeline_mode = #tpu.pipeline_mode<synchronous>, transform_indices = @transform_2, window_bounds = array<i64: 4, 384, 128>}, {pipeline_mode = #tpu.pipeline_mode<synchronous>, transform_indices = @transform_3, window_bounds = array<i64: 5, 3, 128>}, {transform_indices = @transform_4, window_bounds = array<i64: 1, 91, 8, 64>}]} {
    %cst = arith.constant 0.000000e+00 : f32
    %0 = vector.broadcast %cst : f32 to vector<50x1x128xf32>
    %c0 = arith.constant 0 : index
    %c0_0 = arith.constant 0 : index
    %c0_1 = arith.constant 0 : index
    %1 = vector.load %arg6[%c0, %c0_0, %c0_1] : memref<50x8x128xf32, #tpu.memory_space<vmem>>, vector<50x1x128xf32>
    tpu.vector_store %arg6[%c0, %c0_0, %c0_1], %0 {strides = array<i32>} : memref<50x8x128xf32, #tpu.memory_space<vmem>>, vector<50x1x128xf32>,
    %cst_2 = arith.constant 0.000000e+00 : f32
    %2 = vector.broadcast %cst_2 : f32 to vector<50x1x128xf32>
    %c0_3 = arith.constant 0 : index
    %c0_4 = arith.constant 0 : index
    %c0_5 = arith.constant 0 : index
    %3 = vector.load %arg7[%c0_3, %c0_4, %c0_5] : memref<50x8x128xf32, #tpu.memory_space<vmem>>, vector<50x1x128xf32>
    tpu.vector_store %arg7[%c0_3, %c0_4, %c0_5], %2 {strides = array<i32>} : memref<50x8x128xf32, #tpu.memory_space<vmem>>, vector<50x1x128xf32>,
    %c0_6 = arith.constant 0 : index
    %c0_7 = arith.constant 0 : index
    %c0_8 = arith.constant 0 : index
    %4 = vector.load %arg1[%c0_6, %c0_7, %c0_8] : memref<1x392x128xf32, #tpu.memory_space<vmem>>, vector<1x392x128xf32>
    %5 = vector.shape_cast %4 : vector<1x392x128xf32> to vector<392x128xf32>
    %c0_9 = arith.constant 0 : index
    %c0_10 = arith.constant 0 : index
    %6 = vector.load %arg2[%c0_9, %c0_10] : memref<128x128xf32, #tpu.memory_space<vmem>>, vector<128x128xf32>
    %cst_11 = arith.constant dense<0.000000e+00> : vector<392x128xf32>
    %7 = tpu.matmul %5, %6, %cst_11 {dimension_numbers = #tpu.dot_dimension_numbers<[1], [0], [0], [1], [0, 0, 1, 1], [], []>} : vector<392x128xf32>, vector<128x128xf32>, vector<392x128xf32> -> vector<392x128xf32>
    %c0_12 = arith.constant 0 : index
    %c0_13 = arith.constant 0 : index
    %c0_14 = arith.constant 0 : index
    %8 = vector.load %arg4[%c0_12, %c0_13, %c0_14] : memref<5x3x128xf32, #tpu.memory_space<vmem>>, vector<1x3x128xf32>
    %9 = vector.shape_cast %8 : vector<1x3x128xf32> to vector<3x128xf32>
    %10 = vector.extract_strided_slice %9 {offsets = [0, 0], sizes = [1, 128], strides = [1, 1]} : vector<3x128xf32> to vector<1x128xf32>
    %11 = vector.broadcast %10 : vector<1x128xf32> to vector<392x128xf32>
    %12 = arith.addf %7, %11 : vector<392x128xf32>
    %13 = vector.extract_strided_slice %12 {offsets = [0, 0], sizes = [392, 64], strides = [1, 1]} : vector<392x128xf32> to vector<392x64xf32>
    %14 = vector.extract_strided_slice %12 {offsets = [0, 64], sizes = [392, 64], strides = [1, 1]} : vector<392x128xf32> to vector<392x64xf32>
    %15 = arith.negf %14 : vector<392x64xf32>
    %16 = math.exp %15 : vector<392x64xf32>
    %cst_15 = arith.constant 1.000000e+00 : f32
    %17 = vector.broadcast %cst_15 : f32 to vector<392x64xf32>
    %18 = arith.addf %17, %16 : vector<392x64xf32>
    %19 = arith.divf %17, %18 : vector<392x64xf32>
    %20 = arith.mulf %13, %19 : vector<392x64xf32>
    %cst_16 = arith.constant dense<0.000000e+00> : vector<64xf32>
    %21 = vector.multi_reduction <add>, %20, %cst_16 [0] : vector<392x64xf32> to vector<64xf32>
    %22 = vector.shape_cast %21 : vector<64xf32> to vector<1x64xf32>
    %23 = arith.mulf %20, %20 : vector<392x64xf32>
    %cst_17 = arith.constant dense<0.000000e+00> : vector<64xf32>
    %24 = vector.multi_reduction <add>, %23, %cst_17 [0] : vector<392x64xf32> to vector<64xf32>
    %25 = vector.shape_cast %24 : vector<64xf32> to vector<1x64xf32>
    %cst_18 = arith.constant 0.00255102036 : f32
    %26 = vector.broadcast %cst_18 : f32 to vector<1x64xf32>
    %27 = arith.mulf %22, %26 : vector<1x64xf32>
    %cst_19 = arith.constant 0.00255102036 : f32
    %28 = vector.broadcast %cst_19 : f32 to vector<1x64xf32>
    %29 = arith.mulf %25, %28 : vector<1x64xf32>
    %30 = arith.mulf %27, %27 : vector<1x64xf32>
    %31 = arith.subf %29, %30 : vector<1x64xf32>
    %32 = vector.broadcast %27 : vector<1x64xf32> to vector<392x64xf32>
    %33 = arith.subf %20, %32 : vector<392x64xf32>
    %cst_20 = arith.constant 9.99999974E-6 : f32
    %34 = vector.broadcast %cst_20 : f32 to vector<1x64xf32>
    %35 = arith.addf %31, %34 : vector<1x64xf32>
    %36 = math.rsqrt %35 : vector<1x64xf32>
    %37 = vector.broadcast %36 : vector<1x64xf32> to vector<392x64xf32>
    %38 = arith.mulf %33, %37 : vector<392x64xf32>
    %39 = vector.extract_strided_slice %9 {offsets = [1, 0], sizes = [1, 64], strides = [1, 1]} : vector<3x128xf32> to vector<1x64xf32>
    %40 = vector.broadcast %39 : vector<1x64xf32> to vector<392x64xf32>
    %41 = arith.mulf %38, %40 : vector<392x64xf32>
    %42 = vector.extract_strided_slice %9 {offsets = [1, 64], sizes = [1, 64], strides = [1, 1]} : vector<3x128xf32> to vector<1x64xf32>
    %43 = vector.broadcast %42 : vector<1x64xf32> to vector<392x64xf32>
    %44 = arith.addf %41, %43 : vector<392x64xf32>
    %45 = vector.extract_strided_slice %9 {offsets = [2, 0], sizes = [1, 64], strides = [1, 1]} : vector<3x128xf32> to vector<1x64xf32>
    %cst_21 = arith.constant 0.000000e+00 : f32
    %46 = vector.broadcast %cst_21 : f32 to vector<392x64xf32>
    %47 = arith.cmpf oge, %44, %46 : vector<392x64xf32>
    %48 = vector.broadcast %45 : vector<1x64xf32> to vector<392x64xf32>
    %49 = arith.mulf %48, %44 : vector<392x64xf32>
    %50 = arith.select %47, %44, %49 : vector<392x64xi1>, vector<392x64xf32>
    %51 = vector.shape_cast %50 : vector<392x64xf32> to vector<49x8x64xf32>
    %c0_22 = arith.constant 0 : index
    %c0_23 = arith.constant 0 : index
    %c0_24 = arith.constant 0 : index
    %c0_25 = arith.constant 0 : index
    %52 = vector.load %arg5[%c0_22, %c0_23, %c0_24, %c0_25] : memref<1x91x8x64xf32, #tpu.memory_space<vmem>>, vector<1x49x8x64xf32>
    %53 = vector.shape_cast %52 : vector<1x49x8x64xf32> to vector<49x8x64xf32>
    %54 = vector.shape_cast %51 : vector<49x8x64xf32> to vector<1x49x8x64xf32>
    tpu.vector_store %arg5[%c0_22, %c0_23, %c0_24, %c0_25], %54 {strides = array<i32>} : memref<1x91x8x64xf32, #tpu.memory_space<vmem>>, vector<1x49x8x64xf32>,
    %c0_26 = arith.constant 0 : index
    %c0_27 = arith.constant 0 : index
    %c64 = arith.constant 64 : index
    %55 = vector.load %arg6[%c0_26, %c0_27, %c64] : memref<50x8x128xf32, #tpu.memory_space<vmem>>, vector<49x8x64xf32>
    tpu.vector_store %arg6[%c0_26, %c0_27, %c64], %51 {strides = array<i32>} : memref<50x8x128xf32, #tpu.memory_space<vmem>>, vector<49x8x64xf32>,
    %56 = vector.extract_strided_slice %51 {offsets = [0, 0, 0], sizes = [49, 7, 64], strides = [1, 1, 1]} : vector<49x8x64xf32> to vector<49x7x64xf32>
    %c0_28 = arith.constant 0 : index
    %c1 = arith.constant 1 : index
    %c0_29 = arith.constant 0 : index
    %57 = vector.load %arg6[%c0_28, %c1, %c0_29] : memref<50x8x128xf32, #tpu.memory_space<vmem>>, vector<49x7x64xf32>
    tpu.vector_store %arg6[%c0_28, %c1, %c0_29], %56 {strides = array<i32>} : memref<50x8x128xf32, #tpu.memory_space<vmem>>, vector<49x7x64xf32>,
    %c0_30 = arith.constant 0 : index
    %c0_31 = arith.constant 0 : index
    %c0_32 = arith.constant 0 : index
    %58 = vector.load %arg6[%c0_30, %c0_31, %c0_32] : memref<50x8x128xf32, #tpu.memory_space<vmem>>, vector<50x8x128xf32>
    %59 = vector.shape_cast %58 : vector<50x8x128xf32> to vector<25x16x128xf32>
    %60 = vector.extract_strided_slice %59 {offsets = [0, 0, 0], sizes = [24, 8, 128], strides = [1, 1, 1]} : vector<25x16x128xf32> to vector<24x8x128xf32>
    %61 = vector.extract_strided_slice %59 {offsets = [0, 8, 0], sizes = [24, 8, 128], strides = [1, 1, 1]} : vector<25x16x128xf32> to vector<24x8x128xf32>
    %62 = vector.extract_strided_slice %59 {offsets = [1, 0, 0], sizes = [24, 8, 128], strides = [1, 1, 1]} : vector<25x16x128xf32> to vector<24x8x128xf32>
    %63 = tpu.concatenate %60, %61, %62 in 2 : vector<24x8x128xf32>, vector<24x8x128xf32>, vector<24x8x128xf32> -> vector<24x8x384xf32>
    %64 = vector.shape_cast %63 : vector<24x8x384xf32> to vector<192x384xf32>
    %c0_33 = arith.constant 0 : index
    %c0_34 = arith.constant 0 : index
    %c0_35 = arith.constant 0 : index
    %65 = vector.load %arg3[%c0_33, %c0_34, %c0_35] : memref<4x384x128xf32, #tpu.memory_space<vmem>>, vector<1x384x128xf32>
    %66 = vector.shape_cast %65 : vector<1x384x128xf32> to vector<384x128xf32>
    %cst_36 = arith.constant dense<0.000000e+00> : vector<192x128xf32>
    %67 = tpu.matmul %64, %66, %cst_36 {dimension_numbers = #tpu.dot_dimension_numbers<[1], [0], [0], [1], [0, 0, 1, 1], [], []>} : vector<192x384xf32>, vector<384x128xf32>, vector<192x128xf32> -> vector<192x128xf32>
    %c1_37 = arith.constant 1 : index
    %c0_38 = arith.constant 0 : index
    %c0_39 = arith.constant 0 : index
    %68 = vector.load %arg4[%c1_37, %c0_38, %c0_39] : memref<5x3x128xf32, #tpu.memory_space<vmem>>, vector<1x3x128xf32>
    %69 = vector.shape_cast %68 : vector<1x3x128xf32> to vector<3x128xf32>
    %70 = vector.extract_strided_slice %69 {offsets = [0, 0], sizes = [1, 128], strides = [1, 1]} : vector<3x128xf32> to vector<1x128xf32>
    %71 = vector.broadcast %70 : vector<1x128xf32> to vector<192x128xf32>
    %72 = arith.addf %67, %71 : vector<192x128xf32>
    %73 = vector.extract_strided_slice %72 {offsets = [0, 0], sizes = [192, 64], strides = [1, 1]} : vector<192x128xf32> to vector<192x64xf32>
    %74 = vector.extract_strided_slice %72 {offsets = [0, 64], sizes = [192, 64], strides = [1, 1]} : vector<192x128xf32> to vector<192x64xf32>
    %75 = arith.negf %74 : vector<192x64xf32>
    %76 = math.exp %75 : vector<192x64xf32>
    %cst_40 = arith.constant 1.000000e+00 : f32
    %77 = vector.broadcast %cst_40 : f32 to vector<192x64xf32>
    %78 = arith.addf %77, %76 : vector<192x64xf32>
    %79 = arith.divf %77, %78 : vector<192x64xf32>
    %80 = arith.mulf %73, %79 : vector<192x64xf32>
    %cst_41 = arith.constant dense<0.000000e+00> : vector<64xf32>
    %81 = vector.multi_reduction <add>, %80, %cst_41 [0] : vector<192x64xf32> to vector<64xf32>
    %82 = vector.shape_cast %81 : vector<64xf32> to vector<1x64xf32>
    %83 = arith.mulf %80, %80 : vector<192x64xf32>
    %cst_42 = arith.constant dense<0.000000e+00> : vector<64xf32>
    %84 = vector.multi_reduction <add>, %83, %cst_42 [0] : vector<192x64xf32> to vector<64xf32>
    %85 = vector.shape_cast %84 : vector<64xf32> to vector<1x64xf32>
    %cst_43 = arith.constant 0.00520833349 : f32
    %86 = vector.broadcast %cst_43 : f32 to vector<1x64xf32>
    %87 = arith.mulf %82, %86 : vector<1x64xf32>
    %cst_44 = arith.constant 0.00520833349 : f32
    %88 = vector.broadcast %cst_44 : f32 to vector<1x64xf32>
    %89 = arith.mulf %85, %88 : vector<1x64xf32>
    %90 = arith.mulf %87, %87 : vector<1x64xf32>
    %91 = arith.subf %89, %90 : vector<1x64xf32>
    %92 = vector.broadcast %87 : vector<1x64xf32> to vector<192x64xf32>
    %93 = arith.subf %80, %92 : vector<192x64xf32>
    %cst_45 = arith.constant 9.99999974E-6 : f32
    %94 = vector.broadcast %cst_45 : f32 to vector<1x64xf32>
    %95 = arith.addf %91, %94 : vector<1x64xf32>
    %96 = math.rsqrt %95 : vector<1x64xf32>
    %97 = vector.broadcast %96 : vector<1x64xf32> to vector<192x64xf32>
    %98 = arith.mulf %93, %97 : vector<192x64xf32>
    %99 = vector.extract_strided_slice %69 {offsets = [1, 0], sizes = [1, 64], strides = [1, 1]} : vector<3x128xf32> to vector<1x64xf32>
    %100 = vector.broadcast %99 : vector<1x64xf32> to vector<192x64xf32>
    %101 = arith.mulf %98, %100 : vector<192x64xf32>
    %102 = vector.extract_strided_slice %69 {offsets = [1, 64], sizes = [1, 64], strides = [1, 1]} : vector<3x128xf32> to vector<1x64xf32>
    %103 = vector.broadcast %102 : vector<1x64xf32> to vector<192x64xf32>
    %104 = arith.addf %101, %103 : vector<192x64xf32>
    %105 = vector.extract_strided_slice %69 {offsets = [2, 0], sizes = [1, 64], strides = [1, 1]} : vector<3x128xf32> to vector<1x64xf32>
    %cst_46 = arith.constant 0.000000e+00 : f32
    %106 = vector.broadcast %cst_46 : f32 to vector<192x64xf32>
    %107 = arith.cmpf oge, %104, %106 : vector<192x64xf32>
    %108 = vector.broadcast %105 : vector<1x64xf32> to vector<192x64xf32>
    %109 = arith.mulf %108, %104 : vector<192x64xf32>
    %110 = arith.select %107, %104, %109 : vector<192x64xi1>, vector<192x64xf32>
    %111 = vector.shape_cast %110 : vector<192x64xf32> to vector<24x8x64xf32>
    %c0_47 = arith.constant 0 : index
    %c49 = arith.constant 49 : index
    %c0_48 = arith.constant 0 : index
    %c0_49 = arith.constant 0 : index
    %112 = vector.load %arg5[%c0_47, %c49, %c0_48, %c0_49] : memref<1x91x8x64xf32, #tpu.memory_space<vmem>>, vector<1x24x8x64xf32>
    %113 = vector.shape_cast %112 : vector<1x24x8x64xf32> to vector<24x8x64xf32>
    %114 = vector.shape_cast %111 : vector<24x8x64xf32> to vector<1x24x8x64xf32>
    tpu.vector_store %arg5[%c0_47, %c49, %c0_48, %c0_49], %114 {strides = array<i32>} : memref<1x91x8x64xf32, #tpu.memory_space<vmem>>, vector<1x24x8x64xf32>,
    %c0_50 = arith.constant 0 : index
    %c0_51 = arith.constant 0 : index
    %c64_52 = arith.constant 64 : index
    %115 = vector.load %arg7[%c0_50, %c0_51, %c64_52] : memref<50x8x128xf32, #tpu.memory_space<vmem>>, vector<24x8x64xf32>
    tpu.vector_store %arg7[%c0_50, %c0_51, %c64_52], %111 {strides = array<i32>} : memref<50x8x128xf32, #tpu.memory_space<vmem>>, vector<24x8x64xf32>,
    %116 = vector.extract_strided_slice %111 {offsets = [0, 0, 0], sizes = [24, 7, 64], strides = [1, 1, 1]} : vector<24x8x64xf32> to vector<24x7x64xf32>
    %c0_53 = arith.constant 0 : index
    %c1_54 = arith.constant 1 : index
    %c0_55 = arith.constant 0 : index
    %117 = vector.load %arg7[%c0_53, %c1_54, %c0_55] : memref<50x8x128xf32, #tpu.memory_space<vmem>>, vector<24x7x64xf32>
    tpu.vector_store %arg7[%c0_53, %c1_54, %c0_55], %116 {strides = array<i32>} : memref<50x8x128xf32, #tpu.memory_space<vmem>>, vector<24x7x64xf32>,
    %c0_56 = arith.constant 0 : index
    %c0_57 = arith.constant 0 : index
    %c0_58 = arith.constant 0 : index
    %118 = vector.load %arg7[%c0_56, %c0_57, %c0_58] : memref<50x8x128xf32, #tpu.memory_space<vmem>>, vector<24x8x128xf32>
    %119 = vector.shape_cast %118 : vector<24x8x128xf32> to vector<12x16x128xf32>
    %120 = vector.extract_strided_slice %119 {offsets = [0, 0, 0], sizes = [11, 8, 128], strides = [1, 1, 1]} : vector<12x16x128xf32> to vector<11x8x128xf32>
    %121 = vector.extract_strided_slice %119 {offsets = [0, 8, 0], sizes = [11, 8, 128], strides = [1, 1, 1]} : vector<12x16x128xf32> to vector<11x8x128xf32>
    %122 = vector.extract_strided_slice %119 {offsets = [1, 0, 0], sizes = [11, 8, 128], strides = [1, 1, 1]} : vector<12x16x128xf32> to vector<11x8x128xf32>
    %123 = tpu.concatenate %120, %121, %122 in 2 : vector<11x8x128xf32>, vector<11x8x128xf32>, vector<11x8x128xf32> -> vector<11x8x384xf32>
    %124 = vector.shape_cast %123 : vector<11x8x384xf32> to vector<88x384xf32>
    %c1_59 = arith.constant 1 : index
    %c0_60 = arith.constant 0 : index
    %c0_61 = arith.constant 0 : index
    %125 = vector.load %arg3[%c1_59, %c0_60, %c0_61] : memref<4x384x128xf32, #tpu.memory_space<vmem>>, vector<1x384x128xf32>
    %126 = vector.shape_cast %125 : vector<1x384x128xf32> to vector<384x128xf32>
    %cst_62 = arith.constant dense<0.000000e+00> : vector<88x128xf32>
    %127 = tpu.matmul %124, %126, %cst_62 {dimension_numbers = #tpu.dot_dimension_numbers<[1], [0], [0], [1], [0, 0, 1, 1], [], []>} : vector<88x384xf32>, vector<384x128xf32>, vector<88x128xf32> -> vector<88x128xf32>
    %c2 = arith.constant 2 : index
    %c0_63 = arith.constant 0 : index
    %c0_64 = arith.constant 0 : index
    %128 = vector.load %arg4[%c2, %c0_63, %c0_64] : memref<5x3x128xf32, #tpu.memory_space<vmem>>, vector<1x3x128xf32>
    %129 = vector.shape_cast %128 : vector<1x3x128xf32> to vector<3x128xf32>
    %130 = vector.extract_strided_slice %129 {offsets = [0, 0], sizes = [1, 128], strides = [1, 1]} : vector<3x128xf32> to vector<1x128xf32>
    %131 = vector.broadcast %130 : vector<1x128xf32> to vector<88x128xf32>
    %132 = arith.addf %127, %131 : vector<88x128xf32>
    %133 = vector.extract_strided_slice %132 {offsets = [0, 0], sizes = [88, 64], strides = [1, 1]} : vector<88x128xf32> to vector<88x64xf32>
    %134 = vector.extract_strided_slice %132 {offsets = [0, 64], sizes = [88, 64], strides = [1, 1]} : vector<88x128xf32> to vector<88x64xf32>
    %135 = arith.negf %134 : vector<88x64xf32>
    %136 = math.exp %135 : vector<88x64xf32>
    %cst_65 = arith.constant 1.000000e+00 : f32
    %137 = vector.broadcast %cst_65 : f32 to vector<88x64xf32>
    %138 = arith.addf %137, %136 : vector<88x64xf32>
    %139 = arith.divf %137, %138 : vector<88x64xf32>
    %140 = arith.mulf %133, %139 : vector<88x64xf32>
    %cst_66 = arith.constant dense<0.000000e+00> : vector<64xf32>
    %141 = vector.multi_reduction <add>, %140, %cst_66 [0] : vector<88x64xf32> to vector<64xf32>
    %142 = vector.shape_cast %141 : vector<64xf32> to vector<1x64xf32>
    %143 = arith.mulf %140, %140 : vector<88x64xf32>
    %cst_67 = arith.constant dense<0.000000e+00> : vector<64xf32>
    %144 = vector.multi_reduction <add>, %143, %cst_67 [0] : vector<88x64xf32> to vector<64xf32>
    %145 = vector.shape_cast %144 : vector<64xf32> to vector<1x64xf32>
    %cst_68 = arith.constant 0.0113636367 : f32
    %146 = vector.broadcast %cst_68 : f32 to vector<1x64xf32>
    %147 = arith.mulf %142, %146 : vector<1x64xf32>
    %cst_69 = arith.constant 0.0113636367 : f32
    %148 = vector.broadcast %cst_69 : f32 to vector<1x64xf32>
    %149 = arith.mulf %145, %148 : vector<1x64xf32>
    %150 = arith.mulf %147, %147 : vector<1x64xf32>
    %151 = arith.subf %149, %150 : vector<1x64xf32>
    %152 = vector.broadcast %147 : vector<1x64xf32> to vector<88x64xf32>
    %153 = arith.subf %140, %152 : vector<88x64xf32>
    %cst_70 = arith.constant 9.99999974E-6 : f32
    %154 = vector.broadcast %cst_70 : f32 to vector<1x64xf32>
    %155 = arith.addf %151, %154 : vector<1x64xf32>
    %156 = math.rsqrt %155 : vector<1x64xf32>
    %157 = vector.broadcast %156 : vector<1x64xf32> to vector<88x64xf32>
    %158 = arith.mulf %153, %157 : vector<88x64xf32>
    %159 = vector.extract_strided_slice %129 {offsets = [1, 0], sizes = [1, 64], strides = [1, 1]} : vector<3x128xf32> to vector<1x64xf32>
    %160 = vector.broadcast %159 : vector<1x64xf32> to vector<88x64xf32>
    %161 = arith.mulf %158, %160 : vector<88x64xf32>
    %162 = vector.extract_strided_slice %129 {offsets = [1, 64], sizes = [1, 64], strides = [1, 1]} : vector<3x128xf32> to vector<1x64xf32>
    %163 = vector.broadcast %162 : vector<1x64xf32> to vector<88x64xf32>
    %164 = arith.addf %161, %163 : vector<88x64xf32>
    %165 = vector.extract_strided_slice %129 {offsets = [2, 0], sizes = [1, 64], strides = [1, 1]} : vector<3x128xf32> to vector<1x64xf32>
    %cst_71 = arith.constant 0.000000e+00 : f32
    %166 = vector.broadcast %cst_71 : f32 to vector<88x64xf32>
    %167 = arith.cmpf oge, %164, %166 : vector<88x64xf32>
    %168 = vector.broadcast %165 : vector<1x64xf32> to vector<88x64xf32>
    %169 = arith.mulf %168, %164 : vector<88x64xf32>
    %170 = arith.select %167, %164, %169 : vector<88x64xi1>, vector<88x64xf32>
    %171 = vector.shape_cast %170 : vector<88x64xf32> to vector<11x8x64xf32>
    %c0_72 = arith.constant 0 : index
    %c73 = arith.constant 73 : index
    %c0_73 = arith.constant 0 : index
    %c0_74 = arith.constant 0 : index
    %172 = vector.load %arg5[%c0_72, %c73, %c0_73, %c0_74] : memref<1x91x8x64xf32, #tpu.memory_space<vmem>>, vector<1x11x8x64xf32>
    %173 = vector.shape_cast %172 : vector<1x11x8x64xf32> to vector<11x8x64xf32>
    %174 = vector.shape_cast %171 : vector<11x8x64xf32> to vector<1x11x8x64xf32>
    tpu.vector_store %arg5[%c0_72, %c73, %c0_73, %c0_74], %174 {strides = array<i32>} : memref<1x91x8x64xf32, #tpu.memory_space<vmem>>, vector<1x11x8x64xf32>,
    %c0_75 = arith.constant 0 : index
    %c0_76 = arith.constant 0 : index
    %c64_77 = arith.constant 64 : index
    %175 = vector.load %arg6[%c0_75, %c0_76, %c64_77] : memref<50x8x128xf32, #tpu.memory_space<vmem>>, vector<11x8x64xf32>
    tpu.vector_store %arg6[%c0_75, %c0_76, %c64_77], %171 {strides = array<i32>} : memref<50x8x128xf32, #tpu.memory_space<vmem>>, vector<11x8x64xf32>,
    %176 = vector.extract_strided_slice %171 {offsets = [0, 0, 0], sizes = [11, 7, 64], strides = [1, 1, 1]} : vector<11x8x64xf32> to vector<11x7x64xf32>
    %c0_78 = arith.constant 0 : index
    %c1_79 = arith.constant 1 : index
    %c0_80 = arith.constant 0 : index
    %177 = vector.load %arg6[%c0_78, %c1_79, %c0_80] : memref<50x8x128xf32, #tpu.memory_space<vmem>>, vector<11x7x64xf32>
    tpu.vector_store %arg6[%c0_78, %c1_79, %c0_80], %176 {strides = array<i32>} : memref<50x8x128xf32, #tpu.memory_space<vmem>>, vector<11x7x64xf32>,
    %c0_81 = arith.constant 0 : index
    %c0_82 = arith.constant 0 : index
    %c0_83 = arith.constant 0 : index
    %178 = vector.load %arg6[%c0_81, %c0_82, %c0_83] : memref<50x8x128xf32, #tpu.memory_space<vmem>>, vector<12x8x128xf32>
    %179 = vector.shape_cast %178 : vector<12x8x128xf32> to vector<6x16x128xf32>
    %180 = vector.extract_strided_slice %179 {offsets = [0, 0, 0], sizes = [5, 8, 128], strides = [1, 1, 1]} : vector<6x16x128xf32> to vector<5x8x128xf32>
    %181 = vector.extract_strided_slice %179 {offsets = [0, 8, 0], sizes = [5, 8, 128], strides = [1, 1, 1]} : vector<6x16x128xf32> to vector<5x8x128xf32>
    %182 = vector.extract_strided_slice %179 {offsets = [1, 0, 0], sizes = [5, 8, 128], strides = [1, 1, 1]} : vector<6x16x128xf32> to vector<5x8x128xf32>
    %183 = tpu.concatenate %180, %181, %182 in 2 : vector<5x8x128xf32>, vector<5x8x128xf32>, vector<5x8x128xf32> -> vector<5x8x384xf32>
    %184 = vector.shape_cast %183 : vector<5x8x384xf32> to vector<40x384xf32>
    %c2_84 = arith.constant 2 : index
    %c0_85 = arith.constant 0 : index
    %c0_86 = arith.constant 0 : index
    %185 = vector.load %arg3[%c2_84, %c0_85, %c0_86] : memref<4x384x128xf32, #tpu.memory_space<vmem>>, vector<1x384x128xf32>
    %186 = vector.shape_cast %185 : vector<1x384x128xf32> to vector<384x128xf32>
    %cst_87 = arith.constant dense<0.000000e+00> : vector<40x128xf32>
    %187 = tpu.matmul %184, %186, %cst_87 {dimension_numbers = #tpu.dot_dimension_numbers<[1], [0], [0], [1], [0, 0, 1, 1], [], []>} : vector<40x384xf32>, vector<384x128xf32>, vector<40x128xf32> -> vector<40x128xf32>
    %c3 = arith.constant 3 : index
    %c0_88 = arith.constant 0 : index
    %c0_89 = arith.constant 0 : index
    %188 = vector.load %arg4[%c3, %c0_88, %c0_89] : memref<5x3x128xf32, #tpu.memory_space<vmem>>, vector<1x3x128xf32>
    %189 = vector.shape_cast %188 : vector<1x3x128xf32> to vector<3x128xf32>
    %190 = vector.extract_strided_slice %189 {offsets = [0, 0], sizes = [1, 128], strides = [1, 1]} : vector<3x128xf32> to vector<1x128xf32>
    %191 = vector.broadcast %190 : vector<1x128xf32> to vector<40x128xf32>
    %192 = arith.addf %187, %191 : vector<40x128xf32>
    %193 = vector.extract_strided_slice %192 {offsets = [0, 0], sizes = [40, 64], strides = [1, 1]} : vector<40x128xf32> to vector<40x64xf32>
    %194 = vector.extract_strided_slice %192 {offsets = [0, 64], sizes = [40, 64], strides = [1, 1]} : vector<40x128xf32> to vector<40x64xf32>
    %195 = arith.negf %194 : vector<40x64xf32>
    %196 = math.exp %195 : vector<40x64xf32>
    %cst_90 = arith.constant 1.000000e+00 : f32
    %197 = vector.broadcast %cst_90 : f32 to vector<40x64xf32>
    %198 = arith.addf %197, %196 : vector<40x64xf32>
    %199 = arith.divf %197, %198 : vector<40x64xf32>
    %200 = arith.mulf %193, %199 : vector<40x64xf32>
    %cst_91 = arith.constant dense<0.000000e+00> : vector<64xf32>
    %201 = vector.multi_reduction <add>, %200, %cst_91 [0] : vector<40x64xf32> to vector<64xf32>
    %202 = vector.shape_cast %201 : vector<64xf32> to vector<1x64xf32>
    %203 = arith.mulf %200, %200 : vector<40x64xf32>
    %cst_92 = arith.constant dense<0.000000e+00> : vector<64xf32>
    %204 = vector.multi_reduction <add>, %203, %cst_92 [0] : vector<40x64xf32> to vector<64xf32>
    %205 = vector.shape_cast %204 : vector<64xf32> to vector<1x64xf32>
    %cst_93 = arith.constant 2.500000e-02 : f32
    %206 = vector.broadcast %cst_93 : f32 to vector<1x64xf32>
    %207 = arith.mulf %202, %206 : vector<1x64xf32>
    %cst_94 = arith.constant 2.500000e-02 : f32
    %208 = vector.broadcast %cst_94 : f32 to vector<1x64xf32>
    %209 = arith.mulf %205, %208 : vector<1x64xf32>
    %210 = arith.mulf %207, %207 : vector<1x64xf32>
    %211 = arith.subf %209, %210 : vector<1x64xf32>
    %212 = vector.broadcast %207 : vector<1x64xf32> to vector<40x64xf32>
    %213 = arith.subf %200, %212 : vector<40x64xf32>
    %cst_95 = arith.constant 9.99999974E-6 : f32
    %214 = vector.broadcast %cst_95 : f32 to vector<1x64xf32>
    %215 = arith.addf %211, %214 : vector<1x64xf32>
    %216 = math.rsqrt %215 : vector<1x64xf32>
    %217 = vector.broadcast %216 : vector<1x64xf32> to vector<40x64xf32>
    %218 = arith.mulf %213, %217 : vector<40x64xf32>
    %219 = vector.extract_strided_slice %189 {offsets = [1, 0], sizes = [1, 64], strides = [1, 1]} : vector<3x128xf32> to vector<1x64xf32>
    %220 = vector.broadcast %219 : vector<1x64xf32> to vector<40x64xf32>
    %221 = arith.mulf %218, %220 : vector<40x64xf32>
    %222 = vector.extract_strided_slice %189 {offsets = [1, 64], sizes = [1, 64], strides = [1, 1]} : vector<3x128xf32> to vector<1x64xf32>
    %223 = vector.broadcast %222 : vector<1x64xf32> to vector<40x64xf32>
    %224 = arith.addf %221, %223 : vector<40x64xf32>
    %225 = vector.extract_strided_slice %189 {offsets = [2, 0], sizes = [1, 64], strides = [1, 1]} : vector<3x128xf32> to vector<1x64xf32>
    %cst_96 = arith.constant 0.000000e+00 : f32
    %226 = vector.broadcast %cst_96 : f32 to vector<40x64xf32>
    %227 = arith.cmpf oge, %224, %226 : vector<40x64xf32>
    %228 = vector.broadcast %225 : vector<1x64xf32> to vector<40x64xf32>
    %229 = arith.mulf %228, %224 : vector<40x64xf32>
    %230 = arith.select %227, %224, %229 : vector<40x64xi1>, vector<40x64xf32>
    %231 = vector.shape_cast %230 : vector<40x64xf32> to vector<5x8x64xf32>
    %c0_97 = arith.constant 0 : index
    %c84 = arith.constant 84 : index
    %c0_98 = arith.constant 0 : index
    %c0_99 = arith.constant 0 : index
    %232 = vector.load %arg5[%c0_97, %c84, %c0_98, %c0_99] : memref<1x91x8x64xf32, #tpu.memory_space<vmem>>, vector<1x5x8x64xf32>
    %233 = vector.shape_cast %232 : vector<1x5x8x64xf32> to vector<5x8x64xf32>
    %234 = vector.shape_cast %231 : vector<5x8x64xf32> to vector<1x5x8x64xf32>
    tpu.vector_store %arg5[%c0_97, %c84, %c0_98, %c0_99], %234 {strides = array<i32>} : memref<1x91x8x64xf32, #tpu.memory_space<vmem>>, vector<1x5x8x64xf32>,
    %c0_100 = arith.constant 0 : index
    %c0_101 = arith.constant 0 : index
    %c64_102 = arith.constant 64 : index
    %235 = vector.load %arg7[%c0_100, %c0_101, %c64_102] : memref<50x8x128xf32, #tpu.memory_space<vmem>>, vector<5x8x64xf32>
    tpu.vector_store %arg7[%c0_100, %c0_101, %c64_102], %231 {strides = array<i32>} : memref<50x8x128xf32, #tpu.memory_space<vmem>>, vector<5x8x64xf32>,
    %236 = vector.extract_strided_slice %231 {offsets = [0, 0, 0], sizes = [5, 7, 64], strides = [1, 1, 1]} : vector<5x8x64xf32> to vector<5x7x64xf32>
    %c0_103 = arith.constant 0 : index
    %c1_104 = arith.constant 1 : index
    %c0_105 = arith.constant 0 : index
    %237 = vector.load %arg7[%c0_103, %c1_104, %c0_105] : memref<50x8x128xf32, #tpu.memory_space<vmem>>, vector<5x7x64xf32>
    tpu.vector_store %arg7[%c0_103, %c1_104, %c0_105], %236 {strides = array<i32>} : memref<50x8x128xf32, #tpu.memory_space<vmem>>, vector<5x7x64xf32>,
    %c0_106 = arith.constant 0 : index
    %c0_107 = arith.constant 0 : index
    %c0_108 = arith.constant 0 : index
    %238 = vector.load %arg7[%c0_106, %c0_107, %c0_108] : memref<50x8x128xf32, #tpu.memory_space<vmem>>, vector<6x8x128xf32>
    %239 = vector.shape_cast %238 : vector<6x8x128xf32> to vector<3x16x128xf32>
    %240 = vector.extract_strided_slice %239 {offsets = [0, 0, 0], sizes = [2, 8, 128], strides = [1, 1, 1]} : vector<3x16x128xf32> to vector<2x8x128xf32>
    %241 = vector.extract_strided_slice %239 {offsets = [0, 8, 0], sizes = [2, 8, 128], strides = [1, 1, 1]} : vector<3x16x128xf32> to vector<2x8x128xf32>
    %242 = vector.extract_strided_slice %239 {offsets = [1, 0, 0], sizes = [2, 8, 128], strides = [1, 1, 1]} : vector<3x16x128xf32> to vector<2x8x128xf32>
    %243 = tpu.concatenate %240, %241, %242 in 2 : vector<2x8x128xf32>, vector<2x8x128xf32>, vector<2x8x128xf32> -> vector<2x8x384xf32>
    %244 = vector.shape_cast %243 : vector<2x8x384xf32> to vector<16x384xf32>
    %c3_109 = arith.constant 3 : index
    %c0_110 = arith.constant 0 : index
    %c0_111 = arith.constant 0 : index
    %245 = vector.load %arg3[%c3_109, %c0_110, %c0_111] : memref<4x384x128xf32, #tpu.memory_space<vmem>>, vector<1x384x128xf32>
    %246 = vector.shape_cast %245 : vector<1x384x128xf32> to vector<384x128xf32>
    %cst_112 = arith.constant dense<0.000000e+00> : vector<16x128xf32>
    %247 = tpu.matmul %244, %246, %cst_112 {dimension_numbers = #tpu.dot_dimension_numbers<[1], [0], [0], [1], [0, 0, 1, 1], [], []>} : vector<16x384xf32>, vector<384x128xf32>, vector<16x128xf32> -> vector<16x128xf32>
    %c4 = arith.constant 4 : index
    %c0_113 = arith.constant 0 : index
    %c0_114 = arith.constant 0 : index
    %248 = vector.load %arg4[%c4, %c0_113, %c0_114] : memref<5x3x128xf32, #tpu.memory_space<vmem>>, vector<1x3x128xf32>
    %249 = vector.shape_cast %248 : vector<1x3x128xf32> to vector<3x128xf32>
    %250 = vector.extract_strided_slice %249 {offsets = [0, 0], sizes = [1, 128], strides = [1, 1]} : vector<3x128xf32> to vector<1x128xf32>
    %251 = vector.broadcast %250 : vector<1x128xf32> to vector<16x128xf32>
    %252 = arith.addf %247, %251 : vector<16x128xf32>
    %253 = vector.extract_strided_slice %252 {offsets = [0, 0], sizes = [16, 64], strides = [1, 1]} : vector<16x128xf32> to vector<16x64xf32>
    %254 = vector.extract_strided_slice %252 {offsets = [0, 64], sizes = [16, 64], strides = [1, 1]} : vector<16x128xf32> to vector<16x64xf32>
    %255 = arith.negf %254 : vector<16x64xf32>
    %256 = math.exp %255 : vector<16x64xf32>
    %cst_115 = arith.constant 1.000000e+00 : f32
    %257 = vector.broadcast %cst_115 : f32 to vector<16x64xf32>
    %258 = arith.addf %257, %256 : vector<16x64xf32>
    %259 = arith.divf %257, %258 : vector<16x64xf32>
    %260 = arith.mulf %253, %259 : vector<16x64xf32>
    %cst_116 = arith.constant dense<0.000000e+00> : vector<64xf32>
    %261 = vector.multi_reduction <add>, %260, %cst_116 [0] : vector<16x64xf32> to vector<64xf32>
    %262 = vector.shape_cast %261 : vector<64xf32> to vector<1x64xf32>
    %263 = arith.mulf %260, %260 : vector<16x64xf32>
    %cst_117 = arith.constant dense<0.000000e+00> : vector<64xf32>
    %264 = vector.multi_reduction <add>, %263, %cst_117 [0] : vector<16x64xf32> to vector<64xf32>
    %265 = vector.shape_cast %264 : vector<64xf32> to vector<1x64xf32>
    %cst_118 = arith.constant 6.250000e-02 : f32
    %266 = vector.broadcast %cst_118 : f32 to vector<1x64xf32>
    %267 = arith.mulf %262, %266 : vector<1x64xf32>
    %cst_119 = arith.constant 6.250000e-02 : f32
    %268 = vector.broadcast %cst_119 : f32 to vector<1x64xf32>
    %269 = arith.mulf %265, %268 : vector<1x64xf32>
    %270 = arith.mulf %267, %267 : vector<1x64xf32>
    %271 = arith.subf %269, %270 : vector<1x64xf32>
    %272 = vector.broadcast %267 : vector<1x64xf32> to vector<16x64xf32>
    %273 = arith.subf %260, %272 : vector<16x64xf32>
    %cst_120 = arith.constant 9.99999974E-6 : f32
    %274 = vector.broadcast %cst_120 : f32 to vector<1x64xf32>
    %275 = arith.addf %271, %274 : vector<1x64xf32>
    %276 = math.rsqrt %275 : vector<1x64xf32>
    %277 = vector.broadcast %276 : vector<1x64xf32> to vector<16x64xf32>
    %278 = arith.mulf %273, %277 : vector<16x64xf32>
    %279 = vector.extract_strided_slice %249 {offsets = [1, 0], sizes = [1, 64], strides = [1, 1]} : vector<3x128xf32> to vector<1x64xf32>
    %280 = vector.broadcast %279 : vector<1x64xf32> to vector<16x64xf32>
    %281 = arith.mulf %278, %280 : vector<16x64xf32>
    %282 = vector.extract_strided_slice %249 {offsets = [1, 64], sizes = [1, 64], strides = [1, 1]} : vector<3x128xf32> to vector<1x64xf32>
    %283 = vector.broadcast %282 : vector<1x64xf32> to vector<16x64xf32>
    %284 = arith.addf %281, %283 : vector<16x64xf32>
    %285 = vector.extract_strided_slice %249 {offsets = [2, 0], sizes = [1, 64], strides = [1, 1]} : vector<3x128xf32> to vector<1x64xf32>
    %cst_121 = arith.constant 0.000000e+00 : f32
    %286 = vector.broadcast %cst_121 : f32 to vector<16x64xf32>
    %287 = arith.cmpf oge, %284, %286 : vector<16x64xf32>
    %288 = vector.broadcast %285 : vector<1x64xf32> to vector<16x64xf32>
    %289 = arith.mulf %288, %284 : vector<16x64xf32>
    %290 = arith.select %287, %284, %289 : vector<16x64xi1>, vector<16x64xf32>
    %291 = vector.shape_cast %290 : vector<16x64xf32> to vector<2x8x64xf32>
    %c0_122 = arith.constant 0 : index
    %c89 = arith.constant 89 : index
    %c0_123 = arith.constant 0 : index
    %c0_124 = arith.constant 0 : index
    %292 = vector.load %arg5[%c0_122, %c89, %c0_123, %c0_124] : memref<1x91x8x64xf32, #tpu.memory_space<vmem>>, vector<1x2x8x64xf32>
    %293 = vector.shape_cast %292 : vector<1x2x8x64xf32> to vector<2x8x64xf32>
    %294 = vector.shape_cast %291 : vector<2x8x64xf32> to vector<1x2x8x64xf32>
    tpu.vector_store %arg5[%c0_122, %c89, %c0_123, %c0_124], %294 {strides = array<i32>} : memref<1x91x8x64xf32, #tpu.memory_space<vmem>>, vector<1x2x8x64xf32>,
    return
  }
  func.func @transform_0(%arg0: i32) -> (i32, i32, i32) {
    %c0_i32 = arith.constant 0 : i32
    %c0_i32_0 = arith.constant 0 : i32
    %c0_i32_1 = arith.constant 0 : i32
    return %arg0, %c0_i32, %c0_i32_0 : i32, i32, i32
  }
  func.func @transform_1(%arg0: i32) -> (i32, i32) {
    %c0_i32 = arith.constant 0 : i32
    %c0_i32_0 = arith.constant 0 : i32
    %c0_i32_1 = arith.constant 0 : i32
    return %c0_i32, %c0_i32_0 : i32, i32
  }
  func.func @transform_2(%arg0: i32) -> (i32, i32, i32) {
    %c0_i32 = arith.constant 0 : i32
    %c0_i32_0 = arith.constant 0 : i32
    %c0_i32_1 = arith.constant 0 : i32
    %c0_i32_2 = arith.constant 0 : i32
    return %c0_i32, %c0_i32_0, %c0_i32_1 : i32, i32, i32
  }
  func.func @transform_3(%arg0: i32) -> (i32, i32, i32) {
    %c0_i32 = arith.constant 0 : i32
    %c0_i32_0 = arith.constant 0 : i32
    %c0_i32_1 = arith.constant 0 : i32
    %c0_i32_2 = arith.constant 0 : i32
    return %c0_i32, %c0_i32_0, %c0_i32_1 : i32, i32, i32
  }
  func.func @transform_4(%arg0: i32) -> (i32, i32, i32, i32) {
    %c0_i32 = arith.constant 0 : i32
    %c0_i32_0 = arith.constant 0 : i32
    %c0_i32_1 = arith.constant 0 : i32
    %c0_i32_2 = arith.constant 0 : i32
    return %arg0, %c0_i32, %c0_i32_0, %c0_i32_1 : i32, i32, i32, i32
  }
}

</mosaic_0001>

<bundles_post_ra>
// kernel: encoder_forward.1
= control target key start
LH: loop header
LB: loop body
LE: loop exit
PB: predicated region body
PF: predicated region fallthrough
CT: control target
= control target key end

     0   :  { %s6275_s15 = smov 0   ;;  %s10262_s0 = inlined_call_operand.vmem [shape: f32[2,392,128], index: 0, kind: input, shape index: {}]   ;;  %s10263_s1 = inlined_call_operand.vmem [shape: f32[128,128], index: 1, kind: input, shape index: {}]   ;;  %s10264_s2 = inlined_call_operand.vmem [shape: f32[4,384,128], index: 2, kind: input, shape index: {}]   ;;  %s10265_s3 = inlined_call_operand.vmem [shape: f32[5,3,128], index: 3, kind: input, shape index: {}]   ;;  %s10266_s4 = inlined_call_operand.vmem [shape: f32[2,91,8,64], index: 4, kind: output, shape index: {}]  }
   0x1 LB: > { %s4845_s16 = sadd.s32 4294967295, %s6245_s15   ;;  %p4849_p0 = scmp.ge.s32.totalorder %s6245_s15, 1  ;;  %s6245_s15 = sphi %s6275_s15, %s14_s15  }
   0x2   : > { %p162_p1 = scmp.lt.s32.totalorder %s6245_s15, 3 }
   0x4   : > { %p163_p2 = pnand %p4849_p0, %p162_p1 }
   0x6   : > { %166 = sbr.rel (%p163_p2) target bundleno = 2926 (0xb6e), region = 36 }
   0xb   : > { %v6286_v0 = vld [vmem:[%s10263_s1 + $0x78] sm:$0xff]  ;;  %v10267_v1 = vmov 0.0   ;;  %v361_v2 = vld [vmem:[%s10263_s1 + $0x70] sm:$0xff]  ;;  %vm6248_vm0 = vmmov 0   ;;  %v360_v3 = vld [vmem:[%s10263_s1 + $0x68] sm:$0xff]  ;;  %p188_p3 = scmp.lt.s32.totalorder %s4845_s16, 1  ;;  %v364_v63 = vlaneseq }
   0xc   : > { %5456 = vmatprep.subr.mxu0 %v10267_v1  ;;  %198 = vst [vmem:[#allocation2] sm:$0x1] %v10267_v1  ;;  %199 = vst [vmem:[#allocation2 + $0x8] sm:$0x1] %v10267_v1  ;;  %5488 = vmatprep.mubr.msk.f32.mxu0 %vm6248_vm0, %v10267_v1  ;;  %v359_v4 = vld [vmem:[%s10263_s1 + $0x60] sm:$0xff]  ;;  %v358_v5 = vld [vmem:[%s10263_s1 + $0x58] sm:$0xff] }
   0xd   : > { %200 = vst [vmem:[#allocation2 + $0x10] sm:$0x1] %v10267_v1  ;;  %201 = vst [vmem:[#allocation2 + $0x18] sm:$0x1] %v10267_v1  ;;  %5457 = vmatpush3.msra.mxu0 %v6286_v0  ;;  %2282 = vmatprep.subr.mxu1 %v10267_v1  ;;  %v357_v6 = vld [vmem:[%s10263_s1 + $0x50] sm:$0xff]  ;;  %v356_v7 = vld [vmem:[%s10263_s1 + $0x48] sm:$0xff] }
   0xe   : > { %202 = vst [vmem:[#allocation2 + $0x20] sm:$0x1] %v10267_v1  ;;  %203 = vst [vmem:[#allocation2 + $0x28] sm:$0x1] %v10267_v1  ;;  %5458 = vmatprep.subr.mxu0 %v10267_v1  ;;  %v355_v8 = vld [vmem:[%s10263_s1 + $0x40] sm:$0xff]  ;;  %v354_v9 = vld [vmem:[%s10263_s1 + $0x38] sm:$0xff] }
   0xf   : > { %204 = vst [vmem:[#allocation2 + $0x30] sm:$0x1] %v10267_v1  ;;  %205 = vst [vmem:[#allocation2 + $0x38] sm:$0x1] %v10267_v1  ;;  %5459 = vmatpush3.msra.mxu0 %v361_v2  ;;  %v353_v10 = vld [vmem:[%s10263_s1 + $0x30] sm:$0xff]  ;;  %v352_v11 = vld [vmem:[%s10263_s1 + $0x28] sm:$0xff] }
  0x10   : > { %206 = vst [vmem:[#allocation2 + $0x40] sm:$0x1] %v10267_v1  ;;  %207 = vst [vmem:[#allocation2 + $0x48] sm:$0x1] %v10267_v1  ;;  %5460 = vmatprep.subr.mxu0 %v10267_v1  ;;  %s10333_s16 = smov (!%p188_p3, %s4845_s16), 1  ;;  %v351_v12 = vld [vmem:[%s10263_s1 + $0x20] sm:$0xff] }
  0x11   : > { %208 = vst [vmem:[#allocation2 + $0x50] sm:$0x1] %v10267_v1  ;;  %209 = vst [vmem:[#allocation2 + $0x58] sm:$0x1] %v10267_v1  ;;  %5461 = vmatpush3.msra.mxu0 %v360_v3  ;;  %v350_v13 = vld [vmem:[%s10263_s1 + $0x18] sm:$0xff]  ;;  %s5850_s19 = smul.u32 392, %s10333_s16 }
  0x12   : > { %210 = vst [vmem:[#allocation2 + $0x60] sm:$0x1] %v10267_v1  ;;  %211 = vst [vmem:[#allocation2 + $0x68] sm:$0x1] %v10267_v1  ;;  %5462 = vmatprep.subr.mxu0 %v10267_v1  ;;  %v349_v14 = vld [vmem:[%s10263_s1 + $0x10] sm:$0xff]  ;;  %v348_v15 = vld [vmem:[%s10263_s1 + $0x8] sm:$0xff] }
  0x13   : > { %212 = vst [vmem:[#allocation2 + $0x70] sm:$0x1] %v10267_v1  ;;  %213 = vst [vmem:[#allocation2 + $0x78] sm:$0x1] %v10267_v1  ;;  %5463 = vmatpush3.msra.mxu0 %v359_v4  ;;  %s6430_s26 = scalar_lea.vmem %s10262_s0, %s5850_s19  ;;  %v347_v16 = vld [vmem:[%s10263_s1] sm:$0xff]  ;;  %v6577_v2 = vshrl.u32 %v364_v63, 7 }
  0x14   : > { %214 = vst [vmem:[#allocation2 + $0x80] sm:$0x1] %v10267_v1  ;;  %215 = vst [vmem:[#allocation2 + $0x88] sm:$0x1] %v10267_v1  ;;  %5464 = vmatprep.subr.mxu0 %v10267_v1  ;;  %v298_v17 = vld [vmem:[%s6430_s26] sm:$0xff]  ;;  %v299_v18 = vld [vmem:[%s6430_s26 + $0x8] sm:$0xff] }
  0x15   : > { %216 = vst [vmem:[#allocation2 + $0x90] sm:$0x1] %v10267_v1  ;;  %217 = vst [vmem:[#allocation2 + $0x98] sm:$0x1] %v10267_v1  ;;  %5465 = vmatpush3.msra.mxu0 %v358_v5  ;;  %v300_v19 = vld [vmem:[%s6430_s26 + $0x10] sm:$0xff]  ;;  %v301_v20 = vld [vmem:[%s6430_s26 + $0x18] sm:$0xff] }
  0x16   : > { %218 = vst [vmem:[#allocation2 + $0xa0] sm:$0x1] %v10267_v1  ;;  %219 = vst [vmem:[#allocation2 + $0xa8] sm:$0x1] %v10267_v1  ;;  %5466 = vmatprep.subr.mxu0 %v10267_v1  ;;  %v302_v21 = vld [vmem:[%s6430_s26 + $0x20] sm:$0xff]  ;;  %v303_v22 = vld [vmem:[%s6430_s26 + $0x28] sm:$0xff] }
  0x17   : > { %220 = vst [vmem:[#allocation2 + $0xb0] sm:$0x1] %v10267_v1  ;;  %221 = vst [vmem:[#allocation2 + $0xb8] sm:$0x1] %v10267_v1  ;;  %5467 = vmatpush3.msra.mxu0 %v357_v6  ;;  %v304_v23 = vld [vmem:[%s6430_s26 + $0x30] sm:$0xff]  ;;  %v305_v24 = vld [vmem:[%s6430_s26 + $0x38] sm:$0xff] }
  0x18   : > { %222 = vst [vmem:[#allocation2 + $0xc0] sm:$0x1] %v10267_v1  ;;  %223 = vst [vmem:[#allocation2 + $0xc8] sm:$0x1] %v10267_v1  ;;  %5468 = vmatprep.subr.mxu0 %v10267_v1  ;;  %v306_v25 = vld [vmem:[%s6430_s26 + $0x40] sm:$0xff]  ;;  %v307_v26 = vld [vmem:[%s6430_s26 + $0x48] sm:$0xff] }
  0x19   : > { %224 = vst [vmem:[#allocation2 + $0xd0] sm:$0x1] %v10267_v1  ;;  %225 = vst [vmem:[#allocation2 + $0xd8] sm:$0x1] %v10267_v1  ;;  %5469 = vmatpush3.msra.mxu0 %v356_v7  ;;  %v308_v27 = vld [vmem:[%s6430_s26 + $0x50] sm:$0xff]  ;;  %v309_v28 = vld [vmem:[%s6430_s26 + $0x58] sm:$0xff] }
  0x1a   : > { %226 = vst [vmem:[#allocation2 + $0xe0] sm:$0x1] %v10267_v1  ;;  %227 = vst [vmem:[#allocation2 + $0xe8] sm:$0x1] %v10267_v1  ;;  %5470 = vmatprep.subr.mxu0 %v10267_v1  ;;  %v310_v29 = vld [vmem:[%s6430_s26 + $0x60] sm:$0xff]  ;;  %v311_v30 = vld [vmem:[%s6430_s26 + $0x68] sm:$0xff] }
  0x1b   : > { %228 = vst [vmem:[#allocation2 + $0xf0] sm:$0x1] %v10267_v1  ;;  %229 = vst [vmem:[#allocation2 + $0xf8] sm:$0x1] %v10267_v1  ;;  %5471 = vmatpush3.msra.mxu0 %v355_v8  ;;  %v312_v31 = vld [vmem:[%s6430_s26 + $0x70] sm:$0xff]  ;;  %v313_v32 = vld [vmem:[%s6430_s26 + $0x78] sm:$0xff] }
  0x1c   : > { %230 = vst [vmem:[#allocation2 + $0x100] sm:$0x1] %v10267_v1  ;;  %231 = vst [vmem:[#allocation2 + $0x108] sm:$0x1] %v10267_v1  ;;  %5472 = vmatprep.subr.mxu0 %v10267_v1  ;;  %v314_v33 = vld [vmem:[%s6430_s26 + $0x80] sm:$0xff]  ;;  %v315_v34 = vld [vmem:[%s6430_s26 + $0x88] sm:$0xff] }
  0x1d   : > { %232 = vst [vmem:[#allocation2 + $0x110] sm:$0x1] %v10267_v1  ;;  %233 = vst [vmem:[#allocation2 + $0x118] sm:$0x1] %v10267_v1  ;;  %5473 = vmatpush3.msra.mxu0 %v354_v9  ;;  %v316_v35 = vld [vmem:[%s6430_s26 + $0x90] sm:$0xff]  ;;  %v317_v36 = vld [vmem:[%s6430_s26 + $0x98] sm:$0xff] }
  0x1e   : > { %234 = vst [vmem:[#allocation2 + $0x120] sm:$0x1] %v10267_v1  ;;  %235 = vst [vmem:[#allocation2 + $0x128] sm:$0x1] %v10267_v1  ;;  %5474 = vmatprep.subr.mxu0 %v10267_v1  ;;  %v318_v37 = vld [vmem:[%s6430_s26 + $0xa0] sm:$0xff]  ;;  %v319_v38 = vld [vmem:[%s6430_s26 + $0xa8] sm:$0xff] }
  0x1f   : > { %236 = vst [vmem:[#allocation2 + $0x130] sm:$0x1] %v10267_v1  ;;  %237 = vst [vmem:[#allocation2 + $0x138] sm:$0x1] %v10267_v1  ;;  %5475 = vmatpush3.msra.mxu0 %v353_v10  ;;  %v320_v39 = vld [vmem:[%s6430_s26 + $0xb0] sm:$0xff]  ;;  %v321_v40 = vld [vmem:[%s6430_s26 + $0xb8] sm:$0xff] }
  0x20   : > { %238 = vst [vmem:[#allocation2 + $0x140] sm:$0x1] %v10267_v1  ;;  %239 = vst [vmem:[#allocation2 + $0x148] sm:$0x1] %v10267_v1  ;;  %5476 = vmatprep.subr.mxu0 %v10267_v1  ;;  %v322_v41 = vld [vmem:[%s6430_s26 + $0xc0] sm:$0xff]  ;;  %v323_v42 = vld [vmem:[%s6430_s26 + $0xc8] sm:$0xff] }
  0x21   : > { %240 = vst [vmem:[#allocation2 + $0x150] sm:$0x1] %v10267_v1  ;;  %241 = vst [vmem:[#allocation2 + $0x158] sm:$0x1] %v10267_v1  ;;  %5477 = vmatpush3.msra.mxu0 %v352_v11  ;;  %v324_v43 = vld [vmem:[%s6430_s26 + $0xd0] sm:$0xff]  ;;  %v325_v44 = vld [vmem:[%s6430_s26 + $0xd8] sm:$0xff] }
  0x22   : > { %242 = vst [vmem:[#allocation2 + $0x160] sm:$0x1] %v10267_v1  ;;  %243 = vst [vmem:[#allocation2 + $0x168] sm:$0x1] %v10267_v1  ;;  %5478 = vmatprep.subr.mxu0 %v10267_v1  ;;  %v326_v45 = vld [vmem:[%s6430_s26 + $0xe0] sm:$0xff]  ;;  %v327_v46 = vld [vmem:[%s6430_s26 + $0xe8] sm:$0xff] }
  0x23   : > { %244 = vst [vmem:[#allocation2 + $0x170] sm:$0x1] %v10267_v1  ;;  %245 = vst [vmem:[#allocation2 + $0x178] sm:$0x1] %v10267_v1  ;;  %5479 = vmatpush3.msra.mxu0 %v351_v12  ;;  %v328_v47 = vld [vmem:[%s6430_s26 + $0xf0] sm:$0xff]  ;;  %v329_v48 = vld [vmem:[%s6430_s26 + $0xf8] sm:$0xff] }
  0x24   : > { %246 = vst [vmem:[#allocation2 + $0x180] sm:$0x1] %v10267_v1  ;;  %248 = vst [vmem:[#allocation3] sm:$0x1] %v10267_v1  ;;  %5480 = vmatprep.subr.mxu0 %v10267_v1  ;;  %v330_v49 = vld [vmem:[%s6430_s26 + $0x100] sm:$0xff]  ;;  %v331_v50 = vld [vmem:[%s6430_s26 + $0x108] sm:$0xff] }
  0x25   : > { %249 = vst [vmem:[#allocation3 + $0x8] sm:$0x1] %v10267_v1  ;;  %250 = vst [vmem:[#allocation3 + $0x10] sm:$0x1] %v10267_v1  ;;  %5481 = vmatpush3.msra.mxu0 %v350_v13  ;;  %v332_v51 = vld [vmem:[%s6430_s26 + $0x110] sm:$0xff]  ;;  %v333_v52 = vld [vmem:[%s6430_s26 + $0x118] sm:$0xff] }
  0x26   : > { %251 = vst [vmem:[#allocation3 + $0x18] sm:$0x1] %v10267_v1  ;;  %252 = vst [vmem:[#allocation3 + $0x20] sm:$0x1] %v10267_v1  ;;  %5482 = vmatprep.subr.mxu0 %v10267_v1  ;;  %v334_v53 = vld [vmem:[%s6430_s26 + $0x120] sm:$0xff]  ;;  %v335_v54 = vld [vmem:[%s6430_s26 + $0x128] sm:$0xff] }
  0x27   : > { %253 = vst [vmem:[#allocation3 + $0x28] sm:$0x1] %v10267_v1  ;;  %254 = vst [vmem:[#allocation3 + $0x30] sm:$0x1] %v10267_v1  ;;  %5483 = vmatpush3.msra.mxu0 %v349_v14  ;;  %v336_v55 = vld [vmem:[%s6430_s26 + $0x130] sm:$0xff]  ;;  %v337_v56 = vld [vmem:[%s6430_s26 + $0x138] sm:$0xff] }
  0x28   : > { %255 = vst [vmem:[#allocation3 + $0x38] sm:$0x1] %v10267_v1  ;;  %256 = vst [vmem:[#allocation3 + $0x40] sm:$0x1] %v10267_v1  ;;  %5484 = vmatprep.subr.mxu0 %v10267_v1  ;;  %v338_v57 = vld [vmem:[%s6430_s26 + $0x140] sm:$0xff]  ;;  %v339_v58 = vld [vmem:[%s6430_s26 + $0x148] sm:$0xff] }
  0x29   : > { %257 = vst [vmem:[#allocation3 + $0x48] sm:$0x1] %v10267_v1  ;;  %258 = vst [vmem:[#allocation3 + $0x50] sm:$0x1] %v10267_v1  ;;  %5485 = vmatpush3.msra.mxu0 %v348_v15  ;;  %v340_v59 = vld [vmem:[%s6430_s26 + $0x150] sm:$0xff]  ;;  %v341_v60 = vld [vmem:[%s6430_s26 + $0x158] sm:$0xff] }
  0x2a   : > { %259 = vst [vmem:[#allocation3 + $0x58] sm:$0x1] %v10267_v1  ;;  %260 = vst [vmem:[#allocation3 + $0x60] sm:$0x1] %v10267_v1  ;;  %5486 = vmatprep.subr.mxu0 %v10267_v1  ;;  %v342_v61 = vld [vmem:[%s6430_s26 + $0x160] sm:$0xff]  ;;  %v343_v62 = vld [vmem:[%s6430_s26 + $0x168] sm:$0xff] }
  0x2b   : > { %261 = vst [vmem:[#allocation3 + $0x68] sm:$0x1] %v10267_v1  ;;  %262 = vst [vmem:[#allocation3 + $0x70] sm:$0x1] %v10267_v1  ;;  %5487 = vmatpush3.msra.mxu0 %v347_v16  ;;  %v344_v0 = vld [vmem:[%s6430_s26 + $0x170] sm:$0xff]  ;;  %v345_v3 = vld [vmem:[%s6430_s26 + $0x178] sm:$0xff] }
  0x2c   : > { %263 = vst [vmem:[#allocation3 + $0x78] sm:$0x1] %v10267_v1  ;;  %264 = vst [vmem:[#allocation3 + $0x80] sm:$0x1] %v10267_v1  ;;  %5489 = vmatmul.mubr.f32.vlgmr.msra.gmra.mxu0 %v298_v17  ;;  %5703 = vmatprep.subr.mxu0 %v10267_v1  ;;  %v6583_v4 = vsub.s32 0, %v6577_v2  ;;  %v346_v7 = vld [vmem:[%s6430_s26 + $0x180] sm:$0xff] }
  0x2d   : > { %265 = vst [vmem:[#allocation3 + $0x88] sm:$0x1] %v10267_v1  ;;  %266 = vst [vmem:[#allocation3 + $0x90] sm:$0x1] %v10267_v1  ;;  %5491 = vmatprep.mubr.msk.f32.mxu0 %vm6248_vm0, %v10267_v1  ;;  %v6588_v5 = vld [vmem:[%s10265_s3] sm:$0x7] }
  0x2e   : > { %267 = vst [vmem:[#allocation3 + $0x98] sm:$0x1] %v10267_v1  ;;  %268 = vst [vmem:[#allocation3 + $0xa0] sm:$0x1] %v10267_v1  ;;  %v6594_v6 = vrot.slane %v6588_v5, %v6583_v4  ;;  %s6249_s5 = smov 64   ;;  %vm1217_vm1 = vcmask 523264  }
  0x2f   : > { %269 = vst [vmem:[#allocation3 + $0xa8] sm:$0x1] %v10267_v1  ;;  %270 = vst [vmem:[#allocation3 + $0xb0] sm:$0x1] %v10267_v1  ;;  %s5851_s26 = smul.u32 728, %s10333_s16 }
  0x30   : > { %5492 = vmatmul.mubr.f32.gmra.mxu0 %v299_v18  ;;  %10288 = vst [vmem:[#allocation4_spill] sm:$0xff] %v6577_v2  ;;  %10289 = vst [vmem:[#allocation5_spill] sm:$0xff] %v6583_v4 }
  0x31   : > { %5494 = vmatprep.mubr.msk.f32.mxu0 %vm6248_vm0, %v10267_v1  ;;  %s7732_s7 = scalar_lea.vmem %s10266_s4, %s5851_s26 }
  0x34   : > { %5495 = vmatmul.mubr.f32.gmra.mxu0 %v300_v19 }
  0x35   : > { %5497 = vmatprep.mubr.msk.f32.mxu0 %vm6248_vm0, %v10267_v1 }
  0x38   : > { %5498 = vmatmul.mubr.f32.gmra.mxu0 %v301_v20 }
  0x39   : > { %5500 = vmatprep.mubr.msk.f32.mxu0 %vm6248_vm0, %v10267_v1 }
  0x3c   : > { %5501 = vmatmul.mubr.f32.gmra.mxu0 %v302_v21 }
  0x3d   : > { %5503 = vmatprep.mubr.msk.f32.mxu0 %vm6248_vm0, %v10267_v1 }
  0x40   : > { %5504 = vmatmul.mubr.f32.gmra.mxu0 %v303_v22 }
  0x41   : > { %5506 = vmatprep.mubr.msk.f32.mxu0 %vm6248_vm0, %v10267_v1 }
  0x44   : > { %5507 = vmatmul.mubr.f32.gmra.mxu0 %v304_v23 }
  0x45   : > { %5509 = vmatprep.mubr.msk.f32.mxu0 %vm6248_vm0, %v10267_v1 }
  0x48   : > { %5510 = vmatmul.mubr.f32.gmra.mxu0 %v305_v24 }
  0x49   : > { %5512 = vmatprep.mubr.msk.f32.mxu0 %vm6248_vm0, %v10267_v1 }
  0x4c   : > { %5513 = vmatmul.mubr.f32.gmra.mxu0 %v306_v25 }
  0x4d   : > { %5515 = vmatprep.mubr.msk.f32.mxu0 %vm6248_vm0, %v10267_v1 }
  0x50   : > { %5516 = vmatmul.mubr.f32.gmra.mxu0 %v307_v26 }
  0x51   : > { %5518 = vmatprep.mubr.msk.f32.mxu0 %vm6248_vm0, %v10267_v1 }
  0x54   : > { %5519 = vmatmul.mubr.f32.gmra.mxu0 %v308_v27 }
  0x55   : > { %5521 = vmatprep.mubr.msk.f32.mxu0 %vm6248_vm0, %v10267_v1 }
  0x58   : > { %5522 = vmatmul.mubr.f32.gmra.mxu0 %v309_v28 }
  0x59   : > { %5524 = vmatprep.mubr.msk.f32.mxu0 %vm6248_vm0, %v10267_v1 }
  0x5c   : > { %5525 = vmatmul.mubr.f32.gmra.mxu0 %v310_v29 }
  0x5d   : > { %5527 = vmatprep.mubr.msk.f32.mxu0 %vm6248_vm0, %v10267_v1 }
  0x60   : > { %5528 = vmatmul.mubr.f32.gmra.mxu0 %v311_v30 }
  0x61   : > { %5530 = vmatprep.mubr.msk.f32.mxu0 %vm6248_vm0, %v10267_v1 }
  0x64   : > { %5531 = vmatmul.mubr.f32.gmra.mxu0 %v312_v31 }
  0x65   : > { %5533 = vmatprep.mubr.msk.f32.mxu0 %vm6248_vm0, %v10267_v1 }
  0x68   : > { %5534 = vmatmul.mubr.f32.gmra.mxu0 %v313_v32 }
  0x69   : > { %5536 = vmatprep.mubr.msk.f32.mxu0 %vm6248_vm0, %v10267_v1 }
  0x6c   : > { %5537 = vmatmul.mubr.f32.gmra.mxu0 %v314_v33 }
  0x6d   : > { %5539 = vmatprep.mubr.msk.f32.mxu0 %vm6248_vm0, %v10267_v1 }
  0x70   : > { %5540 = vmatmul.mubr.f32.gmra.mxu0 %v315_v34 }
  0x71   : > { %5542 = vmatprep.mubr.msk.f32.mxu0 %vm6248_vm0, %v10267_v1 }
  0x74   : > { %5543 = vmatmul.mubr.f32.gmra.mxu0 %v316_v35 }
  0x75   : > { %5545 = vmatprep.mubr.msk.f32.mxu0 %vm6248_vm0, %v10267_v1 }
  0x78   : > { %5546 = vmatmul.mubr.f32.gmra.mxu0 %v317_v36 }
  0x79   : > { %5548 = vmatprep.mubr.msk.f32.mxu0 %vm6248_vm0, %v10267_v1 }
  0x7c   : > { %5549 = vmatmul.mubr.f32.gmra.mxu0 %v318_v37 }
  0x7d   : > { %5551 = vmatprep.mubr.msk.f32.mxu0 %vm6248_vm0, %v10267_v1 }
  0x80   : > { %5552 = vmatmul.mubr.f32.gmra.mxu0 %v319_v38 }
  0x81   : > { %5554 = vmatprep.mubr.msk.f32.mxu0 %vm6248_vm0, %v10267_v1 }
  0x84   : > { %5555 = vmatmul.mubr.f32.gmra.mxu0 %v320_v39 }
  0x85   : > { %5557 = vmatprep.mubr.msk.f32.mxu0 %vm6248_vm0, %v10267_v1 }
  0x88   : > { %5558 = vmatmul.mubr.f32.gmra.mxu0 %v321_v40 }
  0x89   : > { %5560 = vmatprep.mubr.msk.f32.mxu0 %vm6248_vm0, %v10267_v1 }
  0x8c   : > { %5561 = vmatmul.mubr.f32.gmra.mxu0 %v322_v41 }
  0x8d   : > { %5563 = vmatprep.mubr.msk.f32.mxu0 %vm6248_vm0, %v10267_v1 }
  0x90   : > { %5564 = vmatmul.mubr.f32.gmra.mxu0 %v323_v42 }
  0x91   : > { %5566 = vmatprep.mubr.msk.f32.mxu0 %vm6248_vm0, %v10267_v1 }
  0x94   : > { %5567 = vmatmul.mubr.f32.gmra.mxu0 %v324_v43 }
  0x95   : > { %5569 = vmatprep.mubr.msk.f32.mxu0 %vm6248_vm0, %v10267_v1 }
  0x98   : > { %5570 = vmatmul.mubr.f32.gmra.mxu0 %v325_v44 }
  0x99   : > { %5572 = vmatprep.mubr.msk.f32.mxu0 %vm6248_vm0, %v10267_v1 }
  0x9c   : > { %5573 = vmatmul.mubr.f32.gmra.mxu0 %v326_v45 }
  0x9d   : > { %5575 = vmatprep.mubr.msk.f32.mxu0 %vm6248_vm0, %v10267_v1 }
  0xa0   : > { %5576 = vmatmul.mubr.f32.gmra.mxu0 %v327_v46 }
  0xa1   : > { %5578 = vmatprep.mubr.msk.f32.mxu0 %vm6248_vm0, %v10267_v1 }
  0xa4   : > { %5579 = vmatmul.mubr.f32.gmra.mxu0 %v328_v47 }
  0xa5   : > { %5581 = vmatprep.mubr.msk.f32.mxu0 %vm6248_vm0, %v10267_v1 }
  0xa8   : > { %5582 = vmatmul.mubr.f32.gmra.mxu0 %v329_v48 }
  0xa9   : > { %5584 = vmatprep.mubr.msk.f32.mxu0 %vm6248_vm0, %v10267_v1 }
  0xac   : > { %5585 = vmatmul.mubr.f32.gmra.mxu0 %v330_v49 }
  0xad   : > { %5587 = vmatprep.mubr.msk.f32.mxu0 %vm6248_vm0, %v10267_v1 }
  0xb0   : > { %5588 = vmatmul.mubr.f32.gmra.mxu0 %v331_v50 }
  0xb1   : > { %5590 = vmatprep.mubr.msk.f32.mxu0 %vm6248_vm0, %v10267_v1 }
  0xb4   : > { %5591 = vmatmul.mubr.f32.gmra.mxu0 %v332_v51 }
  0xb5   : > { %5593 = vmatprep.mubr.msk.f32.mxu0 %vm6248_vm0, %v10267_v1 }
  0xb8   : > { %5594 = vmatmul.mubr.f32.gmra.mxu0 %v333_v52 }
  0xb9   : > { %5596 = vmatprep.mubr.msk.f32.mxu0 %vm6248_vm0, %v10267_v1 }
  0xbc   : > { %5597 = vmatmul.mubr.f32.gmra.mxu0 %v334_v53 }
  0xbd   : > { %5599 = vmatprep.mubr.msk.f32.mxu0 %vm6248_vm0, %v10267_v1 }
  0xc0   : > { %5600 = vmatmul.mubr.f32.gmra.mxu0 %v335_v54 }
  0xc1   : > { %5602 = vmatprep.mubr.msk.f32.mxu0 %vm6248_vm0, %v10267_v1 }
  0xc4   : > { %5603 = vmatmul.mubr.f32.gmra.mxu0 %v336_v55 }
  0xc5   : > { %5605 = vmatprep.mubr.msk.f32.mxu0 %vm6248_vm0, %v10267_v1 }
  0xc8   : > { %5606 = vmatmul.mubr.f32.gmra.mxu0 %v337_v56 }
  0xc9   : > { %5608 = vmatprep.mubr.msk.f32.mxu0 %vm6248_vm0, %v10267_v1 }
  0xcc   : > { %5609 = vmatmul.mubr.f32.gmra.mxu0 %v338_v57 }
  0xcd   : > { %5611 = vmatprep.mubr.msk.f32.mxu0 %vm6248_vm0, %v10267_v1 }
  0xd0   : > { %5612 = vmatmul.mubr.f32.gmra.mxu0 %v339_v58 }
  0xd1   : > { %5614 = vmatprep.mubr.msk.f32.mxu0 %vm6248_vm0, %v10267_v1 }
  0xd4   : > { %5615 = vmatmul.mubr.f32.gmra.mxu0 %v340_v59 }
  0xd5   : > { %5617 = vmatprep.mubr.msk.f32.mxu0 %vm6248_vm0, %v10267_v1 }
  0xd8   : > { %5618 = vmatmul.mubr.f32.gmra.mxu0 %v341_v60 }
  0xd9   : > { %5620 = vmatprep.mubr.msk.f32.mxu0 %vm6248_vm0, %v10267_v1 }
  0xdc   : > { %5621 = vmatmul.mubr.f32.gmra.mxu0 %v342_v61 }
  0xdd   : > { %5623 = vmatprep.mubr.msk.f32.mxu0 %vm6248_vm0, %v10267_v1 }
  0xe0   : > { %5624 = vmatmul.mubr.f32.gmra.mxu0 %v343_v62 }
  0xe1   : > { %5626 = vmatprep.mubr.msk.f32.mxu0 %vm6248_vm0, %v10267_v1 }
  0xe4   : > { %5627 = vmatmul.mubr.f32.gmra.mxu0 %v344_v0 }
  0xe5   : > { %5629 = vmatprep.mubr.msk.f32.mxu0 %vm6248_vm0, %v10267_v1 }
  0xe8   : > { %5630 = vmatmul.mubr.f32.gmra.mxu0 %v345_v3 }
  0xe9   : > { %5632 = vmatprep.mubr.msk.f32.mxu0 %vm6248_vm0, %v10267_v1 }
  0xec   : > { %v434_v8 = vpop.f32.mrf.mxu0  ;;  %5633 = vmatmul.mubr.f32.gmra.mxu0 %v346_v7 }
  0xed   : > { %v6598_v9 = vadd.f32 %v434_v8, %v6594_v6  ;;  %5735 = vmatprep.mubr.msk.f32.mxu0 %vm6248_vm0, %v10267_v1 }
  0xee   : > { %v5490_v10 = vpop.f32.mrf.mxu0 }
  0xef   : > { %v4852_v11 = vmul.f32 -1.442695, %v6598_v9 }
  0xf0   : > { %v439_v12 = vpop.f32.mrf.mxu0 }
  0xf1   : > { %5863 = vpow2.f32 %v4852_v11  ;;  %v6604_v13 = vadd.f32 %v439_v12, %v6594_v6 }
  0xf2   : > { %v5493_v14 = vpop.f32.mrf.mxu0 }
  0xf3   : > { %v4853_v15 = vmul.f32 -1.442695, %v6604_v13 }
  0xf4   : > { %v444_v16 = vpop.f32.mrf.mxu0 }
  0xf5   : > { %5865 = vpow2.f32 %v4853_v15  ;;  %v6608_v17 = vadd.f32 %v444_v16, %v6594_v6 }
  0xf6   : > { %v5496_v18 = vpop.f32.mrf.mxu0 }
  0xf7   : > { %v4854_v19 = vmul.f32 -1.442695, %v6608_v17 }
  0xf8   : > { %v449_v20 = vpop.f32.mrf.mxu0 }
  0xf9   : > { %5867 = vpow2.f32 %v4854_v19  ;;  %v6612_v21 = vadd.f32 %v449_v20, %v6594_v6 }
  0xfa   : > { %v5499_v22 = vpop.f32.mrf.mxu0 }
  0xfb   : > { %v4855_v23 = vmul.f32 -1.442695, %v6612_v21 }
  0xfc   : > { %v454_v24 = vpop.f32.mrf.mxu0 }
  0xfd   : > { %5869 = vpow2.f32 %v4855_v23  ;;  %v6616_v25 = vadd.f32 %v454_v24, %v6594_v6 }
  0xfe   : > { %v5864_v26 = vpop.eup %5863  ;;  %v5502_v27 = vpop.f32.mrf.mxu0 }
  0xff   : > { %v825_v28 = vadd.f32 1.0, %v5864_v26  ;;  %v4856_v29 = vmul.f32 -1.442695, %v6616_v25 }
 0x100   : > { %v459_v30 = vpop.f32.mrf.mxu0 }
 0x101   : > { %5871 = vrcp.f32 %v825_v28  ;;  %v6620_v31 = vadd.f32 %v459_v30, %v6594_v6 }
 0x102   : > { %v5866_v32 = vpop.eup %5865  ;;  %5873 = vpow2.f32 %v4856_v29  ;;  %v5505_v33 = vpop.f32.mrf.mxu0 }
 0x103   : > { %v826_v34 = vadd.f32 1.0, %v5866_v32  ;;  %v4857_v35 = vmul.f32 -1.442695, %v6620_v31 }
 0x104   : > { %v464_v36 = vpop.f32.mrf.mxu0 }
 0x105   : > { %5875 = vrcp.f32 %v826_v34  ;;  %v6624_v37 = vadd.f32 %v464_v36, %v6594_v6 }
 0x106   : > { %v5868_v38 = vpop.eup %5867  ;;  %5877 = vpow2.f32 %v4857_v35  ;;  %v5508_v39 = vpop.f32.mrf.mxu0 }
 0x107   : > { %v827_v40 = vadd.f32 1.0, %v5868_v38  ;;  %v4858_v41 = vmul.f32 -1.442695, %v6624_v37 }
 0x108   : > { %v469_v42 = vpop.f32.mrf.mxu0 }
 0x109   : > { %5879 = vrcp.f32 %v827_v40  ;;  %v6628_v43 = vadd.f32 %v469_v42, %v6594_v6 }
 0x10a   : > { %v5870_v44 = vpop.eup %5869  ;;  %5881 = vpow2.f32 %v4858_v41  ;;  %v5511_v45 = vpop.f32.mrf.mxu0 }
 0x10b   : > { %v828_v46 = vadd.f32 1.0, %v5870_v44  ;;  %v4859_v47 = vmul.f32 -1.442695, %v6628_v43 }
 0x10c   : > { %v474_v48 = vpop.f32.mrf.mxu0 }
 0x10d   : > { %5883 = vrcp.f32 %v828_v46  ;;  %v6632_v49 = vadd.f32 %v474_v48, %v6594_v6 }
 0x10e   : > { %v5872_v50 = vpop.eup %5871  ;;  %5885 = vpow2.f32 %v4859_v47  ;;  %v5514_v51 = vpop.f32.mrf.mxu0 }
 0x10f   : > { %v5874_v52 = vpop.eup %5873  ;;  %v4860_v53 = vmul.f32 -1.442695, %v6632_v49  ;;  %1021 = vrot.lane.b32.xlu0 %v5872_v50, %s6249_s5 }
 0x110   : > { %v829_v54 = vadd.f32 1.0, %v5874_v52  ;;  %v479_v55 = vpop.f32.mrf.mxu0 }
 0x111   : > { %5887 = vpow2.f32 %v4860_v53  ;;  %v6637_v56 = vadd.f32 %v479_v55, %v6594_v6 }
 0x112   : > { %v5876_v57 = vpop.eup %5875  ;;  %5889 = vrcp.f32 %v829_v54  ;;  %v5517_v58 = vpop.f32.mrf.mxu0 }
 0x113   : > { %v5878_v59 = vpop.eup %5877  ;;  %v4861_v60 = vmul.f32 -1.442695, %v6637_v56  ;;  %1023 = vrot.lane.b32.xlu0 %v5876_v57, %s6249_s5 }
 0x114   : > { %v830_v61 = vadd.f32 1.0, %v5878_v59  ;;  %v484_v62 = vpop.f32.mrf.mxu0 }
 0x115   : > { %5891 = vpow2.f32 %v4861_v60  ;;  %v6642_v63 = vadd.f32 %v484_v62, %v6594_v6 }
 0x116   : > { %v5880_v0 = vpop.eup %5879  ;;  %5893 = vrcp.f32 %v830_v61  ;;  %v5520_v3 = vpop.f32.mrf.mxu0 }
 0x117   : > { %v5882_v7 = vpop.eup %5881  ;;  %v4862_v8 = vmul.f32 -1.442695, %v6642_v63  ;;  %1025 = vrot.lane.b32.xlu1 %v5880_v0, %s6249_s5 }
 0x118   : > { %v831_v10 = vadd.f32 1.0, %v5882_v7  ;;  %v489_v11 = vpop.f32.mrf.mxu0 }
 0x119   : > { %5895 = vpow2.f32 %v4862_v8  ;;  %v6647_v12 = vadd.f32 %v489_v11, %v6594_v6 }
 0x11a   : > { %v5884_v14 = vpop.eup %5883  ;;  %5897 = vrcp.f32 %v831_v10  ;;  %v5523_v15 = vpop.f32.mrf.mxu0 }
 0x11b   : > { %v5886_v16 = vpop.eup %5885  ;;  %v4863_v18 = vmul.f32 -1.442695, %v6647_v12  ;;  %1027 = vrot.lane.b32.xlu1 %v5884_v14, %s6249_s5 }
 0x11c   : > { %v832_v19 = vadd.f32 1.0, %v5886_v16  ;;  %v494_v20 = vpop.f32.mrf.mxu0 }
 0x11d   : > { %5899 = vpow2.f32 %v4863_v18  ;;  %v6652_v22 = vadd.f32 %v494_v20, %v6594_v6 }
 0x11e   : > { %v5888_v23 = vpop.eup %5887  ;;  %5901 = vrcp.f32 %v832_v19  ;;  %v5526_v24 = vpop.f32.mrf.mxu0 }
 0x11f   : > { %v5890_v26 = vpop.eup %5889  ;;  %v833_v27 = vadd.f32 1.0, %v5888_v23  ;;  %v4864_v28 = vmul.f32 -1.442695, %v6652_v22 }
 0x120   : > { %1029 = vrot.lane.b32.xlu0 %v5890_v26, %s6249_s5  ;;  %v499_v29 = vpop.f32.mrf.mxu0 }
 0x121   : > { %5903 = vrcp.f32 %v833_v27  ;;  %v6657_v30 = vadd.f32 %v499_v29, %v6594_v6 }
 0x122   : > { %v5892_v32 = vpop.eup %5891  ;;  %5905 = vpow2.f32 %v4864_v28  ;;  %v5529_v33 = vpop.f32.mrf.mxu0 }
 0x123   : > { %v5894_v34 = vpop.eup %5893  ;;  %v834_v35 = vadd.f32 1.0, %v5892_v32  ;;  %v4865_v36 = vmul.f32 -1.442695, %v6657_v30 }
 0x124   : > { %1031 = vrot.lane.b32.xlu1 %v5894_v34, %s6249_s5  ;;  %v504_v38 = vpop.f32.mrf.mxu0 }
 0x125   : > { %5907 = vrcp.f32 %v834_v35  ;;  %v6662_v39 = vadd.f32 %v504_v38, %v6594_v6 }
 0x126   : > { %v5896_v40 = vpop.eup %5895  ;;  %5909 = vpow2.f32 %v4865_v36  ;;  %v5532_v41 = vpop.f32.mrf.mxu0 }
 0x127   : > { %v5898_v42 = vpop.eup %5897  ;;  %v835_v44 = vadd.f32 1.0, %v5896_v40  ;;  %v4866_v45 = vmul.f32 -1.442695, %v6662_v39 }
 0x128   : > { %1033 = vrot.lane.b32.xlu0 %v5898_v42, %s6249_s5  ;;  %v509_v46 = vpop.f32.mrf.mxu0 }
 0x129   : > { %5911 = vrcp.f32 %v835_v44  ;;  %v6667_v47 = vadd.f32 %v509_v46, %v6594_v6 }
 0x12a   : > { %v5900_v48 = vpop.eup %5899  ;;  %5913 = vpow2.f32 %v4866_v45  ;;  %v5535_v50 = vpop.f32.mrf.mxu0 }
 0x12b   : > { %v5902_v51 = vpop.eup %5901  ;;  %v836_v52 = vadd.f32 1.0, %v5900_v48  ;;  %v4867_v53 = vmul.f32 -1.442695, %v6667_v47 }
 0x12c   : > { %1035 = vrot.lane.b32.xlu1 %v5902_v51, %s6249_s5  ;;  %v514_v54 = vpop.f32.mrf.mxu0 }
 0x12d   : > { %5915 = vrcp.f32 %v836_v52  ;;  %v6672_v55 = vadd.f32 %v514_v54, %v6594_v6 }
 0x12e   : > { %v5904_v57 = vpop.eup %5903  ;;  %5917 = vpow2.f32 %v4867_v53  ;;  %v5538_v58 = vpop.f32.mrf.mxu0 }
 0x12f   : > { %v5906_v59 = vpop.eup %5905  ;;  %v4868_v60 = vmul.f32 -1.442695, %v6672_v55  ;;  %1037 = vrot.lane.b32.xlu0 %v5904_v57, %s6249_s5 }
 0x130   : > { %v837_v61 = vadd.f32 1.0, %v5906_v59  ;;  %v519_v62 = vpop.f32.mrf.mxu0 }
 0x131   : > { %5919 = vpow2.f32 %v4868_v60  ;;  %v6677_v0 = vadd.f32 %v519_v62, %v6594_v6 }
 0x132   : > { %v5908_v3 = vpop.eup %5907  ;;  %5921 = vrcp.f32 %v837_v61  ;;  %v5541_v7 = vpop.f32.mrf.mxu0 }
 0x133   : > { %v5910_v8 = vpop.eup %5909  ;;  %v4869_v10 = vmul.f32 -1.442695, %v6677_v0  ;;  %1039 = vrot.lane.b32.xlu1 %v5908_v3, %s6249_s5 }
 0x134   : > { %v838_v11 = vadd.f32 1.0, %v5910_v8  ;;  %v524_v14 = vpop.f32.mrf.mxu0 }
 0x135   : > { %5923 = vpow2.f32 %v4869_v10  ;;  %v6682_v15 = vadd.f32 %v524_v14, %v6594_v6 }
 0x136   : > { %v5912_v16 = vpop.eup %5911  ;;  %5925 = vrcp.f32 %v838_v11  ;;  %v5544_v18 = vpop.f32.mrf.mxu0 }
 0x137   : > { %v5914_v19 = vpop.eup %5913  ;;  %v4870_v20 = vmul.f32 -1.442695, %v6682_v15  ;;  %1041 = vrot.lane.b32.xlu0 %v5912_v16, %s6249_s5 }
 0x138   : > { %v839_v23 = vadd.f32 1.0, %v5914_v19  ;;  %v529_v24 = vpop.f32.mrf.mxu0 }
 0x139   : > { %5927 = vpow2.f32 %v4870_v20  ;;  %v6687_v26 = vadd.f32 %v529_v24, %v6594_v6 }
 0x13a   : > { %v5916_v27 = vpop.eup %5915  ;;  %5929 = vrcp.f32 %v839_v23  ;;  %v5547_v28 = vpop.f32.mrf.mxu0 }
 0x13b   : > { %v5918_v29 = vpop.eup %5917  ;;  %v4871_v32 = vmul.f32 -1.442695, %v6687_v26  ;;  %1043 = vrot.lane.b32.xlu1 %v5916_v27, %s6249_s5 }
 0x13c   : > { %v840_v33 = vadd.f32 1.0, %v5918_v29  ;;  %v534_v34 = vpop.f32.mrf.mxu0 }
 0x13d   : > { %5931 = vpow2.f32 %v4871_v32  ;;  %v6692_v35 = vadd.f32 %v534_v34, %v6594_v6 }
 0x13e   : > { %v5920_v36 = vpop.eup %5919  ;;  %5933 = vrcp.f32 %v840_v33  ;;  %v5550_v38 = vpop.f32.mrf.mxu0 }
 0x13f   : > { %v5922_v40 = vpop.eup %5921  ;;  %v841_v41 = vadd.f32 1.0, %v5920_v36  ;;  %v4872_v42 = vmul.f32 -1.442695, %v6692_v35 }
 0x140   : > { %1045 = vrot.lane.b32.xlu0 %v5922_v40, %s6249_s5  ;;  %v539_v44 = vpop.f32.mrf.mxu0 }
 0x141   : > { %5935 = vrcp.f32 %v841_v41  ;;  %v6697_v45 = vadd.f32 %v539_v44, %v6594_v6 }
 0x142   : > { %v5924_v46 = vpop.eup %5923  ;;  %5937 = vpow2.f32 %v4872_v42  ;;  %v5553_v48 = vpop.f32.mrf.mxu0 }
 0x143   : > { %v5926_v50 = vpop.eup %5925  ;;  %v842_v51 = vadd.f32 1.0, %v5924_v46  ;;  %v4873_v52 = vmul.f32 -1.442695, %v6697_v45 }
 0x144   : > { %1047 = vrot.lane.b32.xlu1 %v5926_v50, %s6249_s5  ;;  %v544_v53 = vpop.f32.mrf.mxu0 }
 0x145   : > { %5939 = vrcp.f32 %v842_v51  ;;  %v6702_v54 = vadd.f32 %v544_v53, %v6594_v6 }
 0x146   : > { %v5928_v57 = vpop.eup %5927  ;;  %5941 = vpow2.f32 %v4873_v52  ;;  %v5556_v58 = vpop.f32.mrf.mxu0 }
 0x147   : > { %v5930_v59 = vpop.eup %5929  ;;  %v843_v60 = vadd.f32 1.0, %v5928_v57  ;;  %v4874_v61 = vmul.f32 -1.442695, %v6702_v54 }
 0x148   : > { %1049 = vrot.lane.b32.xlu0 %v5930_v59, %s6249_s5  ;;  %v549_v62 = vpop.f32.mrf.mxu0 }
 0x149   : > { %5943 = vrcp.f32 %v843_v60  ;;  %v6707_v3 = vadd.f32 %v549_v62, %v6594_v6 }
 0x14a   : > { %v5932_v7 = vpop.eup %5931  ;;  %5945 = vpow2.f32 %v4874_v61  ;;  %v5559_v8 = vpop.f32.mrf.mxu0 }
 0x14b   : > { %v5934_v10 = vpop.eup %5933  ;;  %v844_v11 = vadd.f32 1.0, %v5932_v7  ;;  %v4875_v14 = vmul.f32 -1.442695, %v6707_v3 }
 0x14c   : > { %1051 = vrot.lane.b32.xlu1 %v5934_v10, %s6249_s5  ;;  %v554_v16 = vpop.f32.mrf.mxu0 }
 0x14d   : > { %5947 = vrcp.f32 %v844_v11  ;;  %v6712_v18 = vadd.f32 %v554_v16, %v6594_v6 }
 0x14e   : > { %v5936_v19 = vpop.eup %5935  ;;  %5949 = vpow2.f32 %v4875_v14  ;;  %v5562_v20 = vpop.f32.mrf.mxu0 }
 0x14f   : > { %v5938_v23 = vpop.eup %5937  ;;  %v4876_v24 = vmul.f32 -1.442695, %v6712_v18  ;;  %1053 = vrot.lane.b32.xlu0 %v5936_v19, %s6249_s5 }
 0x150   : > { %v845_v27 = vadd.f32 1.0, %v5938_v23  ;;  %v559_v28 = vpop.f32.mrf.mxu0 }
 0x151   : > { %5951 = vpow2.f32 %v4876_v24  ;;  %v6717_v29 = vadd.f32 %v559_v28, %v6594_v6 }
 0x152   : > { %v5940_v32 = vpop.eup %5939  ;;  %5953 = vrcp.f32 %v845_v27  ;;  %v5565_v33 = vpop.f32.mrf.mxu0 }
 0x153   : > { %v5942_v34 = vpop.eup %5941  ;;  %v4877_v36 = vmul.f32 -1.442695, %v6717_v29  ;;  %1055 = vrot.lane.b32.xlu1 %v5940_v32, %s6249_s5 }
 0x154   : > { %v846_v38 = vadd.f32 1.0, %v5942_v34  ;;  %v564_v40 = vpop.f32.mrf.mxu0 }
 0x155   : > { %5955 = vpow2.f32 %v4877_v36  ;;  %v6722_v41 = vadd.f32 %v564_v40, %v6594_v6 }
 0x156   : > { %v5944_v42 = vpop.eup %5943  ;;  %5957 = vrcp.f32 %v846_v38  ;;  %v5568_v44 = vpop.f32.mrf.mxu0 }
 0x157   : > { %v5946_v46 = vpop.eup %5945  ;;  %v4878_v48 = vmul.f32 -1.442695, %v6722_v41  ;;  %1057 = vrot.lane.b32.xlu0 %v5944_v42, %s6249_s5 }
 0x158   : > { %v847_v50 = vadd.f32 1.0, %v5946_v46  ;;  %v569_v51 = vpop.f32.mrf.mxu0 }
 0x159   : > { %5959 = vpow2.f32 %v4878_v48  ;;  %v6727_v52 = vadd.f32 %v569_v51, %v6594_v6 }
 0x15a   : > { %v5948_v53 = vpop.eup %5947  ;;  %5961 = vrcp.f32 %v847_v50  ;;  %v5571_v57 = vpop.f32.mrf.mxu0 }
 0x15b   : > { %v5950_v58 = vpop.eup %5949  ;;  %v4879_v59 = vmul.f32 -1.442695, %v6727_v52  ;;  %1059 = vrot.lane.b32.xlu1 %v5948_v53, %s6249_s5 }
 0x15c   : > { %v848_v60 = vadd.f32 1.0, %v5950_v58  ;;  %v574_v61 = vpop.f32.mrf.mxu0 }
 0x15d   : > { %5963 = vpow2.f32 %v4879_v59  ;;  %v6732_v62 = vadd.f32 %v574_v61, %v6594_v6 }
 0x15e   : > { %v5952_v7 = vpop.eup %5951  ;;  %5965 = vrcp.f32 %v848_v60  ;;  %v5574_v8 = vpop.f32.mrf.mxu0 }
 0x15f   : > { %v5954_v10 = vpop.eup %5953  ;;  %v849_v11 = vadd.f32 1.0, %v5952_v7  ;;  %v4880_v14 = vmul.f32 -1.442695, %v6732_v62 }
 0x160   : > { %1061 = vrot.lane.b32.xlu0 %v5954_v10, %s6249_s5  ;;  %v579_v16 = vpop.f32.mrf.mxu0 }
 0x161   : > { %5967 = vrcp.f32 %v849_v11  ;;  %v6737_v19 = vadd.f32 %v579_v16, %v6594_v6 }
 0x162   : > { %v5956_v20 = vpop.eup %5955  ;;  %5969 = vpow2.f32 %v4880_v14  ;;  %v5577_v23 = vpop.f32.mrf.mxu0 }
 0x163   : > { %v5958_v24 = vpop.eup %5957  ;;  %v850_v27 = vadd.f32 1.0, %v5956_v20  ;;  %v4881_v28 = vmul.f32 -1.442695, %v6737_v19 }
 0x164   : > { %1063 = vrot.lane.b32.xlu1 %v5958_v24, %s6249_s5  ;;  %v584_v32 = vpop.f32.mrf.mxu0 }
 0x165   : > { %5971 = vrcp.f32 %v850_v27  ;;  %v6742_v33 = vadd.f32 %v584_v32, %v6594_v6 }
 0x166   : > { %v5960_v34 = vpop.eup %5959  ;;  %5973 = vpow2.f32 %v4881_v28  ;;  %v5580_v36 = vpop.f32.mrf.mxu0 }
 0x167   : > { %v5962_v38 = vpop.eup %5961  ;;  %v851_v40 = vadd.f32 1.0, %v5960_v34  ;;  %v4882_v42 = vmul.f32 -1.442695, %v6742_v33 }
 0x168   : > { %1065 = vrot.lane.b32.xlu0 %v5962_v38, %s6249_s5  ;;  %v589_v44 = vpop.f32.mrf.mxu0 }
 0x169   : > { %5975 = vrcp.f32 %v851_v40  ;;  %v6747_v46 = vadd.f32 %v589_v44, %v6594_v6 }
 0x16a   : > { %v5964_v48 = vpop.eup %5963  ;;  %5977 = vpow2.f32 %v4882_v42  ;;  %v5583_v50 = vpop.f32.mrf.mxu0 }
 0x16b   : > { %v5966_v51 = vpop.eup %5965  ;;  %v852_v53 = vadd.f32 1.0, %v5964_v48  ;;  %v4883_v57 = vmul.f32 -1.442695, %v6747_v46 }
 0x16c   : > { %1067 = vrot.lane.b32.xlu1 %v5966_v51, %s6249_s5  ;;  %v594_v58 = vpop.f32.mrf.mxu0 }
 0x16d   : > { %5979 = vrcp.f32 %v852_v53  ;;  %v6752_v59 = vadd.f32 %v594_v58, %v6594_v6 }
 0x16e   : > { %v5968_v60 = vpop.eup %5967  ;;  %5981 = vpow2.f32 %v4883_v57  ;;  %v5586_v61 = vpop.f32.mrf.mxu0 }
 0x16f   : > { %v5970_v7 = vpop.eup %5969  ;;  %v4884_v8 = vmul.f32 -1.442695, %v6752_v59  ;;  %1069 = vrot.lane.b32.xlu0 %v5968_v60, %s6249_s5 }
 0x170   : > { %v853_v10 = vadd.f32 1.0, %v5970_v7  ;;  %v599_v11 = vpop.f32.mrf.mxu0 }
 0x171   : > { %5983 = vpow2.f32 %v4884_v8  ;;  %v6757_v14 = vadd.f32 %v599_v11, %v6594_v6 }
 0x172   : > { %v5972_v16 = vpop.eup %5971  ;;  %5985 = vrcp.f32 %v853_v10  ;;  %v5589_v20 = vpop.f32.mrf.mxu0 }
 0x173   : > { %v5974_v23 = vpop.eup %5973  ;;  %v4885_v24 = vmul.f32 -1.442695, %v6757_v14  ;;  %1071 = vrot.lane.b32.xlu1 %v5972_v16, %s6249_s5 }
 0x174   : > { %v854_v27 = vadd.f32 1.0, %v5974_v23  ;;  %v604_v28 = vpop.f32.mrf.mxu0 }
 0x175   : > { %5987 = vpow2.f32 %v4885_v24  ;;  %v6762_v32 = vadd.f32 %v604_v28, %v6594_v6 }
 0x176   : > { %v5976_v34 = vpop.eup %5975  ;;  %5989 = vrcp.f32 %v854_v27  ;;  %v5592_v36 = vpop.f32.mrf.mxu0 }
 0x177   : > { %v5978_v38 = vpop.eup %5977  ;;  %v4886_v40 = vmul.f32 -1.442695, %v6762_v32  ;;  %1073 = vrot.lane.b32.xlu0 %v5976_v34, %s6249_s5 }
 0x178   : > { %v855_v42 = vadd.f32 1.0, %v5978_v38  ;;  %v609_v44 = vpop.f32.mrf.mxu0 }
 0x179   : > { %5991 = vpow2.f32 %v4886_v40  ;;  %v6767_v48 = vadd.f32 %v609_v44, %v6594_v6 }
 0x17a   : > { %v5980_v50 = vpop.eup %5979  ;;  %5993 = vrcp.f32 %v855_v42  ;;  %v5595_v51 = vpop.f32.mrf.mxu0 }
 0x17b   : > { %v5982_v53 = vpop.eup %5981  ;;  %v4887_v57 = vmul.f32 -1.442695, %v6767_v48  ;;  %1075 = vrot.lane.b32.xlu1 %v5980_v50, %s6249_s5 }
 0x17c   : > { %v856_v58 = vadd.f32 1.0, %v5982_v53  ;;  %v614_v60 = vpop.f32.mrf.mxu0 }
 0x17d   : > { %5995 = vpow2.f32 %v4887_v57  ;;  %v6772_v61 = vadd.f32 %v614_v60, %v6594_v6 }
 0x17e   : > { %v5984_v7 = vpop.eup %5983  ;;  %5997 = vrcp.f32 %v856_v58  ;;  %v5598_v8 = vpop.f32.mrf.mxu0 }
 0x17f   : > { %v5986_v10 = vpop.eup %5985  ;;  %v857_v11 = vadd.f32 1.0, %v5984_v7  ;;  %v4888_v16 = vmul.f32 -1.442695, %v6772_v61 }
 0x180   : > { %1077 = vrot.lane.b32.xlu0 %v5986_v10, %s6249_s5  ;;  %v619_v20 = vpop.f32.mrf.mxu0 }
 0x181   : > { %5999 = vrcp.f32 %v857_v11  ;;  %v6777_v23 = vadd.f32 %v619_v20, %v6594_v6 }
 0x182   : > { %v5988_v24 = vpop.eup %5987  ;;  %6001 = vpow2.f32 %v4888_v16  ;;  %v5601_v27 = vpop.f32.mrf.mxu0 }
 0x183   : > { %v5990_v28 = vpop.eup %5989  ;;  %v858_v34 = vadd.f32 1.0, %v5988_v24  ;;  %v4889_v36 = vmul.f32 -1.442695, %v6777_v23 }
 0x184   : > { %1079 = vrot.lane.b32.xlu1 %v5990_v28, %s6249_s5  ;;  %v624_v38 = vpop.f32.mrf.mxu0 }
 0x185   : > { %6003 = vrcp.f32 %v858_v34  ;;  %v6782_v40 = vadd.f32 %v624_v38, %v6594_v6 }
 0x186   : > { %v5992_v42 = vpop.eup %5991  ;;  %6005 = vpow2.f32 %v4889_v36  ;;  %v5604_v44 = vpop.f32.mrf.mxu0 }
 0x187   : > { %v5994_v50 = vpop.eup %5993  ;;  %v859_v51 = vadd.f32 1.0, %v5992_v42  ;;  %v4890_v53 = vmul.f32 -1.442695, %v6782_v40 }
 0x188   : > { %1081 = vrot.lane.b32.xlu0 %v5994_v50, %s6249_s5  ;;  %v629_v57 = vpop.f32.mrf.mxu0 }
 0x189   : > { %6007 = vrcp.f32 %v859_v51  ;;  %v6787_v58 = vadd.f32 %v629_v57, %v6594_v6 }
 0x18a   : > { %v5996_v60 = vpop.eup %5995  ;;  %6009 = vpow2.f32 %v4890_v53  ;;  %v5607_v7 = vpop.f32.mrf.mxu0 }
 0x18b   : > { %v5998_v8 = vpop.eup %5997  ;;  %v860_v10 = vadd.f32 1.0, %v5996_v60  ;;  %v4891_v11 = vmul.f32 -1.442695, %v6787_v58 }
 0x18c   : > { %1083 = vrot.lane.b32.xlu1 %v5998_v8, %s6249_s5  ;;  %v634_v16 = vpop.f32.mrf.mxu0 }
 0x18d   : > { %6011 = vrcp.f32 %v860_v10  ;;  %v6792_v20 = vadd.f32 %v634_v16, %v6594_v6 }
 0x18e   : > { %v6000_v24 = vpop.eup %5999  ;;  %6013 = vpow2.f32 %v4891_v11  ;;  %v5610_v27 = vpop.f32.mrf.mxu0 }
 0x18f   : > { %v6002_v28 = vpop.eup %6001  ;;  %v4892_v34 = vmul.f32 -1.442695, %v6792_v20  ;;  %1085 = vrot.lane.b32.xlu0 %v6000_v24, %s6249_s5 }
 0x190   : > { %v861_v36 = vadd.f32 1.0, %v6002_v28  ;;  %v639_v38 = vpop.f32.mrf.mxu0 }
 0x191   : > { %6015 = vpow2.f32 %v4892_v34  ;;  %v6797_v42 = vadd.f32 %v639_v38, %v6594_v6 }
 0x192   : > { %v6004_v44 = vpop.eup %6003  ;;  %6017 = vrcp.f32 %v861_v36  ;;  %v5613_v50 = vpop.f32.mrf.mxu0 }
 0x193   : > { %v6006_v51 = vpop.eup %6005  ;;  %v4893_v53 = vmul.f32 -1.442695, %v6797_v42  ;;  %1087 = vrot.lane.b32.xlu1 %v6004_v44, %s6249_s5 }
 0x194   : > { %v862_v57 = vadd.f32 1.0, %v6006_v51  ;;  %v644_v60 = vpop.f32.mrf.mxu0 }
 0x195   : > { %6019 = vpow2.f32 %v4893_v53  ;;  %v6802_v7 = vadd.f32 %v644_v60, %v6594_v6 }
 0x196   : > { %v6008_v8 = vpop.eup %6007  ;;  %6021 = vrcp.f32 %v862_v57  ;;  %v5616_v10 = vpop.f32.mrf.mxu0 }
 0x197   : > { %v6010_v11 = vpop.eup %6009  ;;  %v4894_v16 = vmul.f32 -1.442695, %v6802_v7  ;;  %1089 = vrot.lane.b32.xlu0 %v6008_v8, %s6249_s5 }
 0x198   : > { %v863_v24 = vadd.f32 1.0, %v6010_v11  ;;  %v649_v27 = vpop.f32.mrf.mxu0 }
 0x199   : > { %6023 = vpow2.f32 %v4894_v16  ;;  %v6807_v28 = vadd.f32 %v649_v27, %v6594_v6 }
 0x19a   : > { %v6012_v34 = vpop.eup %6011  ;;  %6025 = vrcp.f32 %v863_v24  ;;  %v5619_v36 = vpop.f32.mrf.mxu0 }
 0x19b   : > { %v6014_v38 = vpop.eup %6013  ;;  %v4895_v44 = vmul.f32 -1.442695, %v6807_v28  ;;  %1091 = vrot.lane.b32.xlu1 %v6012_v34, %s6249_s5 }
 0x19c   : > { %v864_v50 = vadd.f32 1.0, %v6014_v38  ;;  %v654_v51 = vpop.f32.mrf.mxu0 }
 0x19d   : > { %6027 = vpow2.f32 %v4895_v44  ;;  %v6812_v53 = vadd.f32 %v654_v51, %v6594_v6 }
 0x19e   : > { %v6016_v57 = vpop.eup %6015  ;;  %6029 = vrcp.f32 %v864_v50  ;;  %v5622_v60 = vpop.f32.mrf.mxu0 }
 0x19f   : > { %v6018_v8 = vpop.eup %6017  ;;  %v865_v10 = vadd.f32 1.0, %v6016_v57  ;;  %v4896_v11 = vmul.f32 -1.442695, %v6812_v53 }
 0x1a0   : > { %1093 = vrot.lane.b32.xlu0 %v6018_v8, %s6249_s5  ;;  %v659_v16 = vpop.f32.mrf.mxu0 }
 0x1a1   : > { %6031 = vrcp.f32 %v865_v10  ;;  %v6817_v24 = vadd.f32 %v659_v16, %v6594_v6 }
 0x1a2   : > { %v6020_v27 = vpop.eup %6019  ;;  %6033 = vpow2.f32 %v4896_v11  ;;  %v5625_v34 = vpop.f32.mrf.mxu0 }
 0x1a3   : > { %v6022_v36 = vpop.eup %6021  ;;  %v866_v38 = vadd.f32 1.0, %v6020_v27  ;;  %v4897_v44 = vmul.f32 -1.442695, %v6817_v24 }
 0x1a4   : > { %1095 = vrot.lane.b32.xlu1 %v6022_v36, %s6249_s5  ;;  %v664_v50 = vpop.f32.mrf.mxu0 }
 0x1a5   : > { %6035 = vrcp.f32 %v866_v38  ;;  %v6822_v51 = vadd.f32 %v664_v50, %v6594_v6 }
 0x1a6   : > { %v6024_v57 = vpop.eup %6023  ;;  %6037 = vpow2.f32 %v4897_v44  ;;  %v5628_v60 = vpop.f32.mrf.mxu0 }
 0x1a7   : > { %v6026_v8 = vpop.eup %6025  ;;  %v867_v10 = vadd.f32 1.0, %v6024_v57  ;;  %v4898_v16 = vmul.f32 -1.442695, %v6822_v51 }
 0x1a8   : > { %1097 = vrot.lane.b32.xlu0 %v6026_v8, %s6249_s5  ;;  %v669_v11 = vpop.f32.mrf.mxu0 }
 0x1a9   : > { %6039 = vrcp.f32 %v867_v10  ;;  %v6827_v27 = vadd.f32 %v669_v11, %v6594_v6 }
 0x1aa   : > { %v6028_v34 = vpop.eup %6027  ;;  %6041 = vpow2.f32 %v4898_v16  ;;  %v5631_v36 = vpop.f32.mrf.mxu0 }
 0x1ab   : > { %10290 = vst [vmem:[#allocation6_spill] sm:$0xff] %v6827_v27  ;;  %v6030_v38 = vpop.eup %6029  ;;  %v868_v50 = vadd.f32 1.0, %v6028_v34  ;;  %v4899_v1 = vmul.f32 -1.442695, %v6827_v27 }
 0x1ac   : > { %1099 = vrot.lane.b32.xlu1 %v6030_v38, %s6249_s5  ;;  %v674_v44 = vpop.f32.mrf.mxu0 }
 0x1ad   : > { %6043 = vrcp.f32 %v868_v50  ;;  %v6832_v57 = vadd.f32 %v674_v44, %v6594_v6 }
 0x1ae   : > { %v6032_v60 = vpop.eup %6031  ;;  %6045 = vpow2.f32 %v4899_v1  ;;  %v5634_v8 = vpop.f32.mrf.mxu0 }
 0x1af   : > { %10291 = vst [vmem:[#allocation7_spill] sm:$0xff] %v6832_v57  ;;  %v6034_v10 = vpop.eup %6033  ;;  %v4900_v11 = vmul.f32 -1.442695, %v6832_v57  ;;  %1101 = vrot.lane.b32.xlu0 %v6032_v60, %s6249_s5 }
 0x1b0   : > { %v869_v16 = vadd.f32 1.0, %v6034_v10 }
 0x1b1   : > { %6047 = vpow2.f32 %v4900_v11 }
 0x1b2   : > { %v6036_v34 = vpop.eup %6035  ;;  %6049 = vrcp.f32 %v869_v16 }
 0x1b3   : > { %v6038_v36 = vpop.eup %6037  ;;  %1103 = vrot.lane.b32.xlu1 %v6036_v34, %s6249_s5 }
 0x1b4   : > { %v870_v38 = vadd.f32 1.0, %v6038_v36 }
 0x1b6   : > { %v6040_v50 = vpop.eup %6039  ;;  %6051 = vrcp.f32 %v870_v38  ;;  %v6842_v38 = vsub.s32 1, %v6577_v2 }
 0x1b7   : > { %v6042_v6 = vpop.eup %6041  ;;  %1105 = vrot.lane.b32.xlu0 %v6040_v50, %s6249_s5 }
 0x1b8   : > { %v871_v1 = vadd.f32 1.0, %v6042_v6  ;;  %10292 = vst [vmem:[#allocation8_spill] sm:$0xff] %v6842_v38  ;;  %v6847_v6 = vrot.slane %v6588_v5, %v6842_v38 }
 0x1ba   : > { %v6044_v44 = vpop.eup %6043  ;;  %6053 = vrcp.f32 %v871_v1  ;;  %10293 = vst [vmem:[#allocation9_spill] sm:$0xff] %v6847_v6 }
 0x1bb   : > { %v6046_v8 = vpop.eup %6045  ;;  %1107 = vrot.lane.b32.xlu1 %v6044_v44, %s6249_s5  ;;  %v1022_v44 = vpop.permute.xlu0 %1021 }
 0x1bc   : > { %v872_v60 = vadd.f32 1.0, %v6046_v8  ;;  %v1026_v8 = vpop.permute.xlu1 %1025 }
 0x1bd   : > { %v6860_v5 = vmul.f32 %v1026_v8, %v6608_v17 }
 0x1be   : > { %v6048_v10 = vpop.eup %6047  ;;  %6055 = vrcp.f32 %v872_v60 }
 0x1bf   : > { %v6050_v11 = vpop.eup %6049  ;;  %v873_v16 = vadd.f32 1.0, %v6048_v10  ;;  %v1024_v60 = vpop.permute.xlu0 %1023  ;;  %10296 = vst [vmem:[#allocation12_spill] sm:$0xff] %v6860_v5 }
 0x1c0   : > { %1109 = vrot.lane.b32.xlu0 %v6050_v11, %s6249_s5  ;;  %v6854_v10 = vmul.f32 %v1024_v60, %v6604_v13  ;;  %v6857_v11 = vmul.f32 %v1022_v44, %v6598_v9  ;;  %v1323_v44 = vmul.f32 %v6860_v5, %v6860_v5 }
 0x1c1   : > { %6057 = vrcp.f32 %v873_v16  ;;  %v1028_v16 = vpop.permute.xlu1 %1027 }
 0x1c2   : > { %10294 = vst [vmem:[#allocation10_spill] sm:$0xff] %v6854_v10  ;;  %10295 = vst [vmem:[#allocation11_spill] sm:$0xff] %v6857_v11  ;;  %v1219_v9 = vsel %vm1217_vm1, %v6854_v10, 0.0  ;;  %v1218_v8 = vsel %vm1217_vm1, %v6857_v11, 0.0 }
 0x1c3   : > { %v6052_v34 = vpop.eup %6051 }
 0x1c4   : > { %1111 = vrot.lane.b32.xlu1 %v6052_v34, %s6249_s5  ;;  %v1030_v34 = vpop.permute.xlu0 %1029 }
 0x1c5   : > { %v1032_v13 = vpop.permute.xlu1 %1031  ;;  %v6874_v17 = vmul.f32 %v1030_v34, %v6616_v25  ;;  %v1373_v34 = vsel %vm1217_vm1, %v1323_v44, 0.0 }
 0x1c6   : > { %v6884_v4 = vmul.f32 %v1032_v13, %v6620_v31 }
 0x1c7   : > { %v6054_v36 = vpop.eup %6053 }
 0x1c8   : > { %1113 = vrot.lane.b32.xlu0 %v6054_v36, %s6249_s5  ;;  %v1322_v36 = vmul.f32 %v6854_v10, %v6854_v10  ;;  %v1034_v60 = vpop.permute.xlu0 %1033  ;;  %v1220_v10 = vadd.f32 %v1219_v9, %v1218_v8  ;;  %v1326_v13 = vmul.f32 %v6884_v4, %v6884_v4 }
 0x1c9   : > { %v1036_v25 = vpop.permute.xlu1 %1035 }
 0x1ca   : > { %v6901_v9 = vmul.f32 %v1036_v25, %v6628_v43  ;;  %v1379_v43 = vsel %vm1217_vm1, %v1326_v13, 0.0 }
 0x1cb   : > { %v6056_v50 = vpop.eup %6055 }
 0x1cc   : > { %1115 = vrot.lane.b32.xlu1 %v6056_v50, %s6249_s5  ;;  %v6865_v50 = vmul.f32 %v1028_v16, %v6612_v21  ;;  %v1371_v21 = vsel %vm1217_vm1, %v1322_v36, 0.0  ;;  %v1221_v16 = vsel %vm1217_vm1, %v6860_v5, 0.0  ;;  %v1325_v36 = vmul.f32 %v6874_v17, %v6874_v17  ;;  %v1038_v27 = vpop.permute.xlu0 %1037 }
 0x1cd   : > { %v6893_v5 = vmul.f32 %v1034_v60, %v6624_v37  ;;  %v1222_v57 = vadd.f32 %v1221_v16, %v1220_v10  ;;  %v6909_v10 = vmul.f32 %v1038_v27, %v6632_v49  ;;  %v1231_v27 = vsel %vm1217_vm1, %v6901_v9, 0.0 }
 0x1ce   : > { %v6058_v1 = vpop.eup %6057  ;;  %10297 = vst [vmem:[#allocation13_spill] sm:$0xff] %v6865_v50  ;;  %v1324_v38 = vmul.f32 %v6865_v50, %v6865_v50  ;;  %v1377_v37 = vsel %vm1217_vm1, %v1325_v36, 0.0 }
 0x1cf   : > { %1117 = vrot.lane.b32.xlu0 %v6058_v1, %s6249_s5  ;;  %v1321_v1 = vmul.f32 %v6857_v11, %v6857_v11  ;;  %v1223_v11 = vsel %vm1217_vm1, %v6865_v50, 0.0  ;;  %v1040_v50 = vpop.permute.xlu1 %1039 }
 0x1d0   : > { %1631 = vrot.lane.b32.xlu1 %v6847_v6, %s6249_s5  ;;  %v1375_v31 = vsel %vm1217_vm1, %v1324_v38, 0.0  ;;  %v1224_v8 = vadd.f32 %v1223_v11, %v1222_v57  ;;  %v1327_v38 = vmul.f32 %v6893_v5, %v6893_v5  ;;  %v1042_v16 = vpop.permute.xlu0 %1041  ;;  %v1328_v57 = vmul.f32 %v6901_v9, %v6901_v9 }
 0x1d1   : > { %v1370_v6 = vsel %vm1217_vm1, %v1321_v1, 0.0  ;;  %v1225_v1 = vsel %vm1217_vm1, %v6874_v17, 0.0  ;;  %v6917_v11 = vmul.f32 %v1040_v50, %v6637_v56  ;;  %v1233_v50 = vsel %vm1217_vm1, %v6909_v10, 0.0 }
 0x1d2   : > { %v1372_v2 = vadd.f32 %v1371_v21, %v1370_v6  ;;  %v1227_v6 = vsel %vm1217_vm1, %v6884_v4, 0.0  ;;  %v1226_v21 = vadd.f32 %v1225_v1, %v1224_v8  ;;  %v1381_v49 = vsel %vm1217_vm1, %v1327_v38, 0.0 }
 0x1d3   : > { %v1044_v36 = vpop.permute.xlu1 %1043  ;;  %v6925_v1 = vmul.f32 %v1042_v16, %v6642_v63  ;;  %v1383_v56 = vsel %vm1217_vm1, %v1328_v57, 0.0  ;;  %v1235_v16 = vsel %vm1217_vm1, %v6917_v11, 0.0 }
 0x1d4   : > { %v1374_v44 = vadd.f32 %v1373_v34, %v1372_v2  ;;  %v1229_v2 = vsel %vm1217_vm1, %v6893_v5, 0.0  ;;  %v1228_v34 = vadd.f32 %v1227_v6, %v1226_v21  ;;  %v1046_v8 = vpop.permute.xlu0 %1045  ;;  %v6933_v6 = vmul.f32 %v1044_v36, %v6647_v12 }
 0x1d5   : > { %v1237_v36 = vsel %vm1217_vm1, %v6925_v1, 0.0 }
 0x1d6   : > { %v1376_v60 = vadd.f32 %v1375_v31, %v1374_v44  ;;  %v1329_v31 = vmul.f32 %v6909_v10, %v6909_v10  ;;  %v1230_v44 = vadd.f32 %v1229_v2, %v1228_v34  ;;  %v6941_v2 = vmul.f32 %v1046_v8, %v6652_v22 }
 0x1d7   : > { %v1048_v21 = vpop.permute.xlu1 %1047  ;;  %v1239_v8 = vsel %vm1217_vm1, %v6933_v6, 0.0 }
 0x1d8   : > { %v1378_v25 = vadd.f32 %v1377_v37, %v1376_v60  ;;  %v1330_v37 = vmul.f32 %v6917_v11, %v6917_v11  ;;  %v1232_v60 = vadd.f32 %v1231_v27, %v1230_v44  ;;  %v1385_v63 = vsel %vm1217_vm1, %v1329_v31, 0.0  ;;  %v1050_v34 = vpop.permute.xlu0 %1049 }
 0x1d9   : > { %v6949_v27 = vmul.f32 %v1048_v21, %v6657_v30  ;;  %v1241_v21 = vsel %vm1217_vm1, %v6941_v2, 0.0 }
 0x1da   : > { %v1380_v13 = vadd.f32 %v1379_v43, %v1378_v25  ;;  %v1331_v43 = vmul.f32 %v6925_v1, %v6925_v1  ;;  %v1234_v25 = vadd.f32 %v1233_v50, %v1232_v60  ;;  %v1387_v12 = vsel %vm1217_vm1, %v1330_v37, 0.0 }
 0x1db   : > { %v1052_v44 = vpop.permute.xlu1 %1051  ;;  %v6957_v50 = vmul.f32 %v1050_v34, %v6662_v39  ;;  %v1243_v34 = vsel %vm1217_vm1, %v6949_v27, 0.0 }
 0x1dc   : > { %v1382_v38 = vadd.f32 %v1381_v49, %v1380_v13  ;;  %v1332_v49 = vmul.f32 %v6933_v6, %v6933_v6  ;;  %v1236_v13 = vadd.f32 %v1235_v16, %v1234_v25  ;;  %v1389_v22 = vsel %vm1217_vm1, %v1331_v43, 0.0  ;;  %v1054_v60 = vpop.permute.xlu0 %1053 }
 0x1dd   : > { %v6965_v16 = vmul.f32 %v1052_v44, %v6667_v47  ;;  %v1245_v44 = vsel %vm1217_vm1, %v6957_v50, 0.0 }
 0x1de   : > { %v1384_v57 = vadd.f32 %v1383_v56, %v1382_v38  ;;  %v1333_v56 = vmul.f32 %v6941_v2, %v6941_v2  ;;  %v1238_v38 = vadd.f32 %v1237_v36, %v1236_v13  ;;  %v1391_v30 = vsel %vm1217_vm1, %v1332_v49, 0.0 }
 0x1df   : > { %v1056_v25 = vpop.permute.xlu1 %1055  ;;  %v6973_v36 = vmul.f32 %v1054_v60, %v6672_v55  ;;  %v1247_v60 = vsel %vm1217_vm1, %v6965_v16, 0.0 }
 0x1e0   : > { %v1386_v31 = vadd.f32 %v1385_v63, %v1384_v57  ;;  %v1334_v63 = vmul.f32 %v6949_v27, %v6949_v27  ;;  %v1240_v57 = vadd.f32 %v1239_v8, %v1238_v38  ;;  %v1393_v39 = vsel %vm1217_vm1, %v1333_v56, 0.0  ;;  %v1058_v13 = vpop.permute.xlu0 %1057 }
 0x1e1   : > { %v6981_v8 = vmul.f32 %v1056_v25, %v6677_v0  ;;  %v1249_v25 = vsel %vm1217_vm1, %v6973_v36, 0.0 }
 0x1e2   : > { %v1388_v37 = vadd.f32 %v1387_v12, %v1386_v31  ;;  %v1335_v12 = vmul.f32 %v6957_v50, %v6957_v50  ;;  %v1242_v31 = vadd.f32 %v1241_v21, %v1240_v57  ;;  %v1395_v47 = vsel %vm1217_vm1, %v1334_v63, 0.0 }
 0x1e3   : > { %v1060_v38 = vpop.permute.xlu1 %1059  ;;  %v6989_v21 = vmul.f32 %v1058_v13, %v6682_v15  ;;  %v1251_v13 = vsel %vm1217_vm1, %v6981_v8, 0.0 }
 0x1e4   : > { %v1390_v43 = vadd.f32 %v1389_v22, %v1388_v37  ;;  %v1336_v22 = vmul.f32 %v6965_v16, %v6965_v16  ;;  %v1244_v37 = vadd.f32 %v1243_v34, %v1242_v31  ;;  %v1397_v55 = vsel %vm1217_vm1, %v1335_v12, 0.0  ;;  %v1062_v57 = vpop.permute.xlu0 %1061 }
 0x1e5   : > { %v6997_v34 = vmul.f32 %v1060_v38, %v6687_v26  ;;  %v1253_v38 = vsel %vm1217_vm1, %v6989_v21, 0.0 }
 0x1e6   : > { %v1392_v49 = vadd.f32 %v1391_v30, %v1390_v43  ;;  %v1337_v30 = vmul.f32 %v6973_v36, %v6973_v36  ;;  %v1246_v43 = vadd.f32 %v1245_v44, %v1244_v37  ;;  %v1399_v0 = vsel %vm1217_vm1, %v1336_v22, 0.0 }
 0x1e7   : > { %v1064_v31 = vpop.permute.xlu1 %1063  ;;  %v7005_v44 = vmul.f32 %v1062_v57, %v6692_v35  ;;  %v1255_v57 = vsel %vm1217_vm1, %v6997_v34, 0.0 }
 0x1e8   : > { %v1394_v56 = vadd.f32 %v1393_v39, %v1392_v49  ;;  %v1338_v39 = vmul.f32 %v6981_v8, %v6981_v8  ;;  %v1248_v49 = vadd.f32 %v1247_v60, %v1246_v43  ;;  %v1401_v15 = vsel %vm1217_vm1, %v1337_v30, 0.0  ;;  %v1066_v37 = vpop.permute.xlu0 %1065 }
 0x1e9   : > { %v7013_v60 = vmul.f32 %v1064_v31, %v6697_v45  ;;  %v1257_v31 = vsel %vm1217_vm1, %v7005_v44, 0.0 }
 0x1ea   : > { %v1396_v63 = vadd.f32 %v1395_v47, %v1394_v56  ;;  %v1339_v47 = vmul.f32 %v6989_v21, %v6989_v21  ;;  %v1250_v56 = vadd.f32 %v1249_v25, %v1248_v49  ;;  %v1403_v26 = vsel %vm1217_vm1, %v1338_v39, 0.0 }
 0x1eb   : > { %v1068_v43 = vpop.permute.xlu1 %1067  ;;  %v7021_v25 = vmul.f32 %v1066_v37, %v6702_v54  ;;  %v1259_v37 = vsel %vm1217_vm1, %v7013_v60, 0.0 }
 0x1ec   : > { %v1398_v12 = vadd.f32 %v1397_v55, %v1396_v63  ;;  %v1340_v55 = vmul.f32 %v6997_v34, %v6997_v34  ;;  %v1252_v63 = vadd.f32 %v1251_v13, %v1250_v56  ;;  %v1405_v35 = vsel %vm1217_vm1, %v1339_v47, 0.0  ;;  %v1070_v49 = vpop.permute.xlu0 %1069 }
 0x1ed   : > { %v7029_v13 = vmul.f32 %v1068_v43, %v6707_v3  ;;  %v1261_v43 = vsel %vm1217_vm1, %v7021_v25, 0.0 }
 0x1ee   : > { %v1400_v22 = vadd.f32 %v1399_v0, %v1398_v12  ;;  %v1341_v0 = vmul.f32 %v7005_v44, %v7005_v44  ;;  %v1254_v12 = vadd.f32 %v1253_v38, %v1252_v63  ;;  %v1407_v45 = vsel %vm1217_vm1, %v1340_v55, 0.0 }
 0x1ef   : > { %v1072_v56 = vpop.permute.xlu1 %1071  ;;  %v7037_v38 = vmul.f32 %v1070_v49, %v6712_v18  ;;  %v1263_v49 = vsel %vm1217_vm1, %v7029_v13, 0.0 }
 0x1f0   : > { %v1402_v30 = vadd.f32 %v1401_v15, %v1400_v22  ;;  %v1342_v15 = vmul.f32 %v7013_v60, %v7013_v60  ;;  %v1256_v22 = vadd.f32 %v1255_v57, %v1254_v12  ;;  %v1409_v54 = vsel %vm1217_vm1, %v1341_v0, 0.0  ;;  %v1074_v63 = vpop.permute.xlu0 %1073 }
 0x1f1   : > { %v7045_v57 = vmul.f32 %v1072_v56, %v6717_v29  ;;  %v1265_v56 = vsel %vm1217_vm1, %v7037_v38, 0.0 }
 0x1f2   : > { %v1404_v39 = vadd.f32 %v1403_v26, %v1402_v30  ;;  %v1343_v26 = vmul.f32 %v7021_v25, %v7021_v25  ;;  %v1258_v30 = vadd.f32 %v1257_v31, %v1256_v22  ;;  %v1411_v3 = vsel %vm1217_vm1, %v1342_v15, 0.0 }
 0x1f3   : > { %v1076_v12 = vpop.permute.xlu1 %1075  ;;  %v7053_v31 = vmul.f32 %v1074_v63, %v6722_v41  ;;  %v1267_v63 = vsel %vm1217_vm1, %v7045_v57, 0.0 }
 0x1f4   : > { %v1406_v47 = vadd.f32 %v1405_v35, %v1404_v39  ;;  %v1344_v35 = vmul.f32 %v7029_v13, %v7029_v13  ;;  %v1260_v39 = vadd.f32 %v1259_v37, %v1258_v30  ;;  %v1413_v18 = vsel %vm1217_vm1, %v1343_v26, 0.0  ;;  %v1078_v22 = vpop.permute.xlu0 %1077 }
 0x1f5   : > { %v7061_v37 = vmul.f32 %v1076_v12, %v6727_v52  ;;  %v1269_v12 = vsel %vm1217_vm1, %v7053_v31, 0.0 }
 0x1f6   : > { %v1408_v55 = vadd.f32 %v1407_v45, %v1406_v47  ;;  %v1345_v45 = vmul.f32 %v7037_v38, %v7037_v38  ;;  %v1262_v47 = vadd.f32 %v1261_v43, %v1260_v39  ;;  %v1415_v29 = vsel %vm1217_vm1, %v1344_v35, 0.0 }
 0x1f7   : > { %v1080_v30 = vpop.permute.xlu1 %1079  ;;  %v7069_v43 = vmul.f32 %v1078_v22, %v6732_v62  ;;  %v1271_v22 = vsel %vm1217_vm1, %v7061_v37, 0.0 }
 0x1f8   : > { %v1410_v0 = vadd.f32 %v1409_v54, %v1408_v55  ;;  %v1346_v54 = vmul.f32 %v7045_v57, %v7045_v57  ;;  %v1264_v55 = vadd.f32 %v1263_v49, %v1262_v47  ;;  %v1417_v41 = vsel %vm1217_vm1, %v1345_v45, 0.0 }
 0x1f9   : > { %v7077_v49 = vmul.f32 %v1080_v30, %v6737_v19  ;;  %v1273_v30 = vsel %vm1217_vm1, %v7069_v43, 0.0 }
 0x1fa   : > { %v1412_v15 = vadd.f32 %v1411_v3, %v1410_v0  ;;  %v1347_v3 = vmul.f32 %v7053_v31, %v7053_v31  ;;  %v1266_v0 = vadd.f32 %v1265_v56, %v1264_v55  ;;  %v1082_v39 = vpop.permute.xlu0 %1081  ;;  %v1419_v52 = vsel %vm1217_vm1, %v1346_v54, 0.0 }
 0x1fb   : > { %v7085_v56 = vmul.f32 %v1082_v39, %v6742_v33  ;;  %v1275_v39 = vsel %vm1217_vm1, %v7077_v49, 0.0 }
 0x1fc   : > { %v1414_v26 = vadd.f32 %v1413_v18, %v1412_v15  ;;  %v1348_v18 = vmul.f32 %v7061_v37, %v7061_v37  ;;  %v1268_v15 = vadd.f32 %v1267_v63, %v1266_v0  ;;  %v1421_v62 = vsel %vm1217_vm1, %v1347_v3, 0.0 }
 0x1fe   : > { %v1416_v35 = vadd.f32 %v1415_v29, %v1414_v26  ;;  %v1084_v47 = vpop.permute.xlu1 %1083  ;;  %v1349_v29 = vmul.f32 %v7069_v43, %v7069_v43  ;;  %v1270_v26 = vadd.f32 %v1269_v12, %v1268_v15  ;;  %v1423_v19 = vsel %vm1217_vm1, %v1348_v18, 0.0 }
 0x1ff   : > { %v7093_v63 = vmul.f32 %v1084_v47, %v6747_v46  ;;  %v1277_v47 = vsel %vm1217_vm1, %v7085_v56, 0.0 }
 0x200   : > { %v1418_v45 = vadd.f32 %v1417_v41, %v1416_v35  ;;  %v1350_v41 = vmul.f32 %v7077_v49, %v7077_v49  ;;  %v1272_v35 = vadd.f32 %v1271_v22, %v1270_v26  ;;  %v1425_v33 = vsel %vm1217_vm1, %v1349_v29, 0.0 }
 0x201   : > { %v1086_v55 = vpop.permute.xlu0 %1085 }
 0x202   : > { %v1420_v54 = vadd.f32 %v1419_v52, %v1418_v45  ;;  %v1351_v52 = vmul.f32 %v7085_v56, %v7085_v56  ;;  %v7101_v12 = vmul.f32 %v1086_v55, %v6752_v59  ;;  %v1274_v45 = vadd.f32 %v1273_v30, %v1272_v35 }
 0x203   : > { %v1427_v46 = vsel %vm1217_vm1, %v1350_v41, 0.0  ;;  %v1279_v55 = vsel %vm1217_vm1, %v7093_v63, 0.0 }
 0x204   : > { %v1422_v3 = vadd.f32 %v1421_v62, %v1420_v54  ;;  %v1352_v62 = vmul.f32 %v7093_v63, %v7093_v63  ;;  %v1276_v54 = vadd.f32 %v1275_v39, %v1274_v45  ;;  %v1429_v59 = vsel %vm1217_vm1, %v1351_v52, 0.0 }
 0x205   : > { %v1088_v0 = vpop.permute.xlu1 %1087 }
 0x206   : > { %v1424_v18 = vadd.f32 %v1423_v19, %v1422_v3  ;;  %v7109_v22 = vmul.f32 %v1088_v0, %v6757_v14  ;;  %v1353_v19 = vmul.f32 %v7101_v12, %v7101_v12  ;;  %v1278_v3 = vadd.f32 %v1277_v47, %v1276_v54 }
 0x207   : > { %v1431_v14 = vsel %vm1217_vm1, %v1352_v62, 0.0  ;;  %v1281_v0 = vsel %vm1217_vm1, %v7101_v12, 0.0 }
 0x208   : > { %v1426_v29 = vadd.f32 %v1425_v33, %v1424_v18  ;;  %v1354_v33 = vmul.f32 %v7109_v22, %v7109_v22  ;;  %v1280_v18 = vadd.f32 %v1279_v55, %v1278_v3 }
 0x209   : > { %v1090_v15 = vpop.permute.xlu0 %1089 }
 0x20a   : > { %v7117_v30 = vmul.f32 %v1090_v15, %v6762_v32  ;;  %v1428_v41 = vadd.f32 %v1427_v46, %v1426_v29  ;;  %v1433_v32 = vsel %vm1217_vm1, %v1353_v19, 0.0  ;;  %v1283_v15 = vsel %vm1217_vm1, %v7109_v22, 0.0 }
 0x20b   : > { %v1282_v29 = vadd.f32 %v1281_v0, %v1280_v18 }
 0x20c   : > { %v1430_v52 = vadd.f32 %v1429_v59, %v1428_v41  ;;  %v1355_v46 = vmul.f32 %v7117_v30, %v7117_v30 }
 0x20d   : > { %v1092_v26 = vpop.permute.xlu1 %1091  ;;  %v1284_v41 = vadd.f32 %v1283_v15, %v1282_v29 }
 0x20e   : > { %v7125_v39 = vmul.f32 %v1092_v26, %v6767_v48  ;;  %v1432_v62 = vadd.f32 %v1431_v14, %v1430_v52  ;;  %v1435_v48 = vsel %vm1217_vm1, %v1354_v33, 0.0  ;;  %v1285_v26 = vsel %vm1217_vm1, %v7117_v30, 0.0 }
 0x20f   : > { %v1286_v52 = vadd.f32 %v1285_v26, %v1284_v41 }
 0x210   : > { %v1356_v59 = vmul.f32 %v7125_v39, %v7125_v39  ;;  %v1434_v19 = vadd.f32 %v1433_v32, %v1432_v62 }
 0x212   : > { %v1094_v35 = vpop.permute.xlu0 %1093  ;;  %v1436_v33 = vadd.f32 %v1435_v48, %v1434_v19 }
 0x213   : > { %v7133_v47 = vmul.f32 %v1094_v35, %v6772_v61  ;;  %v1437_v61 = vsel %vm1217_vm1, %v1355_v46, 0.0  ;;  %v1287_v35 = vsel %vm1217_vm1, %v7125_v39, 0.0 }
 0x214   : > { %v1438_v46 = vadd.f32 %v1437_v61, %v1436_v33  ;;  %v1288_v62 = vadd.f32 %v1287_v35, %v1286_v52 }
 0x215   : > { %v1357_v14 = vmul.f32 %v7133_v47, %v7133_v47 }
 0x216   : > { %v1096_v45 = vpop.permute.xlu1 %1095 }
 0x217   : > { %v7141_v55 = vmul.f32 %v1096_v45, %v6777_v23  ;;  %v1439_v23 = vsel %vm1217_vm1, %v1356_v59, 0.0  ;;  %v1289_v45 = vsel %vm1217_vm1, %v7133_v47, 0.0 }
 0x218   : > { %v1440_v59 = vadd.f32 %v1439_v23, %v1438_v46  ;;  %v1290_v19 = vadd.f32 %v1289_v45, %v1288_v62 }
 0x219   : > { %v1358_v32 = vmul.f32 %v7141_v55, %v7141_v55 }
 0x21a   : > { %v1098_v54 = vpop.permute.xlu0 %1097 }
 0x21b   : > { %v7149_v0 = vmul.f32 %v1098_v54, %v6782_v40  ;;  %v1441_v40 = vsel %vm1217_vm1, %v1357_v14, 0.0  ;;  %v1291_v54 = vsel %vm1217_vm1, %v7141_v55, 0.0 }
 0x21c   : > { %v1442_v14 = vadd.f32 %v1441_v40, %v1440_v59  ;;  %v1292_v33 = vadd.f32 %v1291_v54, %v1290_v19 }
 0x21d   : > { %v1359_v48 = vmul.f32 %v7149_v0, %v7149_v0 }
 0x21e   : > { %v1100_v3 = vpop.permute.xlu1 %1099 }
 0x21f   : > { %v7157_v15 = vmul.f32 %v1100_v3, %v6787_v58  ;;  %v1443_v58 = vsel %vm1217_vm1, %v1358_v32, 0.0  ;;  %v1293_v3 = vsel %vm1217_vm1, %v7149_v0, 0.0 }
 0x220   : > { %v1444_v32 = vadd.f32 %v1443_v58, %v1442_v14  ;;  %v1294_v46 = vadd.f32 %v1293_v3, %v1292_v33 }
 0x221   : > { %v1102_v18 = vpop.permute.xlu0 %1101  ;;  %v1360_v61 = vmul.f32 %v7157_v15, %v7157_v15 }
 0x222   : > { %v7165_v26 = vmul.f32 %v1102_v18, %v6792_v20  ;;  %v1445_v20 = vsel %vm1217_vm1, %v1359_v48, 0.0  ;;  %v1295_v18 = vsel %vm1217_vm1, %v7157_v15, 0.0 }
 0x223   : > { %v1447_v62 = vsel %vm1217_vm1, %v1360_v61, 0.0  ;;  %v1446_v48 = vadd.f32 %v1445_v20, %v1444_v32  ;;  %v1296_v59 = vadd.f32 %v1295_v18, %v1294_v46 }
 0x224   : > { %v1361_v23 = vmul.f32 %v7165_v26, %v7165_v26 }
 0x225   : > { %v1104_v29 = vpop.permute.xlu1 %1103  ;;  %v1448_v3 = vadd.f32 %v1447_v62, %v1446_v48  ;;  %v2243_v62 = vld [vmem:[%s10264_s2 + $0x78] sm:$0xff] }
 0x226   : > { %v7173_v35 = vmul.f32 %v1104_v29, %v6797_v42  ;;  %v1297_v42 = vsel %vm1217_vm1, %v7165_v26, 0.0  ;;  %v1449_v19 = vsel %vm1217_vm1, %v1361_v23, 0.0  ;;  %2283 = vmatpush1.msra.mxu1 %v2243_v62 }
 0x227   : > { %v1298_v61 = vadd.f32 %v1297_v42, %v1296_v59  ;;  %v1450_v20 = vadd.f32 %v1449_v19, %v1448_v3  ;;  %v2242_v42 = vld [vmem:[%s10264_s2 + $0x70] sm:$0xff] }
 0x228   : > { %v1362_v29 = vmul.f32 %v7173_v35, %v7173_v35 }
 0x229   : > { %v1106_v41 = vpop.permute.xlu0 %1105 }
 0x22a   : > { %v7181_v45 = vmul.f32 %v1106_v41, %v6802_v7  ;;  %v1299_v7 = vsel %vm1217_vm1, %v7173_v35, 0.0  ;;  %v1451_v14 = vsel %vm1217_vm1, %v1362_v29, 0.0 }
 0x22b   : > { %v1300_v18 = vadd.f32 %v1299_v7, %v1298_v61  ;;  %v1452_v29 = vadd.f32 %v1451_v14, %v1450_v20  ;;  %v10298_v7 = vmov 0.0  }
 0x22c   : > { %v1363_v41 = vmul.f32 %v7181_v45, %v7181_v45  ;;  %2284 = vmatprep.subr.mxu1 %v10298_v7 }
 0x22d   : > { %v1108_v52 = vpop.permute.xlu1 %1107  ;;  %2285 = vmatpush1.msra.mxu1 %v2242_v42 }
 0x22e   : > { %v7189_v40 = vmul.f32 %v1108_v52, %v6807_v28  ;;  %v1301_v28 = vsel %vm1217_vm1, %v7181_v45, 0.0  ;;  %v1453_v32 = vsel %vm1217_vm1, %v1363_v41, 0.0  ;;  %2286 = vmatprep.subr.mxu1 %v10298_v7 }
 0x22f   : > { %v1454_v41 = vadd.f32 %v1453_v32, %v1452_v29  ;;  %v10299_v29 = vld [vmem:[#allocation6_spill] sm:$0xff] }
 0x230   : > { %v1364_v33 = vmul.f32 %v7189_v40, %v7189_v40 }
 0x232   : > { %v1110_v54 = vpop.permute.xlu0 %1109 }
 0x233   : > { %v7197_v58 = vmul.f32 %v1110_v54, %v6812_v53  ;;  %v1303_v53 = vsel %vm1217_vm1, %v7189_v40, 0.0  ;;  %v1302_v54 = vadd.f32 %v1301_v28, %v1300_v18 }
 0x235   : > { %v1365_v46 = vmul.f32 %v7197_v58, %v7197_v58  ;;  %v1305_v48 = vsel %vm1217_vm1, %v7197_v58, 0.0  ;;  %v1304_v3 = vadd.f32 %v1303_v53, %v1302_v54 }
 0x236   : > { %v1112_v52 = vpop.permute.xlu1 %1111 }
 0x237   : > { %v7205_v23 = vmul.f32 %v1112_v52, %v6817_v24  ;;  %v1455_v24 = vsel %vm1217_vm1, %v1364_v33, 0.0  ;;  %v1457_v14 = vsel %vm1217_vm1, %v1365_v46, 0.0  ;;  %v2241_v33 = vld [vmem:[%s10264_s2 + $0x68] sm:$0xff]  ;;  %v2240_v52 = vld [vmem:[%s10264_s2 + $0x60] sm:$0xff]  ;;  %v1306_v18 = vadd.f32 %v1305_v48, %v1304_v3  ;;  %v2239_v48 = vld [vmem:[%s10264_s2 + $0x58] sm:$0xff] }
 0x238   : > { %v1456_v20 = vadd.f32 %v1455_v24, %v1454_v41  ;;  %2287 = vmatpush1.msra.mxu1 %v2241_v33  ;;  %v10300_v33 = vld [vmem:[#allocation7_spill] sm:$0xff] }
 0x239   : > { %v1366_v59 = vmul.f32 %v7205_v23, %v7205_v23  ;;  %v1307_v28 = vsel %vm1217_vm1, %v7205_v23, 0.0  ;;  %2288 = vmatprep.subr.mxu1 %v10298_v7 }
 0x23a   : > { %v1114_v19 = vpop.permute.xlu0 %1113  ;;  %v1458_v62 = vadd.f32 %v1457_v14, %v1456_v20  ;;  %v1308_v42 = vadd.f32 %v1307_v28, %v1306_v18  ;;  %2289 = vmatpush1.msra.mxu1 %v2240_v52 }
 0x23b   : > { %v7225_v61 = vmul.f32 %v1114_v19, %v6822_v51  ;;  %v1459_v32 = vsel %vm1217_vm1, %v1366_v59, 0.0  ;;  %2290 = vmatprep.subr.mxu1 %v10298_v7  ;;  %v2238_v59 = vld [vmem:[%s10264_s2 + $0x50] sm:$0xff] }
 0x23c   : > { %v1460_v19 = vadd.f32 %v1459_v32, %v1458_v62  ;;  %2291 = vmatpush1.msra.mxu1 %v2239_v48  ;;  %v2236_v62 = vld [vmem:[%s10264_s2 + $0x40] sm:$0xff] }
 0x23d   : > { %v1367_v51 = vmul.f32 %v7225_v61, %v7225_v61  ;;  %v1309_v53 = vsel %vm1217_vm1, %v7225_v61, 0.0  ;;  %2292 = vmatprep.subr.mxu1 %v10298_v7 }
 0x23e   : > { %v1116_v46 = vpop.permute.xlu1 %1115  ;;  %v1310_v41 = vadd.f32 %v1309_v53, %v1308_v42  ;;  %2293 = vmatpush1.msra.mxu1 %v2238_v59 }
 0x23f   : > { %v7244_v54 = vmul.f32 %v1116_v46, %v10299_v29  ;;  %v1461_v24 = vsel %vm1217_vm1, %v1367_v51, 0.0  ;;  %2294 = vmatprep.subr.mxu1 %v10298_v7  ;;  %v2237_v46 = vld [vmem:[%s10264_s2 + $0x48] sm:$0xff] }
 0x240   : > { %v1462_v20 = vadd.f32 %v1461_v24, %v1460_v19  ;;  %2295 = vmatpush1.msra.mxu1 %v2237_v46  ;;  %v2235_v19 = vld [vmem:[%s10264_s2 + $0x38] sm:$0xff] }
 0x241   : > { %v1311_v3 = vsel %vm1217_vm1, %v7244_v54, 0.0  ;;  %v1368_v14 = vmul.f32 %v7244_v54, %v7244_v54  ;;  %v1118_v28 = vpop.permute.xlu0 %1117  ;;  %2296 = vmatprep.subr.mxu1 %v10298_v7 }
 0x242   : > { %v7259_v52 = vmul.f32 %v1118_v28, %v10300_v33  ;;  %v1312_v18 = vadd.f32 %v1311_v3, %v1310_v41  ;;  %2297 = vmatpush1.msra.mxu1 %v2236_v62  ;;  %v2234_v41 = vld [vmem:[%s10264_s2 + $0x30] sm:$0xff]  ;;  %v2231_v62 = vld [vmem:[%s10264_s2 + $0x18] sm:$0xff] }
 0x243   : > { %v1463_v51 = vsel %vm1217_vm1, %v1368_v14, 0.0  ;;  %2298 = vmatprep.subr.mxu1 %v10298_v7 }
 0x244   : > { %v1313_v32 = vsel %vm1217_vm1, %v7259_v52, 0.0  ;;  %v1369_v53 = vmul.f32 %v7259_v52, %v7259_v52  ;;  %v1464_v42 = vadd.f32 %v1463_v51, %v1462_v20  ;;  %2299 = vmatpush1.msra.mxu1 %v2235_v19  ;;  %v2233_v20 = vld [vmem:[%s10264_s2 + $0x28] sm:$0xff] }
 0x245   : > { %v1314_v29 = vadd.f32 %v1313_v32, %v1312_v18  ;;  %2300 = vmatprep.subr.mxu1 %v10298_v7  ;;  %v2232_v18 = vld [vmem:[%s10264_s2 + $0x20] sm:$0xff]  ;;  %v2229_v19 = vld [vmem:[%s10264_s2 + $0x8] sm:$0xff] }
 0x246   : > { %v1465_v24 = vsel %vm1217_vm1, %v1369_v53, 0.0  ;;  %2301 = vmatpush1.msra.mxu1 %v2234_v41  ;;  %v2228_v41 = vld [vmem:[%s10264_s2] sm:$0xff] }
 0x247   : > { %v1315_v48 = vrot.slane %v1314_v29, 4  ;;  %v1466_v59 = vadd.f32 %v1465_v24, %v1464_v42  ;;  %2302 = vmatprep.subr.mxu1 %v10298_v7  ;;  %v2230_v42 = vld [vmem:[%s10264_s2 + $0x10] sm:$0xff] }
 0x248   : > { %2303 = vmatpush1.msra.mxu1 %v2233_v20  ;;  %v10301_v20 = vld [vmem:[#allocation4_spill] sm:$0xff] }
 0x249   : > { %v1316_v3 = vadd.f32 %v1315_v48, %v1314_v29  ;;  %v1467_v14 = vrot.slane %v1466_v59, 4  ;;  %2304 = vmatprep.subr.mxu1 %v10298_v7 }
 0x24a   : > { %2305 = vmatpush1.msra.mxu1 %v2232_v18  ;;  %v7315_v18 = vsub.s32 2, %v10301_v20  ;;  %v2253_v20 = vld [vmem:[%s10264_s2 + $0xc8] sm:$0xff] }
 0x24b   : > { %v1317_v28 = vrot.slane %v1316_v3, 2  ;;  %v1468_v33 = vadd.f32 %v1467_v14, %v1466_v59  ;;  %2306 = vmatprep.subr.mxu1 %v10298_v7 }
 0x24c   : > { %2307 = vmatpush1.msra.mxu1 %v2231_v62  ;;  %10302 = vst [vmem:[#allocation6_spill] sm:$0xff] %v7315_v18 }
 0x24d   : > { %v1318_v51 = vadd.f32 %v1317_v28, %v1316_v3  ;;  %v1469_v32 = vrot.slane %v1468_v33, 2  ;;  %2308 = vmatprep.subr.mxu1 %v10298_v7 }
 0x24e   : > { %2309 = vmatpush1.msra.mxu1 %v2230_v42  ;;  %v2257_v42 = vld [vmem:[%s10264_s2 + $0xe8] sm:$0xff] }
 0x24f   : > { %v1319_v53 = vrot.slane %v1318_v51, 1  ;;  %v1470_v46 = vadd.f32 %v1469_v32, %v1468_v33  ;;  %2310 = vmatprep.subr.mxu1 %v10298_v7  ;;  %v2258_v32 = vld [vmem:[%s10264_s2 + $0xf0] sm:$0xff] }
 0x250   : > { %2311 = vmatpush1.msra.mxu1 %v2229_v19  ;;  %v10304_v19 = vld [vmem:[#allocation10_spill] sm:$0xff] }
 0x251   : > { %v1320_v29 = vadd.f32 %v1319_v53, %v1318_v51  ;;  %v1471_v24 = vrot.slane %v1470_v46, 1  ;;  %2312 = vmatprep.subr.mxu1 %v10298_v7  ;;  %v2259_v51 = vld [vmem:[%s10264_s2 + $0xf8] sm:$0xff] }
 0x252   : > { %2313 = vmatpush1.msra.mxu1 %v2228_v41 }
 0x253   : > { %v1472_v48 = vadd.f32 %v1471_v24, %v1470_v46  ;;  %v7300_v59 = vmul.f32 0.0025510204, %v1320_v29  ;;  %2314 = vmatprep.subr.mxu1 %v10298_v7  ;;  %v6237_v46 = vld [vmem:[%s10265_s3] sm:$0x7]  ;;  %v10303_v24 = vld [vmem:[#allocation11_spill] sm:$0xff] }
 0x254   : > { %2315 = vmatpush2.msra.mxu1 %v2259_v51  ;;  %v7329_v62 = vrot.slane %v6237_v46, %v7315_v18  ;;  %v2256_v29 = vld [vmem:[%s10264_s2 + $0xe0] sm:$0xff] }
 0x255   : > { %v1474_v3 = vmul.f32 0.0025510204, %v1472_v48  ;;  %v1475_v14 = vmul.f32 %v7300_v59, %v7300_v59  ;;  %v1525_v28 = vsub.f32 %v7259_v52, %v7300_v59  ;;  %2316 = vmatprep.subr.mxu1 %v10298_v7  ;;  %v1477_v48 = vsub.f32 %v10303_v24, %v7300_v59 }
 0x256   : > { %2317 = vmatpush2.msra.mxu1 %v2258_v32  ;;  %v2254_v32 = vld [vmem:[%s10264_s2 + $0xd0] sm:$0xff]  ;;  %v1495_v51 = vsub.f32 %v6989_v21, %v7300_v59  ;;  %v1497_v41 = vsub.f32 %v7005_v44, %v7300_v59  ;;  %v1498_v46 = vsub.f32 %v7013_v60, %v7300_v59  ;;  %v1501_v21 = vsub.f32 %v7037_v38, %v7300_v59  ;;  %v2251_v38 = vld [vmem:[%s10264_s2 + $0xb8] sm:$0xff] }
 0x257   : > { %v1476_v33 = vsub.f32 %v1474_v3, %v1475_v14  ;;  %2318 = vmatprep.subr.mxu1 %v10298_v7  ;;  %v10305_v3 = vld [vmem:[#allocation12_spill] sm:$0xff]  ;;  %v2255_v14 = vld [vmem:[%s10264_s2 + $0xd8] sm:$0xff]  ;;  %v1503_v44 = vsub.f32 %v7053_v31, %v7300_v59  ;;  %v1504_v60 = vsub.f32 %v7061_v37, %v7300_v59  ;;  %v1509_v31 = vsub.f32 %v7101_v12, %v7300_v59 }
 0x258   : > { %2319 = vmatpush2.msra.mxu1 %v2257_v42  ;;  %v1490_v42 = vsub.f32 %v6949_v27, %v7300_v59  ;;  %v1493_v27 = vsub.f32 %v6973_v36, %v7300_v59  ;;  %v2252_v36 = vld [vmem:[%s10264_s2 + $0xc0] sm:$0xff]  ;;  %v1510_v37 = vsub.f32 %v7109_v22, %v7300_v59  ;;  %v1515_v12 = vsub.f32 %v7149_v0, %v7300_v59  ;;  %v2250_v22 = vld [vmem:[%s10264_s2 + $0xb0] sm:$0xff] }
 0x259   : > { %v1526_v53 = vadd.f32 1e-05, %v1476_v33  ;;  %v10306_v33 = vld [vmem:[#allocation13_spill] sm:$0xff]  ;;  %2320 = vmatprep.subr.mxu1 %v10298_v7  ;;  %v10308_v0 = vsub.f32 %v10305_v3, %v7300_v59 }
 0x25a   : > { %2321 = vmatpush2.msra.mxu1 %v2256_v29  ;;  %v1496_v29 = vsub.f32 %v6997_v34, %v7300_v59  ;;  %v1502_v34 = vsub.f32 %v7045_v57, %v7300_v59  ;;  %v1508_v57 = vsub.f32 %v7093_v63, %v7300_v59  ;;  %v1514_v63 = vsub.f32 %v7141_v55, %v7300_v59 }
 0x25b   : > { %6059 = vrsqrt.f32 %v1526_v53  ;;  %2322 = vmatprep.subr.mxu1 %v10298_v7  ;;  %v1491_v53 = vsub.f32 %v6957_v50, %v7300_v59  ;;  %v1494_v50 = vsub.f32 %v6981_v8, %v7300_v59  ;;  %v1500_v8 = vsub.f32 %v7029_v13, %v7300_v59 }
 0x25c   : > { %2323 = vmatpush2.msra.mxu1 %v2255_v14  ;;  %v1492_v14 = vsub.f32 %v6965_v16, %v7300_v59  ;;  %v1499_v16 = vsub.f32 %v7021_v25, %v7300_v59  ;;  %v1505_v25 = vsub.f32 %v7069_v43, %v7300_v59  ;;  %v1507_v13 = vsub.f32 %v7085_v56, %v7300_v59 }
 0x25d   : > { %2324 = vmatprep.subr.mxu1 %v10298_v7  ;;  %v1511_v43 = vsub.f32 %v7117_v30, %v7300_v59  ;;  %v1512_v56 = vsub.f32 %v7125_v39, %v7300_v59 }
 0x25e   : > { %2325 = vmatpush2.msra.mxu1 %v2254_v32  ;;  %v1506_v32 = vsub.f32 %v7077_v49, %v7300_v59 }
 0x25f   : > { %2326 = vmatprep.subr.mxu1 %v10298_v7 }
 0x260   : > { %2327 = vmatpush2.msra.mxu1 %v2253_v20  ;;  %v1513_v20 = vsub.f32 %v7133_v47, %v7300_v59  ;;  %v10307_v47 = vsub.f32 %v10304_v19, %v7300_v59 }
 0x261   : > { %2328 = vmatprep.subr.mxu1 %v10298_v7 }
 0x262   : > { %2329 = vmatpush2.msra.mxu1 %v2252_v36  ;;  %v10311_v36 = vsub.f32 %v6884_v4, %v7300_v59 }
 0x263   : > { %2330 = vmatprep.subr.mxu1 %v10298_v7 }
 0x264   : > { %2331 = vmatpush2.msra.mxu1 %v2251_v38  ;;  %v10312_v38 = vsub.f32 %v6893_v5, %v7300_v59  ;;  %v10315_v5 = vsub.f32 %v6917_v11, %v7300_v59 }
 0x265   : > { %2332 = vmatprep.subr.mxu1 %v10298_v7 }
 0x266   : > { %2333 = vmatpush2.msra.mxu1 %v2250_v22 }
 0x267   : > { %2334 = vmatprep.subr.mxu1 %v10298_v7 }
 0x268   : > { %v7446_v49 = vpop.eup %6059 }
 0x269   : > { %v7464_v30 = vmul.f32 %v7446_v49, %v1525_v28  ;;  %v7470_v39 = vmul.f32 %v7446_v49, %v1477_v48  ;;  %v7476_v55 = vmul.f32 %v7446_v49, %v10307_v47  ;;  %v7482_v52 = vmul.f32 %v7446_v49, %v10308_v0 }
 0x26a   : > { %v10309_v28 = vsub.f32 %v10306_v33, %v7300_v59  ;;  %v10310_v48 = vsub.f32 %v6874_v17, %v7300_v59  ;;  %v7500_v3 = vmul.f32 %v7446_v49, %v10311_v36  ;;  %v7506_v33 = vmul.f32 %v7446_v49, %v10312_v38  ;;  %v2249_v17 = vld [vmem:[%s10264_s2 + $0xa8] sm:$0xff] }
 0x26b   : > { %v10313_v47 = vsub.f32 %v6901_v9, %v7300_v59  ;;  %v10314_v0 = vsub.f32 %v6909_v10, %v7300_v59  ;;  %v10316_v36 = vsub.f32 %v6925_v1, %v7300_v59  ;;  %v10317_v9 = vsub.f32 %v6933_v6, %v7300_v59  ;;  %2335 = vmatpush2.msra.mxu1 %v2249_v17 }
 0x26c   : > { %v7488_v24 = vmul.f32 %v7446_v49, %v10309_v28  ;;  %v7494_v19 = vmul.f32 %v7446_v49, %v10310_v48  ;;  %v7526_v48 = vmul.f32 %v7446_v49, %v10315_v5  ;;  %v7550_v1 = vmul.f32 %v7446_v49, %v1491_v53  ;;  %2336 = vmatprep.subr.mxu1 %v10298_v7 }
 0x26d   : > { %v1535_v4 = vmul.f32 %v7446_v49, %v10313_v47  ;;  %v7520_v28 = vmul.f32 %v7446_v49, %v10314_v0  ;;  %v7532_v38 = vmul.f32 %v7446_v49, %v10316_v36  ;;  %v7538_v10 = vmul.f32 %v7446_v49, %v10317_v9 }
 0x26e   : > { %v10318_v47 = vsub.f32 %v6941_v2, %v7300_v59  ;;  %v7547_v0 = vmul.f32 %v7446_v49, %v1490_v42  ;;  %v7554_v22 = vmul.f32 %v7446_v49, %v1492_v14  ;;  %v7557_v6 = vmul.f32 %v7446_v49, %v1493_v27 }
 0x26f   : > { %v7560_v5 = vmul.f32 %v7446_v49, %v1494_v50  ;;  %v7563_v2 = vmul.f32 %v7446_v49, %v1495_v51  ;;  %v7566_v42 = vmul.f32 %v7446_v49, %v1496_v29  ;;  %v7569_v53 = vmul.f32 %v7446_v49, %v1497_v41 }
 0x270   : > { %v7544_v11 = vmul.f32 %v7446_v49, %v10318_v47  ;;  %v7572_v36 = vmul.f32 %v7446_v49, %v1498_v46  ;;  %v7575_v14 = vmul.f32 %v7446_v49, %v1499_v16  ;;  %v7579_v27 = vmul.f32 %v7446_v49, %v1500_v8  ;;  %v7657_v47 = vpop.permute.xlu1 %1631 }
 0x271   : > { %v7582_v51 = vmul.f32 %v7446_v49, %v1501_v21  ;;  %v7585_v29 = vmul.f32 %v7446_v49, %v1502_v34  ;;  %v7588_v41 = vmul.f32 %v7446_v49, %v1503_v44  ;;  %v7591_v46 = vmul.f32 %v7446_v49, %v1504_v60  ;;  %v2248_v21 = vld [vmem:[%s10264_s2 + $0xa0] sm:$0xff]  ;;  %v2247_v34 = vld [vmem:[%s10264_s2 + $0x98] sm:$0xff] }
 0x272   : > { %v7594_v50 = vmul.f32 %v7446_v49, %v1505_v25  ;;  %v7597_v16 = vmul.f32 %v7446_v49, %v1506_v32  ;;  %v7600_v8 = vmul.f32 %v7446_v49, %v1507_v13  ;;  %v7609_v44 = vmul.f32 %v7446_v49, %v1508_v57  ;;  %2337 = vmatpush2.msra.mxu1 %v2248_v21 }
 0x273   : > { %v7612_v60 = vmul.f32 %v7446_v49, %v1509_v31  ;;  %v7615_v25 = vmul.f32 %v7446_v49, %v1510_v37  ;;  %v7618_v32 = vmul.f32 %v7446_v49, %v1511_v43  ;;  %v7621_v13 = vmul.f32 %v7446_v49, %v1512_v56  ;;  %2338 = vmatprep.subr.mxu1 %v10298_v7 }
 0x274   : > { %v7624_v17 = vmul.f32 %v7446_v49, %v1513_v20  ;;  %v7627_v9 = vmul.f32 %v7446_v49, %v1514_v63  ;;  %v7630_v57 = vmul.f32 %v7446_v49, %v1515_v12  ;;  %v10319_v31 = vsub.f32 %v7157_v15, %v7300_v59  ;;  %2339 = vmatpush2.msra.mxu1 %v2247_v34 }
 0x275   : > { %v10320_v43 = vsub.f32 %v7165_v26, %v7300_v59  ;;  %v10321_v20 = vsub.f32 %v7173_v35, %v7300_v59  ;;  %v10322_v12 = vsub.f32 %v7181_v45, %v7300_v59  ;;  %v10323_v26 = vsub.f32 %v7189_v40, %v7300_v59  ;;  %2340 = vmatprep.subr.mxu1 %v10298_v7 }
 0x276   : > { %v7637_v37 = vmul.f32 %v7446_v49, %v10319_v31  ;;  %v10324_v35 = vsub.f32 %v7197_v58, %v7300_v59  ;;  %v10325_v45 = vsub.f32 %v7205_v23, %v7300_v59  ;;  %v10326_v34 = vsub.f32 %v7225_v61, %v7300_v59  ;;  %v2246_v58 = vld [vmem:[%s10264_s2 + $0x90] sm:$0xff]  ;;  %v10328_v61 = vld [vmem:[#allocation9_spill] sm:$0xff] }
 0x277   : > { %v7643_v56 = vmul.f32 %v7446_v49, %v10320_v43  ;;  %v7649_v63 = vmul.f32 %v7446_v49, %v10321_v20  ;;  %v7655_v15 = vmul.f32 %v7446_v49, %v10322_v12  ;;  %v7663_v21 = vmul.f32 %v7446_v49, %v10323_v26  ;;  %v2245_v20 = vld [vmem:[%s10264_s2 + $0x88] sm:$0xff]  ;;  %2341 = vmatpush2.msra.mxu1 %v2246_v58  ;;  %v2244_v58 = vld [vmem:[%s10264_s2 + $0x80] sm:$0xff] }
 0x278   : > { %v7669_v31 = vmul.f32 %v7446_v49, %v10324_v35  ;;  %v7675_v43 = vmul.f32 %v7446_v49, %v10325_v45  ;;  %v7681_v40 = vmul.f32 %v7446_v49, %v10326_v34  ;;  %v10327_v23 = vsub.f32 %v7244_v54, %v7300_v59  ;;  %2342 = vmatprep.subr.mxu1 %v10298_v7 }
 0x279   : > { %v1582_v26 = vmul.f32 %v10328_v61, %v7476_v55  ;;  %v1581_v35 = vmul.f32 %v10328_v61, %v7470_v39  ;;  %v1584_v45 = vmul.f32 %v10328_v61, %v7488_v24  ;;  %v1583_v34 = vmul.f32 %v10328_v61, %v7482_v52  ;;  %2343 = vmatpush2.msra.mxu1 %v2245_v20 }
 0x27a   : > { %v7695_v12 = vmul.f32 %v7446_v49, %v10327_v23  ;;  %v1586_v18 = vmul.f32 %v10328_v61, %v7500_v3  ;;  %v1585_v54 = vmul.f32 %v10328_v61, %v7494_v19  ;;  %v1588_v59 = vmul.f32 %v10328_v61, %v1535_v4  ;;  %2344 = vmatprep.subr.mxu1 %v10298_v7  ;;  %v7727_v23 = vld [vmem:[%s10264_s2 + $0x178] sm:$0xff] }
 0x27b   : > { %v1635_v49 = vadd.f32 %v7657_v47, %v1582_v26  ;;  %v1634_v39 = vadd.f32 %v7657_v47, %v1581_v35  ;;  %v1637_v55 = vadd.f32 %v7657_v47, %v1584_v45  ;;  %v1587_v24 = vmul.f32 %v10328_v61, %v7506_v33  ;;  %2345 = vmatpush2.msra.mxu1 %v2244_v58 }
 0x27c   : > { %v1636_v52 = vadd.f32 %v7657_v47, %v1583_v34  ;;  %v1639_v3 = vadd.f32 %v7657_v47, %v1586_v18  ;;  %v1638_v19 = vadd.f32 %v7657_v47, %v1585_v54  ;;  %v1641_v4 = vadd.f32 %v7657_v47, %v1588_v59  ;;  %5635 = vmatprep.subr.mxu1 %v7727_v23 }
 0x27d   : > { %vm1684_vm2 = vcmp.ge.f32.partialorder %v1635_v49, 0.0  ;;  %v1737_v18 = vmul.f32 %v7329_v62, %v1635_v49  ;;  %vm1683_vm3 = vcmp.ge.f32.partialorder %v1634_v39, 0.0  ;;  %v1736_v33 = vmul.f32 %v7329_v62, %v1634_v39 }
 0x27e   : > { %vm1686_vm4 = vcmp.ge.f32.partialorder %v1637_v55, 0.0  ;;  %v1739_v20 = vmul.f32 %v7329_v62, %v1637_v55  ;;  %vm1685_vm5 = vcmp.ge.f32.partialorder %v1636_v52, 0.0  ;;  %v1738_v26 = vmul.f32 %v7329_v62, %v1636_v52 }
 0x27f   : > { %v7739_v35 = vsel %vm1684_vm2, %v1635_v49, %v1737_v18  ;;  %v7741_v45 = vsel %vm1683_vm3, %v1634_v39, %v1736_v33  ;;  %vm1688_vm6 = vcmp.ge.f32.partialorder %v1639_v3, 0.0  ;;  %v1741_v34 = vmul.f32 %v7329_v62, %v1639_v3 }
 0x280   : > { %1934 = vrot.lane.b32.xlu0 %v7739_v35, %s6249_s5  ;;  %1835 = vst.msk [vmem:[%s7732_s7 + $0x8] sm:$0xff] %vm1217_vm1, %v7739_v35  ;;  %1932 = vrot.lane.b32.xlu1 %v7741_v45, %s6249_s5  ;;  %1834 = vst.msk [vmem:[%s7732_s7] sm:$0xff] %vm1217_vm1, %v7741_v45  ;;  %v7754_v54 = vsel %vm1686_vm4, %v1637_v55, %v1739_v20  ;;  %v7756_v59 = vsel %vm1685_vm5, %v1636_v52, %v1738_v26  ;;  %vm1687_vm7 = vcmp.ge.f32.partialorder %v1638_v19, 0.0 }
 0x281   : > { %v1740_v49 = vmul.f32 %v7329_v62, %v1638_v19  ;;  %1837 = vst.msk [vmem:[%s7732_s7 + $0x18] sm:$0xff] %vm1217_vm1, %v7754_v54  ;;  %1836 = vst.msk [vmem:[%s7732_s7 + $0x10] sm:$0xff] %vm1217_vm1, %v7756_v59  ;;  %v7765_v39 = vsel %vm1688_vm6, %v1639_v3, %v1741_v34  ;;  %vm1690_vm8 = vcmp.ge.f32.partialorder %v1641_v4, 0.0  ;;  %v1743_v58 = vmul.f32 %v7329_v62, %v1641_v4 }
 0x282   : > { %v1640_v55 = vadd.f32 %v7657_v47, %v1587_v24  ;;  %1839 = vst.msk [vmem:[%s7732_s7 + $0x28] sm:$0xff] %vm1217_vm1, %v7765_v39  ;;  %v1590_v18 = vmul.f32 %v10328_v61, %v7526_v48  ;;  %v1589_v33 = vmul.f32 %v10328_v61, %v7520_v28  ;;  %v1592_v3 = vmul.f32 %v10328_v61, %v7538_v10 }
 0x283   : > { %v7772_v52 = vsel %vm1687_vm7, %v1638_v19, %v1740_v49  ;;  %v7783_v20 = vsel %vm1690_vm8, %v1641_v4, %v1743_v58  ;;  %v1591_v19 = vmul.f32 %v10328_v61, %v7532_v38  ;;  %v1594_v38 = vmul.f32 %v10328_v61, %v7547_v0 }
 0x284   : > { %1838 = vst.msk [vmem:[%s7732_s7 + $0x20] sm:$0xff] %vm1217_vm1, %v7772_v52  ;;  %vm1689_vm9 = vcmp.ge.f32.partialorder %v1640_v55, 0.0  ;;  %v1742_v24 = vmul.f32 %v7329_v62, %v1640_v55  ;;  %1938 = vrot.lane.b32.xlu0 %v7754_v54, %s6249_s5  ;;  %1936 = vrot.lane.b32.xlu1 %v7756_v59, %s6249_s5  ;;  %1841 = vst.msk [vmem:[%s7732_s7 + $0x38] sm:$0xff] %vm1217_vm1, %v7783_v20  ;;  %v1643_v28 = vadd.f32 %v7657_v47, %v1590_v18 }
 0x285   : > { %v1642_v48 = vadd.f32 %v7657_v47, %v1589_v33  ;;  %v1645_v10 = vadd.f32 %v7657_v47, %v1592_v3  ;;  %v1644_v26 = vadd.f32 %v7657_v47, %v1591_v19  ;;  %v1593_v34 = vmul.f32 %v10328_v61, %v7544_v11 }
 0x286   : > { %v7798_v4 = vsel %vm1689_vm9, %v1640_v55, %v1742_v24  ;;  %vm1692_vm10 = vcmp.ge.f32.partialorder %v1643_v28, 0.0  ;;  %v1745_v49 = vmul.f32 %v7329_v62, %v1643_v28  ;;  %v1647_v33 = vadd.f32 %v7657_v47, %v1594_v38 }
 0x287   : > { %1840 = vst.msk [vmem:[%s7732_s7 + $0x30] sm:$0xff] %vm1217_vm1, %v7798_v4  ;;  %vm1691_vm11 = vcmp.ge.f32.partialorder %v1642_v48, 0.0  ;;  %v1744_v58 = vmul.f32 %v7329_v62, %v1642_v48  ;;  %vm1694_vm12 = vcmp.ge.f32.partialorder %v1645_v10, 0.0  ;;  %v1747_v55 = vmul.f32 %v7329_v62, %v1645_v10 }
 0x288   : > { %vm1693_vm13 = vcmp.ge.f32.partialorder %v1644_v26, 0.0  ;;  %v1746_v0 = vmul.f32 %v7329_v62, %v1644_v26  ;;  %1942 = vrot.lane.b32.xlu0 %v7765_v39, %s6249_s5  ;;  %1940 = vrot.lane.b32.xlu1 %v7772_v52, %s6249_s5  ;;  %v7816_v11 = vsel %vm1692_vm10, %v1643_v28, %v1745_v49  ;;  %v1646_v19 = vadd.f32 %v7657_v47, %v1593_v34 }
 0x289   : > { %v7818_v18 = vsel %vm1691_vm11, %v1642_v48, %v1744_v58  ;;  %1843 = vst.msk [vmem:[%s7732_s7 + $0x48] sm:$0xff] %vm1217_vm1, %v7816_v11  ;;  %v7827_v3 = vsel %vm1694_vm12, %v1645_v10, %v1747_v55  ;;  %v1596_v28 = vmul.f32 %v10328_v61, %v7554_v22  ;;  %vm1696_vm14 = vcmp.ge.f32.partialorder %v1647_v33, 0.0 }
 0x28a   : > { %1842 = vst.msk [vmem:[%s7732_s7 + $0x40] sm:$0xff] %vm1217_vm1, %v7818_v18  ;;  %v7829_v24 = vsel %vm1693_vm13, %v1644_v26, %v1746_v0  ;;  %1845 = vst.msk [vmem:[%s7732_s7 + $0x58] sm:$0xff] %vm1217_vm1, %v7827_v3  ;;  %v1749_v48 = vmul.f32 %v7329_v62, %v1647_v33  ;;  %v1595_v10 = vmul.f32 %v10328_v61, %v7550_v1  ;;  %vm1695_vm15 = vcmp.ge.f32.partialorder %v1646_v19, 0.0 }
 0x28b   : > { %1844 = vst.msk [vmem:[%s7732_s7 + $0x50] sm:$0xff] %vm1217_vm1, %v7829_v24  ;;  %v1598_v26 = vmul.f32 %v10328_v61, %v7560_v5  ;;  %v1748_v22 = vmul.f32 %v7329_v62, %v1646_v19  ;;  %v1649_v38 = vadd.f32 %v7657_v47, %v1596_v28  ;;  %v1597_v34 = vmul.f32 %v10328_v61, %v7557_v6 }
 0x28c   : > { %1946 = vrot.lane.b32.xlu0 %v7783_v20, %s6249_s5  ;;  %1944 = vrot.lane.b32.xlu1 %v7798_v4, %s6249_s5  ;;  %v7853_v49 = vsel %vm1696_vm14, %v1647_v33, %v1749_v48  ;;  %v1648_v1 = vadd.f32 %v7657_v47, %v1595_v10  ;;  %v1600_v48 = vmul.f32 %v10328_v61, %v7566_v42 }
 0x28d   : > { %v1651_v5 = vadd.f32 %v7657_v47, %v1598_v26  ;;  %1847 = vst.msk [vmem:[%s7732_s7 + $0x68] sm:$0xff] %vm1217_vm1, %v7853_v49  ;;  %v7860_v58 = vsel %vm1695_vm15, %v1646_v19, %v1748_v22  ;;  %vm1698_vm2 = vcmp.ge.f32.partialorder %v1649_v38, 0.0  ;;  %v1751_v6 = vmul.f32 %v7329_v62, %v1649_v38 }
 0x28e   : > { %v1650_v55 = vadd.f32 %v7657_v47, %v1597_v34  ;;  %1846 = vst.msk [vmem:[%s7732_s7 + $0x60] sm:$0xff] %vm1217_vm1, %v7860_v58  ;;  %vm1697_vm3 = vcmp.ge.f32.partialorder %v1648_v1, 0.0  ;;  %v1750_v0 = vmul.f32 %v7329_v62, %v1648_v1  ;;  %v1599_v22 = vmul.f32 %v10328_v61, %v7563_v2 }
 0x28f   : > { %vm1700_vm4 = vcmp.ge.f32.partialorder %v1651_v5, 0.0  ;;  %v1753_v33 = vmul.f32 %v7329_v62, %v1651_v5  ;;  %v7869_v28 = vsel %vm1698_vm2, %v1649_v38, %v1751_v6  ;;  %v1653_v38 = vadd.f32 %v7657_v47, %v1600_v48 }
 0x290   : > { %vm1699_vm5 = vcmp.ge.f32.partialorder %v1650_v55, 0.0  ;;  %v1752_v19 = vmul.f32 %v7329_v62, %v1650_v55  ;;  %1950 = vrot.lane.b32.xlu0 %v7816_v11, %s6249_s5  ;;  %1948 = vrot.lane.b32.xlu1 %v7818_v18, %s6249_s5  ;;  %1849 = vst.msk [vmem:[%s7732_s7 + $0x78] sm:$0xff] %vm1217_vm1, %v7869_v28  ;;  %v7881_v10 = vsel %vm1697_vm3, %v1648_v1, %v1750_v0 }
 0x291   : > { %v7883_v26 = vsel %vm1700_vm4, %v1651_v5, %v1753_v33  ;;  %1848 = vst.msk [vmem:[%s7732_s7 + $0x70] sm:$0xff] %vm1217_vm1, %v7881_v10  ;;  %v1602_v34 = vmul.f32 %v10328_v61, %v7572_v36  ;;  %v1601_v1 = vmul.f32 %v10328_v61, %v7569_v53  ;;  %v1652_v2 = vadd.f32 %v7657_v47, %v1599_v22 }
 0x292   : > { %1851 = vst.msk [vmem:[%s7732_s7 + $0x88] sm:$0xff] %vm1217_vm1, %v7883_v26  ;;  %v7893_v42 = vsel %vm1699_vm5, %v1650_v55, %v1752_v19  ;;  %v1604_v5 = vmul.f32 %v10328_v61, %v7579_v27  ;;  %v1603_v6 = vmul.f32 %v10328_v61, %v7575_v14  ;;  %v1606_v55 = vmul.f32 %v10328_v61, %v7585_v29 }
 0x293   : > { %1850 = vst.msk [vmem:[%s7732_s7 + $0x80] sm:$0xff] %vm1217_vm1, %v7893_v42  ;;  %vm1702_vm6 = vcmp.ge.f32.partialorder %v1653_v38, 0.0  ;;  %v1755_v36 = vmul.f32 %v7329_v62, %v1653_v38  ;;  %v1655_v53 = vadd.f32 %v7657_v47, %v1602_v34  ;;  %v1654_v0 = vadd.f32 %v7657_v47, %v1601_v1 }
 0x294   : > { %1954 = vrot.lane.b32.xlu0 %v7827_v3, %s6249_s5  ;;  %1952 = vrot.lane.b32.xlu1 %v7829_v24, %s6249_s5  ;;  %vm1701_vm7 = vcmp.ge.f32.partialorder %v1652_v2, 0.0  ;;  %v1754_v14 = vmul.f32 %v7329_v62, %v1652_v2  ;;  %v1657_v27 = vadd.f32 %v7657_v47, %v1604_v5  ;;  %v1656_v29 = vadd.f32 %v7657_v47, %v1603_v6 }
 0x295   : > { %v7920_v33 = vsel %vm1702_vm6, %v1653_v38, %v1755_v36  ;;  %vm1704_vm8 = vcmp.ge.f32.partialorder %v1655_v53, 0.0  ;;  %v1757_v19 = vmul.f32 %v7329_v62, %v1655_v53  ;;  %vm1703_vm9 = vcmp.ge.f32.partialorder %v1654_v0, 0.0 }
 0x296   : > { %1853 = vst.msk [vmem:[%s7732_s7 + $0x98] sm:$0xff] %vm1217_vm1, %v7920_v33  ;;  %v7926_v48 = vsel %vm1701_vm7, %v1652_v2, %v1754_v14  ;;  %v1756_v22 = vmul.f32 %v7329_v62, %v1654_v0  ;;  %vm1706_vm10 = vcmp.ge.f32.partialorder %v1657_v27, 0.0  ;;  %v1759_v34 = vmul.f32 %v7329_v62, %v1657_v27 }
 0x297   : > { %1852 = vst.msk [vmem:[%s7732_s7 + $0x90] sm:$0xff] %vm1217_vm1, %v7926_v48  ;;  %v7933_v38 = vsel %vm1704_vm8, %v1655_v53, %v1757_v19  ;;  %vm1705_vm11 = vcmp.ge.f32.partialorder %v1656_v29, 0.0  ;;  %v1758_v1 = vmul.f32 %v7329_v62, %v1656_v29  ;;  %v1659_v5 = vadd.f32 %v7657_v47, %v1606_v55 }
 0x298   : > { %1958 = vrot.lane.b32.xlu0 %v7853_v49, %s6249_s5  ;;  %1956 = vrot.lane.b32.xlu1 %v7860_v58, %s6249_s5  ;;  %1855 = vst.msk [vmem:[%s7732_s7 + $0xa8] sm:$0xff] %vm1217_vm1, %v7933_v38  ;;  %v7944_v2 = vsel %vm1703_vm9, %v1654_v0, %v1756_v22  ;;  %v7946_v6 = vsel %vm1706_vm10, %v1657_v27, %v1759_v34 }
 0x299   : > { %v1605_v36 = vmul.f32 %v10328_v61, %v7582_v51  ;;  %1854 = vst.msk [vmem:[%s7732_s7 + $0xa0] sm:$0xff] %vm1217_vm1, %v7944_v2  ;;  %1857 = vst.msk [vmem:[%s7732_s7 + $0xb8] sm:$0xff] %vm1217_vm1, %v7946_v6  ;;  %v7956_v55 = vsel %vm1705_vm11, %v1656_v29, %v1758_v1  ;;  %vm1708_vm12 = vcmp.ge.f32.partialorder %v1659_v5, 0.0  ;;  %v1761_v53 = vmul.f32 %v7329_v62, %v1659_v5 }
 0x29a   : > { %v1608_v0 = vmul.f32 %v10328_v61, %v7591_v46  ;;  %1856 = vst.msk [vmem:[%s7732_s7 + $0xb0] sm:$0xff] %vm1217_vm1, %v7956_v55  ;;  %v1607_v14 = vmul.f32 %v10328_v61, %v7588_v41  ;;  %v1610_v27 = vmul.f32 %v10328_v61, %v7597_v16  ;;  %v1609_v29 = vmul.f32 %v10328_v61, %v7594_v50 }
 0x29b   : > { %v1658_v51 = vadd.f32 %v7657_v47, %v1605_v36  ;;  %v7971_v19 = vsel %vm1708_vm12, %v1659_v5, %v1761_v53  ;;  %v1612_v46 = vmul.f32 %v10328_v61, %v7609_v44  ;;  %v1611_v34 = vmul.f32 %v10328_v61, %v7600_v8 }
 0x29c   : > { %v1661_v22 = vadd.f32 %v7657_v47, %v1608_v0  ;;  %1962 = vrot.lane.b32.xlu0 %v7869_v28, %s6249_s5  ;;  %1960 = vrot.lane.b32.xlu1 %v7881_v10, %s6249_s5  ;;  %1859 = vst.msk [vmem:[%s7732_s7 + $0xc8] sm:$0xff] %vm1217_vm1, %v7971_v19  ;;  %v1660_v50 = vadd.f32 %v7657_v47, %v1607_v14 }
 0x29d   : > { %vm1707_vm13 = vcmp.ge.f32.partialorder %v1658_v51, 0.0  ;;  %v1760_v41 = vmul.f32 %v7329_v62, %v1658_v51  ;;  %v1663_v16 = vadd.f32 %v7657_v47, %v1610_v27  ;;  %v1662_v44 = vadd.f32 %v7657_v47, %v1609_v29 }
 0x29e   : > { %vm1710_vm14 = vcmp.ge.f32.partialorder %v1661_v22, 0.0  ;;  %v1763_v8 = vmul.f32 %v7329_v62, %v1661_v22  ;;  %v1665_v1 = vadd.f32 %v7657_v47, %v1612_v46  ;;  %vm1709_vm15 = vcmp.ge.f32.partialorder %v1660_v50, 0.0 }
 0x29f   : > { %v7991_v5 = vsel %vm1707_vm13, %v1658_v51, %v1760_v41  ;;  %v1762_v36 = vmul.f32 %v7329_v62, %v1660_v50  ;;  %vm1712_vm2 = vcmp.ge.f32.partialorder %v1663_v16, 0.0  ;;  %v1765_v0 = vmul.f32 %v7329_v62, %v1663_v16 }
 0x2a0   : > { %1858 = vst.msk [vmem:[%s7732_s7 + $0xc0] sm:$0xff] %vm1217_vm1, %v7991_v5  ;;  %v7997_v53 = vsel %vm1710_vm14, %v1661_v22, %v1763_v8  ;;  %vm1711_vm3 = vcmp.ge.f32.partialorder %v1662_v44, 0.0  ;;  %v1764_v14 = vmul.f32 %v7329_v62, %v1662_v44  ;;  %1966 = vrot.lane.b32.xlu0 %v7883_v26, %s6249_s5  ;;  %1964 = vrot.lane.b32.xlu1 %v7893_v42, %s6249_s5  ;;  %vm1714_vm4 = vcmp.ge.f32.partialorder %v1665_v1, 0.0 }
 0x2a1   : > { %1861 = vst.msk [vmem:[%s7732_s7 + $0xd8] sm:$0xff] %vm1217_vm1, %v7997_v53  ;;  %v8008_v51 = vsel %vm1709_vm15, %v1660_v50, %v1762_v36  ;;  %v1767_v27 = vmul.f32 %v7329_v62, %v1665_v1  ;;  %v1664_v29 = vadd.f32 %v7657_v47, %v1611_v34  ;;  %v8015_v22 = vsel %vm1712_vm2, %v1663_v16, %v1765_v0 }
 0x2a2   : > { %1860 = vst.msk [vmem:[%s7732_s7 + $0xd0] sm:$0xff] %vm1217_vm1, %v8008_v51  ;;  %v8017_v46 = vsel %vm1711_vm3, %v1662_v44, %v1764_v14  ;;  %v1614_v41 = vmul.f32 %v10328_v61, %v7615_v25  ;;  %v1613_v8 = vmul.f32 %v10328_v61, %v7612_v60  ;;  %1863 = vst.msk [vmem:[%s7732_s7 + $0xe8] sm:$0xff] %vm1217_vm1, %v8015_v22 }
 0x2a3   : > { %1862 = vst.msk [vmem:[%s7732_s7 + $0xe0] sm:$0xff] %vm1217_vm1, %v8017_v46  ;;  %v8029_v34 = vsel %vm1714_vm4, %v1665_v1, %v1767_v27  ;;  %vm1713_vm5 = vcmp.ge.f32.partialorder %v1664_v29, 0.0  ;;  %v1766_v50 = vmul.f32 %v7329_v62, %v1664_v29  ;;  %v1616_v16 = vmul.f32 %v10328_v61, %v7621_v13 }
 0x2a4   : > { %1865 = vst.msk [vmem:[%s7732_s7 + $0xf8] sm:$0xff] %vm1217_vm1, %v8029_v34  ;;  %v1667_v60 = vadd.f32 %v7657_v47, %v1614_v41  ;;  %v1666_v25 = vadd.f32 %v7657_v47, %v1613_v8  ;;  %v1615_v44 = vmul.f32 %v10328_v61, %v7618_v32  ;;  %v1618_v1 = vmul.f32 %v10328_v61, %v7627_v9 }
 0x2a5   : > { %1970 = vrot.lane.b32.xlu0 %v7920_v33, %s6249_s5  ;;  %1968 = vrot.lane.b32.xlu1 %v7926_v48, %s6249_s5  ;;  %v8047_v13 = vsel %vm1713_vm5, %v1664_v29, %v1766_v50  ;;  %v1669_v36 = vadd.f32 %v7657_v47, %v1616_v16  ;;  %v1617_v0 = vmul.f32 %v10328_v61, %v7624_v17 }
 0x2a6   : > { %1864 = vst.msk [vmem:[%s7732_s7 + $0xf0] sm:$0xff] %vm1217_vm1, %v8047_v13  ;;  %vm1716_vm6 = vcmp.ge.f32.partialorder %v1667_v60, 0.0  ;;  %v1769_v32 = vmul.f32 %v7329_v62, %v1667_v60  ;;  %vm1715_vm7 = vcmp.ge.f32.partialorder %v1666_v25, 0.0  ;;  %v1768_v9 = vmul.f32 %v7329_v62, %v1666_v25 }
 0x2a7   : > { %vm1718_vm8 = vcmp.ge.f32.partialorder %v1669_v36, 0.0  ;;  %v1771_v14 = vmul.f32 %v7329_v62, %v1669_v36  ;;  %v1668_v27 = vadd.f32 %v7657_v47, %v1615_v44  ;;  %v1671_v29 = vadd.f32 %v7657_v47, %v1618_v1 }
 0x2a8   : > { %v8060_v17 = vsel %vm1716_vm6, %v1667_v60, %v1769_v32  ;;  %v8062_v41 = vsel %vm1715_vm7, %v1666_v25, %v1768_v9  ;;  %v1670_v8 = vadd.f32 %v7657_v47, %v1617_v0  ;;  %v1620_v50 = vmul.f32 %v10328_v61, %v7637_v37 }
 0x2a9   : > { %1974 = vrot.lane.b32.xlu0 %v7933_v38, %s6249_s5  ;;  %1972 = vrot.lane.b32.xlu1 %v7944_v2, %s6249_s5  ;;  %1867 = vst.msk [vmem:[%s7732_s7 + $0x108] sm:$0xff] %vm1217_vm1, %v8060_v17  ;;  %1866 = vst.msk [vmem:[%s7732_s7 + $0x100] sm:$0xff] %vm1217_vm1, %v8062_v41  ;;  %v8077_v16 = vsel %vm1718_vm8, %v1669_v36, %v1771_v14  ;;  %vm1717_vm9 = vcmp.ge.f32.partialorder %v1668_v27, 0.0  ;;  %v1770_v60 = vmul.f32 %v7329_v62, %v1668_v27 }
 0x2aa   : > { %vm1720_vm10 = vcmp.ge.f32.partialorder %v1671_v29, 0.0  ;;  %1869 = vst.msk [vmem:[%s7732_s7 + $0x118] sm:$0xff] %vm1217_vm1, %v8077_v16  ;;  %v1773_v37 = vmul.f32 %v7329_v62, %v1671_v29  ;;  %vm1719_vm11 = vcmp.ge.f32.partialorder %v1670_v8, 0.0  ;;  %v1772_v25 = vmul.f32 %v7329_v62, %v1670_v8 }
 0x2ab   : > { %v1673_v44 = vadd.f32 %v7657_v47, %v1620_v50  ;;  %v8086_v1 = vsel %vm1717_vm9, %v1668_v27, %v1770_v60  ;;  %v1619_v36 = vmul.f32 %v10328_v61, %v7630_v57  ;;  %v1622_v0 = vmul.f32 %v10328_v61, %v7649_v63 }
 0x2ac   : > { %v1621_v32 = vmul.f32 %v10328_v61, %v7643_v56  ;;  %1868 = vst.msk [vmem:[%s7732_s7 + $0x110] sm:$0xff] %vm1217_vm1, %v8086_v1  ;;  %v8097_v9 = vsel %vm1720_vm10, %v1671_v29, %v1773_v37  ;;  %v8099_v14 = vsel %vm1719_vm11, %v1670_v8, %v1772_v25  ;;  %v1624_v8 = vmul.f32 %v10328_v61, %v7663_v21 }
 0x2ad   : > { %vm1722_vm12 = vcmp.ge.f32.partialorder %v1673_v44, 0.0  ;;  %v1775_v27 = vmul.f32 %v7329_v62, %v1673_v44  ;;  %1978 = vrot.lane.b32.xlu0 %v7946_v6, %s6249_s5  ;;  %1976 = vrot.lane.b32.xlu1 %v7956_v55, %s6249_s5  ;;  %1871 = vst.msk [vmem:[%s7732_s7 + $0x128] sm:$0xff] %vm1217_vm1, %v8097_v9  ;;  %1870 = vst.msk [vmem:[%s7732_s7 + $0x120] sm:$0xff] %vm1217_vm1, %v8099_v14  ;;  %v1672_v57 = vadd.f32 %v7657_v47, %v1619_v36  ;;  %vm2079_vm9 = vcmask 1048064  }
 0x2ae   : > { %v1675_v56 = vadd.f32 %v7657_v47, %v1622_v0  ;;  %v1674_v63 = vadd.f32 %v7657_v47, %v1621_v32  ;;  %v1623_v50 = vmul.f32 %v10328_v61, %v7655_v15  ;;  %v1626_v60 = vmul.f32 %v10328_v61, %v7675_v43 }
 0x2af   : > { %v8115_v29 = vsel %vm1722_vm12, %v1673_v44, %v1775_v27  ;;  %vm1721_vm13 = vcmp.ge.f32.partialorder %v1672_v57, 0.0  ;;  %v1774_v37 = vmul.f32 %v7329_v62, %v1672_v57  ;;  %v1677_v15 = vadd.f32 %v7657_v47, %v1624_v8 }
 0x2b0   : > { %1873 = vst.msk [vmem:[%s7732_s7 + $0x138] sm:$0xff] %vm1217_vm1, %v8115_v29  ;;  %vm1724_vm14 = vcmp.ge.f32.partialorder %v1675_v56, 0.0  ;;  %v1777_v25 = vmul.f32 %v7329_v62, %v1675_v56  ;;  %vm1723_vm15 = vcmp.ge.f32.partialorder %v1674_v63, 0.0  ;;  %v1776_v21 = vmul.f32 %v7329_v62, %v1674_v63 }
 0x2b1   : > { %v1676_v44 = vadd.f32 %v7657_v47, %v1623_v50  ;;  %1982 = vrot.lane.b32.xlu0 %v7971_v19, %s6249_s5  ;;  %1980 = vrot.lane.b32.xlu1 %v7991_v5, %s6249_s5  ;;  %v8135_v43 = vsel %vm1721_vm13, %v1672_v57, %v1774_v37  ;;  %v1679_v0 = vadd.f32 %v7657_v47, %v1626_v60  ;;  %vm1726_vm2 = vcmp.ge.f32.partialorder %v1677_v15, 0.0 }
 0x2b2   : > { %v8137_v36 = vsel %vm1724_vm14, %v1675_v56, %v1777_v25  ;;  %1872 = vst.msk [vmem:[%s7732_s7 + $0x130] sm:$0xff] %vm1217_vm1, %v8135_v43  ;;  %v8146_v32 = vsel %vm1723_vm15, %v1674_v63, %v1776_v21  ;;  %v1779_v27 = vmul.f32 %v7329_v62, %v1677_v15  ;;  %v1625_v8 = vmul.f32 %v10328_v61, %v7669_v31 }
 0x2b3   : > { %1875 = vst.msk [vmem:[%s7732_s7 + $0x148] sm:$0xff] %vm1217_vm1, %v8137_v36  ;;  %vm1725_vm3 = vcmp.ge.f32.partialorder %v1676_v44, 0.0  ;;  %1874 = vst.msk [vmem:[%s7732_s7 + $0x140] sm:$0xff] %vm1217_vm1, %v8146_v32  ;;  %v1778_v57 = vmul.f32 %v7329_v62, %v1676_v44  ;;  %vm1728_vm4 = vcmp.ge.f32.partialorder %v1679_v0, 0.0  ;;  %v1781_v56 = vmul.f32 %v7329_v62, %v1679_v0 }
 0x2b4   : > { %v8156_v50 = vsel %vm1726_vm2, %v1677_v15, %v1779_v27  ;;  %v1628_v63 = vmul.f32 %v10328_v61, %v7695_v12  ;;  %v1627_v60 = vmul.f32 %v10328_v61, %v7681_v40  ;;  %v1629_v37 = vmul.f32 %v10328_v61, %v7464_v30 }
 0x2b5   : > { %1986 = vrot.lane.b32.xlu0 %v7997_v53, %s6249_s5  ;;  %1984 = vrot.lane.b32.xlu1 %v8008_v51, %s6249_s5  ;;  %1877 = vst.msk [vmem:[%s7732_s7 + $0x158] sm:$0xff] %vm1217_vm1, %v8156_v50  ;;  %v8171_v31 = vsel %vm1725_vm3, %v1676_v44, %v1778_v57  ;;  %v8173_v25 = vsel %vm1728_vm4, %v1679_v0, %v1781_v56  ;;  %vm2129_vm10 = vcmask 522240  }
 0x2b6   : > { %v1678_v12 = vadd.f32 %v7657_v47, %v1625_v8  ;;  %1876 = vst.msk [vmem:[%s7732_s7 + $0x150] sm:$0xff] %vm1217_vm1, %v8171_v31  ;;  %1879 = vst.msk [vmem:[%s7732_s7 + $0x168] sm:$0xff] %vm1217_vm1, %v8173_v25  ;;  %v1681_v30 = vadd.f32 %v7657_v47, %v1628_v63  ;;  %v1680_v40 = vadd.f32 %v7657_v47, %v1627_v60 }
 0x2b7   : > { %v1682_v61 = vadd.f32 %v7657_v47, %v1629_v37 }
 0x2b8   : > { %vm1727_vm5 = vcmp.ge.f32.partialorder %v1678_v12, 0.0  ;;  %v1780_v21 = vmul.f32 %v7329_v62, %v1678_v12  ;;  %vm1730_vm6 = vcmp.ge.f32.partialorder %v1681_v30, 0.0  ;;  %v1783_v15 = vmul.f32 %v7329_v62, %v1681_v30 }
 0x2b9   : > { %vm1729_vm7 = vcmp.ge.f32.partialorder %v1680_v40, 0.0  ;;  %v1782_v44 = vmul.f32 %v7329_v62, %v1680_v40  ;;  %1990 = vrot.lane.b32.xlu0 %v8015_v22, %s6249_s5  ;;  %1988 = vrot.lane.b32.xlu1 %v8017_v46, %s6249_s5  ;;  %vm1731_vm8 = vcmp.ge.f32.partialorder %v1682_v61, 0.0  ;;  %v1784_v47 = vmul.f32 %v7329_v62, %v1682_v61 }
 0x2ba   : > { %v8192_v0 = vsel %vm1727_vm5, %v1678_v12, %v1780_v21  ;;  %v8198_v27 = vsel %vm1730_vm6, %v1681_v30, %v1783_v15  ;;  %v2271_v15 = vld [vmem:[%s10264_s2 + $0x158] sm:$0xff] }
 0x2bb   : > { %1878 = vst.msk [vmem:[%s7732_s7 + $0x160] sm:$0xff] %vm1217_vm1, %v8192_v0  ;;  %v8200_v57 = vsel %vm1729_vm7, %v1680_v40, %v1782_v44  ;;  %1881 = vst.msk [vmem:[%s7732_s7 + $0x178] sm:$0xff] %vm1217_vm1, %v8198_v27  ;;  %v8208_v56 = vsel %vm1731_vm8, %v1682_v61, %v1784_v47  ;;  %v2273_v40 = vld [vmem:[%s10264_s2 + $0x168] sm:$0xff]  ;;  %v2270_v44 = vld [vmem:[%s10264_s2 + $0x150] sm:$0xff] }
 0x2bc   : > { %1880 = vst.msk [vmem:[%s7732_s7 + $0x170] sm:$0xff] %vm1217_vm1, %v8200_v57  ;;  %1882 = vst.msk [vmem:[%s7732_s7 + $0x180] sm:$0xff] %vm1217_vm1, %v8208_v56 }
 0x2bd   : > { %1994 = vrot.lane.b32.xlu0 %v8029_v34, %s6249_s5  ;;  %1992 = vrot.lane.b32.xlu1 %v8047_v13, %s6249_s5 }
 0x2c1   : > { %1998 = vrot.lane.b32.xlu0 %v8060_v17, %s6249_s5  ;;  %1996 = vrot.lane.b32.xlu1 %v8062_v41, %s6249_s5 }
 0x2c5   : > { %2002 = vrot.lane.b32.xlu0 %v8077_v16, %s6249_s5  ;;  %2000 = vrot.lane.b32.xlu1 %v8086_v1, %s6249_s5 }
 0x2c9   : > { %2006 = vrot.lane.b32.xlu0 %v8097_v9, %s6249_s5  ;;  %2004 = vrot.lane.b32.xlu1 %v8099_v14, %s6249_s5 }
 0x2cd   : > { %2010 = vrot.lane.b32.xlu0 %v8115_v29, %s6249_s5  ;;  %2008 = vrot.lane.b32.xlu1 %v8135_v43, %s6249_s5 }
 0x2d1   : > { %2014 = vrot.lane.b32.xlu0 %v8137_v36, %s6249_s5  ;;  %2012 = vrot.lane.b32.xlu1 %v8146_v32, %s6249_s5 }
 0x2d5   : > { %2018 = vrot.lane.b32.xlu0 %v8156_v50, %s6249_s5  ;;  %2016 = vrot.lane.b32.xlu1 %v8171_v31, %s6249_s5 }
 0x2d9   : > { %2022 = vrot.lane.b32.xlu0 %v8173_v25, %s6249_s5  ;;  %2020 = vrot.lane.b32.xlu1 %v8192_v0, %s6249_s5 }
 0x2dd   : > { %2026 = vrot.lane.b32.xlu0 %v8198_v27, %s6249_s5  ;;  %2024 = vrot.lane.b32.xlu1 %v8200_v57, %s6249_s5 }
 0x2e1   : > { %2028 = vrot.lane.b32.xlu0 %v8208_v56, %s6249_s5 }
 0x2f2   : > { %v1935_v62 = vpop.permute.xlu0 %1934  ;;  %v1933_v8 = vpop.permute.xlu1 %1932 }
 0x2f3   : > { %2081 = vst.msk [vmem:[#allocation2 + $0x8] sm:$0xff] %vm2079_vm9, %v1935_v62  ;;  %2080 = vst.msk [vmem:[#allocation2] sm:$0xff] %vm2079_vm9, %v1933_v8  ;;  %v2269_v8 = vld [vmem:[%s10264_s2 + $0x148] sm:$0xff] }
 0x2f4   : > { %2131 = vst.msk [vmem:[#allocation2 + $0x9] sm:$0x7f] %vm2129_vm10, %v7739_v35  ;;  %2130 = vst.msk [vmem:[#allocation2 + $0x1] sm:$0x7f] %vm2129_vm10, %v7741_v45 }
 0x2f6   : > { %v1939_v63 = vpop.permute.xlu0 %1938  ;;  %v1937_v60 = vpop.permute.xlu1 %1936 }
 0x2f7   : > { %2083 = vst.msk [vmem:[#allocation2 + $0x18] sm:$0xff] %vm2079_vm9, %v1939_v63  ;;  %2082 = vst.msk [vmem:[#allocation2 + $0x10] sm:$0xff] %vm2079_vm9, %v1937_v60  ;;  %v2268_v63 = vld [vmem:[%s10264_s2 + $0x140] sm:$0xff] }
 0x2f8   : > { %2133 = vst.msk [vmem:[#allocation2 + $0x19] sm:$0x7f] %vm2129_vm10, %v7754_v54  ;;  %2132 = vst.msk [vmem:[#allocation2 + $0x11] sm:$0x7f] %vm2129_vm10, %v7756_v59  ;;  %v2274_v54 = vld [vmem:[%s10264_s2 + $0x170] sm:$0xff] }
 0x2fa   : > { %v1943_v37 = vpop.permute.xlu0 %1942  ;;  %v1941_v12 = vpop.permute.xlu1 %1940 }
 0x2fb   : > { %2085 = vst.msk [vmem:[#allocation2 + $0x28] sm:$0xff] %vm2079_vm9, %v1943_v37  ;;  %2084 = vst.msk [vmem:[#allocation2 + $0x20] sm:$0xff] %vm2079_vm9, %v1941_v12  ;;  %v2180_v35 = vld [vmem:[#allocation2 + $0x8] sm:$0xff]  ;;  %v2179_v45 = vld [vmem:[#allocation2] sm:$0xff] }
 0x2fc   : > { %2135 = vst.msk [vmem:[#allocation2 + $0x29] sm:$0x7f] %vm2129_vm10, %v7765_v39  ;;  %2134 = vst.msk [vmem:[#allocation2 + $0x21] sm:$0x7f] %vm2129_vm10, %v7772_v52  ;;  %2346 = vmatprep.mubr.f32.mxu1 %v2180_v35  ;;  %v2267_v12 = vld [vmem:[%s10264_s2 + $0x138] sm:$0xff]  ;;  %v2266_v35 = vld [vmem:[%s10264_s2 + $0x130] sm:$0xff] }
 0x2fd   : > { %2347 = vmatmul.mubr.f32.vlgmr.msra.gmra.mxu1 %v2179_v45 }
 0x2fe   : > { %5636 = vmatpush3.msra.mxu1 %v7727_v23  ;;  %v1947_v59 = vpop.permute.xlu0 %1946  ;;  %v1945_v30 = vpop.permute.xlu1 %1944  ;;  %v2272_v23 = vld [vmem:[%s10264_s2 + $0x160] sm:$0xff] }
 0x2ff   : > { %2087 = vst.msk [vmem:[#allocation2 + $0x38] sm:$0xff] %vm2079_vm9, %v1947_v59  ;;  %2086 = vst.msk [vmem:[#allocation2 + $0x30] sm:$0xff] %vm2079_vm9, %v1945_v30  ;;  %v2182_v39 = vld [vmem:[#allocation2 + $0x18] sm:$0xff]  ;;  %v8278_v52 = vld [vmem:[#allocation2 + $0x10] sm:$0xff]  ;;  %5637 = vmatprep.subr.mxu1 %v2274_v54 }
 0x300   : > { %2137 = vst.msk [vmem:[#allocation2 + $0x39] sm:$0x7f] %vm2129_vm10, %v7783_v20  ;;  %2136 = vst.msk [vmem:[#allocation2 + $0x31] sm:$0x7f] %vm2129_vm10, %v7798_v4  ;;  %2351 = vmatprep.mubr.f32.mxu1 %v2182_v39  ;;  %5638 = vmatpush3.msra.mxu1 %v2274_v54  ;;  %v2265_v59 = vld [vmem:[%s10264_s2 + $0x128] sm:$0xff]  ;;  %v2264_v30 = vld [vmem:[%s10264_s2 + $0x120] sm:$0xff] }
 0x301   : > { %2352 = vmatmul.mubr.f32.gmra.mxu1 %v8278_v52  ;;  %5639 = vmatprep.subr.mxu1 %v2273_v40 }
 0x302   : > { %v1951_v61 = vpop.permute.xlu0 %1950  ;;  %v1949_v21 = vpop.permute.xlu1 %1948  ;;  %5640 = vmatpush3.msra.mxu1 %v2273_v40 }
 0x303   : > { %2089 = vst.msk [vmem:[#allocation2 + $0x48] sm:$0xff] %vm2079_vm9, %v1951_v61  ;;  %2088 = vst.msk [vmem:[#allocation2 + $0x40] sm:$0xff] %vm2079_vm9, %v1949_v21  ;;  %v2184_v20 = vld [vmem:[#allocation2 + $0x28] sm:$0xff]  ;;  %v8293_v4 = vld [vmem:[#allocation2 + $0x20] sm:$0xff]  ;;  %5641 = vmatprep.subr.mxu1 %v2272_v23 }
 0x304   : > { %2139 = vst.msk [vmem:[#allocation2 + $0x49] sm:$0x7f] %vm2129_vm10, %v7816_v11  ;;  %2138 = vst.msk [vmem:[#allocation2 + $0x41] sm:$0x7f] %vm2129_vm10, %v7818_v18  ;;  %2356 = vmatprep.mubr.f32.mxu1 %v2184_v20  ;;  %5642 = vmatpush3.msra.mxu1 %v2272_v23  ;;  %v2263_v23 = vld [vmem:[%s10264_s2 + $0x118] sm:$0xff]  ;;  %v2262_v61 = vld [vmem:[%s10264_s2 + $0x110] sm:$0xff] }
 0x305   : > { %2357 = vmatmul.mubr.f32.gmra.mxu1 %v8293_v4  ;;  %5643 = vmatprep.subr.mxu1 %v2271_v15  ;;  %v2261_v20 = vld [vmem:[%s10264_s2 + $0x108] sm:$0xff] }
 0x306   : > { %v1955_v47 = vpop.permute.xlu0 %1954  ;;  %v1953_v62 = vpop.permute.xlu1 %1952  ;;  %5644 = vmatpush3.msra.mxu1 %v2271_v15 }
 0x307   : > { %2091 = vst.msk [vmem:[#allocation2 + $0x58] sm:$0xff] %vm2079_vm9, %v1955_v47  ;;  %2090 = vst.msk [vmem:[#allocation2 + $0x50] sm:$0xff] %vm2079_vm9, %v1953_v62  ;;  %v2186_v11 = vld [vmem:[#allocation2 + $0x38] sm:$0xff]  ;;  %v8308_v18 = vld [vmem:[#allocation2 + $0x30] sm:$0xff]  ;;  %5645 = vmatprep.subr.mxu1 %v2270_v44 }
 0x308   : > { %2141 = vst.msk [vmem:[#allocation2 + $0x59] sm:$0x7f] %vm2129_vm10, %v7827_v3  ;;  %2140 = vst.msk [vmem:[#allocation2 + $0x51] sm:$0x7f] %vm2129_vm10, %v7829_v24  ;;  %2361 = vmatprep.mubr.f32.mxu1 %v2186_v11  ;;  %5646 = vmatpush3.msra.mxu1 %v2270_v44  ;;  %v2260_v44 = vld [vmem:[%s10264_s2 + $0x100] sm:$0xff] }
 0x309   : > { %2362 = vmatmul.mubr.f32.gmra.mxu1 %v8308_v18  ;;  %5647 = vmatprep.subr.mxu1 %v2269_v8 }
 0x30a   : > { %v1959_v60 = vpop.permute.xlu0 %1958  ;;  %v1957_v37 = vpop.permute.xlu1 %1956  ;;  %5648 = vmatpush3.msra.mxu1 %v2269_v8 }
 0x30b   : > { %2093 = vst.msk [vmem:[#allocation2 + $0x68] sm:$0xff] %vm2079_vm9, %v1959_v60  ;;  %2092 = vst.msk [vmem:[#allocation2 + $0x60] sm:$0xff] %vm2079_vm9, %v1957_v37  ;;  %v2188_v3 = vld [vmem:[#allocation2 + $0x48] sm:$0xff]  ;;  %v8323_v24 = vld [vmem:[#allocation2 + $0x40] sm:$0xff]  ;;  %5649 = vmatprep.subr.mxu1 %v2268_v63 }
 0x30c   : > { %2143 = vst.msk [vmem:[#allocation2 + $0x69] sm:$0x7f] %vm2129_vm10, %v7853_v49  ;;  %2142 = vst.msk [vmem:[#allocation2 + $0x61] sm:$0x7f] %vm2129_vm10, %v7860_v58  ;;  %2366 = vmatprep.mubr.f32.mxu1 %v2188_v3  ;;  %5650 = vmatpush3.msra.mxu1 %v2268_v63 }
 0x30d   : > { %2367 = vmatmul.mubr.f32.gmra.mxu1 %v8323_v24  ;;  %5651 = vmatprep.subr.mxu1 %v2267_v12 }
 0x30e   : > { %v1963_v45 = vpop.permute.xlu0 %1962  ;;  %v1961_v54 = vpop.permute.xlu1 %1960  ;;  %5652 = vmatpush3.msra.mxu1 %v2267_v12 }
 0x30f   : > { %2095 = vst.msk [vmem:[#allocation2 + $0x78] sm:$0xff] %vm2079_vm9, %v1963_v45  ;;  %2094 = vst.msk [vmem:[#allocation2 + $0x70] sm:$0xff] %vm2079_vm9, %v1961_v54  ;;  %v2190_v49 = vld [vmem:[#allocation2 + $0x58] sm:$0xff]  ;;  %v8338_v58 = vld [vmem:[#allocation2 + $0x50] sm:$0xff]  ;;  %5653 = vmatprep.subr.mxu1 %v2266_v35 }
 0x310   : > { %2145 = vst.msk [vmem:[#allocation2 + $0x79] sm:$0x7f] %vm2129_vm10, %v7869_v28  ;;  %2144 = vst.msk [vmem:[#allocation2 + $0x71] sm:$0x7f] %vm2129_vm10, %v7881_v10  ;;  %2371 = vmatprep.mubr.f32.mxu1 %v2190_v49  ;;  %5654 = vmatpush3.msra.mxu1 %v2266_v35 }
 0x311   : > { %2372 = vmatmul.mubr.f32.gmra.mxu1 %v8338_v58  ;;  %5655 = vmatprep.subr.mxu1 %v2265_v59 }
 0x312   : > { %v1967_v40 = vpop.permute.xlu0 %1966  ;;  %v1965_v39 = vpop.permute.xlu1 %1964  ;;  %5656 = vmatpush3.msra.mxu1 %v2265_v59 }
 0x313   : > { %2097 = vst.msk [vmem:[#allocation2 + $0x88] sm:$0xff] %vm2079_vm9, %v1967_v40  ;;  %2096 = vst.msk [vmem:[#allocation2 + $0x80] sm:$0xff] %vm2079_vm9, %v1965_v39  ;;  %v2192_v28 = vld [vmem:[#allocation2 + $0x68] sm:$0xff]  ;;  %v8353_v10 = vld [vmem:[#allocation2 + $0x60] sm:$0xff]  ;;  %5657 = vmatprep.subr.mxu1 %v2264_v30 }
 0x314   : > { %2147 = vst.msk [vmem:[#allocation2 + $0x89] sm:$0x7f] %vm2129_vm10, %v7883_v26  ;;  %2146 = vst.msk [vmem:[#allocation2 + $0x81] sm:$0x7f] %vm2129_vm10, %v7893_v42  ;;  %2376 = vmatprep.mubr.f32.mxu1 %v2192_v28  ;;  %5658 = vmatpush3.msra.mxu1 %v2264_v30 }
 0x315   : > { %2377 = vmatmul.mubr.f32.gmra.mxu1 %v8353_v10  ;;  %5659 = vmatprep.subr.mxu1 %v2263_v23 }
 0x316   : > { %5660 = vmatpush3.msra.mxu1 %v2263_v23 }
 0x317   : > { %v1971_v21 = vpop.permute.xlu0 %1970  ;;  %v1969_v15 = vpop.permute.xlu1 %1968  ;;  %v2194_v26 = vld [vmem:[#allocation2 + $0x78] sm:$0xff]  ;;  %v8368_v42 = vld [vmem:[#allocation2 + $0x70] sm:$0xff]  ;;  %5661 = vmatprep.subr.mxu1 %v2262_v61 }
 0x318   : > { %2099 = vst.msk [vmem:[#allocation2 + $0x98] sm:$0xff] %vm2079_vm9, %v1971_v21  ;;  %2098 = vst.msk [vmem:[#allocation2 + $0x90] sm:$0xff] %vm2079_vm9, %v1969_v15  ;;  %2381 = vmatprep.mubr.f32.mxu1 %v2194_v26  ;;  %5662 = vmatpush3.msra.mxu1 %v2262_v61 }
 0x319   : > { %2149 = vst.msk [vmem:[#allocation2 + $0x99] sm:$0x7f] %vm2129_vm10, %v7920_v33  ;;  %2148 = vst.msk [vmem:[#allocation2 + $0x91] sm:$0x7f] %vm2129_vm10, %v7926_v48  ;;  %2382 = vmatmul.mubr.f32.gmra.mxu1 %v8368_v42  ;;  %5663 = vmatprep.subr.mxu1 %v2261_v20 }
 0x31a   : > { %5664 = vmatpush3.msra.mxu1 %v2261_v20 }
 0x31b   : > { %v1975_v47 = vpop.permute.xlu0 %1974  ;;  %v1973_v62 = vpop.permute.xlu1 %1972  ;;  %v2196_v33 = vld [vmem:[#allocation2 + $0x88] sm:$0xff]  ;;  %v8380_v8 = vld [vmem:[#allocation2 + $0x80] sm:$0xff]  ;;  %5665 = vmatprep.subr.mxu1 %v2260_v44 }
 0x31c   : > { %2101 = vst.msk [vmem:[#allocation2 + $0xa8] sm:$0xff] %vm2079_vm9, %v1975_v47  ;;  %2100 = vst.msk [vmem:[#allocation2 + $0xa0] sm:$0xff] %vm2079_vm9, %v1973_v62  ;;  %2386 = vmatprep.mubr.f32.mxu1 %v2196_v33  ;;  %5666 = vmatpush3.msra.mxu1 %v2260_v44 }
 0x31d   : > { %2151 = vst.msk [vmem:[#allocation2 + $0xa9] sm:$0x7f] %vm2129_vm10, %v7933_v38  ;;  %2150 = vst.msk [vmem:[#allocation2 + $0xa1] sm:$0x7f] %vm2129_vm10, %v7944_v2  ;;  %2387 = vmatmul.mubr.f32.gmra.mxu1 %v8380_v8 }
 0x31f   : > { %v1979_v48 = vpop.permute.xlu0 %1978  ;;  %v1977_v11 = vpop.permute.xlu1 %1976 }
 0x320   : > { %2103 = vst.msk [vmem:[#allocation2 + $0xb8] sm:$0xff] %vm2079_vm9, %v1979_v48  ;;  %2102 = vst.msk [vmem:[#allocation2 + $0xb0] sm:$0xff] %vm2079_vm9, %v1977_v11  ;;  %v2198_v63 = vld [vmem:[#allocation2 + $0x98] sm:$0xff]  ;;  %v8389_v60 = vld [vmem:[#allocation2 + $0x90] sm:$0xff] }
 0x321   : > { %2153 = vst.msk [vmem:[#allocation2 + $0xb9] sm:$0x7f] %vm2129_vm10, %v7946_v6  ;;  %2152 = vst.msk [vmem:[#allocation2 + $0xb1] sm:$0x7f] %vm2129_vm10, %v7956_v55  ;;  %2391 = vmatprep.mubr.f32.mxu1 %v2198_v63 }
 0x322   : > { %2392 = vmatmul.mubr.f32.gmra.mxu1 %v8389_v60 }
 0x323   : > { %v1983_v38 = vpop.permute.xlu0 %1982  ;;  %v1981_v2 = vpop.permute.xlu1 %1980 }
 0x324   : > { %2105 = vst.msk [vmem:[#allocation2 + $0xc8] sm:$0xff] %vm2079_vm9, %v1983_v38  ;;  %2104 = vst.msk [vmem:[#allocation2 + $0xc0] sm:$0xff] %vm2079_vm9, %v1981_v2  ;;  %v2200_v37 = vld [vmem:[#allocation2 + $0xa8] sm:$0xff]  ;;  %v8398_v12 = vld [vmem:[#allocation2 + $0xa0] sm:$0xff] }
 0x325   : > { %2155 = vst.msk [vmem:[#allocation2 + $0xc9] sm:$0x7f] %vm2129_vm10, %v7971_v19  ;;  %2154 = vst.msk [vmem:[#allocation2 + $0xc1] sm:$0x7f] %vm2129_vm10, %v7991_v5  ;;  %2396 = vmatprep.mubr.f32.mxu1 %v2200_v37 }
 0x326   : > { %2397 = vmatmul.mubr.f32.gmra.mxu1 %v8398_v12 }
 0x327   : > { %v1987_v6 = vpop.permute.xlu0 %1986  ;;  %v1985_v55 = vpop.permute.xlu1 %1984 }
 0x328   : > { %2107 = vst.msk [vmem:[#allocation2 + $0xd8] sm:$0xff] %vm2079_vm9, %v1987_v6  ;;  %2106 = vst.msk [vmem:[#allocation2 + $0xd0] sm:$0xff] %vm2079_vm9, %v1985_v55  ;;  %v2202_v3 = vld [vmem:[#allocation2 + $0xb8] sm:$0xff]  ;;  %v8407_v35 = vld [vmem:[#allocation2 + $0xb0] sm:$0xff] }
 0x329   : > { %2157 = vst.msk [vmem:[#allocation2 + $0xd9] sm:$0x7f] %vm2129_vm10, %v7997_v53  ;;  %2156 = vst.msk [vmem:[#allocation2 + $0xd1] sm:$0x7f] %vm2129_vm10, %v8008_v51  ;;  %2401 = vmatprep.mubr.f32.mxu1 %v2202_v3 }
 0x32a   : > { %2402 = vmatmul.mubr.f32.gmra.mxu1 %v8407_v35 }
 0x32b   : > { %v1991_v19 = vpop.permute.xlu0 %1990  ;;  %v1989_v5 = vpop.permute.xlu1 %1988 }
 0x32c   : > { %2109 = vst.msk [vmem:[#allocation2 + $0xe8] sm:$0xff] %vm2079_vm9, %v1991_v19  ;;  %2108 = vst.msk [vmem:[#allocation2 + $0xe0] sm:$0xff] %vm2079_vm9, %v1989_v5  ;;  %v2204_v45 = vld [vmem:[#allocation2 + $0xc8] sm:$0xff]  ;;  %v8416_v54 = vld [vmem:[#allocation2 + $0xc0] sm:$0xff] }
 0x32d   : > { %2159 = vst.msk [vmem:[#allocation2 + $0xe9] sm:$0x7f] %vm2129_vm10, %v8015_v22  ;;  %2158 = vst.msk [vmem:[#allocation2 + $0xe1] sm:$0x7f] %vm2129_vm10, %v8017_v46  ;;  %2406 = vmatprep.mubr.f32.mxu1 %v2204_v45 }
 0x32e   : > { %2407 = vmatmul.mubr.f32.gmra.mxu1 %v8416_v54 }
 0x32f   : > { %v1995_v53 = vpop.permute.xlu0 %1994  ;;  %v1993_v51 = vpop.permute.xlu1 %1992 }
 0x330   : > { %2111 = vst.msk [vmem:[#allocation2 + $0xf8] sm:$0xff] %vm2079_vm9, %v1995_v53  ;;  %2110 = vst.msk [vmem:[#allocation2 + $0xf0] sm:$0xff] %vm2079_vm9, %v1993_v51  ;;  %v2206_v59 = vld [vmem:[#allocation2 + $0xd8] sm:$0xff]  ;;  %v8425_v49 = vld [vmem:[#allocation2 + $0xd0] sm:$0xff] }
 0x331   : > { %2161 = vst.msk [vmem:[#allocation2 + $0xf9] sm:$0x7f] %vm2129_vm10, %v8029_v34  ;;  %2160 = vst.msk [vmem:[#allocation2 + $0xf1] sm:$0x7f] %vm2129_vm10, %v8047_v13  ;;  %2411 = vmatprep.mubr.f32.mxu1 %v2206_v59 }
 0x332   : > { %2412 = vmatmul.mubr.f32.gmra.mxu1 %v8425_v49 }
 0x333   : > { %v1999_v22 = vpop.permute.xlu0 %1998  ;;  %v1997_v46 = vpop.permute.xlu1 %1996 }
 0x334   : > { %2113 = vst.msk [vmem:[#allocation2 + $0x108] sm:$0xff] %vm2079_vm9, %v1999_v22  ;;  %2112 = vst.msk [vmem:[#allocation2 + $0x100] sm:$0xff] %vm2079_vm9, %v1997_v46  ;;  %v2208_v30 = vld [vmem:[#allocation2 + $0xe8] sm:$0xff]  ;;  %v8434_v40 = vld [vmem:[#allocation2 + $0xe0] sm:$0xff] }
 0x335   : > { %2163 = vst.msk [vmem:[#allocation2 + $0x109] sm:$0x7f] %vm2129_vm10, %v8060_v17  ;;  %2162 = vst.msk [vmem:[#allocation2 + $0x101] sm:$0x7f] %vm2129_vm10, %v8062_v41  ;;  %2416 = vmatprep.mubr.f32.mxu1 %v2208_v30 }
 0x336   : > { %2417 = vmatmul.mubr.f32.gmra.mxu1 %v8434_v40 }
 0x337   : > { %v2003_v34 = vpop.permute.xlu0 %2002  ;;  %v2001_v13 = vpop.permute.xlu1 %2000 }
 0x338   : > { %2115 = vst.msk [vmem:[#allocation2 + $0x118] sm:$0xff] %vm2079_vm9, %v2003_v34  ;;  %2114 = vst.msk [vmem:[#allocation2 + $0x110] sm:$0xff] %vm2079_vm9, %v2001_v13  ;;  %v2210_v39 = vld [vmem:[#allocation2 + $0xf8] sm:$0xff]  ;;  %v8443_v23 = vld [vmem:[#allocation2 + $0xf0] sm:$0xff] }
 0x339   : > { %2165 = vst.msk [vmem:[#allocation2 + $0x119] sm:$0x7f] %vm2129_vm10, %v8077_v16  ;;  %2164 = vst.msk [vmem:[#allocation2 + $0x111] sm:$0x7f] %vm2129_vm10, %v8086_v1  ;;  %2421 = vmatprep.mubr.f32.mxu1 %v2210_v39 }
 0x33a   : > { %2422 = vmatmul.mubr.f32.gmra.mxu1 %v8443_v23 }
 0x33b   : > { %v2007_v17 = vpop.permute.xlu0 %2006  ;;  %v2005_v41 = vpop.permute.xlu1 %2004 }
 0x33c   : > { %2117 = vst.msk [vmem:[#allocation2 + $0x128] sm:$0xff] %vm2079_vm9, %v2007_v17  ;;  %2116 = vst.msk [vmem:[#allocation2 + $0x120] sm:$0xff] %vm2079_vm9, %v2005_v41  ;;  %v2212_v28 = vld [vmem:[#allocation2 + $0x108] sm:$0xff]  ;;  %v8452_v61 = vld [vmem:[#allocation2 + $0x100] sm:$0xff] }
 0x33d   : > { %2167 = vst.msk [vmem:[#allocation2 + $0x129] sm:$0x7f] %vm2129_vm10, %v8097_v9  ;;  %2166 = vst.msk [vmem:[#allocation2 + $0x121] sm:$0x7f] %vm2129_vm10, %v8099_v14  ;;  %2426 = vmatprep.mubr.f32.mxu1 %v2212_v28 }
 0x33e   : > { %2427 = vmatmul.mubr.f32.gmra.mxu1 %v8452_v61 }
 0x33f   : > { %v2011_v16 = vpop.permute.xlu0 %2010  ;;  %v2009_v1 = vpop.permute.xlu1 %2008 }
 0x340   : > { %2119 = vst.msk [vmem:[#allocation2 + $0x138] sm:$0xff] %vm2079_vm9, %v2011_v16  ;;  %2118 = vst.msk [vmem:[#allocation2 + $0x130] sm:$0xff] %vm2079_vm9, %v2009_v1  ;;  %v2214_v21 = vld [vmem:[#allocation2 + $0x118] sm:$0xff]  ;;  %v8461_v15 = vld [vmem:[#allocation2 + $0x110] sm:$0xff] }
 0x341   : > { %2169 = vst.msk [vmem:[#allocation2 + $0x139] sm:$0x7f] %vm2129_vm10, %v8115_v29  ;;  %2168 = vst.msk [vmem:[#allocation2 + $0x131] sm:$0x7f] %vm2129_vm10, %v8135_v43  ;;  %2431 = vmatprep.mubr.f32.mxu1 %v2214_v21 }
 0x342   : > { %2432 = vmatmul.mubr.f32.gmra.mxu1 %v8461_v15 }
 0x343   : > { %v2015_v9 = vpop.permute.xlu0 %2014  ;;  %v2013_v14 = vpop.permute.xlu1 %2012 }
 0x344   : > { %2121 = vst.msk [vmem:[#allocation2 + $0x148] sm:$0xff] %vm2079_vm9, %v2015_v9  ;;  %2120 = vst.msk [vmem:[#allocation2 + $0x140] sm:$0xff] %vm2079_vm9, %v2013_v14  ;;  %v2216_v20 = vld [vmem:[#allocation2 + $0x128] sm:$0xff]  ;;  %v2215_v26 = vld [vmem:[#allocation2 + $0x120] sm:$0xff] }
 0x345   : > { %2171 = vst.msk [vmem:[#allocation2 + $0x149] sm:$0x7f] %vm2129_vm10, %v8137_v36  ;;  %2170 = vst.msk [vmem:[#allocation2 + $0x141] sm:$0x7f] %vm2129_vm10, %v8146_v32  ;;  %2436 = vmatprep.mubr.f32.mxu1 %v2216_v20 }
 0x346   : > { %2437 = vmatmul.mubr.f32.gmra.mxu1 %v2215_v26 }
 0x347   : > { %v2019_v29 = vpop.permute.xlu0 %2018  ;;  %v2017_v43 = vpop.permute.xlu1 %2016 }
 0x348   : > { %2123 = vst.msk [vmem:[#allocation2 + $0x158] sm:$0xff] %vm2079_vm9, %v2019_v29  ;;  %2122 = vst.msk [vmem:[#allocation2 + $0x150] sm:$0xff] %vm2079_vm9, %v2017_v43  ;;  %v2218_v44 = vld [vmem:[#allocation2 + $0x138] sm:$0xff]  ;;  %v2217_v47 = vld [vmem:[#allocation2 + $0x130] sm:$0xff] }
 0x349   : > { %2173 = vst.msk [vmem:[#allocation2 + $0x159] sm:$0x7f] %vm2129_vm10, %v8156_v50  ;;  %2172 = vst.msk [vmem:[#allocation2 + $0x151] sm:$0x7f] %vm2129_vm10, %v8171_v31  ;;  %2441 = vmatprep.mubr.f32.mxu1 %v2218_v44  ;;  %v8547_v29 = vld [vmem:[%s10265_s3 + $0x4] sm:$0x7] }
 0x34a   : > { %2442 = vmatmul.mubr.f32.gmra.mxu1 %v2217_v47 }
 0x34b   : > { %v2023_v36 = vpop.permute.xlu0 %2022  ;;  %v2021_v32 = vpop.permute.xlu1 %2020 }
 0x34c   : > { %2125 = vst.msk [vmem:[#allocation2 + $0x168] sm:$0xff] %vm2079_vm9, %v2023_v36  ;;  %2124 = vst.msk [vmem:[#allocation2 + $0x160] sm:$0xff] %vm2079_vm9, %v2021_v32  ;;  %v2220_v62 = vld [vmem:[#allocation2 + $0x148] sm:$0xff]  ;;  %v2219_v33 = vld [vmem:[#allocation2 + $0x140] sm:$0xff] }
 0x34d   : > { %2175 = vst.msk [vmem:[#allocation2 + $0x169] sm:$0x7f] %vm2129_vm10, %v8173_v25  ;;  %2174 = vst.msk [vmem:[#allocation2 + $0x161] sm:$0x7f] %vm2129_vm10, %v8192_v0  ;;  %2446 = vmatprep.mubr.f32.mxu1 %v2220_v62 }
 0x34e   : > { %2447 = vmatmul.mubr.f32.gmra.mxu1 %v2219_v33 }
 0x34f   : > { %v2027_v50 = vpop.permute.xlu0 %2026  ;;  %v2025_v31 = vpop.permute.xlu1 %2024 }
 0x350   : > { %2127 = vst.msk [vmem:[#allocation2 + $0x178] sm:$0xff] %vm2079_vm9, %v2027_v50  ;;  %2126 = vst.msk [vmem:[#allocation2 + $0x170] sm:$0xff] %vm2079_vm9, %v2025_v31  ;;  %v2222_v48 = vld [vmem:[#allocation2 + $0x158] sm:$0xff]  ;;  %v2221_v11 = vld [vmem:[#allocation2 + $0x150] sm:$0xff] }
 0x351   : > { %2177 = vst.msk [vmem:[#allocation2 + $0x179] sm:$0x7f] %vm2129_vm10, %v8198_v27  ;;  %2176 = vst.msk [vmem:[#allocation2 + $0x171] sm:$0x7f] %vm2129_vm10, %v8200_v57  ;;  %2451 = vmatprep.mubr.f32.mxu1 %v2222_v48 }
 0x352   : > { %2452 = vmatmul.mubr.f32.gmra.mxu1 %v2221_v11 }
 0x353   : > { %v2029_v25 = vpop.permute.xlu0 %2028 }
 0x354   : > { %2128 = vst.msk [vmem:[#allocation2 + $0x180] sm:$0xff] %vm2079_vm9, %v2029_v25  ;;  %v2224_v0 = vld [vmem:[#allocation2 + $0x168] sm:$0xff]  ;;  %v2223_v63 = vld [vmem:[#allocation2 + $0x160] sm:$0xff] }
 0x355   : > { %2178 = vst.msk [vmem:[#allocation2 + $0x181] sm:$0x7f] %vm2129_vm10, %v8208_v56  ;;  %2456 = vmatprep.mubr.f32.mxu1 %v2224_v0 }
 0x356   : > { %2457 = vmatmul.mubr.f32.gmra.mxu1 %v2223_v63 }
 0x358   : > { %v2226_v38 = vld [vmem:[#allocation2 + $0x178] sm:$0xff]  ;;  %v2225_v2 = vld [vmem:[#allocation2 + $0x170] sm:$0xff] }
 0x359   : > { %2461 = vmatprep.mubr.f32.mxu1 %v2226_v38 }
 0x35a   : > { %2462 = vmatmul.mubr.f32.gmra.mxu1 %v2225_v2 }
 0x35b   : > { %5667 = vmatprep.mubr.f32.mxu1 %v8278_v52 }
 0x35c   : > { %v2227_v27 = vld [vmem:[#allocation2 + $0x180] sm:$0xff] }
 0x35e   : > { %5668 = vmatmul.mubr.f32.vlgmr.msra.gmra.mxu1 %v8293_v4 }
 0x35f   : > { %5670 = vmatprep.mubr.f32.mxu1 %v8308_v18 }
 0x362   : > { %5671 = vmatmul.mubr.f32.gmra.mxu1 %v8323_v24 }
 0x363   : > { %5673 = vmatprep.mubr.f32.mxu1 %v8338_v58 }
 0x366   : > { %5674 = vmatmul.mubr.f32.gmra.mxu1 %v8353_v10 }
 0x367   : > { %5676 = vmatprep.mubr.f32.mxu1 %v8368_v42 }
 0x36a   : > { %5677 = vmatmul.mubr.f32.gmra.mxu1 %v8380_v8 }
 0x36b   : > { %5679 = vmatprep.mubr.f32.mxu1 %v8389_v60 }
 0x36e   : > { %5680 = vmatmul.mubr.f32.gmra.mxu1 %v8398_v12 }
 0x36f   : > { %5682 = vmatprep.mubr.f32.mxu1 %v8407_v35 }
 0x372   : > { %5683 = vmatmul.mubr.f32.gmra.mxu1 %v8416_v54 }
 0x373   : > { %5685 = vmatprep.mubr.f32.mxu1 %v8425_v49 }
 0x376   : > { %5686 = vmatmul.mubr.f32.gmra.mxu1 %v8434_v40 }
 0x377   : > { %5688 = vmatprep.mubr.f32.mxu1 %v8443_v23 }
 0x37a   : > { %5689 = vmatmul.mubr.f32.gmra.mxu1 %v8452_v61 }
 0x37b   : > { %5691 = vmatprep.mubr.f32.mxu1 %v8461_v15 }
 0x37e   : > { %5692 = vmatmul.mubr.f32.gmra.mxu1 %v2215_v26 }
 0x37f   : > { %5694 = vmatprep.mubr.f32.mxu1 %v2217_v47  ;;  %v10329_v47 = vld [vmem:[#allocation5_spill] sm:$0xff] }
 0x380   : > { %v8553_v36 = vrot.slane %v8547_v29, %v10329_v47 }
 0x382   : > { %5695 = vmatmul.mubr.f32.gmra.mxu1 %v2219_v33 }
 0x383   : > { %5697 = vmatprep.mubr.f32.mxu1 %v2221_v11 }
 0x386   : > { %5698 = vmatmul.mubr.f32.gmra.mxu1 %v2223_v63 }
 0x387   : > { %5700 = vmatprep.mubr.f32.mxu1 %v2225_v2 }
 0x38a   : > { %5701 = vmatmul.mubr.f32.gmra.mxu1 %v2227_v27 }
 0x3bd   : > { %v2348_v57 = vpop.f32.mrf.mxu1 }
 0x3be   : > { %v2349_v50 = vadd.f32 %v2348_v57, %v8553_v36 }
 0x3bf   : > { %v2350_v56 = vpop.f32.mrf.mxu1 }
 0x3c1   : > { %v2353_v52 = vpop.f32.mrf.mxu1 }
 0x3c2   : > { %v2354_v62 = vadd.f32 %v2353_v52, %v8553_v36 }
 0x3c3   : > { %v2355_v4 = vpop.f32.mrf.mxu1 }
 0x3c5   : > { %v2358_v18 = vpop.f32.mrf.mxu1 }
 0x3c6   : > { %v2359_v38 = vadd.f32 %v2358_v18, %v8553_v36 }
 0x3c7   : > { %v2360_v24 = vpop.f32.mrf.mxu1 }
 0x3c9   : > { %v2363_v58 = vpop.f32.mrf.mxu1 }
 0x3ca   : > { %v2364_v11 = vadd.f32 %v2363_v58, %v8553_v36 }
 0x3cb   : > { %v2365_v10 = vpop.f32.mrf.mxu1 }
 0x3cd   : > { %v2368_v42 = vpop.f32.mrf.mxu1 }
 0x3ce   : > { %v2369_v58 = vadd.f32 %v2368_v42, %v8553_v36 }
 0x3cf   : > { %v2370_v8 = vpop.f32.mrf.mxu1 }
 0x3d1   : > { %v2373_v60 = vpop.f32.mrf.mxu1 }
 0x3d2   : > { %v2374_v57 = vadd.f32 %v2373_v60, %v8553_v36 }
 0x3d3   : > { %v2375_v37 = vpop.f32.mrf.mxu1 }
 0x3d5   : > { %v8512_v12 = vpop.f32.mrf.mxu1 }
 0x3d7   : > { %v2380_v6 = vpop.f32.mrf.mxu1 }
 0x3d9   : > { %v2383_v55 = vpop.f32.mrf.mxu1 }
 0x3da   : > { %v2384_v37 = vadd.f32 %v2383_v55, %v8553_v36 }
 0x3db   : > { %v2385_v3 = vpop.f32.mrf.mxu1 }
 0x3dd   : > { %v8514_v35 = vpop.f32.mrf.mxu1 }
 0x3df   : > { %v2390_v19 = vpop.f32.mrf.mxu1 }
 0x3e0   : > { %v2379_v19 = vadd.f32 %v8512_v12, %v8553_v36 }
 0x3e2   : > { %v8516_v5 = vpop.f32.mrf.mxu1 }
 0x3e4   : > { %v2395_v45 = vpop.f32.mrf.mxu1 }
 0x3e6   : > { %v8518_v54 = vpop.f32.mrf.mxu1 }
 0x3e8   : > { %v2400_v53 = vpop.f32.mrf.mxu1 }
 0x3ea   : > { %v8520_v51 = vpop.f32.mrf.mxu1 }
 0x3ec   : > { %v2405_v59 = vpop.f32.mrf.mxu1 }
 0x3ed   : > { %v2394_v59 = vadd.f32 %v8516_v5, %v8553_v36 }
 0x3ee   : > { %v8522_v49 = vpop.f32.mrf.mxu1 }
 0x3f0   : > { %v2410_v22 = vpop.f32.mrf.mxu1 }
 0x3f2   : > { %v8524_v46 = vpop.f32.mrf.mxu1 }
 0x3f4   : > { %v2415_v30 = vpop.f32.mrf.mxu1 }
 0x3f6   : > { %v8526_v40 = vpop.f32.mrf.mxu1 }
 0x3f8   : > { %v2420_v34 = vpop.f32.mrf.mxu1 }
 0x3f9   : > { %v2389_v34 = vadd.f32 %v8514_v35, %v8553_v36  ;;  %v2399_v35 = vadd.f32 %v8518_v54, %v8553_v36 }
 0x3fa   : > { %v8528_v13 = vpop.f32.mrf.mxu1 }
 0x3fc   : > { %v2425_v39 = vpop.f32.mrf.mxu1 }
 0x3fe   : > { %v8530_v23 = vpop.f32.mrf.mxu1 }
 0x400   : > { %v2430_v17 = vpop.f32.mrf.mxu1 }
 0x402   : > { %v8532_v41 = vpop.f32.mrf.mxu1 }
 0x404   : > { %v2435_v28 = vpop.f32.mrf.mxu1 }
 0x405   : > { %v2404_v28 = vadd.f32 %v8520_v51, %v8553_v36  ;;  %v2414_v51 = vadd.f32 %v8524_v46, %v8553_v36 }
 0x406   : > { %v8534_v61 = vpop.f32.mrf.mxu1 }
 0x408   : > { %v2440_v16 = vpop.f32.mrf.mxu1 }
 0x40a   : > { %v8536_v1 = vpop.f32.mrf.mxu1 }
 0x40c   : > { %v2445_v21 = vpop.f32.mrf.mxu1 }
 0x40e   : > { %v8538_v15 = vpop.f32.mrf.mxu1 }
 0x410   : > { %v2450_v9 = vpop.f32.mrf.mxu1 }
 0x412   : > { %v8540_v14 = vpop.f32.mrf.mxu1 }
 0x414   : > { %v2455_v20 = vpop.f32.mrf.mxu1 }
 0x416   : > { %v8542_v26 = vpop.f32.mrf.mxu1 }
 0x418   : > { %v2460_v43 = vpop.f32.mrf.mxu1 }
 0x41a   : > { %v8549_v44 = vpop.f32.mrf.mxu1 }
 0x41c   : > { %v2465_v32 = vpop.f32.mrf.mxu1 }
 0x41e   : > { %v5669_v33 = vpop.f32.mrf.mxu1 }
 0x41f   : > { %v8557_v31 = vadd.f32 %v5669_v33, %v2354_v62 }
 0x420   : > { %v2533_v48 = vpop.f32.mrf.mxu1 }
 0x421   : > { %v4903_v25 = vmul.f32 -1.442695, %v8557_v31  ;;  %v8561_v0 = vadd.f32 %v2533_v48, %v2349_v50 }
 0x422   : > { %v5672_v63 = vpop.f32.mrf.mxu1 }
 0x423   : > { %6061 = vpow2.f32 %v4903_v25  ;;  %v4902_v2 = vmul.f32 -1.442695, %v8561_v0  ;;  %v8565_v27 = vadd.f32 %v5672_v63, %v2364_v11 }
 0x424   : > { %v2543_v56 = vpop.f32.mrf.mxu1 }
 0x425   : > { %6063 = vpow2.f32 %v4902_v2  ;;  %v4905_v52 = vmul.f32 -1.442695, %v8565_v27  ;;  %v8569_v4 = vadd.f32 %v2543_v56, %v2359_v38  ;;  %v2409_v38 = vadd.f32 %v8522_v49, %v8553_v36 }
 0x426   : > { %v5675_v24 = vpop.f32.mrf.mxu1 }
 0x427   : > { %6065 = vpow2.f32 %v4905_v52  ;;  %v4904_v10 = vmul.f32 -1.442695, %v8569_v4  ;;  %v8573_v18 = vadd.f32 %v5675_v24, %v2374_v57  ;;  %v2424_v24 = vadd.f32 %v8528_v13, %v8553_v36 }
 0x428   : > { %v2553_v8 = vpop.f32.mrf.mxu1 }
 0x429   : > { %6067 = vpow2.f32 %v4904_v10  ;;  %v4907_v6 = vmul.f32 -1.442695, %v8573_v18  ;;  %v8577_v60 = vadd.f32 %v2553_v8, %v2369_v58 }
 0x42a   : > { %v5678_v3 = vpop.f32.mrf.mxu1 }
 0x42b   : > { %6069 = vpow2.f32 %v4907_v6  ;;  %v4906_v42 = vmul.f32 -1.442695, %v8577_v60  ;;  %v8582_v45 = vadd.f32 %v5678_v3, %v2384_v37  ;;  %v2419_v6 = vadd.f32 %v8526_v40, %v8553_v36 }
 0x42c   : > { %v2563_v53 = vpop.f32.mrf.mxu1 }
 0x42d   : > { %6071 = vpow2.f32 %v4906_v42  ;;  %v4909_v55 = vmul.f32 -1.442695, %v8582_v45  ;;  %v8587_v22 = vadd.f32 %v2563_v53, %v2379_v19 }
 0x42e   : > { %v5681_v30 = vpop.f32.mrf.mxu1 }
 0x42f   : > { %6073 = vpow2.f32 %v4909_v55  ;;  %v4908_v12 = vmul.f32 -1.442695, %v8587_v22  ;;  %v8592_v39 = vadd.f32 %v5681_v30, %v2394_v59  ;;  %v2434_v59 = vadd.f32 %v8532_v41, %v8553_v36 }
 0x430   : > { %v6062_v17 = vpop.eup %6061  ;;  %v2573_v16 = vpop.f32.mrf.mxu1 }
 0x431   : > { %v2725_v5 = vadd.f32 1.0, %v6062_v17  ;;  %6075 = vpow2.f32 %v4908_v12  ;;  %v4911_v21 = vmul.f32 -1.442695, %v8592_v39  ;;  %v8597_v9 = vadd.f32 %v2573_v16, %v2389_v34 }
 0x432   : > { %v6064_v20 = vpop.eup %6063  ;;  %v5684_v43 = vpop.f32.mrf.mxu1  ;;  %v2429_v17 = vadd.f32 %v8530_v23, %v8553_v36 }
 0x433   : > { %6077 = vrcp.f32 %v2725_v5  ;;  %v2724_v32 = vadd.f32 1.0, %v6064_v20  ;;  %v4910_v62 = vmul.f32 -1.442695, %v8597_v9  ;;  %v8602_v33 = vadd.f32 %v5684_v43, %v2404_v28 }
 0x434   : > { %v6066_v50 = vpop.eup %6065  ;;  %6079 = vpow2.f32 %v4911_v21  ;;  %v2583_v48 = vpop.f32.mrf.mxu1  ;;  %v2444_v43 = vadd.f32 %v8536_v1, %v8553_v36 }
 0x435   : > { %6081 = vrcp.f32 %v2724_v32  ;;  %v2727_v11 = vadd.f32 1.0, %v6066_v50  ;;  %v4913_v25 = vmul.f32 -1.442695, %v8602_v33  ;;  %v8607_v63 = vadd.f32 %v2583_v48, %v2399_v35 }
 0x436   : > { %v6068_v54 = vpop.eup %6067  ;;  %6083 = vpow2.f32 %v4910_v62  ;;  %v5687_v2 = vpop.f32.mrf.mxu1 }
 0x437   : > { %6085 = vrcp.f32 %v2727_v11  ;;  %v2726_v56 = vadd.f32 1.0, %v6068_v54  ;;  %v4912_v57 = vmul.f32 -1.442695, %v8607_v63  ;;  %v8612_v52 = vadd.f32 %v5687_v2, %v2414_v51 }
 0x438   : > { %v6070_v46 = vpop.eup %6069  ;;  %6087 = vpow2.f32 %v4913_v25  ;;  %v2593_v58 = vpop.f32.mrf.mxu1  ;;  %v2439_v11 = vadd.f32 %v8534_v61, %v8553_v36 }
 0x439   : > { %6089 = vrcp.f32 %v2726_v56  ;;  %v2729_v10 = vadd.f32 1.0, %v6070_v46  ;;  %v4915_v8 = vmul.f32 -1.442695, %v8612_v52  ;;  %v8617_v37 = vadd.f32 %v2593_v58, %v2409_v38 }
 0x43a   : > { %v6072_v49 = vpop.eup %6071  ;;  %6091 = vpow2.f32 %v4912_v57  ;;  %v5690_v3 = vpop.f32.mrf.mxu1  ;;  %v2454_v57 = vadd.f32 %v8540_v14, %v8553_v36 }
 0x43b   : > { %6093 = vrcp.f32 %v2729_v10  ;;  %v2728_v19 = vadd.f32 1.0, %v6072_v49  ;;  %v4914_v42 = vmul.f32 -1.442695, %v8617_v37  ;;  %v8622_v53 = vadd.f32 %v5690_v3, %v2424_v24 }
 0x43c   : > { %v6074_v13 = vpop.eup %6073  ;;  %6095 = vpow2.f32 %v4915_v8  ;;  %v2603_v55 = vpop.f32.mrf.mxu1  ;;  %v2449_v49 = vadd.f32 %v8538_v15, %v8553_v36 }
 0x43d   : > { %6097 = vrcp.f32 %v2728_v19  ;;  %v2731_v30 = vadd.f32 1.0, %v6074_v13  ;;  %v4917_v34 = vmul.f32 -1.442695, %v8622_v53  ;;  %v8627_v12 = vadd.f32 %v2603_v55, %v2419_v6 }
 0x43e   : > { %v6076_v40 = vpop.eup %6075  ;;  %6099 = vpow2.f32 %v4914_v42  ;;  %v5693_v28 = vpop.f32.mrf.mxu1 }
 0x43f   : > { %6101 = vrcp.f32 %v2731_v30  ;;  %v2730_v16 = vadd.f32 1.0, %v6076_v40  ;;  %v4916_v5 = vmul.f32 -1.442695, %v8627_v12  ;;  %v8632_v21 = vadd.f32 %v5693_v28, %v2434_v59 }
 0x440   : > { %v6078_v41 = vpop.eup %6077  ;;  %6103 = vpow2.f32 %v4917_v34  ;;  %v2613_v20 = vpop.f32.mrf.mxu1  ;;  %v2464_v59 = vadd.f32 %v8549_v44, %v8553_v36  ;;  %v2459_v28 = vadd.f32 %v8542_v26, %v8553_v36 }
 0x441   : > { %v6080_v35 = vpop.eup %6079  ;;  %6105 = vrcp.f32 %v2730_v16  ;;  %v4919_v32 = vmul.f32 -1.442695, %v8632_v21  ;;  %v8637_v62 = vadd.f32 %v2613_v20, %v2429_v17  ;;  %2822 = vrot.lane.b32.xlu0 %v6078_v41, %s6249_s5 }
 0x442   : > { %v6082_v23 = vpop.eup %6081  ;;  %v2733_v50 = vadd.f32 1.0, %v6080_v35  ;;  %6107 = vpow2.f32 %v4916_v5  ;;  %v5696_v51 = vpop.f32.mrf.mxu1 }
 0x443   : > { %v6084_v48 = vpop.eup %6083  ;;  %6109 = vpow2.f32 %v4919_v32  ;;  %v4918_v25 = vmul.f32 -1.442695, %v8637_v62  ;;  %v8643_v54 = vadd.f32 %v5696_v51, %v2444_v43  ;;  %2820 = vrot.lane.b32.xlu1 %v6082_v23, %s6249_s5 }
 0x444   : > { %v6086_v1 = vpop.eup %6085  ;;  %6111 = vrcp.f32 %v2733_v50  ;;  %v2732_v38 = vadd.f32 1.0, %v6084_v48  ;;  %v2623_v2 = vpop.f32.mrf.mxu1 }
 0x445   : > { %v6088_v56 = vpop.eup %6087  ;;  %6113 = vpow2.f32 %v4918_v25  ;;  %v4921_v46 = vmul.f32 -1.442695, %v8643_v54  ;;  %v8649_v24 = vadd.f32 %v2623_v2, %v2439_v11  ;;  %2826 = vrot.lane.b32.xlu0 %v6086_v1, %s6249_s5 }
 0x446   : > { %v6090_v61 = vpop.eup %6089  ;;  %6115 = vrcp.f32 %v2732_v38  ;;  %v2735_v58 = vadd.f32 1.0, %v6088_v56  ;;  %v5699_v10 = vpop.f32.mrf.mxu1 }
 0x447   : > { %v6092_v8 = vpop.eup %6091  ;;  %6117 = vpow2.f32 %v4921_v46  ;;  %v4920_v6 = vmul.f32 -1.442695, %v8649_v24  ;;  %v8655_v3 = vadd.f32 %v5699_v10, %v2454_v57  ;;  %2824 = vrot.lane.b32.xlu1 %v6090_v61, %s6249_s5 }
 0x448   : > { %v6094_v14 = vpop.eup %6093  ;;  %6119 = vrcp.f32 %v2735_v58  ;;  %v2734_v19 = vadd.f32 1.0, %v6092_v8  ;;  %v2633_v42 = vpop.f32.mrf.mxu1 }
 0x449   : > { %v6096_v13 = vpop.eup %6095  ;;  %6121 = vpow2.f32 %v4920_v6  ;;  %v4923_v55 = vmul.f32 -1.442695, %v8655_v3  ;;  %v8661_v30 = vadd.f32 %v2633_v42, %v2449_v49  ;;  %2830 = vrot.lane.b32.xlu0 %v6094_v14, %s6249_s5  ;;  %v4997_v14 = vld [vmem:[%s10264_s2 + $0x2f8] sm:$0xff] }
 0x44a   : > { %v6098_v15 = vpop.eup %6097  ;;  %6123 = vrcp.f32 %v2734_v19  ;;  %v2737_v34 = vadd.f32 1.0, %v6096_v13  ;;  %v5702_v40 = vpop.f32.mrf.mxu1  ;;  %5704 = vmatpush3.msra.mxu0 %v4997_v14 }
 0x44b   : > { %v6100_v17 = vpop.eup %6099  ;;  %6125 = vpow2.f32 %v4923_v55  ;;  %v4922_v16 = vmul.f32 -1.442695, %v8661_v30  ;;  %v8667_v5 = vadd.f32 %v5702_v40, %v2464_v59  ;;  %2828 = vrot.lane.b32.xlu1 %v6098_v15, %s6249_s5  ;;  %5705 = vmatprep.subr.mxu0 %v10298_v7 }
 0x44c   : > { %v6102_v44 = vpop.eup %6101  ;;  %6127 = vrcp.f32 %v2737_v34  ;;  %v2736_v41 = vadd.f32 1.0, %v6100_v17  ;;  %v2643_v20 = vpop.f32.mrf.mxu1 }
 0x44d   : > { %v6104_v35 = vpop.eup %6103  ;;  %6129 = vpow2.f32 %v4922_v16  ;;  %v4925_v43 = vmul.f32 -1.442695, %v8667_v5  ;;  %v8671_v32 = vadd.f32 %v2643_v20, %v2459_v28  ;;  %2834 = vrot.lane.b32.xlu0 %v6102_v44, %s6249_s5  ;;  %v4996_v20 = vld [vmem:[%s10264_s2 + $0x2f0] sm:$0xff] }
 0x44e   : > { %v6106_v26 = vpop.eup %6105  ;;  %6131 = vrcp.f32 %v2736_v41  ;;  %v2739_v36 = vadd.f32 1.0, %v6104_v35  ;;  %5706 = vmatpush3.msra.mxu0 %v4996_v20 }
 0x44f   : > { %v6108_v23 = vpop.eup %6107  ;;  %6133 = vpow2.f32 %v4925_v43  ;;  %v4924_v50 = vmul.f32 -1.442695, %v8671_v32  ;;  %2832 = vrot.lane.b32.xlu1 %v6106_v26, %s6249_s5  ;;  %5707 = vmatprep.subr.mxu0 %v10298_v7 }
 0x450   : > { %v6110_v51 = vpop.eup %6109  ;;  %6135 = vrcp.f32 %v2739_v36  ;;  %v2738_v48 = vadd.f32 1.0, %v6108_v23  ;;  %v10330_v23 = vld [vmem:[#allocation8_spill] sm:$0xff] }
 0x451   : > { %v6112_v11 = vpop.eup %6111  ;;  %v2741_v25 = vadd.f32 1.0, %v6110_v51  ;;  %6137 = vpow2.f32 %v4924_v50  ;;  %v8701_v50 = vrot.slane %v8547_v29, %v10330_v23  ;;  %v4995_v51 = vld [vmem:[%s10264_s2 + $0x2e8] sm:$0xff]  ;;  %v4993_v29 = vld [vmem:[%s10264_s2 + $0x2d8] sm:$0xff] }
 0x452   : > { %v6114_v1 = vpop.eup %6113  ;;  %6139 = vrcp.f32 %v2738_v48  ;;  %2838 = vrot.lane.b32.xlu0 %v6112_v11, %s6249_s5  ;;  %v4994_v48 = vld [vmem:[%s10264_s2 + $0x2e0] sm:$0xff]  ;;  %5708 = vmatpush3.msra.mxu0 %v4995_v51  ;;  %v4992_v11 = vld [vmem:[%s10264_s2 + $0x2d0] sm:$0xff] }
 0x453   : > { %v6116_v38 = vpop.eup %6115  ;;  %6141 = vrcp.f32 %v2741_v25  ;;  %v2740_v2 = vadd.f32 1.0, %v6114_v1  ;;  %5709 = vmatprep.subr.mxu0 %v10298_v7  ;;  %v4991_v25 = vld [vmem:[%s10264_s2 + $0x2c8] sm:$0xff]  ;;  %v4990_v1 = vld [vmem:[%s10264_s2 + $0x2c0] sm:$0xff] }
 0x454   : > { %v6118_v56 = vpop.eup %6117  ;;  %2836 = vrot.lane.b32.xlu1 %v6116_v38, %s6249_s5  ;;  %5710 = vmatpush3.msra.mxu0 %v4994_v48 }
 0x455   : > { %v6120_v57 = vpop.eup %6119  ;;  %6143 = vrcp.f32 %v2740_v2  ;;  %v2743_v46 = vadd.f32 1.0, %v6118_v56  ;;  %5711 = vmatprep.subr.mxu0 %v10298_v7 }
 0x456   : > { %v6122_v61 = vpop.eup %6121  ;;  %2842 = vrot.lane.b32.xlu0 %v6120_v57, %s6249_s5  ;;  %5712 = vmatpush3.msra.mxu0 %v4993_v29 }
 0x457   : > { %v6124_v58 = vpop.eup %6123  ;;  %6145 = vrcp.f32 %v2743_v46  ;;  %v2742_v10 = vadd.f32 1.0, %v6122_v61  ;;  %5713 = vmatprep.subr.mxu0 %v10298_v7  ;;  %v4989_v46 = vld [vmem:[%s10264_s2 + $0x2b8] sm:$0xff] }
 0x458   : > { %v6126_v8 = vpop.eup %6125  ;;  %2840 = vrot.lane.b32.xlu1 %v6124_v58, %s6249_s5  ;;  %5714 = vmatpush3.msra.mxu0 %v4992_v11 }
 0x459   : > { %v6128_v49 = vpop.eup %6127  ;;  %6147 = vrcp.f32 %v2742_v10  ;;  %v2745_v6 = vadd.f32 1.0, %v6126_v8  ;;  %5715 = vmatprep.subr.mxu0 %v10298_v7 }
 0x45a   : > { %v6130_v19 = vpop.eup %6129  ;;  %2846 = vrot.lane.b32.xlu0 %v6128_v49, %s6249_s5  ;;  %5716 = vmatpush3.msra.mxu0 %v4991_v25 }
 0x45b   : > { %v6132_v42 = vpop.eup %6131  ;;  %6149 = vrcp.f32 %v2745_v6  ;;  %v2744_v13 = vadd.f32 1.0, %v6130_v19  ;;  %5717 = vmatprep.subr.mxu0 %v10298_v7 }
 0x45c   : > { %v6134_v59 = vpop.eup %6133  ;;  %2844 = vrot.lane.b32.xlu1 %v6132_v42, %s6249_s5  ;;  %5718 = vmatpush3.msra.mxu0 %v4990_v1  ;;  %v4988_v1 = vld [vmem:[%s10264_s2 + $0x2b0] sm:$0xff] }
 0x45d   : > { %v6136_v55 = vpop.eup %6135  ;;  %6151 = vrcp.f32 %v2744_v13  ;;  %v2747_v15 = vadd.f32 1.0, %v6134_v59  ;;  %5719 = vmatprep.subr.mxu0 %v10298_v7 }
 0x45e   : > { %v6138_v34 = vpop.eup %6137  ;;  %2850 = vrot.lane.b32.xlu0 %v6136_v55, %s6249_s5  ;;  %5720 = vmatpush3.msra.mxu0 %v4989_v46  ;;  %v4981_v46 = vld [vmem:[%s10264_s2 + $0x278] sm:$0xff] }
 0x45f   : > { %v6140_v40 = vpop.eup %6139  ;;  %6153 = vrcp.f32 %v2747_v15  ;;  %v2746_v17 = vadd.f32 1.0, %v6138_v34  ;;  %5721 = vmatprep.subr.mxu0 %v10298_v7  ;;  %5240 = vmatprep.subr.mxu1 %v4981_v46 }
 0x460   : > { %v6142_v28 = vpop.eup %6141  ;;  %2848 = vrot.lane.b32.xlu1 %v6140_v40, %s6249_s5  ;;  %5722 = vmatpush3.msra.mxu0 %v4988_v1  ;;  %v4961_v1 = vld [vmem:[%s10264_s2 + $0x1d8] sm:$0xff] }
 0x461   : > { %6155 = vrcp.f32 %v2746_v17  ;;  %5723 = vmatprep.subr.mxu0 %v10298_v7 }
 0x462   : > { %v6144_v16 = vpop.eup %6143  ;;  %2854 = vrot.lane.b32.xlu0 %v6142_v28, %s6249_s5 }
 0x464   : > { %v6146_v44 = vpop.eup %6145  ;;  %2852 = vrot.lane.b32.xlu1 %v6144_v16, %s6249_s5 }
 0x466   : > { %v6148_v41 = vpop.eup %6147  ;;  %2858 = vrot.lane.b32.xlu0 %v6146_v44, %s6249_s5 }
 0x468   : > { %v6150_v35 = vpop.eup %6149  ;;  %2856 = vrot.lane.b32.xlu1 %v6148_v41, %s6249_s5 }
 0x46a   : > { %v6152_v43 = vpop.eup %6151  ;;  %2862 = vrot.lane.b32.xlu0 %v6150_v35, %s6249_s5 }
 0x46c   : > { %v6154_v26 = vpop.eup %6153  ;;  %2860 = vrot.lane.b32.xlu1 %v6152_v43, %s6249_s5 }
 0x46e   : > { %v6156_v36 = vpop.eup %6155  ;;  %2866 = vrot.lane.b32.xlu0 %v6154_v26, %s6249_s5 }
 0x470   : > { %2864 = vrot.lane.b32.xlu1 %v6156_v36, %s6249_s5 }
 0x474   : > { %3129 = vrot.lane.b32.xlu1 %v8701_v50, %s6249_s5 }
 0x4b3   : > { %v2823_v38 = vpop.permute.xlu0 %2822 }
 0x4b4   : > { %v8731_v2 = vmul.f32 %v2823_v38, %v8557_v31 }
 0x4b5   : > { %v2821_v56 = vpop.permute.xlu1 %2820 }
 0x4b6   : > { %v8734_v57 = vmul.f32 %v2821_v56, %v8561_v0  ;;  %v2970_v58 = vmul.f32 %v8731_v2, %v8731_v2  ;;  %v2917_v49 = vsel %vm1217_vm1, %v8731_v2, 0.0 }
 0x4b7   : > { %v2827_v61 = vpop.permute.xlu0 %2826 }
 0x4b8   : > { %v2916_v10 = vsel %vm1217_vm1, %v8734_v57, 0.0  ;;  %v2969_v31 = vmul.f32 %v8734_v57, %v8734_v57  ;;  %v8746_v8 = vmul.f32 %v2827_v61, %v8565_v27  ;;  %v2994_v59 = vsel %vm1217_vm1, %v2970_v58, 0.0  ;;  %v4980_v61 = vld [vmem:[%s10264_s2 + $0x270] sm:$0xff] }
 0x4b9   : > { %v2825_v0 = vpop.permute.xlu1 %2824  ;;  %v2918_v19 = vadd.f32 %v2917_v49, %v2916_v10 }
 0x4ba   : > { %v2993_v6 = vsel %vm1217_vm1, %v2969_v31, 0.0  ;;  %v8753_v14 = vmul.f32 %v2825_v0, %v8569_v4  ;;  %v2972_v42 = vmul.f32 %v8746_v8, %v8746_v8  ;;  %v2921_v17 = vsel %vm1217_vm1, %v8746_v8, 0.0 }
 0x4bb   : > { %v2831_v13 = vpop.permute.xlu0 %2830  ;;  %v2995_v34 = vadd.f32 %v2994_v59, %v2993_v6  ;;  %v4986_v6 = vld [vmem:[%s10264_s2 + $0x2a0] sm:$0xff]  ;;  %v4979_v59 = vld [vmem:[%s10264_s2 + $0x268] sm:$0xff] }
 0x4bc   : > { %v2919_v27 = vsel %vm1217_vm1, %v8753_v14, 0.0  ;;  %v2971_v55 = vmul.f32 %v8753_v14, %v8753_v14  ;;  %v8763_v15 = vmul.f32 %v2831_v13, %v8573_v18  ;;  %v2998_v44 = vsel %vm1217_vm1, %v2972_v42, 0.0 }
 0x4bd   : > { %v2920_v40 = vadd.f32 %v2919_v27, %v2918_v19  ;;  %v2829_v4 = vpop.permute.xlu1 %2828  ;;  %v4964_v19 = vld [vmem:[%s10264_s2 + $0x1f0] sm:$0xff] }
 0x4be   : > { %v2996_v28 = vsel %vm1217_vm1, %v2971_v55, 0.0  ;;  %v8769_v16 = vmul.f32 %v2829_v4, %v8577_v60  ;;  %v2974_v18 = vmul.f32 %v8763_v15, %v8763_v15  ;;  %v2925_v29 = vsel %vm1217_vm1, %v8763_v15, 0.0  ;;  %v4985_v4 = vld [vmem:[%s10264_s2 + $0x298] sm:$0xff] }
 0x4bf   : > { %v2997_v41 = vadd.f32 %v2996_v28, %v2995_v34  ;;  %v2922_v20 = vadd.f32 %v2921_v17, %v2920_v40  ;;  %v2835_v35 = vpop.permute.xlu0 %2834  ;;  %v4963_v17 = vld [vmem:[%s10264_s2 + $0x1e8] sm:$0xff] }
 0x4c0   : > { %v2923_v43 = vsel %vm1217_vm1, %v8769_v16, 0.0  ;;  %v2973_v26 = vmul.f32 %v8769_v16, %v8769_v16  ;;  %v8779_v36 = vmul.f32 %v2835_v35, %v8582_v45  ;;  %v4987_v45 = vld [vmem:[%s10264_s2 + $0x2a8] sm:$0xff]  ;;  %v3002_v58 = vsel %vm1217_vm1, %v2974_v18, 0.0  ;;  %v4962_v18 = vld [vmem:[%s10264_s2 + $0x1e0] sm:$0xff] }
 0x4c1   : > { %v2999_v51 = vadd.f32 %v2998_v44, %v2997_v41  ;;  %v2924_v60 = vadd.f32 %v2923_v43, %v2922_v20  ;;  %v2833_v48 = vpop.permute.xlu1 %2832  ;;  %5724 = vmatpush3.msra.mxu0 %v4987_v45  ;;  %v4984_v43 = vld [vmem:[%s10264_s2 + $0x290] sm:$0xff] }
 0x4c2   : > { %v3000_v11 = vsel %vm1217_vm1, %v2973_v26, 0.0  ;;  %v8785_v25 = vmul.f32 %v2833_v48, %v8587_v22  ;;  %v4965_v22 = vld [vmem:[%s10264_s2 + $0x1f8] sm:$0xff]  ;;  %v2976_v10 = vmul.f32 %v8779_v36, %v8779_v36  ;;  %v2929_v27 = vsel %vm1217_vm1, %v8779_v36, 0.0  ;;  %5725 = vmatprep.subr.mxu0 %v10298_v7 }
 0x4c3   : > { %v3001_v38 = vadd.f32 %v3000_v11, %v2999_v51  ;;  %v2926_v56 = vadd.f32 %v2925_v29, %v2924_v60  ;;  %5241 = vmatpush3.msra.mxu1 %v4965_v22  ;;  %5726 = vmatpush3.msra.mxu0 %v4986_v6 }
 0x4c4   : > { %v2927_v31 = vsel %vm1217_vm1, %v8785_v25, 0.0  ;;  %v2975_v0 = vmul.f32 %v8785_v25, %v8785_v25  ;;  %v2839_v49 = vpop.permute.xlu0 %2838  ;;  %5242 = vmatprep.subr.mxu1 %v4980_v61  ;;  %v3006_v41 = vsel %vm1217_vm1, %v2976_v10, 0.0  ;;  %5727 = vmatprep.subr.mxu0 %v10298_v7 }
 0x4c5   : > { %v3003_v42 = vadd.f32 %v3002_v58, %v3001_v38  ;;  %v2928_v13 = vadd.f32 %v2927_v31, %v2926_v56  ;;  %v8823_v34 = vmul.f32 %v2839_v49, %v8592_v39  ;;  %5243 = vmatpush3.msra.mxu1 %v4964_v19  ;;  %v4978_v39 = vld [vmem:[%s10264_s2 + $0x260] sm:$0xff]  ;;  %5728 = vmatpush3.msra.mxu0 %v4985_v4  ;;  %v4976_v56 = vld [vmem:[%s10264_s2 + $0x250] sm:$0xff] }
 0x4c6   : > { %v3004_v55 = vsel %vm1217_vm1, %v2975_v0, 0.0  ;;  %v2837_v40 = vpop.permute.xlu1 %2836  ;;  %5244 = vmatprep.subr.mxu1 %v4979_v59  ;;  %5729 = vmatprep.subr.mxu0 %v10298_v7  ;;  %v4975_v0 = vld [vmem:[%s10264_s2 + $0x248] sm:$0xff]  ;;  %v4974_v4 = vld [vmem:[%s10264_s2 + $0x240] sm:$0xff] }
 0x4c7   : > { %v3005_v28 = vadd.f32 %v3004_v55, %v3003_v42  ;;  %v2930_v44 = vadd.f32 %v2929_v27, %v2928_v13  ;;  %v8837_v20 = vmul.f32 %v2837_v40, %v8597_v9  ;;  %5245 = vmatpush3.msra.mxu1 %v4963_v17  ;;  %v4977_v9 = vld [vmem:[%s10264_s2 + $0x258] sm:$0xff]  ;;  %v2978_v51 = vmul.f32 %v8823_v34, %v8823_v34  ;;  %v4959_v59 = vld [vmem:[%s10264_s2 + $0x1c8] sm:$0xff] }
 0x4c8   : > { %v2843_v35 = vpop.permute.xlu0 %2842  ;;  %5246 = vmatprep.subr.mxu1 %v4978_v39  ;;  %5730 = vmatpush3.msra.mxu0 %v4984_v43  ;;  %v2933_v46 = vsel %vm1217_vm1, %v8823_v34, 0.0 }
 0x4c9   : > { %v3007_v26 = vadd.f32 %v3006_v41, %v3005_v28  ;;  %v2931_v60 = vsel %vm1217_vm1, %v8837_v20, 0.0  ;;  %v2977_v48 = vmul.f32 %v8837_v20, %v8837_v20  ;;  %v8856_v29 = vmul.f32 %v2843_v35, %v8602_v33  ;;  %5247 = vmatpush3.msra.mxu1 %v4962_v18  ;;  %v4983_v33 = vld [vmem:[%s10264_s2 + $0x288] sm:$0xff]  ;;  %5731 = vmatprep.subr.mxu0 %v10298_v7  ;;  %v4973_v18 = vld [vmem:[%s10264_s2 + $0x238] sm:$0xff] }
 0x4ca   : > { %v2841_v11 = vpop.permute.xlu1 %2840  ;;  %v2932_v45 = vadd.f32 %v2931_v60, %v2930_v44  ;;  %5248 = vmatprep.subr.mxu1 %v4977_v9  ;;  %5732 = vmatpush3.msra.mxu0 %v4983_v33  ;;  %v3010_v49 = vsel %vm1217_vm1, %v2978_v51, 0.0  ;;  %v4958_v44 = vld [vmem:[%s10264_s2 + $0x1c0] sm:$0xff]  ;;  %v4957_v60 = vld [vmem:[%s10264_s2 + $0x1b8] sm:$0xff] }
 0x4cb   : > { %v8863_v38 = vmul.f32 %v2841_v11, %v8607_v63  ;;  %v3008_v22 = vsel %vm1217_vm1, %v2977_v48, 0.0  ;;  %v4960_v63 = vld [vmem:[%s10264_s2 + $0x1d0] sm:$0xff]  ;;  %5249 = vmatpush3.msra.mxu1 %v4961_v1  ;;  %v2980_v6 = vmul.f32 %v8856_v29, %v8856_v29  ;;  %5733 = vmatprep.subr.mxu0 %v10298_v7 }
 0x4cc   : > { %v2847_v61 = vpop.permute.xlu0 %2846  ;;  %v3009_v58 = vadd.f32 %v3008_v22, %v3007_v26  ;;  %v2934_v10 = vadd.f32 %v2933_v46, %v2932_v45  ;;  %5250 = vmatprep.subr.mxu1 %v4976_v56  ;;  %v4972_v56 = vld [vmem:[%s10264_s2 + $0x230] sm:$0xff] }
 0x4cd   : > { %v2935_v31 = vsel %vm1217_vm1, %v8863_v38, 0.0  ;;  %v2979_v19 = vmul.f32 %v8863_v38, %v8863_v38  ;;  %v8889_v42 = vmul.f32 %v2847_v61, %v8612_v52  ;;  %5251 = vmatpush3.msra.mxu1 %v4960_v63  ;;  %v2937_v52 = vsel %vm1217_vm1, %v8856_v29, 0.0  ;;  %v4956_v46 = vld [vmem:[%s10264_s2 + $0x1b0] sm:$0xff] }
 0x4ce   : > { %v2845_v13 = vpop.permute.xlu1 %2844  ;;  %v3011_v27 = vadd.f32 %v3010_v49, %v3009_v58  ;;  %v2936_v55 = vadd.f32 %v2935_v31, %v2934_v10  ;;  %5252 = vmatprep.subr.mxu1 %v4975_v0  ;;  %v3014_v43 = vsel %vm1217_vm1, %v2980_v6, 0.0  ;;  %v4971_v58 = vld [vmem:[%s10264_s2 + $0x228] sm:$0xff] }
 0x4cf   : > { %v8896_v40 = vmul.f32 %v2845_v13, %v8617_v37  ;;  %v3012_v17 = vsel %vm1217_vm1, %v2979_v19, 0.0  ;;  %5253 = vmatpush3.msra.mxu1 %v4959_v59  ;;  %v2982_v26 = vmul.f32 %v8889_v42, %v8889_v42  ;;  %v4955_v6 = vld [vmem:[%s10264_s2 + $0x1a8] sm:$0xff] }
 0x4d0   : > { %v2851_v28 = vpop.permute.xlu0 %2850  ;;  %v3013_v39 = vadd.f32 %v3012_v17, %v3011_v27  ;;  %v2938_v41 = vadd.f32 %v2937_v52, %v2936_v55  ;;  %5254 = vmatprep.subr.mxu1 %v4974_v4  ;;  %v4970_v55 = vld [vmem:[%s10264_s2 + $0x220] sm:$0xff] }
 0x4d1   : > { %v2939_v37 = vsel %vm1217_vm1, %v8896_v40, 0.0  ;;  %v2981_v35 = vmul.f32 %v8896_v40, %v8896_v40  ;;  %v8918_v9 = vmul.f32 %v2851_v28, %v8622_v53  ;;  %5255 = vmatpush3.msra.mxu1 %v4958_v44  ;;  %v2941_v53 = vsel %vm1217_vm1, %v8889_v42, 0.0  ;;  %v4954_v52 = vld [vmem:[%s10264_s2 + $0x1a0] sm:$0xff] }
 0x4d2   : > { %v2849_v51 = vpop.permute.xlu1 %2848  ;;  %v3015_v48 = vadd.f32 %v3014_v43, %v3013_v39  ;;  %v2940_v11 = vadd.f32 %v2939_v37, %v2938_v41  ;;  %5256 = vmatprep.subr.mxu1 %v4973_v18  ;;  %v3018_v10 = vsel %vm1217_vm1, %v2982_v26, 0.0  ;;  %v4969_v39 = vld [vmem:[%s10264_s2 + $0x218] sm:$0xff] }
 0x4d3   : > { %v3016_v1 = vsel %vm1217_vm1, %v2981_v35, 0.0  ;;  %v8925_v45 = vmul.f32 %v2849_v51, %v8627_v12  ;;  %5257 = vmatpush3.msra.mxu1 %v4957_v60  ;;  %v2984_v31 = vmul.f32 %v8918_v9, %v8918_v9  ;;  %v4953_v43 = vld [vmem:[%s10264_s2 + $0x198] sm:$0xff] }
 0x4d4   : > { %v2855_v33 = vpop.permute.xlu0 %2854  ;;  %v3017_v22 = vadd.f32 %v3016_v1, %v3015_v48  ;;  %v2942_v61 = vadd.f32 %v2941_v53, %v2940_v11  ;;  %5258 = vmatprep.subr.mxu1 %v4972_v56 }
 0x4d5   : > { %v2943_v12 = vsel %vm1217_vm1, %v8925_v45, 0.0  ;;  %v2983_v63 = vmul.f32 %v8925_v45, %v8925_v45  ;;  %v8946_v0 = vmul.f32 %v2855_v33, %v8632_v21  ;;  %5259 = vmatpush3.msra.mxu1 %v4956_v46  ;;  %v2945_v21 = vsel %vm1217_vm1, %v8918_v9, 0.0 }
 0x4d6   : > { %v2853_v49 = vpop.permute.xlu1 %2852  ;;  %v3019_v19 = vadd.f32 %v3018_v10, %v3017_v22  ;;  %v2944_v13 = vadd.f32 %v2943_v12, %v2942_v61  ;;  %5260 = vmatprep.subr.mxu1 %v4971_v58  ;;  %v3022_v41 = vsel %vm1217_vm1, %v2984_v31, 0.0 }
 0x4d7   : > { %v3020_v59 = vsel %vm1217_vm1, %v2983_v63, 0.0  ;;  %v8953_v27 = vmul.f32 %v2853_v49, %v8637_v62  ;;  %5261 = vmatpush3.msra.mxu1 %v4955_v6  ;;  %v2986_v37 = vmul.f32 %v8946_v0, %v8946_v0  ;;  %v2949_v11 = vsel %vm1217_vm1, %v8946_v0, 0.0 }
 0x4d8   : > { %v2859_v4 = vpop.permute.xlu0 %2858  ;;  %v3021_v17 = vadd.f32 %v3020_v59, %v3019_v19  ;;  %v2946_v28 = vadd.f32 %v2945_v21, %v2944_v13  ;;  %5262 = vmatprep.subr.mxu1 %v4970_v55 }
 0x4d9   : > { %v2947_v62 = vsel %vm1217_vm1, %v8953_v27, 0.0  ;;  %v2985_v44 = vmul.f32 %v8953_v27, %v8953_v27  ;;  %v8974_v35 = vmul.f32 %v2859_v4, %v8643_v54  ;;  %5263 = vmatpush3.msra.mxu1 %v4954_v52  ;;  %v3026_v46 = vsel %vm1217_vm1, %v2986_v37, 0.0 }
 0x4da   : > { %v2857_v18 = vpop.permute.xlu1 %2856  ;;  %v3023_v26 = vadd.f32 %v3022_v41, %v3021_v17  ;;  %v2948_v51 = vadd.f32 %v2947_v62, %v2946_v28  ;;  %5264 = vmatprep.subr.mxu1 %v4969_v39 }
 0x4db   : > { %v3024_v60 = vsel %vm1217_vm1, %v2985_v44, 0.0  ;;  %v8981_v48 = vmul.f32 %v2857_v18, %v8649_v24  ;;  %5265 = vmatpush3.msra.mxu1 %v4953_v43  ;;  %v2988_v24 = vmul.f32 %v8974_v35, %v8974_v35  ;;  %v2953_v31 = vsel %vm1217_vm1, %v8974_v35, 0.0 }
 0x4dc   : > { %v2863_v1 = vpop.permute.xlu0 %2862  ;;  %v3025_v54 = vadd.f32 %v3024_v60, %v3023_v26  ;;  %v2950_v56 = vadd.f32 %v2949_v11, %v2948_v51 }
 0x4dd   : > { %v2951_v53 = vsel %vm1217_vm1, %v8981_v48, 0.0  ;;  %v2987_v33 = vmul.f32 %v8981_v48, %v8981_v48  ;;  %v8993_v22 = vmul.f32 %v2863_v1, %v8655_v3  ;;  %v3030_v59 = vsel %vm1217_vm1, %v2988_v24, 0.0 }
 0x4de   : > { %v2861_v61 = vpop.permute.xlu1 %2860  ;;  %v3027_v12 = vadd.f32 %v3026_v46, %v3025_v54  ;;  %v2952_v63 = vadd.f32 %v2951_v53, %v2950_v56 }
 0x4df   : > { %v3028_v58 = vsel %vm1217_vm1, %v2987_v33, 0.0  ;;  %v8997_v10 = vmul.f32 %v2861_v61, %v8661_v30  ;;  %v2990_v55 = vmul.f32 %v8993_v22, %v8993_v22  ;;  %v2957_v62 = vsel %vm1217_vm1, %v8993_v22, 0.0 }
 0x4e0   : > { %v2867_v49 = vpop.permute.xlu0 %2866  ;;  %v3029_v6 = vadd.f32 %v3028_v58, %v3027_v12  ;;  %v2954_v19 = vadd.f32 %v2953_v31, %v2952_v63 }
 0x4e1   : > { %v2955_v13 = vsel %vm1217_vm1, %v8997_v10, 0.0  ;;  %v2989_v3 = vmul.f32 %v8997_v10, %v8997_v10  ;;  %v9009_v30 = vmul.f32 %v2867_v49, %v8667_v5  ;;  %v3034_v37 = vsel %vm1217_vm1, %v2990_v55, 0.0 }
 0x4e2   : > { %v2865_v21 = vpop.permute.xlu1 %2864  ;;  %v3031_v4 = vadd.f32 %v3030_v59, %v3029_v6  ;;  %v2956_v52 = vadd.f32 %v2955_v13, %v2954_v19 }
 0x4e3   : > { %v3032_v17 = vsel %vm1217_vm1, %v2989_v3, 0.0  ;;  %v9013_v28 = vmul.f32 %v2865_v21, %v8671_v32  ;;  %v2992_v18 = vmul.f32 %v9009_v30, %v9009_v30  ;;  %v2961_v51 = vsel %vm1217_vm1, %v9009_v30, 0.0  ;;  %v6238_v21 = vld [vmem:[%s10265_s3 + $0x4] sm:$0x7] }
 0x4e4   : > { %v3033_v44 = vadd.f32 %v3032_v17, %v3031_v4  ;;  %v2958_v39 = vadd.f32 %v2957_v62, %v2956_v52  ;;  %v10331_v4 = vld [vmem:[#allocation6_spill] sm:$0xff] }
 0x4e5   : > { %v2959_v41 = vsel %vm1217_vm1, %v9013_v28, 0.0  ;;  %v2991_v5 = vmul.f32 %v9013_v28, %v9013_v28  ;;  %v3038_v1 = vsel %vm1217_vm1, %v2992_v18, 0.0  ;;  %v9036_v52 = vrot.slane %v6238_v21, %v10331_v4  ;;  %v4968_v18 = vld [vmem:[%s10264_s2 + $0x210] sm:$0xff] }
 0x4e6   : > { %v3035_v43 = vadd.f32 %v3034_v37, %v3033_v44  ;;  %v2960_v26 = vadd.f32 %v2959_v41, %v2958_v39  ;;  %5266 = vmatprep.subr.mxu1 %v4968_v18 }
 0x4e7   : > { %v3036_v32 = vsel %vm1217_vm1, %v2991_v5, 0.0 }
 0x4e8   : > { %v2962_v60 = vadd.f32 %v2961_v51, %v2960_v26  ;;  %v3037_v11 = vadd.f32 %v3036_v32, %v3035_v43  ;;  %v4952_v43 = vld [vmem:[%s10264_s2 + $0x190] sm:$0xff]  ;;  %v4967_v26 = vld [vmem:[%s10264_s2 + $0x208] sm:$0xff] }
 0x4e9   : > { %5267 = vmatpush3.msra.mxu1 %v4952_v43 }
 0x4ea   : > { %v2963_v54 = vrot.slane %v2962_v60, 4  ;;  %v3039_v56 = vadd.f32 %v3038_v1, %v3037_v11  ;;  %5268 = vmatprep.subr.mxu1 %v4967_v26 }
 0x4ec   : > { %v2964_v53 = vadd.f32 %v2963_v54, %v2962_v60  ;;  %v3040_v33 = vrot.slane %v3039_v56, 4 }
 0x4ee   : > { %v2965_v46 = vrot.slane %v2964_v53, 2  ;;  %v3041_v24 = vadd.f32 %v3040_v33, %v3039_v56 }
 0x4f0   : > { %v2966_v61 = vadd.f32 %v2965_v46, %v2964_v53  ;;  %v3042_v12 = vrot.slane %v3041_v24, 2 }
 0x4f2   : > { %v2967_v63 = vrot.slane %v2966_v61, 1  ;;  %v3043_v58 = vadd.f32 %v3042_v12, %v3041_v24 }
 0x4f4   : > { %v2968_v31 = vadd.f32 %v2967_v63, %v2966_v61  ;;  %v3044_v49 = vrot.slane %v3043_v58, 1  ;;  %v9101_v63 = vpop.permute.xlu1 %3129 }
 0x4f6   : > { %v3045_v6 = vadd.f32 %v3044_v49, %v3043_v58  ;;  %v9028_v19 = vmul.f32 0.0052083335, %v2968_v31 }
 0x4f8   : > { %v3047_v13 = vmul.f32 0.0052083335, %v3045_v6  ;;  %v3048_v3 = vmul.f32 %v9028_v19, %v9028_v19  ;;  %v3072_v17 = vsub.f32 %v9013_v28, %v9028_v19  ;;  %v3051_v62 = vsub.f32 %v8731_v2, %v9028_v19 }
 0x4f9   : > { %v3050_v44 = vsub.f32 %v8734_v57, %v9028_v19  ;;  %v3053_v39 = vsub.f32 %v8746_v8, %v9028_v19  ;;  %v3052_v41 = vsub.f32 %v8753_v14, %v9028_v19  ;;  %v3055_v5 = vsub.f32 %v8763_v15, %v9028_v19 }
 0x4fa   : > { %v3049_v59 = vsub.f32 %v3047_v13, %v3048_v3  ;;  %v3054_v37 = vsub.f32 %v8769_v16, %v9028_v19  ;;  %v3057_v28 = vsub.f32 %v8779_v36, %v9028_v19  ;;  %v3056_v2 = vsub.f32 %v8785_v25, %v9028_v19  ;;  %v4951_v13 = vld [vmem:[%s10264_s2 + $0x188] sm:$0xff]  ;;  %v4982_v3 = vld [vmem:[%s10264_s2 + $0x280] sm:$0xff] }
 0x4fb   : > { %v3059_v57 = vsub.f32 %v8823_v34, %v9028_v19  ;;  %v3058_v8 = vsub.f32 %v8837_v20, %v9028_v19  ;;  %v3061_v14 = vsub.f32 %v8856_v29, %v9028_v19  ;;  %v3060_v15 = vsub.f32 %v8863_v38, %v9028_v19  ;;  %5269 = vmatpush3.msra.mxu1 %v4951_v13 }
 0x4fc   : > { %v3074_v55 = vadd.f32 1e-05, %v3049_v59  ;;  %v3063_v16 = vsub.f32 %v8889_v42, %v9028_v19  ;;  %v3062_v36 = vsub.f32 %v8896_v40, %v9028_v19  ;;  %v3065_v25 = vsub.f32 %v8918_v9, %v9028_v19  ;;  %v4966_v59 = vld [vmem:[%s10264_s2 + $0x200] sm:$0xff]  ;;  %5734 = vmatpush3.msra.mxu0 %v4982_v3 }
 0x4fd   : > { %v3064_v32 = vsub.f32 %v8925_v45, %v9028_v19  ;;  %v3067_v51 = vsub.f32 %v8946_v0, %v9028_v19  ;;  %v3066_v60 = vsub.f32 %v8953_v27, %v9028_v19  ;;  %v3069_v11 = vsub.f32 %v8974_v35, %v9028_v19  ;;  %5270 = vmatprep.subr.mxu1 %v4966_v59 }
 0x4fe   : > { %6157 = vrsqrt.f32 %v3074_v55  ;;  %v3068_v54 = vsub.f32 %v8981_v48, %v9028_v19  ;;  %v3071_v56 = vsub.f32 %v8993_v22, %v9028_v19  ;;  %v3070_v53 = vsub.f32 %v8997_v10, %v9028_v19  ;;  %5768 = vmatprep.subr.mxu0 %v10298_v7 }
 0x4ff   : > { %v3073_v33 = vsub.f32 %v9009_v30, %v9028_v19 }
 0x50b   : > { %v9087_v1 = vpop.eup %6157 }
 0x50c   : > { %v3098_v46 = vmul.f32 %v9087_v1, %v3072_v17  ;;  %v3077_v24 = vmul.f32 %v9087_v1, %v3051_v62  ;;  %v3076_v61 = vmul.f32 %v9087_v1, %v3050_v44  ;;  %v3079_v12 = vmul.f32 %v9087_v1, %v3053_v39  ;;  %v4950_v44 = vld [vmem:[%s10264_s2 + $0x180] sm:$0xff] }
 0x50d   : > { %v3078_v58 = vmul.f32 %v9087_v1, %v3052_v41  ;;  %v3081_v31 = vmul.f32 %v9087_v1, %v3055_v5  ;;  %v3080_v49 = vmul.f32 %v9087_v1, %v3054_v37  ;;  %v3083_v6 = vmul.f32 %v9087_v1, %v3057_v28  ;;  %5271 = vmatpush3.msra.mxu1 %v4950_v44 }
 0x50e   : > { %v9117_v55 = vmul.f32 %v8701_v50, %v3098_v46  ;;  %v3105_v21 = vmul.f32 %v8701_v50, %v3077_v24  ;;  %v3104_v17 = vmul.f32 %v8701_v50, %v3076_v61  ;;  %v3107_v62 = vmul.f32 %v8701_v50, %v3079_v12 }
 0x50f   : > { %v3106_v39 = vmul.f32 %v8701_v50, %v3078_v58  ;;  %v3109_v41 = vmul.f32 %v8701_v50, %v3081_v31  ;;  %v3108_v5 = vmul.f32 %v8701_v50, %v3080_v49  ;;  %v3111_v37 = vmul.f32 %v8701_v50, %v3083_v6 }
 0x510   : > { %v3133_v28 = vadd.f32 %v9101_v63, %v3105_v21  ;;  %v3132_v18 = vadd.f32 %v9101_v63, %v3104_v17  ;;  %v3135_v43 = vadd.f32 %v9101_v63, %v3107_v62  ;;  %v3082_v26 = vmul.f32 %v9087_v1, %v3056_v2 }
 0x511   : > { %v3134_v46 = vadd.f32 %v9101_v63, %v3106_v39  ;;  %v3137_v24 = vadd.f32 %v9101_v63, %v3109_v41  ;;  %v3136_v61 = vadd.f32 %v9101_v63, %v3108_v5  ;;  %v3139_v12 = vadd.f32 %v9101_v63, %v3111_v37 }
 0x512   : > { %vm3157_vm11 = vcmp.ge.f32.partialorder %v3133_v28, 0.0  ;;  %v3185_v58 = vmul.f32 %v9036_v52, %v3133_v28  ;;  %vm3156_vm12 = vcmp.ge.f32.partialorder %v3132_v18, 0.0  ;;  %v3184_v31 = vmul.f32 %v9036_v52, %v3132_v18 }
 0x513   : > { %vm3159_vm13 = vcmp.ge.f32.partialorder %v3135_v43, 0.0  ;;  %v3187_v2 = vmul.f32 %v9036_v52, %v3135_v43  ;;  %vm3158_vm14 = vcmp.ge.f32.partialorder %v3134_v46, 0.0  ;;  %v3186_v49 = vmul.f32 %v9036_v52, %v3134_v46 }
 0x514   : > { %v9142_v6 = vsel %vm3157_vm11, %v3133_v28, %v3185_v58  ;;  %v9144_v13 = vsel %vm3156_vm12, %v3132_v18, %v3184_v31  ;;  %vm3161_vm15 = vcmp.ge.f32.partialorder %v3137_v24, 0.0  ;;  %v3189_v3 = vmul.f32 %v9036_v52, %v3137_v24 }
 0x515   : > { %3283 = vrot.lane.b32.xlu0 %v9142_v6, %s6249_s5  ;;  %4927 = vst.msk [vmem:[%s7732_s7 + $0x190] sm:$0xff] %vm1217_vm1, %v9142_v6  ;;  %3281 = vrot.lane.b32.xlu1 %v9144_v13, %s6249_s5  ;;  %4926 = vst.msk [vmem:[%s7732_s7 + $0x188] sm:$0xff] %vm1217_vm1, %v9144_v13  ;;  %v9157_v59 = vsel %vm3159_vm13, %v3135_v43, %v3187_v2  ;;  %v9159_v21 = vsel %vm3158_vm14, %v3134_v46, %v3186_v49  ;;  %vm3160_vm2 = vcmp.ge.f32.partialorder %v3136_v61, 0.0 }
 0x516   : > { %v3188_v17 = vmul.f32 %v9036_v52, %v3136_v61  ;;  %4929 = vst.msk [vmem:[%s7732_s7 + $0x1a0] sm:$0xff] %vm1217_vm1, %v9157_v59  ;;  %4928 = vst.msk [vmem:[%s7732_s7 + $0x198] sm:$0xff] %vm1217_vm1, %v9159_v21  ;;  %v9168_v62 = vsel %vm3161_vm15, %v3137_v24, %v3189_v3  ;;  %vm3163_vm3 = vcmp.ge.f32.partialorder %v3139_v12, 0.0  ;;  %v3191_v44 = vmul.f32 %v9036_v52, %v3139_v12 }
 0x517   : > { %v3110_v39 = vmul.f32 %v8701_v50, %v3082_v26  ;;  %4931 = vst.msk [vmem:[%s7732_s7 + $0x1b0] sm:$0xff] %vm1217_vm1, %v9168_v62  ;;  %v3085_v5 = vmul.f32 %v9087_v1, %v3059_v57  ;;  %v3084_v37 = vmul.f32 %v9087_v1, %v3058_v8  ;;  %v3087_v28 = vmul.f32 %v9087_v1, %v3061_v14 }
 0x518   : > { %v9175_v41 = vsel %vm3160_vm2, %v3136_v61, %v3188_v17  ;;  %v9192_v18 = vsel %vm3163_vm3, %v3139_v12, %v3191_v44  ;;  %v3086_v34 = vmul.f32 %v9087_v1, %v3060_v15  ;;  %v3089_v20 = vmul.f32 %v9087_v1, %v3063_v16 }
 0x519   : > { %4930 = vst.msk [vmem:[%s7732_s7 + $0x1a8] sm:$0xff] %vm1217_vm1, %v9175_v41  ;;  %v3138_v43 = vadd.f32 %v9101_v63, %v3110_v39  ;;  %3287 = vrot.lane.b32.xlu0 %v9157_v59, %s6249_s5  ;;  %3285 = vrot.lane.b32.xlu1 %v9159_v21, %s6249_s5  ;;  %4933 = vst.msk [vmem:[%s7732_s7 + $0x1c0] sm:$0xff] %vm1217_vm1, %v9192_v18  ;;  %v3113_v29 = vmul.f32 %v8701_v50, %v3085_v5 }
 0x51a   : > { %v3112_v38 = vmul.f32 %v8701_v50, %v3084_v37  ;;  %v3115_v57 = vmul.f32 %v8701_v50, %v3087_v28  ;;  %v3114_v8 = vmul.f32 %v8701_v50, %v3086_v34  ;;  %v3117_v14 = vmul.f32 %v8701_v50, %v3089_v20 }
 0x51b   : > { %vm3162_vm4 = vcmp.ge.f32.partialorder %v3138_v43, 0.0  ;;  %v3190_v42 = vmul.f32 %v9036_v52, %v3138_v43  ;;  %v3141_v15 = vadd.f32 %v9101_v63, %v3113_v29  ;;  %v3088_v46 = vmul.f32 %v9087_v1, %v3062_v36 }
 0x51c   : > { %v3140_v16 = vadd.f32 %v9101_v63, %v3112_v38  ;;  %v3143_v26 = vadd.f32 %v9101_v63, %v3115_v57  ;;  %v3142_v61 = vadd.f32 %v9101_v63, %v3114_v8  ;;  %v3145_v12 = vadd.f32 %v9101_v63, %v3117_v14 }
 0x51d   : > { %v9223_v24 = vsel %vm3162_vm4, %v3138_v43, %v3190_v42  ;;  %v3091_v58 = vmul.f32 %v9087_v1, %v3065_v25  ;;  %3291 = vrot.lane.b32.xlu0 %v9168_v62, %s6249_s5  ;;  %3289 = vrot.lane.b32.xlu1 %v9175_v41, %s6249_s5  ;;  %vm3165_vm5 = vcmp.ge.f32.partialorder %v3141_v15, 0.0  ;;  %v3193_v40 = vmul.f32 %v9036_v52, %v3141_v15 }
 0x51e   : > { %4932 = vst.msk [vmem:[%s7732_s7 + $0x1b8] sm:$0xff] %vm1217_vm1, %v9223_v24  ;;  %vm3164_vm6 = vcmp.ge.f32.partialorder %v3140_v16, 0.0  ;;  %v3192_v36 = vmul.f32 %v9036_v52, %v3140_v16  ;;  %vm3167_vm7 = vcmp.ge.f32.partialorder %v3143_v26, 0.0  ;;  %v3195_v9 = vmul.f32 %v9036_v52, %v3143_v26 }
 0x51f   : > { %vm3166_vm8 = vcmp.ge.f32.partialorder %v3142_v61, 0.0  ;;  %v3194_v25 = vmul.f32 %v9036_v52, %v3142_v61  ;;  %v9242_v31 = vsel %vm3165_vm5, %v3141_v15, %v3193_v40  ;;  %vm3169_vm11 = vcmp.ge.f32.partialorder %v3145_v12, 0.0 }
 0x520   : > { %v9244_v2 = vsel %vm3164_vm6, %v3140_v16, %v3192_v36  ;;  %v3197_v49 = vmul.f32 %v9036_v52, %v3145_v12  ;;  %4935 = vst.msk [vmem:[%s7732_s7 + $0x1d0] sm:$0xff] %vm1217_vm1, %v9242_v31  ;;  %v9253_v3 = vsel %vm3167_vm7, %v3143_v26, %v3195_v9  ;;  %v3116_v44 = vmul.f32 %v8701_v50, %v3088_v46 }
 0x521   : > { %4934 = vst.msk [vmem:[%s7732_s7 + $0x1c8] sm:$0xff] %vm1217_vm1, %v9244_v2  ;;  %v9255_v17 = vsel %vm3166_vm8, %v3142_v61, %v3194_v25  ;;  %v3119_v39 = vmul.f32 %v8701_v50, %v3091_v58  ;;  %3295 = vrot.lane.b32.xlu0 %v9192_v18, %s6249_s5  ;;  %3293 = vrot.lane.b32.xlu1 %v9223_v24, %s6249_s5  ;;  %4937 = vst.msk [vmem:[%s7732_s7 + $0x1e0] sm:$0xff] %vm1217_vm1, %v9253_v3 }
 0x522   : > { %4936 = vst.msk [vmem:[%s7732_s7 + $0x1d8] sm:$0xff] %vm1217_vm1, %v9255_v17  ;;  %v9269_v5 = vsel %vm3169_vm11, %v3145_v12, %v3197_v49  ;;  %v3090_v37 = vmul.f32 %v9087_v1, %v3064_v32  ;;  %v3093_v28 = vmul.f32 %v9087_v1, %v3067_v51  ;;  %v3144_v43 = vadd.f32 %v9101_v63, %v3116_v44 }
 0x523   : > { %4939 = vst.msk [vmem:[%s7732_s7 + $0x1f0] sm:$0xff] %vm1217_vm1, %v9269_v5  ;;  %v3147_v34 = vadd.f32 %v9101_v63, %v3119_v39  ;;  %v3092_v20 = vmul.f32 %v9087_v1, %v3066_v60  ;;  %v3095_v45 = vmul.f32 %v9087_v1, %v3069_v11  ;;  %v3094_v51 = vmul.f32 %v9087_v1, %v3068_v54 }
 0x524   : > { %v3118_v0 = vmul.f32 %v8701_v50, %v3090_v37  ;;  %v3121_v32 = vmul.f32 %v8701_v50, %v3093_v28  ;;  %v3097_v27 = vmul.f32 %v9087_v1, %v3071_v56  ;;  %vm3168_vm12 = vcmp.ge.f32.partialorder %v3144_v43, 0.0 }
 0x525   : > { %v3196_v35 = vmul.f32 %v9036_v52, %v3144_v43  ;;  %vm3171_vm13 = vcmp.ge.f32.partialorder %v3147_v34, 0.0  ;;  %v3199_v60 = vmul.f32 %v9036_v52, %v3147_v34  ;;  %3299 = vrot.lane.b32.xlu0 %v9242_v31, %s6249_s5  ;;  %3297 = vrot.lane.b32.xlu1 %v9244_v2, %s6249_s5  ;;  %v3120_v22 = vmul.f32 %v8701_v50, %v3092_v20 }
 0x526   : > { %v3146_v48 = vadd.f32 %v9101_v63, %v3118_v0  ;;  %v3149_v11 = vadd.f32 %v9101_v63, %v3121_v32  ;;  %v3123_v29 = vmul.f32 %v8701_v50, %v3095_v45  ;;  %v3122_v38 = vmul.f32 %v8701_v50, %v3094_v51 }
 0x527   : > { %v9311_v54 = vsel %vm3168_vm12, %v3144_v43, %v3196_v35  ;;  %v9313_v56 = vsel %vm3171_vm13, %v3147_v34, %v3199_v60  ;;  %v3148_v8 = vadd.f32 %v9101_v63, %v3120_v22  ;;  %v3125_v16 = vmul.f32 %v8701_v50, %v3097_v27 }
 0x528   : > { %4938 = vst.msk [vmem:[%s7732_s7 + $0x1e8] sm:$0xff] %vm1217_vm1, %v9311_v54  ;;  %4941 = vst.msk [vmem:[%s7732_s7 + $0x200] sm:$0xff] %vm1217_vm1, %v9313_v56  ;;  %vm3170_vm14 = vcmp.ge.f32.partialorder %v3146_v48, 0.0  ;;  %v3198_v57 = vmul.f32 %v9036_v52, %v3146_v48  ;;  %vm3173_vm15 = vcmp.ge.f32.partialorder %v3149_v11, 0.0  ;;  %v3201_v42 = vmul.f32 %v9036_v52, %v3149_v11 }
 0x529   : > { %v3151_v14 = vadd.f32 %v9101_v63, %v3123_v29  ;;  %v3150_v15 = vadd.f32 %v9101_v63, %v3122_v38  ;;  %3303 = vrot.lane.b32.xlu0 %v9253_v3, %s6249_s5  ;;  %3301 = vrot.lane.b32.xlu1 %v9255_v17, %s6249_s5  ;;  %v3096_v61 = vmul.f32 %v9087_v1, %v3070_v53  ;;  %vm3172_vm2 = vcmp.ge.f32.partialorder %v3148_v8, 0.0 }
 0x52a   : > { %v9333_v26 = vsel %vm3170_vm14, %v3146_v48, %v3198_v57  ;;  %v9335_v46 = vsel %vm3173_vm15, %v3149_v11, %v3201_v42  ;;  %v3200_v12 = vmul.f32 %v9036_v52, %v3148_v8  ;;  %v3153_v53 = vadd.f32 %v9101_v63, %v3125_v16 }
 0x52b   : > { %4940 = vst.msk [vmem:[%s7732_s7 + $0x1f8] sm:$0xff] %vm1217_vm1, %v9333_v26  ;;  %4943 = vst.msk [vmem:[%s7732_s7 + $0x210] sm:$0xff] %vm1217_vm1, %v9335_v46  ;;  %vm3175_vm3 = vcmp.ge.f32.partialorder %v3151_v14, 0.0  ;;  %v3203_v58 = vmul.f32 %v9036_v52, %v3151_v14  ;;  %vm3174_vm4 = vcmp.ge.f32.partialorder %v3150_v15, 0.0  ;;  %v3202_v10 = vmul.f32 %v9036_v52, %v3150_v15 }
 0x52c   : > { %v3124_v40 = vmul.f32 %v8701_v50, %v3096_v61  ;;  %v9352_v36 = vsel %vm3172_vm2, %v3148_v8, %v3200_v12  ;;  %v3154_v25 = vadd.f32 %v9101_v63, %v9117_v55  ;;  %v3099_v49 = vmul.f32 %v9087_v1, %v3073_v33 }
 0x52d   : > { %v9354_v9 = vsel %vm3175_vm3, %v3151_v14, %v3203_v58  ;;  %3307 = vrot.lane.b32.xlu0 %v9269_v5, %s6249_s5  ;;  %3305 = vrot.lane.b32.xlu1 %v9311_v54, %s6249_s5  ;;  %4942 = vst.msk [vmem:[%s7732_s7 + $0x208] sm:$0xff] %vm1217_vm1, %v9352_v36  ;;  %v9372_v44 = vsel %vm3174_vm4, %v3150_v15, %v3202_v10  ;;  %vm3177_vm5 = vcmp.ge.f32.partialorder %v3153_v53, 0.0 }
 0x52e   : > { %4945 = vst.msk [vmem:[%s7732_s7 + $0x220] sm:$0xff] %vm1217_vm1, %v9354_v9  ;;  %v3205_v30 = vmul.f32 %v9036_v52, %v3153_v53  ;;  %v3152_v19 = vadd.f32 %v9101_v63, %v3124_v40  ;;  %4944 = vst.msk [vmem:[%s7732_s7 + $0x218] sm:$0xff] %vm1217_vm1, %v9372_v44  ;;  %vm3178_vm6 = vcmp.ge.f32.partialorder %v3154_v25, 0.0  ;;  %v3206_v1 = vmul.f32 %v9036_v52, %v3154_v25 }
 0x52f   : > { %v3127_v33 = vmul.f32 %v8701_v50, %v3099_v49 }
 0x530   : > { %v9381_v55 = vsel %vm3177_vm5, %v3153_v53, %v3205_v30  ;;  %vm3176_vm7 = vcmp.ge.f32.partialorder %v3152_v19, 0.0  ;;  %v3204_v39 = vmul.f32 %v9036_v52, %v3152_v19  ;;  %v9387_v37 = vsel %vm3178_vm6, %v3154_v25, %v3206_v1  ;;  %v9516_v25 = vld [vmem:[%s10265_s3 + $0x8] sm:$0x7] }
 0x531   : > { %4947 = vst.msk [vmem:[%s7732_s7 + $0x230] sm:$0xff] %vm1217_vm1, %v9381_v55  ;;  %v3155_v28 = vadd.f32 %v9101_v63, %v3127_v33  ;;  %3311 = vrot.lane.b32.xlu0 %v9313_v56, %s6249_s5  ;;  %3309 = vrot.lane.b32.xlu1 %v9333_v26, %s6249_s5  ;;  %4948 = vst.msk [vmem:[%s7732_s7 + $0x238] sm:$0xff] %vm1217_vm1, %v9387_v37 }
 0x532   : > { %v9394_v50 = vsel %vm3176_vm7, %v3152_v19, %v3204_v39 }
 0x533   : > { %4946 = vst.msk [vmem:[%s7732_s7 + $0x228] sm:$0xff] %vm1217_vm1, %v9394_v50  ;;  %vm3179_vm8 = vcmp.ge.f32.partialorder %v3155_v28, 0.0  ;;  %v3207_v43 = vmul.f32 %v9036_v52, %v3155_v28 }
 0x535   : > { %v9403_v34 = vsel %vm3179_vm8, %v3155_v28, %v3207_v43  ;;  %3315 = vrot.lane.b32.xlu0 %v9335_v46, %s6249_s5  ;;  %3313 = vrot.lane.b32.xlu1 %v9352_v36, %s6249_s5 }
 0x536   : > { %4949 = vst.msk [vmem:[%s7732_s7 + $0x240] sm:$0xff] %vm1217_vm1, %v9403_v34 }
 0x539   : > { %3319 = vrot.lane.b32.xlu0 %v9354_v9, %s6249_s5  ;;  %3317 = vrot.lane.b32.xlu1 %v9372_v44, %s6249_s5 }
 0x53d   : > { %3323 = vrot.lane.b32.xlu0 %v9381_v55, %s6249_s5  ;;  %3321 = vrot.lane.b32.xlu1 %v9394_v50, %s6249_s5 }
 0x541   : > { %3325 = vrot.lane.b32.xlu0 %v9387_v37, %s6249_s5 }
 0x587   : > { %v3284_v52 = vpop.permute.xlu0 %3283  ;;  %v3282_v63 = vpop.permute.xlu1 %3281 }
 0x588   : > { %3354 = vst.msk [vmem:[#allocation3 + $0x8] sm:$0xff] %vm2079_vm9, %v3284_v52  ;;  %3353 = vst.msk [vmem:[#allocation3] sm:$0xff] %vm2079_vm9, %v3282_v63 }
 0x589   : > { %3378 = vst.msk [vmem:[#allocation3 + $0x9] sm:$0x7f] %vm2129_vm10, %v9142_v6  ;;  %3377 = vst.msk [vmem:[#allocation3 + $0x1] sm:$0x7f] %vm2129_vm10, %v9144_v13 }
 0x58b   : > { %v3288_v20 = vpop.permute.xlu0 %3287  ;;  %v3286_v45 = vpop.permute.xlu1 %3285 }
 0x58c   : > { %3356 = vst.msk [vmem:[#allocation3 + $0x18] sm:$0xff] %vm2079_vm9, %v3288_v20  ;;  %3355 = vst.msk [vmem:[#allocation3 + $0x10] sm:$0xff] %vm2079_vm9, %v3286_v45 }
 0x58d   : > { %3380 = vst.msk [vmem:[#allocation3 + $0x19] sm:$0x7f] %vm2129_vm10, %v9157_v59  ;;  %3379 = vst.msk [vmem:[#allocation3 + $0x11] sm:$0x7f] %vm2129_vm10, %v9159_v21 }
 0x58f   : > { %v3292_v0 = vpop.permute.xlu0 %3291  ;;  %v3290_v32 = vpop.permute.xlu1 %3289 }
 0x590   : > { %3358 = vst.msk [vmem:[#allocation3 + $0x28] sm:$0xff] %vm2079_vm9, %v3292_v0  ;;  %3357 = vst.msk [vmem:[#allocation3 + $0x20] sm:$0xff] %vm2079_vm9, %v3290_v32  ;;  %v3402_v6 = vld [vmem:[#allocation3 + $0x8] sm:$0xff]  ;;  %v3401_v13 = vld [vmem:[#allocation3] sm:$0xff] }
 0x591   : > { %3382 = vst.msk [vmem:[#allocation3 + $0x29] sm:$0x7f] %vm2129_vm10, %v9168_v62  ;;  %3381 = vst.msk [vmem:[#allocation3 + $0x21] sm:$0x7f] %vm2129_vm10, %v9175_v41  ;;  %3543 = vmatprep.mubr.f32.mxu1 %v3402_v6 }
 0x592   : > { %3544 = vmatmul.mubr.f32.vlgmr.msra.gmra.mxu1 %v3401_v13 }
 0x593   : > { %v3296_v59 = vpop.permute.xlu0 %3295  ;;  %v3294_v51 = vpop.permute.xlu1 %3293 }
 0x594   : > { %3360 = vst.msk [vmem:[#allocation3 + $0x38] sm:$0xff] %vm2079_vm9, %v3296_v59  ;;  %3359 = vst.msk [vmem:[#allocation3 + $0x30] sm:$0xff] %vm2079_vm9, %v3294_v51  ;;  %v3404_v21 = vld [vmem:[#allocation3 + $0x18] sm:$0xff]  ;;  %v3403_v27 = vld [vmem:[#allocation3 + $0x10] sm:$0xff] }
 0x595   : > { %3384 = vst.msk [vmem:[#allocation3 + $0x39] sm:$0x7f] %vm2129_vm10, %v9192_v18  ;;  %3383 = vst.msk [vmem:[#allocation3 + $0x31] sm:$0x7f] %vm2129_vm10, %v9223_v24  ;;  %3548 = vmatprep.mubr.f32.mxu1 %v3404_v21  ;;  %5736 = vmatmul.mubr.f32.vlgmr.msra.gmra.mxu0 %v3403_v27 }
 0x596   : > { %3549 = vmatmul.mubr.f32.gmra.mxu1 %v3403_v27  ;;  %5738 = vmatprep.mubr.msk.f32.mxu0 %vm6248_vm0, %v10298_v7 }
 0x597   : > { %v3300_v62 = vpop.permute.xlu0 %3299  ;;  %v3298_v41 = vpop.permute.xlu1 %3297 }
 0x598   : > { %3362 = vst.msk [vmem:[#allocation3 + $0x48] sm:$0xff] %vm2079_vm9, %v3300_v62  ;;  %3361 = vst.msk [vmem:[#allocation3 + $0x40] sm:$0xff] %vm2079_vm9, %v3298_v41  ;;  %v3406_v35 = vld [vmem:[#allocation3 + $0x28] sm:$0xff]  ;;  %v3405_v60 = vld [vmem:[#allocation3 + $0x20] sm:$0xff] }
 0x599   : > { %3386 = vst.msk [vmem:[#allocation3 + $0x49] sm:$0x7f] %vm2129_vm10, %v9242_v31  ;;  %3385 = vst.msk [vmem:[#allocation3 + $0x41] sm:$0x7f] %vm2129_vm10, %v9244_v2  ;;  %3553 = vmatprep.mubr.f32.mxu1 %v3406_v35  ;;  %5739 = vmatmul.mubr.f32.gmra.mxu0 %v3405_v60 }
 0x59a   : > { %3554 = vmatmul.mubr.f32.gmra.mxu1 %v3405_v60  ;;  %5741 = vmatprep.mubr.msk.f32.mxu0 %vm6248_vm0, %v10298_v7 }
 0x59b   : > { %v3304_v18 = vpop.permute.xlu0 %3303  ;;  %v3302_v24 = vpop.permute.xlu1 %3301 }
 0x59c   : > { %3364 = vst.msk [vmem:[#allocation3 + $0x58] sm:$0xff] %vm2079_vm9, %v3304_v18  ;;  %3363 = vst.msk [vmem:[#allocation3 + $0x50] sm:$0xff] %vm2079_vm9, %v3302_v24  ;;  %v3408_v48 = vld [vmem:[#allocation3 + $0x38] sm:$0xff]  ;;  %v3407_v11 = vld [vmem:[#allocation3 + $0x30] sm:$0xff] }
 0x59d   : > { %3388 = vst.msk [vmem:[#allocation3 + $0x59] sm:$0x7f] %vm2129_vm10, %v9253_v3  ;;  %3387 = vst.msk [vmem:[#allocation3 + $0x51] sm:$0x7f] %vm2129_vm10, %v9255_v17  ;;  %3558 = vmatprep.mubr.f32.mxu1 %v3408_v48  ;;  %5742 = vmatmul.mubr.f32.gmra.mxu0 %v3407_v11 }
 0x59e   : > { %3559 = vmatmul.mubr.f32.gmra.mxu1 %v3407_v11  ;;  %5744 = vmatprep.mubr.msk.f32.mxu0 %vm6248_vm0, %v10298_v7 }
 0x59f   : > { %v3308_v31 = vpop.permute.xlu0 %3307  ;;  %v3306_v2 = vpop.permute.xlu1 %3305 }
 0x5a0   : > { %3366 = vst.msk [vmem:[#allocation3 + $0x68] sm:$0xff] %vm2079_vm9, %v3308_v31  ;;  %3365 = vst.msk [vmem:[#allocation3 + $0x60] sm:$0xff] %vm2079_vm9, %v3306_v2  ;;  %v3410_v22 = vld [vmem:[#allocation3 + $0x48] sm:$0xff]  ;;  %v3409_v29 = vld [vmem:[#allocation3 + $0x40] sm:$0xff] }
 0x5a1   : > { %3390 = vst.msk [vmem:[#allocation3 + $0x69] sm:$0x7f] %vm2129_vm10, %v9269_v5  ;;  %3389 = vst.msk [vmem:[#allocation3 + $0x61] sm:$0x7f] %vm2129_vm10, %v9311_v54  ;;  %3563 = vmatprep.mubr.f32.mxu1 %v3410_v22  ;;  %5745 = vmatmul.mubr.f32.gmra.mxu0 %v3409_v29 }
 0x5a2   : > { %3564 = vmatmul.mubr.f32.gmra.mxu1 %v3409_v29  ;;  %5747 = vmatprep.mubr.msk.f32.mxu0 %vm6248_vm0, %v10298_v7 }
 0x5a3   : > { %v3312_v3 = vpop.permute.xlu0 %3311  ;;  %v3310_v17 = vpop.permute.xlu1 %3309 }
 0x5a4   : > { %3368 = vst.msk [vmem:[#allocation3 + $0x78] sm:$0xff] %vm2079_vm9, %v3312_v3  ;;  %3367 = vst.msk [vmem:[#allocation3 + $0x70] sm:$0xff] %vm2079_vm9, %v3310_v17  ;;  %v3412_v38 = vld [vmem:[#allocation3 + $0x58] sm:$0xff]  ;;  %v3411_v57 = vld [vmem:[#allocation3 + $0x50] sm:$0xff] }
 0x5a5   : > { %3392 = vst.msk [vmem:[#allocation3 + $0x79] sm:$0x7f] %vm2129_vm10, %v9313_v56  ;;  %3391 = vst.msk [vmem:[#allocation3 + $0x71] sm:$0x7f] %vm2129_vm10, %v9333_v26  ;;  %3568 = vmatprep.mubr.f32.mxu1 %v3412_v38  ;;  %5748 = vmatmul.mubr.f32.gmra.mxu0 %v3411_v57 }
 0x5a6   : > { %3569 = vmatmul.mubr.f32.gmra.mxu1 %v3411_v57  ;;  %5750 = vmatprep.mubr.msk.f32.mxu0 %vm6248_vm0, %v10298_v7 }
 0x5a7   : > { %v3316_v5 = vpop.permute.xlu0 %3315  ;;  %v3314_v54 = vpop.permute.xlu1 %3313 }
 0x5a8   : > { %3370 = vst.msk [vmem:[#allocation3 + $0x88] sm:$0xff] %vm2079_vm9, %v3316_v5  ;;  %3369 = vst.msk [vmem:[#allocation3 + $0x80] sm:$0xff] %vm2079_vm9, %v3314_v54  ;;  %v3414_v42 = vld [vmem:[#allocation3 + $0x68] sm:$0xff]  ;;  %v3413_v8 = vld [vmem:[#allocation3 + $0x60] sm:$0xff] }
 0x5a9   : > { %3394 = vst.msk [vmem:[#allocation3 + $0x89] sm:$0x7f] %vm2129_vm10, %v9335_v46  ;;  %3393 = vst.msk [vmem:[#allocation3 + $0x81] sm:$0x7f] %vm2129_vm10, %v9352_v36  ;;  %3573 = vmatprep.mubr.f32.mxu1 %v3414_v42  ;;  %5751 = vmatmul.mubr.f32.gmra.mxu0 %v3413_v8 }
 0x5aa   : > { %3574 = vmatmul.mubr.f32.gmra.mxu1 %v3413_v8  ;;  %5753 = vmatprep.mubr.msk.f32.mxu0 %vm6248_vm0, %v10298_v7 }
 0x5ab   : > { %v3320_v56 = vpop.permute.xlu0 %3319  ;;  %v3318_v14 = vpop.permute.xlu1 %3317 }
 0x5ac   : > { %3372 = vst.msk [vmem:[#allocation3 + $0x98] sm:$0xff] %vm2079_vm9, %v3320_v56  ;;  %3371 = vst.msk [vmem:[#allocation3 + $0x90] sm:$0xff] %vm2079_vm9, %v3318_v14  ;;  %v3416_v15 = vld [vmem:[#allocation3 + $0x78] sm:$0xff]  ;;  %v3415_v16 = vld [vmem:[#allocation3 + $0x70] sm:$0xff] }
 0x5ad   : > { %3396 = vst.msk [vmem:[#allocation3 + $0x99] sm:$0x7f] %vm2129_vm10, %v9354_v9  ;;  %3395 = vst.msk [vmem:[#allocation3 + $0x91] sm:$0x7f] %vm2129_vm10, %v9372_v44  ;;  %3578 = vmatprep.mubr.f32.mxu1 %v3416_v15  ;;  %5754 = vmatmul.mubr.f32.gmra.mxu0 %v3415_v16  ;;  %v9520_v44 = vrot.slane %v9516_v25, %v10329_v47 }
 0x5ae   : > { %3579 = vmatmul.mubr.f32.gmra.mxu1 %v3415_v16  ;;  %5756 = vmatprep.mubr.msk.f32.mxu0 %vm6248_vm0, %v10298_v7 }
 0x5af   : > { %v3324_v26 = vpop.permute.xlu0 %3323  ;;  %v3322_v46 = vpop.permute.xlu1 %3321 }
 0x5b0   : > { %3374 = vst.msk [vmem:[#allocation3 + $0xa8] sm:$0xff] %vm2079_vm9, %v3324_v26  ;;  %3373 = vst.msk [vmem:[#allocation3 + $0xa0] sm:$0xff] %vm2079_vm9, %v3322_v46  ;;  %v3418_v61 = vld [vmem:[#allocation3 + $0x88] sm:$0xff]  ;;  %v3417_v12 = vld [vmem:[#allocation3 + $0x80] sm:$0xff] }
 0x5b1   : > { %3398 = vst.msk [vmem:[#allocation3 + $0xa9] sm:$0x7f] %vm2129_vm10, %v9381_v55  ;;  %3397 = vst.msk [vmem:[#allocation3 + $0xa1] sm:$0x7f] %vm2129_vm10, %v9394_v50  ;;  %3583 = vmatprep.mubr.f32.mxu1 %v3418_v61  ;;  %5757 = vmatmul.mubr.f32.gmra.mxu0 %v3417_v12 }
 0x5b2   : > { %3584 = vmatmul.mubr.f32.gmra.mxu1 %v3417_v12  ;;  %5759 = vmatprep.mubr.msk.f32.mxu0 %vm6248_vm0, %v10298_v7 }
 0x5b3   : > { %v3326_v58 = vpop.permute.xlu0 %3325 }
 0x5b4   : > { %3375 = vst.msk [vmem:[#allocation3 + $0xb0] sm:$0xff] %vm2079_vm9, %v3326_v58  ;;  %v3420_v10 = vld [vmem:[#allocation3 + $0x98] sm:$0xff]  ;;  %v3419_v53 = vld [vmem:[#allocation3 + $0x90] sm:$0xff] }
 0x5b5   : > { %3399 = vst.msk [vmem:[#allocation3 + $0xb1] sm:$0x7f] %vm2129_vm10, %v9387_v37  ;;  %3588 = vmatprep.mubr.f32.mxu1 %v3420_v10  ;;  %5760 = vmatmul.mubr.f32.gmra.mxu0 %v3419_v53 }
 0x5b6   : > { %3589 = vmatmul.mubr.f32.gmra.mxu1 %v3419_v53  ;;  %5762 = vmatprep.mubr.msk.f32.mxu0 %vm6248_vm0, %v10298_v7 }
 0x5b8   : > { %v3422_v40 = vld [vmem:[#allocation3 + $0xa8] sm:$0xff]  ;;  %v3421_v36 = vld [vmem:[#allocation3 + $0xa0] sm:$0xff] }
 0x5b9   : > { %3593 = vmatprep.mubr.f32.mxu1 %v3422_v40  ;;  %5763 = vmatmul.mubr.f32.gmra.mxu0 %v3421_v36 }
 0x5ba   : > { %3594 = vmatmul.mubr.f32.gmra.mxu1 %v3421_v36  ;;  %5765 = vmatprep.mubr.msk.f32.mxu0 %vm6248_vm0, %v10298_v7 }
 0x5bc   : > { %v3423_v9 = vld [vmem:[#allocation3 + $0xb0] sm:$0xff] }
 0x5bd   : > { %5766 = vmatmul.mubr.f32.gmra.mxu0 %v3423_v9 }
 0x5be   : > { %5800 = vmatprep.mubr.msk.f32.mxu0 %vm6248_vm0, %v10298_v7 }
 0x652   : > { %v5272_v49 = vpop.f32.mrf.mxu1 }
 0x654   : > { %v5273_v30 = vpop.f32.mrf.mxu1 }
 0x655   : > { %v5274_v19 = vadd.f32 %v5273_v30, %v5272_v49  ;;  %v3665_v1 = vpop.f32.mrf.mxu0 }
 0x656   : > { %v5275_v33 = vpop.f32.mrf.mxu1 }
 0x657   : > { %v3546_v55 = vadd.f32 %v5274_v19, %v9520_v44  ;;  %v5737_v39 = vpop.f32.mrf.mxu0 }
 0x658   : > { %v5276_v37 = vpop.f32.mrf.mxu1 }
 0x659   : > { %v9523_v28 = vadd.f32 %v3665_v1, %v3546_v55  ;;  %v5277_v50 = vadd.f32 %v5276_v37, %v5275_v33  ;;  %v3670_v43 = vpop.f32.mrf.mxu0 }
 0x65a   : > { %v5278_v52 = vpop.f32.mrf.mxu1 }
 0x65b   : > { %v4999_v63 = vmul.f32 -1.442695, %v9523_v28  ;;  %v3551_v20 = vadd.f32 %v5277_v50, %v9520_v44  ;;  %v5740_v45 = vpop.f32.mrf.mxu0 }
 0x65c   : > { %v5279_v0 = vpop.f32.mrf.mxu1 }
 0x65d   : > { %6159 = vpow2.f32 %v4999_v63  ;;  %v9527_v32 = vadd.f32 %v3670_v43, %v3551_v20  ;;  %v5280_v6 = vadd.f32 %v5279_v0, %v5278_v52  ;;  %v3675_v13 = vpop.f32.mrf.mxu0 }
 0x65e   : > { %v5281_v59 = vpop.f32.mrf.mxu1 }
 0x65f   : > { %v5000_v51 = vmul.f32 -1.442695, %v9527_v32  ;;  %v3556_v21 = vadd.f32 %v5280_v6, %v9520_v44  ;;  %v5743_v27 = vpop.f32.mrf.mxu0 }
 0x660   : > { %v5282_v62 = vpop.f32.mrf.mxu1 }
 0x661   : > { %6161 = vpow2.f32 %v5000_v51  ;;  %v9531_v41 = vadd.f32 %v3675_v13, %v3556_v21  ;;  %v5283_v35 = vadd.f32 %v5282_v62, %v5281_v59  ;;  %v3680_v60 = vpop.f32.mrf.mxu0 }
 0x662   : > { %v5284_v18 = vpop.f32.mrf.mxu1 }
 0x663   : > { %v5001_v24 = vmul.f32 -1.442695, %v9531_v41  ;;  %v3561_v48 = vadd.f32 %v5283_v35, %v9520_v44  ;;  %v5746_v11 = vpop.f32.mrf.mxu0 }
 0x664   : > { %v5285_v31 = vpop.f32.mrf.mxu1 }
 0x665   : > { %6163 = vpow2.f32 %v5001_v24  ;;  %v9535_v2 = vadd.f32 %v3680_v60, %v3561_v48  ;;  %v5286_v22 = vadd.f32 %v5285_v31, %v5284_v18  ;;  %v3685_v29 = vpop.f32.mrf.mxu0 }
 0x666   : > { %v5287_v3 = vpop.f32.mrf.mxu1 }
 0x667   : > { %v5002_v17 = vmul.f32 -1.442695, %v9535_v2  ;;  %v3566_v38 = vadd.f32 %v5286_v22, %v9520_v44  ;;  %v5749_v57 = vpop.f32.mrf.mxu0 }
 0x668   : > { %v5288_v5 = vpop.f32.mrf.mxu1 }
 0x669   : > { %6165 = vpow2.f32 %v5002_v17  ;;  %v9539_v54 = vadd.f32 %v3685_v29, %v3566_v38  ;;  %v5289_v42 = vadd.f32 %v5288_v5, %v5287_v3  ;;  %v3690_v8 = vpop.f32.mrf.mxu0 }
 0x66a   : > { %v6160_v56 = vpop.eup %6159  ;;  %v5290_v14 = vpop.f32.mrf.mxu1 }
 0x66b   : > { %v3752_v15 = vadd.f32 1.0, %v6160_v56  ;;  %v5003_v16 = vmul.f32 -1.442695, %v9539_v54  ;;  %v3571_v26 = vadd.f32 %v5289_v42, %v9520_v44  ;;  %v5752_v46 = vpop.f32.mrf.mxu0 }
 0x66c   : > { %v5291_v61 = vpop.f32.mrf.mxu1 }
 0x66d   : > { %6167 = vrcp.f32 %v3752_v15  ;;  %v9543_v12 = vadd.f32 %v3690_v8, %v3571_v26  ;;  %v5292_v58 = vadd.f32 %v5291_v61, %v5290_v14  ;;  %v3695_v10 = vpop.f32.mrf.mxu0 }
 0x66e   : > { %v6162_v53 = vpop.eup %6161  ;;  %6169 = vpow2.f32 %v5003_v16  ;;  %v5293_v40 = vpop.f32.mrf.mxu1 }
 0x66f   : > { %v3753_v36 = vadd.f32 1.0, %v6162_v53  ;;  %v5004_v9 = vmul.f32 -1.442695, %v9543_v12  ;;  %v3576_v49 = vadd.f32 %v5292_v58, %v9520_v44  ;;  %v5755_v30 = vpop.f32.mrf.mxu0 }
 0x670   : > { %v5294_v19 = vpop.f32.mrf.mxu1 }
 0x671   : > { %6171 = vrcp.f32 %v3753_v36  ;;  %v9547_v1 = vadd.f32 %v3695_v10, %v3576_v49  ;;  %v5295_v33 = vadd.f32 %v5294_v19, %v5293_v40  ;;  %v3700_v55 = vpop.f32.mrf.mxu0 }
 0x672   : > { %v6164_v39 = vpop.eup %6163  ;;  %6173 = vpow2.f32 %v5004_v9  ;;  %v5296_v37 = vpop.f32.mrf.mxu1 }
 0x673   : > { %v3754_v50 = vadd.f32 1.0, %v6164_v39  ;;  %v5005_v43 = vmul.f32 -1.442695, %v9547_v1  ;;  %v3581_v52 = vadd.f32 %v5295_v33, %v9520_v44  ;;  %v5758_v63 = vpop.f32.mrf.mxu0 }
 0x674   : > { %v5297_v20 = vpop.f32.mrf.mxu1 }
 0x675   : > { %6175 = vrcp.f32 %v3754_v50  ;;  %v9551_v45 = vadd.f32 %v3700_v55, %v3581_v52  ;;  %v5298_v0 = vadd.f32 %v5297_v20, %v5296_v37  ;;  %v3705_v6 = vpop.f32.mrf.mxu0  ;;  %v9577_v20 = vrot.slane %v9516_v25, %v10330_v23 }
 0x676   : > { %v6166_v13 = vpop.eup %6165  ;;  %6177 = vpow2.f32 %v5005_v43  ;;  %v5299_v59 = vpop.f32.mrf.mxu1 }
 0x677   : > { %v3755_v51 = vadd.f32 1.0, %v6166_v13  ;;  %v5006_v21 = vmul.f32 -1.442695, %v9551_v45  ;;  %v3586_v27 = vadd.f32 %v5298_v0, %v9520_v44  ;;  %v5761_v62 = vpop.f32.mrf.mxu0  ;;  %v5036_v13 = vld [vmem:[%s10264_s2 + $0x378] sm:$0xff] }
 0x678   : > { %v5300_v35 = vpop.f32.mrf.mxu1  ;;  %v5034_v62 = vld [vmem:[%s10264_s2 + $0x368] sm:$0xff] }
 0x679   : > { %6179 = vrcp.f32 %v3755_v51  ;;  %v9555_v60 = vadd.f32 %v3705_v6, %v3586_v27  ;;  %v5301_v18 = vadd.f32 %v5300_v35, %v5299_v59  ;;  %v3710_v24 = vpop.f32.mrf.mxu0  ;;  %v5052_v6 = vld [vmem:[%s10264_s2 + $0x3f8] sm:$0xff]  ;;  %v5051_v59 = vld [vmem:[%s10264_s2 + $0x3f0] sm:$0xff] }
 0x67a   : > { %v6168_v48 = vpop.eup %6167  ;;  %6181 = vpow2.f32 %v5006_v21  ;;  %v5302_v11 = vpop.f32.mrf.mxu1  ;;  %5332 = vmatprep.subr.mxu1 %v5052_v6  ;;  %v5035_v51 = vld [vmem:[%s10264_s2 + $0x370] sm:$0xff]  ;;  %v5050_v21 = vld [vmem:[%s10264_s2 + $0x3e8] sm:$0xff]  ;;  %v5068_v27 = vld [vmem:[%s10264_s2 + $0x478] sm:$0xff] }
 0x67b   : > { %v6170_v31 = vpop.eup %6169  ;;  %v5007_v22 = vmul.f32 -1.442695, %v9555_v60  ;;  %v3591_v29 = vadd.f32 %v5301_v18, %v9520_v44  ;;  %3796 = vrot.lane.b32.xlu1 %v6168_v48, %s6249_s5  ;;  %v5764_v3 = vpop.f32.mrf.mxu0  ;;  %5333 = vmatpush3.msra.mxu1 %v5036_v13  ;;  %v5067_v35 = vld [vmem:[%s10264_s2 + $0x470] sm:$0xff]  ;;  %v5049_v18 = vld [vmem:[%s10264_s2 + $0x3e0] sm:$0xff] }
 0x67c   : > { %v3756_v17 = vadd.f32 1.0, %v6170_v31  ;;  %v5303_v38 = vpop.f32.mrf.mxu1  ;;  %5334 = vmatprep.subr.mxu1 %v5051_v59  ;;  %5769 = vmatpush3.msra.mxu0 %v5068_v27  ;;  %v5033_v48 = vld [vmem:[%s10264_s2 + $0x360] sm:$0xff]  ;;  %v5064_v3 = vld [vmem:[%s10264_s2 + $0x458] sm:$0xff] }
 0x67d   : > { %6183 = vpow2.f32 %v5007_v22  ;;  %v9560_v57 = vadd.f32 %v3710_v24, %v3591_v29  ;;  %v5304_v5 = vadd.f32 %v5303_v38, %v5302_v11  ;;  %v3715_v42 = vpop.f32.mrf.mxu0  ;;  %5335 = vmatpush3.msra.mxu1 %v5035_v51  ;;  %5770 = vmatprep.subr.mxu0 %v10298_v7  ;;  %v5066_v24 = vld [vmem:[%s10264_s2 + $0x468] sm:$0xff]  ;;  %v5048_v11 = vld [vmem:[%s10264_s2 + $0x3d8] sm:$0xff]  ;;  %v5065_v31 = vld [vmem:[%s10264_s2 + $0x460] sm:$0xff] }
 0x67e   : > { %v6172_v8 = vpop.eup %6171  ;;  %6185 = vrcp.f32 %v3756_v17  ;;  %5336 = vmatprep.subr.mxu1 %v5050_v21  ;;  %5771 = vmatpush3.msra.mxu0 %v5067_v35  ;;  %v5032_v22 = vld [vmem:[%s10264_s2 + $0x358] sm:$0xff]  ;;  %v5047_v29 = vld [vmem:[%s10264_s2 + $0x3d0] sm:$0xff]  ;;  %v5046_v38 = vld [vmem:[%s10264_s2 + $0x3c8] sm:$0xff] }
 0x67f   : > { %v6174_v56 = vpop.eup %6173  ;;  %v5008_v14 = vmul.f32 -1.442695, %v9560_v57  ;;  %v3596_v15 = vadd.f32 %v5304_v5, %v9520_v44  ;;  %3798 = vrot.lane.b32.xlu0 %v6172_v8, %s6249_s5  ;;  %v5767_v16 = vpop.f32.mrf.mxu0  ;;  %5337 = vmatpush3.msra.mxu1 %v5034_v62  ;;  %v5031_v17 = vld [vmem:[%s10264_s2 + $0x350] sm:$0xff]  ;;  %v5045_v8 = vld [vmem:[%s10264_s2 + $0x3c0] sm:$0xff] }
 0x680   : > { %v3757_v26 = vadd.f32 1.0, %v6174_v56  ;;  %5772 = vmatprep.subr.mxu0 %v10298_v7  ;;  %5338 = vmatprep.subr.mxu1 %v5049_v18  ;;  %v5063_v5 = vld [vmem:[%s10264_s2 + $0x450] sm:$0xff]  ;;  %v5062_v56 = vld [vmem:[%s10264_s2 + $0x448] sm:$0xff]  ;;  %v5061_v16 = vld [vmem:[%s10264_s2 + $0x440] sm:$0xff] }
 0x681   : > { %6187 = vpow2.f32 %v5008_v14  ;;  %v9565_v46 = vadd.f32 %v3715_v42, %v3596_v15  ;;  %5773 = vmatpush3.msra.mxu0 %v5066_v24  ;;  %5339 = vmatpush3.msra.mxu1 %v5033_v48  ;;  %v5030_v42 = vld [vmem:[%s10264_s2 + $0x348] sm:$0xff]  ;;  %v5029_v14 = vld [vmem:[%s10264_s2 + $0x340] sm:$0xff]  ;;  %v5044_v15 = vld [vmem:[%s10264_s2 + $0x3b8] sm:$0xff] }
 0x682   : > { %v6176_v61 = vpop.eup %6175  ;;  %6189 = vrcp.f32 %v3757_v26  ;;  %5774 = vmatprep.subr.mxu0 %v10298_v7  ;;  %5340 = vmatprep.subr.mxu1 %v5048_v11  ;;  %v5028_v26 = vld [vmem:[%s10264_s2 + $0x338] sm:$0xff] }
 0x683   : > { %v6178_v58 = vpop.eup %6177  ;;  %v5009_v10 = vmul.f32 -1.442695, %v9565_v46  ;;  %3800 = vrot.lane.b32.xlu1 %v6176_v61, %s6249_s5  ;;  %5775 = vmatpush3.msra.mxu0 %v5065_v31  ;;  %v5043_v61 = vld [vmem:[%s10264_s2 + $0x3b0] sm:$0xff] }
 0x684   : > { %v3758_v53 = vadd.f32 1.0, %v6178_v58  ;;  %5341 = vmatpush3.msra.mxu1 %v5032_v22  ;;  %5776 = vmatprep.subr.mxu0 %v10298_v7  ;;  %v5060_v58 = vld [vmem:[%s10264_s2 + $0x438] sm:$0xff] }
 0x685   : > { %6191 = vpow2.f32 %v5009_v10  ;;  %5342 = vmatprep.subr.mxu1 %v5047_v29  ;;  %5777 = vmatpush3.msra.mxu0 %v5064_v3  ;;  %v5027_v10 = vld [vmem:[%s10264_s2 + $0x330] sm:$0xff] }
 0x686   : > { %v6180_v40 = vpop.eup %6179  ;;  %6193 = vrcp.f32 %v3758_v53  ;;  %5343 = vmatpush3.msra.mxu1 %v5031_v17  ;;  %5778 = vmatprep.subr.mxu0 %v10298_v7  ;;  %v5042_v53 = vld [vmem:[%s10264_s2 + $0x3a8] sm:$0xff] }
 0x687   : > { %v6182_v36 = vpop.eup %6181  ;;  %3802 = vrot.lane.b32.xlu0 %v6180_v40, %s6249_s5  ;;  %5344 = vmatprep.subr.mxu1 %v5046_v38  ;;  %v5059_v40 = vld [vmem:[%s10264_s2 + $0x430] sm:$0xff] }
 0x688   : > { %v3759_v44 = vadd.f32 1.0, %v6182_v36  ;;  %5779 = vmatpush3.msra.mxu0 %v5063_v5  ;;  %5345 = vmatpush3.msra.mxu1 %v5030_v42  ;;  %v5026_v36 = vld [vmem:[%s10264_s2 + $0x328] sm:$0xff] }
 0x689   : > { %5780 = vmatprep.subr.mxu0 %v10298_v7  ;;  %5346 = vmatprep.subr.mxu1 %v5045_v8 }
 0x68a   : > { %v6184_v9 = vpop.eup %6183  ;;  %6195 = vrcp.f32 %v3759_v44  ;;  %5781 = vmatpush3.msra.mxu0 %v5062_v56  ;;  %5347 = vmatpush3.msra.mxu1 %v5029_v14  ;;  %v5041_v44 = vld [vmem:[%s10264_s2 + $0x3a0] sm:$0xff] }
 0x68b   : > { %v6186_v49 = vpop.eup %6185  ;;  %v3760_v30 = vadd.f32 1.0, %v6184_v9  ;;  %5782 = vmatprep.subr.mxu0 %v10298_v7  ;;  %5348 = vmatprep.subr.mxu1 %v5044_v15  ;;  %v5025_v9 = vld [vmem:[%s10264_s2 + $0x320] sm:$0xff] }
 0x68c   : > { %3804 = vrot.lane.b32.xlu1 %v6186_v49, %s6249_s5  ;;  %5783 = vmatpush3.msra.mxu0 %v5061_v16  ;;  %v5040_v49 = vld [vmem:[%s10264_s2 + $0x398] sm:$0xff] }
 0x68d   : > { %6197 = vrcp.f32 %v3760_v30  ;;  %5349 = vmatpush3.msra.mxu1 %v5028_v26  ;;  %5784 = vmatprep.subr.mxu0 %v10298_v7  ;;  %v5024_v30 = vld [vmem:[%s10264_s2 + $0x318] sm:$0xff] }
 0x68e   : > { %v6188_v19 = vpop.eup %6187  ;;  %5350 = vmatprep.subr.mxu1 %v5043_v61  ;;  %5785 = vmatpush3.msra.mxu0 %v5060_v58 }
 0x68f   : > { %v6190_v33 = vpop.eup %6189  ;;  %v3761_v55 = vadd.f32 1.0, %v6188_v19  ;;  %5351 = vmatpush3.msra.mxu1 %v5027_v10  ;;  %5786 = vmatprep.subr.mxu0 %v10298_v7 }
 0x690   : > { %3806 = vrot.lane.b32.xlu0 %v6190_v33, %s6249_s5  ;;  %5352 = vmatprep.subr.mxu1 %v5042_v53 }
 0x691   : > { %6199 = vrcp.f32 %v3761_v55  ;;  %5787 = vmatpush3.msra.mxu0 %v5059_v40  ;;  %5353 = vmatpush3.msra.mxu1 %v5026_v36 }
 0x692   : > { %v6192_v39 = vpop.eup %6191  ;;  %5788 = vmatprep.subr.mxu0 %v10298_v7  ;;  %5354 = vmatprep.subr.mxu1 %v5041_v44 }
 0x693   : > { %v6194_v37 = vpop.eup %6193  ;;  %v3762_v50 = vadd.f32 1.0, %v6192_v39  ;;  %5355 = vmatpush3.msra.mxu1 %v5025_v9 }
 0x694   : > { %3808 = vrot.lane.b32.xlu1 %v6194_v37, %s6249_s5  ;;  %5356 = vmatprep.subr.mxu1 %v5040_v49 }
 0x695   : > { %6201 = vrcp.f32 %v3762_v50  ;;  %5357 = vmatpush3.msra.mxu1 %v5024_v30 }
 0x697   : > { %v6196_v43 = vpop.eup %6195 }
 0x698   : > { %3810 = vrot.lane.b32.xlu0 %v6196_v43, %s6249_s5 }
 0x69a   : > { %v6198_v52 = vpop.eup %6197 }
 0x69b   : > { %3812 = vrot.lane.b32.xlu1 %v6198_v52, %s6249_s5 }
 0x69e   : > { %v6200_v63 = vpop.eup %6199 }
 0x69f   : > { %3814 = vrot.lane.b32.xlu0 %v6200_v63, %s6249_s5 }
 0x6a2   : > { %v6202_v0 = vpop.eup %6201 }
 0x6a3   : > { %3816 = vrot.lane.b32.xlu1 %v6202_v0, %s6249_s5  ;;  %3949 = vrot.lane.b32.xlu0 %v9577_v20, %s6249_s5 }
 0x6ed   : > { %v3797_v19 = vpop.permute.xlu1 %3796 }
 0x6ee   : > { %v9705_v37 = vmul.f32 %v3797_v19, %v9523_v28 }
 0x6f0   : > { %v3867_v6 = vmul.f32 %v9705_v37, %v9705_v37  ;;  %v3840_v59 = vsel %vm1217_vm1, %v9705_v37, 0.0 }
 0x6f1   : > { %v3799_v33 = vpop.permute.xlu0 %3798 }
 0x6f2   : > { %v9702_v39 = vmul.f32 %v3799_v33, %v9527_v32  ;;  %v3878_v35 = vsel %vm1217_vm1, %v3867_v6, 0.0 }
 0x6f4   : > { %v3868_v63 = vmul.f32 %v9702_v39, %v9702_v39  ;;  %v3841_v32 = vsel %vm1217_vm1, %v9702_v39, 0.0 }
 0x6f5   : > { %v3801_v55 = vpop.permute.xlu1 %3800  ;;  %v3842_v18 = vadd.f32 %v3841_v32, %v3840_v59 }
 0x6f6   : > { %v9708_v43 = vmul.f32 %v3801_v55, %v9531_v41  ;;  %v3879_v51 = vsel %vm1217_vm1, %v3868_v63, 0.0 }
 0x6f7   : > { %v3880_v31 = vadd.f32 %v3879_v51, %v3878_v35 }
 0x6f8   : > { %v3869_v28 = vmul.f32 %v9708_v43, %v9708_v43 }
 0x6f9   : > { %v3803_v50 = vpop.permute.xlu0 %3802 }
 0x6fa   : > { %v9713_v0 = vmul.f32 %v3803_v50, %v9535_v2  ;;  %v3843_v2 = vsel %vm1217_vm1, %v9708_v43, 0.0 }
 0x6fb   : > { %v3844_v22 = vadd.f32 %v3843_v2, %v3842_v18 }
 0x6fc   : > { %v3870_v21 = vmul.f32 %v9713_v0, %v9713_v0  ;;  %v3845_v24 = vsel %vm1217_vm1, %v9713_v0, 0.0 }
 0x6fd   : > { %v3846_v5 = vadd.f32 %v3845_v24, %v3844_v22 }
 0x6fe   : > { %v3805_v52 = vpop.permute.xlu1 %3804 }
 0x6ff   : > { %v9722_v41 = vmul.f32 %v3805_v52, %v9539_v54  ;;  %v3881_v54 = vsel %vm1217_vm1, %v3869_v28, 0.0 }
 0x700   : > { %v3882_v38 = vadd.f32 %v3881_v54, %v3880_v31 }
 0x701   : > { %v3871_v48 = vmul.f32 %v9722_v41, %v9722_v41  ;;  %v3847_v29 = vsel %vm1217_vm1, %v9722_v41, 0.0 }
 0x702   : > { %v3807_v13 = vpop.permute.xlu0 %3806  ;;  %v3848_v15 = vadd.f32 %v3847_v29, %v3846_v5 }
 0x703   : > { %v9732_v27 = vmul.f32 %v3807_v13, %v9543_v12  ;;  %v3883_v12 = vsel %vm1217_vm1, %v3870_v21, 0.0  ;;  %v3885_v8 = vsel %vm1217_vm1, %v3871_v48, 0.0 }
 0x704   : > { %v3884_v14 = vadd.f32 %v3883_v12, %v3882_v38 }
 0x705   : > { %v3872_v3 = vmul.f32 %v9732_v27, %v9732_v27 }
 0x706   : > { %v3809_v62 = vpop.permute.xlu1 %3808  ;;  %v3886_v10 = vadd.f32 %v3885_v8, %v3884_v14 }
 0x707   : > { %v9741_v11 = vmul.f32 %v3809_v62, %v9547_v1  ;;  %v3849_v1 = vsel %vm1217_vm1, %v9732_v27, 0.0  ;;  %v3887_v26 = vsel %vm1217_vm1, %v3872_v3, 0.0 }
 0x708   : > { %v3850_v53 = vadd.f32 %v3849_v1, %v3848_v15  ;;  %v3888_v9 = vadd.f32 %v3887_v26, %v3886_v10 }
 0x709   : > { %v3873_v56 = vmul.f32 %v9741_v11, %v9741_v11  ;;  %v3851_v61 = vsel %vm1217_vm1, %v9741_v11, 0.0 }
 0x70a   : > { %v3811_v17 = vpop.permute.xlu0 %3810  ;;  %v3852_v49 = vadd.f32 %v3851_v61, %v3850_v53  ;;  %v9790_v61 = vrot.slane %v9516_v25, %v10331_v4  ;;  %v5039_v25 = vld [vmem:[%s10264_s2 + $0x390] sm:$0xff] }
 0x70b   : > { %v9749_v42 = vmul.f32 %v3811_v17, %v9551_v45  ;;  %v3889_v40 = vsel %vm1217_vm1, %v3873_v56, 0.0  ;;  %5358 = vmatprep.subr.mxu1 %v5039_v25 }
 0x70c   : > { %v3890_v55 = vadd.f32 %v3889_v40, %v3888_v9  ;;  %v5057_v9 = vld [vmem:[%s10264_s2 + $0x420] sm:$0xff] }
 0x70d   : > { %v3813_v16 = vpop.permute.xlu1 %3812  ;;  %v3874_v45 = vmul.f32 %v9749_v42, %v9749_v42  ;;  %v3853_v36 = vsel %vm1217_vm1, %v9749_v42, 0.0 }
 0x70e   : > { %v9762_v58 = vmul.f32 %v3813_v16, %v9555_v60  ;;  %v3854_v50 = vadd.f32 %v3853_v36, %v3852_v49 }
 0x70f   : > { %v3891_v19 = vsel %vm1217_vm1, %v3874_v45, 0.0 }
 0x710   : > { %v3875_v44 = vmul.f32 %v9762_v58, %v9762_v58  ;;  %v3855_v33 = vsel %vm1217_vm1, %v9762_v58, 0.0  ;;  %v3892_v13 = vadd.f32 %v3891_v19, %v3890_v55 }
 0x711   : > { %v3815_v30 = vpop.permute.xlu0 %3814  ;;  %v3856_v32 = vadd.f32 %v3855_v33, %v3854_v50 }
 0x712   : > { %v9773_v60 = vmul.f32 %v3815_v30, %v9560_v57  ;;  %v3893_v52 = vsel %vm1217_vm1, %v3875_v44, 0.0  ;;  %v5058_v44 = vld [vmem:[%s10264_s2 + $0x428] sm:$0xff] }
 0x713   : > { %v3894_v2 = vadd.f32 %v3893_v52, %v3892_v13  ;;  %5789 = vmatpush3.msra.mxu0 %v5058_v44  ;;  %v5038_v13 = vld [vmem:[%s10264_s2 + $0x388] sm:$0xff] }
 0x714   : > { %v3857_v63 = vsel %vm1217_vm1, %v9773_v60, 0.0  ;;  %v3876_v6 = vmul.f32 %v9773_v60, %v9773_v60  ;;  %5790 = vmatprep.subr.mxu0 %v10298_v7 }
 0x715   : > { %v3817_v28 = vpop.permute.xlu1 %3816  ;;  %v3858_v57 = vadd.f32 %v3857_v63, %v3856_v32  ;;  %5791 = vmatpush3.msra.mxu0 %v5057_v9  ;;  %v9832_v50 = vpop.permute.xlu0 %3949  ;;  %v5022_v32 = vld [vmem:[%s10264_s2 + $0x308] sm:$0xff] }
 0x716   : > { %v3895_v59 = vsel %vm1217_vm1, %v3876_v6, 0.0  ;;  %v3839_v51 = vmul.f32 %v3817_v28, %v9565_v46  ;;  %5792 = vmatprep.subr.mxu0 %v10298_v7  ;;  %v5056_v28 = vld [vmem:[%s10264_s2 + $0x418] sm:$0xff] }
 0x717   : > { %v3896_v35 = vadd.f32 %v3895_v59, %v3894_v2  ;;  %5793 = vmatpush3.msra.mxu0 %v5056_v28 }
 0x718   : > { %v3859_v21 = vsel %vm1217_vm1, %v3839_v51, 0.0  ;;  %v3877_v62 = vmul.f32 %v3839_v51, %v3839_v51  ;;  %5794 = vmatprep.subr.mxu0 %v10298_v7 }
 0x719   : > { %v3860_v18 = vadd.f32 %v3859_v21, %v3858_v57  ;;  %v5037_v21 = vld [vmem:[%s10264_s2 + $0x380] sm:$0xff] }
 0x71a   : > { %v3897_v54 = vsel %vm1217_vm1, %v3877_v62, 0.0 }
 0x71b   : > { %v3861_v24 = vrot.slane %v3860_v18, 4  ;;  %v3898_v48 = vadd.f32 %v3897_v54, %v3896_v35 }
 0x71d   : > { %v3862_v31 = vadd.f32 %v3861_v24, %v3860_v18  ;;  %v3899_v22 = vrot.slane %v3898_v48, 4 }
 0x71f   : > { %v3863_v12 = vrot.slane %v3862_v31, 2  ;;  %v3900_v29 = vadd.f32 %v3899_v22, %v3898_v48 }
 0x721   : > { %v3864_v3 = vadd.f32 %v3863_v12, %v3862_v31  ;;  %v3901_v17 = vrot.slane %v3900_v29, 2 }
 0x723   : > { %v3865_v38 = vrot.slane %v3864_v3, 1  ;;  %v3902_v5 = vadd.f32 %v3901_v17, %v3900_v29 }
 0x725   : > { %v3866_v46 = vadd.f32 %v3865_v38, %v3864_v3  ;;  %v3903_v8 = vrot.slane %v3902_v5, 1  ;;  %v5021_v38 = vld [vmem:[%s10264_s2 + $0x300] sm:$0xff] }
 0x727   : > { %v3904_v1 = vadd.f32 %v3903_v8, %v3902_v5  ;;  %v9784_v56 = vmul.f32 0.011363637, %v3866_v46  ;;  %v5055_v5 = vld [vmem:[%s10264_s2 + $0x410] sm:$0xff] }
 0x728   : > { %5795 = vmatpush3.msra.mxu0 %v5055_v5 }
 0x729   : > { %v3906_v14 = vmul.f32 0.011363637, %v3904_v1  ;;  %v3907_v15 = vmul.f32 %v9784_v56, %v9784_v56  ;;  %v3919_v45 = vsub.f32 %v3839_v51, %v9784_v56  ;;  %v3910_v10 = vsub.f32 %v9702_v39, %v9784_v56  ;;  %v5023_v39 = vld [vmem:[%s10264_s2 + $0x310] sm:$0xff]  ;;  %5796 = vmatprep.subr.mxu0 %v10298_v7 }
 0x72a   : > { %v3909_v53 = vsub.f32 %v9705_v37, %v9784_v56  ;;  %v3912_v40 = vsub.f32 %v9713_v0, %v9784_v56  ;;  %v3911_v36 = vsub.f32 %v9708_v43, %v9784_v56  ;;  %v3914_v37 = vsub.f32 %v9732_v27, %v9784_v56  ;;  %5359 = vmatpush3.msra.mxu1 %v5023_v39 }
 0x72b   : > { %v3908_v16 = vsub.f32 %v3906_v14, %v3907_v15  ;;  %v3913_v0 = vsub.f32 %v9722_v41, %v9784_v56  ;;  %v3916_v43 = vsub.f32 %v9749_v42, %v9784_v56  ;;  %v3915_v30 = vsub.f32 %v9741_v11, %v9784_v56  ;;  %5360 = vmatprep.subr.mxu1 %v5038_v13  ;;  %v5054_v15 = vld [vmem:[%s10264_s2 + $0x408] sm:$0xff] }
 0x72c   : > { %v3918_v27 = vsub.f32 %v9773_v60, %v9784_v56  ;;  %v3917_v41 = vsub.f32 %v9762_v58, %v9784_v56  ;;  %5361 = vmatpush3.msra.mxu1 %v5022_v32  ;;  %5797 = vmatpush3.msra.mxu0 %v5054_v15 }
 0x72d   : > { %v3920_v26 = vadd.f32 1e-05, %v3908_v16  ;;  %5362 = vmatprep.subr.mxu1 %v5037_v21  ;;  %5798 = vmatprep.subr.mxu0 %v10298_v7 }
 0x72e   : > { %5363 = vmatpush3.msra.mxu1 %v5021_v38 }
 0x72f   : > { %6203 = vrsqrt.f32 %v3920_v26 }
 0x73c   : > { %v9819_v49 = vpop.eup %6203 }
 0x73d   : > { %v3932_v42 = vmul.f32 %v9819_v49, %v3919_v45  ;;  %v3923_v19 = vmul.f32 %v9819_v49, %v3910_v10  ;;  %v3922_v33 = vmul.f32 %v9819_v49, %v3909_v53  ;;  %v3925_v55 = vmul.f32 %v9819_v49, %v3912_v40 }
 0x73e   : > { %v3924_v11 = vmul.f32 %v9819_v49, %v3911_v36  ;;  %v3927_v52 = vmul.f32 %v9819_v49, %v3914_v37  ;;  %v3926_v63 = vmul.f32 %v9819_v49, %v3913_v0  ;;  %v3929_v6 = vmul.f32 %v9819_v49, %v3916_v43  ;;  %v5053_v36 = vld [vmem:[%s10264_s2 + $0x400] sm:$0xff] }
 0x73f   : > { %v3947_v59 = vmul.f32 %v9577_v20, %v3932_v42  ;;  %v3938_v51 = vmul.f32 %v9577_v20, %v3923_v19  ;;  %v3937_v2 = vmul.f32 %v9577_v20, %v3922_v33  ;;  %v3940_v57 = vmul.f32 %v9577_v20, %v3925_v55  ;;  %5799 = vmatpush3.msra.mxu0 %v5053_v36 }
 0x740   : > { %v3939_v62 = vmul.f32 %v9577_v20, %v3924_v11  ;;  %v3942_v35 = vmul.f32 %v9577_v20, %v3927_v52  ;;  %v3941_v18 = vmul.f32 %v9577_v20, %v3926_v63  ;;  %v3944_v54 = vmul.f32 %v9577_v20, %v3929_v6 }
 0x741   : > { %v3953_v24 = vadd.f32 %v9832_v50, %v3938_v51  ;;  %v3952_v48 = vadd.f32 %v9832_v50, %v3937_v2  ;;  %v3955_v31 = vadd.f32 %v9832_v50, %v3940_v57  ;;  %v3928_v22 = vmul.f32 %v9819_v49, %v3915_v30 }
 0x742   : > { %v3954_v12 = vadd.f32 %v9832_v50, %v3939_v62  ;;  %v3957_v29 = vadd.f32 %v9832_v50, %v3942_v35  ;;  %v3956_v3 = vadd.f32 %v9832_v50, %v3941_v18  ;;  %v3959_v17 = vadd.f32 %v9832_v50, %v3944_v54 }
 0x743   : > { %vm3964_vm11 = vcmp.ge.f32.partialorder %v3953_v24, 0.0  ;;  %v3979_v46 = vmul.f32 %v9790_v61, %v3953_v24  ;;  %vm3963_vm12 = vcmp.ge.f32.partialorder %v3952_v48, 0.0  ;;  %v3978_v8 = vmul.f32 %v9790_v61, %v3952_v48 }
 0x744   : > { %vm3966_vm13 = vcmp.ge.f32.partialorder %v3955_v31, 0.0  ;;  %v3981_v1 = vmul.f32 %v9790_v61, %v3955_v31  ;;  %vm3965_vm14 = vcmp.ge.f32.partialorder %v3954_v12, 0.0  ;;  %v3980_v14 = vmul.f32 %v9790_v61, %v3954_v12 }
 0x745   : > { %v9881_v16 = vsel %vm3964_vm11, %v3953_v24, %v3979_v46  ;;  %v9883_v26 = vsel %vm3963_vm12, %v3952_v48, %v3978_v8  ;;  %vm3968_vm15 = vcmp.ge.f32.partialorder %v3957_v29, 0.0  ;;  %v3983_v45 = vmul.f32 %v9790_v61, %v3957_v29 }
 0x746   : > { %4025 = vrot.lane.b32.xlu1 %v9881_v16, %s6249_s5  ;;  %5011 = vst.msk [vmem:[%s7732_s7 + $0x250] sm:$0xff] %vm1217_vm1, %v9881_v16  ;;  %4023 = vrot.lane.b32.xlu0 %v9883_v26, %s6249_s5  ;;  %5010 = vst.msk [vmem:[%s7732_s7 + $0x248] sm:$0xff] %vm1217_vm1, %v9883_v26  ;;  %v3992_v10 = vsel %vm3966_vm13, %v3955_v31, %v3981_v1  ;;  %v3991_v53 = vsel %vm3965_vm14, %v3954_v12, %v3980_v14  ;;  %vm3967_vm2 = vcmp.ge.f32.partialorder %v3956_v3, 0.0 }
 0x747   : > { %v3982_v40 = vmul.f32 %v9790_v61, %v3956_v3  ;;  %5013 = vst.msk [vmem:[%s7732_s7 + $0x260] sm:$0xff] %vm1217_vm1, %v3992_v10  ;;  %5012 = vst.msk [vmem:[%s7732_s7 + $0x258] sm:$0xff] %vm1217_vm1, %v3991_v53  ;;  %v9905_v44 = vsel %vm3968_vm15, %v3957_v29, %v3983_v45  ;;  %vm3970_vm3 = vcmp.ge.f32.partialorder %v3959_v17, 0.0  ;;  %v3985_v25 = vmul.f32 %v9790_v61, %v3959_v17 }
 0x748   : > { %v3943_v39 = vmul.f32 %v9577_v20, %v3928_v22  ;;  %5015 = vst.msk [vmem:[%s7732_s7 + $0x270] sm:$0xff] %vm1217_vm1, %v9905_v44  ;;  %v3931_v0 = vmul.f32 %v9819_v49, %v3918_v27  ;;  %v3930_v43 = vmul.f32 %v9819_v49, %v3917_v41  ;;  %v3962_v9 = vadd.f32 %v9832_v50, %v3947_v59 }
 0x749   : > { %v3993_v37 = vsel %vm3967_vm2, %v3956_v3, %v3982_v40  ;;  %v3996_v30 = vsel %vm3970_vm3, %v3959_v17, %v3985_v25  ;;  %v9994_v3 = vld [vmem:[%s10265_s3 + $0xc] sm:$0x7] }
 0x74a   : > { %5014 = vst.msk [vmem:[%s7732_s7 + $0x268] sm:$0xff] %vm1217_vm1, %v3993_v37  ;;  %v3958_v42 = vadd.f32 %v9832_v50, %v3943_v39  ;;  %4029 = vrot.lane.b32.xlu1 %v3992_v10, %s6249_s5  ;;  %4027 = vrot.lane.b32.xlu0 %v3991_v53, %s6249_s5  ;;  %5017 = vst.msk [vmem:[%s7732_s7 + $0x280] sm:$0xff] %vm1217_vm1, %v3996_v30  ;;  %v3946_v58 = vmul.f32 %v9577_v20, %v3931_v0  ;;  %vm3973_vm4 = vcmp.ge.f32.partialorder %v3962_v9, 0.0 }
 0x74b   : > { %v3945_v60 = vmul.f32 %v9577_v20, %v3930_v43  ;;  %v3988_v56 = vmul.f32 %v9790_v61, %v3962_v9  ;;  %v4143_v38 = vrot.slane %v9994_v3, %v10329_v47 }
 0x74c   : > { %vm3969_vm5 = vcmp.ge.f32.partialorder %v3958_v42, 0.0  ;;  %v3984_v49 = vmul.f32 %v9790_v61, %v3958_v42  ;;  %v3961_v27 = vadd.f32 %v9832_v50, %v3946_v58 }
 0x74d   : > { %v3960_v41 = vadd.f32 %v9832_v50, %v3945_v60  ;;  %v9935_v19 = vsel %vm3973_vm4, %v3962_v9, %v3988_v56 }
 0x74e   : > { %v3995_v33 = vsel %vm3969_vm5, %v3958_v42, %v3984_v49  ;;  %5020 = vst.msk [vmem:[%s7732_s7 + $0x298] sm:$0xff] %vm1217_vm1, %v9935_v19  ;;  %4033 = vrot.lane.b32.xlu1 %v9905_v44, %s6249_s5  ;;  %4031 = vrot.lane.b32.xlu0 %v3993_v37, %s6249_s5  ;;  %vm3972_vm6 = vcmp.ge.f32.partialorder %v3961_v27, 0.0  ;;  %v3987_v20 = vmul.f32 %v9790_v61, %v3961_v27 }
 0x74f   : > { %5016 = vst.msk [vmem:[%s7732_s7 + $0x278] sm:$0xff] %vm1217_vm1, %v3995_v33  ;;  %vm3971_vm7 = vcmp.ge.f32.partialorder %v3960_v41, 0.0  ;;  %v3986_v55 = vmul.f32 %v9790_v61, %v3960_v41 }
 0x750   : > { %v3998_v50 = vsel %vm3972_vm6, %v3961_v27, %v3987_v20 }
 0x751   : > { %v3997_v11 = vsel %vm3971_vm7, %v3960_v41, %v3986_v55  ;;  %5019 = vst.msk [vmem:[%s7732_s7 + $0x290] sm:$0xff] %vm1217_vm1, %v3998_v50 }
 0x752   : > { %5018 = vst.msk [vmem:[%s7732_s7 + $0x288] sm:$0xff] %vm1217_vm1, %v3997_v11  ;;  %4037 = vrot.lane.b32.xlu1 %v3996_v30, %s6249_s5  ;;  %4035 = vrot.lane.b32.xlu0 %v3995_v33, %s6249_s5 }
 0x756   : > { %4041 = vrot.lane.b32.xlu1 %v3998_v50, %s6249_s5  ;;  %4039 = vrot.lane.b32.xlu0 %v3997_v11, %s6249_s5 }
 0x75a   : > { %4043 = vrot.lane.b32.xlu1 %v9935_v19, %s6249_s5 }
 0x7b8   : > { %v4026_v52 = vpop.permute.xlu1 %4025  ;;  %v4024_v63 = vpop.permute.xlu0 %4023 }
 0x7b9   : > { %4057 = vst.msk [vmem:[#allocation2 + $0x8] sm:$0xff] %vm2079_vm9, %v4026_v52  ;;  %4056 = vst.msk [vmem:[#allocation2] sm:$0xff] %vm2079_vm9, %v4024_v63 }
 0x7ba   : > { %4068 = vst.msk [vmem:[#allocation2 + $0x9] sm:$0x7f] %vm2129_vm10, %v9881_v16  ;;  %4067 = vst.msk [vmem:[#allocation2 + $0x1] sm:$0x7f] %vm2129_vm10, %v9883_v26 }
 0x7bc   : > { %v4030_v61 = vpop.permute.xlu1 %4029  ;;  %v4028_v6 = vpop.permute.xlu0 %4027 }
 0x7bd   : > { %4059 = vst.msk [vmem:[#allocation2 + $0x18] sm:$0xff] %vm2079_vm9, %v4030_v61  ;;  %4058 = vst.msk [vmem:[#allocation2 + $0x10] sm:$0xff] %vm2079_vm9, %v4028_v6 }
 0x7be   : > { %4070 = vst.msk [vmem:[#allocation2 + $0x19] sm:$0x7f] %vm2129_vm10, %v3992_v10  ;;  %4069 = vst.msk [vmem:[#allocation2 + $0x11] sm:$0x7f] %vm2129_vm10, %v3991_v53 }
 0x7c0   : > { %v4034_v13 = vpop.permute.xlu1 %4033  ;;  %v4032_v32 = vpop.permute.xlu0 %4031 }
 0x7c1   : > { %4061 = vst.msk [vmem:[#allocation2 + $0x28] sm:$0xff] %vm2079_vm9, %v4034_v13  ;;  %4060 = vst.msk [vmem:[#allocation2 + $0x20] sm:$0xff] %vm2079_vm9, %v4032_v32  ;;  %v4079_v28 = vld [vmem:[#allocation2 + $0x8] sm:$0xff]  ;;  %v4078_v59 = vld [vmem:[#allocation2] sm:$0xff] }
 0x7c2   : > { %4072 = vst.msk [vmem:[#allocation2 + $0x29] sm:$0x7f] %vm2129_vm10, %v9905_v44  ;;  %4071 = vst.msk [vmem:[#allocation2 + $0x21] sm:$0x7f] %vm2129_vm10, %v3993_v37  ;;  %4208 = vmatprep.mubr.f32.mxu1 %v4079_v28 }
 0x7c3   : > { %4209 = vmatmul.mubr.f32.vlgmr.msra.gmra.mxu1 %v4078_v59 }
 0x7c4   : > { %v4038_v51 = vpop.permute.xlu1 %4037  ;;  %v4036_v2 = vpop.permute.xlu0 %4035 }
 0x7c5   : > { %4063 = vst.msk [vmem:[#allocation2 + $0x38] sm:$0xff] %vm2079_vm9, %v4038_v51  ;;  %4062 = vst.msk [vmem:[#allocation2 + $0x30] sm:$0xff] %vm2079_vm9, %v4036_v2  ;;  %v4081_v57 = vld [vmem:[#allocation2 + $0x18] sm:$0xff]  ;;  %v4080_v21 = vld [vmem:[#allocation2 + $0x10] sm:$0xff] }
 0x7c6   : > { %4074 = vst.msk [vmem:[#allocation2 + $0x39] sm:$0x7f] %vm2129_vm10, %v3996_v30  ;;  %4073 = vst.msk [vmem:[#allocation2 + $0x31] sm:$0x7f] %vm2129_vm10, %v3995_v33  ;;  %4213 = vmatprep.mubr.f32.mxu1 %v4081_v57  ;;  %5801 = vmatmul.mubr.f32.vlgmr.msra.gmra.mxu0 %v4080_v21 }
 0x7c7   : > { %4214 = vmatmul.mubr.f32.gmra.mxu1 %v4080_v21  ;;  %5803 = vmatprep.mubr.msk.f32.mxu0 %vm6248_vm0, %v10298_v7 }
 0x7c8   : > { %v4042_v62 = vpop.permute.xlu1 %4041  ;;  %v4040_v35 = vpop.permute.xlu0 %4039 }
 0x7c9   : > { %4065 = vst.msk [vmem:[#allocation2 + $0x48] sm:$0xff] %vm2079_vm9, %v4042_v62  ;;  %4064 = vst.msk [vmem:[#allocation2 + $0x40] sm:$0xff] %vm2079_vm9, %v4040_v35  ;;  %v4083_v18 = vld [vmem:[#allocation2 + $0x28] sm:$0xff]  ;;  %v4082_v54 = vld [vmem:[#allocation2 + $0x20] sm:$0xff] }
 0x7ca   : > { %4076 = vst.msk [vmem:[#allocation2 + $0x49] sm:$0x7f] %vm2129_vm10, %v3998_v50  ;;  %4075 = vst.msk [vmem:[#allocation2 + $0x41] sm:$0x7f] %vm2129_vm10, %v3997_v11  ;;  %4218 = vmatprep.mubr.f32.mxu1 %v4083_v18  ;;  %5804 = vmatmul.mubr.f32.gmra.mxu0 %v4082_v54 }
 0x7cb   : > { %4219 = vmatmul.mubr.f32.gmra.mxu1 %v4082_v54  ;;  %5806 = vmatprep.mubr.msk.f32.mxu0 %vm6248_vm0, %v10298_v7 }
 0x7cc   : > { %v4044_v24 = vpop.permute.xlu1 %4043 }
 0x7cd   : > { %4066 = vst.msk [vmem:[#allocation2 + $0x50] sm:$0xff] %vm2079_vm9, %v4044_v24  ;;  %v4085_v48 = vld [vmem:[#allocation2 + $0x38] sm:$0xff]  ;;  %v4084_v31 = vld [vmem:[#allocation2 + $0x30] sm:$0xff] }
 0x7ce   : > { %4077 = vst.msk [vmem:[#allocation2 + $0x51] sm:$0x7f] %vm2129_vm10, %v9935_v19  ;;  %4223 = vmatprep.mubr.f32.mxu1 %v4085_v48  ;;  %5807 = vmatmul.mubr.f32.gmra.mxu0 %v4084_v31 }
 0x7cf   : > { %4224 = vmatmul.mubr.f32.gmra.mxu1 %v4084_v31  ;;  %5809 = vmatprep.mubr.msk.f32.mxu0 %vm6248_vm0, %v10298_v7  ;;  %v10019_v31 = vrot.slane %v9994_v3, %v10330_v23 }
 0x7d1   : > { %v4087_v22 = vld [vmem:[#allocation2 + $0x48] sm:$0xff]  ;;  %v4086_v12 = vld [vmem:[#allocation2 + $0x40] sm:$0xff] }
 0x7d2   : > { %4228 = vmatprep.mubr.f32.mxu1 %v4087_v22  ;;  %5810 = vmatmul.mubr.f32.gmra.mxu0 %v4086_v12 }
 0x7d3   : > { %4229 = vmatmul.mubr.f32.gmra.mxu1 %v4086_v12  ;;  %5812 = vmatprep.mubr.msk.f32.mxu0 %vm6248_vm0, %v10298_v7  ;;  %v5111_v12 = vld [vmem:[%s10264_s2 + $0x578] sm:$0xff] }
 0x7d4   : > { %5400 = vmatprep.subr.mxu1 %v5111_v12 }
 0x7d5   : > { %v4088_v29 = vld [vmem:[#allocation2 + $0x50] sm:$0xff] }
 0x7d6   : > { %5813 = vmatmul.mubr.f32.gmra.mxu0 %v4088_v29  ;;  %v5095_v29 = vld [vmem:[%s10264_s2 + $0x4f8] sm:$0xff] }
 0x7d7   : > { %5401 = vmatpush3.msra.mxu1 %v5095_v29 }
 0x883   : > { %v5364_v17 = vpop.f32.mrf.mxu1 }
 0x885   : > { %v5365_v5 = vpop.f32.mrf.mxu1 }
 0x886   : > { %v5366_v46 = vadd.f32 %v5365_v5, %v5364_v17  ;;  %v4300_v8 = vpop.f32.mrf.mxu0  ;;  %v5110_v17 = vld [vmem:[%s10264_s2 + $0x570] sm:$0xff]  ;;  %v5109_v5 = vld [vmem:[%s10264_s2 + $0x568] sm:$0xff] }
 0x887   : > { %v5367_v1 = vpop.f32.mrf.mxu1  ;;  %5402 = vmatprep.subr.mxu1 %v5110_v17 }
 0x888   : > { %v4211_v14 = vadd.f32 %v5366_v46, %v4143_v38  ;;  %v5802_v15 = vpop.f32.mrf.mxu0  ;;  %v5127_v46 = vld [vmem:[%s10264_s2 + $0x5f8] sm:$0xff] }
 0x889   : > { %v5368_v16 = vpop.f32.mrf.mxu1  ;;  %5815 = vmatprep.subr.mxu0 %v5127_v46  ;;  %v5125_v15 = vld [vmem:[%s10264_s2 + $0x5e8] sm:$0xff] }
 0x88a   : > { %v9998_v26 = vadd.f32 %v4300_v8, %v4211_v14  ;;  %v5369_v7 = vadd.f32 %v5368_v16, %v5367_v1  ;;  %v4305_v45 = vpop.f32.mrf.mxu0  ;;  %v5093_v8 = vld [vmem:[%s10264_s2 + $0x4e8] sm:$0xff]  ;;  %v5126_v1 = vld [vmem:[%s10264_s2 + $0x5f0] sm:$0xff]  ;;  %v5108_v14 = vld [vmem:[%s10264_s2 + $0x560] sm:$0xff]  ;;  %5816 = vmatpush3.msra.mxu0 %v5127_v46 }
 0x88b   : > { %v5370_v10 = vpop.f32.mrf.mxu1  ;;  %v5092_v16 = vld [vmem:[%s10264_s2 + $0x4e0] sm:$0xff]  ;;  %5817 = vmatprep.subr.mxu0 %v5126_v1 }
 0x88c   : > { %v5070_v53 = vmul.f32 -1.442695, %v9998_v26  ;;  %v4216_v40 = vadd.f32 %v5369_v7, %v4143_v38  ;;  %v5805_v36 = vpop.f32.mrf.mxu0  ;;  %v5107_v7 = vld [vmem:[%s10264_s2 + $0x558] sm:$0xff]  ;;  %5818 = vmatpush3.msra.mxu0 %v5126_v1 }
 0x88d   : > { %v5371_v44 = vpop.f32.mrf.mxu1  ;;  %5819 = vmatprep.subr.mxu0 %v5125_v15  ;;  %v5090_v36 = vld [vmem:[%s10264_s2 + $0x4d0] sm:$0xff] }
 0x88e   : > { %6205 = vpow2.f32 %v5070_v53  ;;  %v10001_v25 = vadd.f32 %v4305_v45, %v4216_v40  ;;  %v5372_v39 = vadd.f32 %v5371_v44, %v5370_v10  ;;  %v4310_v37 = vpop.f32.mrf.mxu0  ;;  %v5124_v45 = vld [vmem:[%s10264_s2 + $0x5e0] sm:$0xff]  ;;  %v5091_v10 = vld [vmem:[%s10264_s2 + $0x4d8] sm:$0xff]  ;;  %v5106_v53 = vld [vmem:[%s10264_s2 + $0x550] sm:$0xff]  ;;  %5820 = vmatpush3.msra.mxu0 %v5125_v15 }
 0x88f   : > { %v5373_v0 = vpop.f32.mrf.mxu1  ;;  %v5123_v40 = vld [vmem:[%s10264_s2 + $0x5d8] sm:$0xff]  ;;  %5821 = vmatprep.subr.mxu0 %v5124_v45  ;;  %v5105_v44 = vld [vmem:[%s10264_s2 + $0x548] sm:$0xff] }
 0x890   : > { %v5071_v43 = vmul.f32 -1.442695, %v10001_v25  ;;  %v4221_v9 = vadd.f32 %v5372_v39, %v4143_v38  ;;  %v5808_v30 = vpop.f32.mrf.mxu0  ;;  %5822 = vmatpush3.msra.mxu0 %v5124_v45  ;;  %v5122_v39 = vld [vmem:[%s10264_s2 + $0x5d0] sm:$0xff] }
 0x891   : > { %v5374_v42 = vpop.f32.mrf.mxu1  ;;  %5823 = vmatprep.subr.mxu0 %v5123_v40  ;;  %v5103_v30 = vld [vmem:[%s10264_s2 + $0x538] sm:$0xff] }
 0x892   : > { %6207 = vpow2.f32 %v5071_v43  ;;  %v10004_v58 = vadd.f32 %v4310_v37, %v4221_v9  ;;  %v5375_v60 = vadd.f32 %v5374_v42, %v5373_v0  ;;  %v4315_v56 = vpop.f32.mrf.mxu0  ;;  %v5089_v37 = vld [vmem:[%s10264_s2 + $0x4c8] sm:$0xff]  ;;  %v5104_v0 = vld [vmem:[%s10264_s2 + $0x540] sm:$0xff]  ;;  %5824 = vmatpush3.msra.mxu0 %v5123_v40 }
 0x893   : > { %v5376_v49 = vpop.f32.mrf.mxu1  ;;  %v5121_v43 = vld [vmem:[%s10264_s2 + $0x5c8] sm:$0xff]  ;;  %v5088_v9 = vld [vmem:[%s10264_s2 + $0x4c0] sm:$0xff]  ;;  %5825 = vmatprep.subr.mxu0 %v5122_v39 }
 0x894   : > { %v5072_v27 = vmul.f32 -1.442695, %v10004_v58  ;;  %v4226_v41 = vadd.f32 %v5375_v60, %v4143_v38  ;;  %v5811_v19 = vpop.f32.mrf.mxu0  ;;  %5826 = vmatpush3.msra.mxu0 %v5122_v39  ;;  %v5120_v42 = vld [vmem:[%s10264_s2 + $0x5c0] sm:$0xff]  ;;  %v5087_v60 = vld [vmem:[%s10264_s2 + $0x4b8] sm:$0xff] }
 0x895   : > { %v5377_v33 = vpop.f32.mrf.mxu1  ;;  %5827 = vmatprep.subr.mxu0 %v5121_v43 }
 0x896   : > { %6209 = vpow2.f32 %v5072_v27  ;;  %v10007_v20 = vadd.f32 %v4315_v56, %v4226_v41  ;;  %v5378_v55 = vadd.f32 %v5377_v33, %v5376_v49  ;;  %v4320_v50 = vpop.f32.mrf.mxu0  ;;  %v5102_v56 = vld [vmem:[%s10264_s2 + $0x530] sm:$0xff]  ;;  %5828 = vmatpush3.msra.mxu0 %v5121_v43  ;;  %v5101_v27 = vld [vmem:[%s10264_s2 + $0x528] sm:$0xff] }
 0x897   : > { %v5086_v49 = vld [vmem:[%s10264_s2 + $0x4b0] sm:$0xff]  ;;  %5829 = vmatprep.subr.mxu0 %v5120_v42  ;;  %v5085_v41 = vld [vmem:[%s10264_s2 + $0x4a8] sm:$0xff] }
 0x898   : > { %v5073_v11 = vmul.f32 -1.442695, %v10007_v20  ;;  %v4231_v52 = vadd.f32 %v5378_v55, %v4143_v38  ;;  %v5814_v63 = vpop.f32.mrf.mxu0  ;;  %v5094_v38 = vld [vmem:[%s10264_s2 + $0x4f0] sm:$0xff]  ;;  %5830 = vmatpush3.msra.mxu0 %v5120_v42  ;;  %v5084_v42 = vld [vmem:[%s10264_s2 + $0x4a0] sm:$0xff] }
 0x899   : > { %5403 = vmatpush3.msra.mxu1 %v5094_v38 }
 0x89a   : > { %6211 = vpow2.f32 %v5073_v11  ;;  %v10010_v61 = vadd.f32 %v4320_v50, %v4231_v52  ;;  %5404 = vmatprep.subr.mxu1 %v5109_v5 }
 0x89b   : > { %v6206_v6 = vpop.eup %6205  ;;  %5405 = vmatpush3.msra.mxu1 %v5093_v8 }
 0x89c   : > { %v4339_v13 = vadd.f32 1.0, %v6206_v6  ;;  %v5074_v32 = vmul.f32 -1.442695, %v10010_v61  ;;  %5406 = vmatprep.subr.mxu1 %v5108_v14 }
 0x89d   : > { %5407 = vmatpush3.msra.mxu1 %v5092_v16 }
 0x89e   : > { %6213 = vrcp.f32 %v4339_v13  ;;  %5408 = vmatprep.subr.mxu1 %v5107_v7 }
 0x89f   : > { %v6208_v28 = vpop.eup %6207  ;;  %6215 = vpow2.f32 %v5074_v32  ;;  %5409 = vmatpush3.msra.mxu1 %v5091_v10 }
 0x8a0   : > { %v4340_v59 = vadd.f32 1.0, %v6208_v28  ;;  %5410 = vmatprep.subr.mxu1 %v5106_v53 }
 0x8a1   : > { %5411 = vmatpush3.msra.mxu1 %v5090_v36 }
 0x8a2   : > { %6217 = vrcp.f32 %v4340_v59  ;;  %5412 = vmatprep.subr.mxu1 %v5105_v44 }
 0x8a3   : > { %v6210_v51 = vpop.eup %6209  ;;  %5413 = vmatpush3.msra.mxu1 %v5089_v37 }
 0x8a4   : > { %v4341_v2 = vadd.f32 1.0, %v6210_v51  ;;  %5414 = vmatprep.subr.mxu1 %v5104_v0 }
 0x8a5   : > { %5415 = vmatpush3.msra.mxu1 %v5088_v9 }
 0x8a6   : > { %6219 = vrcp.f32 %v4341_v2  ;;  %5416 = vmatprep.subr.mxu1 %v5103_v30  ;;  %v5100_v30 = vld [vmem:[%s10264_s2 + $0x520] sm:$0xff] }
 0x8a7   : > { %v6212_v57 = vpop.eup %6211  ;;  %5417 = vmatpush3.msra.mxu1 %v5087_v60  ;;  %v5119_v60 = vld [vmem:[%s10264_s2 + $0x5b8] sm:$0xff] }
 0x8a8   : > { %v4342_v21 = vadd.f32 1.0, %v6212_v57  ;;  %5418 = vmatprep.subr.mxu1 %v5102_v56  ;;  %5831 = vmatprep.subr.mxu0 %v5119_v60 }
 0x8a9   : > { %5419 = vmatpush3.msra.mxu1 %v5086_v49  ;;  %5832 = vmatpush3.msra.mxu0 %v5119_v60 }
 0x8aa   : > { %6221 = vrcp.f32 %v4342_v21  ;;  %5420 = vmatprep.subr.mxu1 %v5101_v27 }
 0x8ab   : > { %v6214_v62 = vpop.eup %6213  ;;  %5421 = vmatpush3.msra.mxu1 %v5085_v41  ;;  %v5099_v41 = vld [vmem:[%s10264_s2 + $0x518] sm:$0xff] }
 0x8ac   : > { %v6216_v35 = vpop.eup %6215  ;;  %4359 = vrot.lane.b32.xlu0 %v6214_v62, %s6249_s5  ;;  %5422 = vmatprep.subr.mxu1 %v5100_v30 }
 0x8ad   : > { %v4343_v18 = vadd.f32 1.0, %v6216_v35  ;;  %5423 = vmatpush3.msra.mxu1 %v5084_v42  ;;  %v10238_v42 = vld [vmem:[%s10265_s3 + $0x10] sm:$0x7] }
 0x8ae   : > { %5424 = vmatprep.subr.mxu1 %v5099_v41 }
 0x8af   : > { %v6218_v54 = vpop.eup %6217  ;;  %6223 = vrcp.f32 %v4343_v18 }
 0x8b0   : > { %4361 = vrot.lane.b32.xlu1 %v6218_v54, %s6249_s5 }
 0x8b3   : > { %v6220_v24 = vpop.eup %6219 }
 0x8b4   : > { %4363 = vrot.lane.b32.xlu0 %v6220_v24, %s6249_s5 }
 0x8b7   : > { %v6222_v48 = vpop.eup %6221 }
 0x8b8   : > { %4365 = vrot.lane.b32.xlu1 %v6222_v48, %s6249_s5 }
 0x8bc   : > { %v6224_v22 = vpop.eup %6223  ;;  %4440 = vrot.lane.b32.xlu1 %v10019_v31, %s6249_s5 }
 0x8bd   : > { %4367 = vrot.lane.b32.xlu0 %v6224_v22, %s6249_s5 }
 0x91e   : > { %v4360_v19 = vpop.permute.xlu0 %4359 }
 0x91f   : > { %v10118_v50 = vmul.f32 %v4360_v19, %v9998_v26  ;;  %v5083_v19 = vld [vmem:[%s10264_s2 + $0x498] sm:$0xff] }
 0x920   : > { %5425 = vmatpush3.msra.mxu1 %v5083_v19 }
 0x921   : > { %v4394_v6 = vmul.f32 %v10118_v50, %v10118_v50  ;;  %v4379_v28 = vsel %vm1217_vm1, %v10118_v50, 0.0 }
 0x922   : > { %v4362_v33 = vpop.permute.xlu1 %4361 }
 0x923   : > { %v10115_v55 = vmul.f32 %v4362_v33, %v10001_v25  ;;  %v4399_v57 = vsel %vm1217_vm1, %v4394_v6, 0.0  ;;  %v5118_v33 = vld [vmem:[%s10264_s2 + $0x5b0] sm:$0xff] }
 0x924   : > { %5833 = vmatprep.subr.mxu0 %v5118_v33 }
 0x925   : > { %v4395_v63 = vmul.f32 %v10115_v55, %v10115_v55  ;;  %v4380_v13 = vsel %vm1217_vm1, %v10115_v55, 0.0  ;;  %5834 = vmatpush3.msra.mxu0 %v5118_v33 }
 0x926   : > { %v4364_v11 = vpop.permute.xlu0 %4363  ;;  %v4381_v51 = vadd.f32 %v4380_v13, %v4379_v28  ;;  %v5098_v28 = vld [vmem:[%s10264_s2 + $0x510] sm:$0xff] }
 0x927   : > { %v10121_v52 = vmul.f32 %v4364_v11, %v10004_v58  ;;  %v4400_v58 = vsel %vm1217_vm1, %v4395_v63, 0.0  ;;  %5426 = vmatprep.subr.mxu1 %v5098_v28 }
 0x928   : > { %v4401_v35 = vadd.f32 %v4400_v58, %v4399_v57  ;;  %v5117_v58 = vld [vmem:[%s10264_s2 + $0x5a8] sm:$0xff] }
 0x929   : > { %v4396_v25 = vmul.f32 %v10121_v52, %v10121_v52  ;;  %v4382_v59 = vsel %vm1217_vm1, %v10121_v52, 0.0  ;;  %v5097_v57 = vld [vmem:[%s10264_s2 + $0x508] sm:$0xff]  ;;  %5835 = vmatprep.subr.mxu0 %v5117_v58 }
 0x92a   : > { %v4366_v32 = vpop.permute.xlu1 %4365  ;;  %v4383_v18 = vadd.f32 %v4382_v59, %v4381_v51  ;;  %5836 = vmatpush3.msra.mxu0 %v5117_v58 }
 0x92b   : > { %v4377_v26 = vmul.f32 %v4366_v32, %v10007_v20  ;;  %v4402_v21 = vsel %vm1217_vm1, %v4396_v25, 0.0  ;;  %v4456_v25 = vrot.slane %v9994_v3, %v10331_v4 }
 0x92c   : > { %v4403_v48 = vadd.f32 %v4402_v21, %v4401_v35  ;;  %v5116_v35 = vld [vmem:[%s10264_s2 + $0x5a0] sm:$0xff] }
 0x92d   : > { %v4397_v2 = vmul.f32 %v4377_v26, %v4377_v26  ;;  %v4384_v62 = vsel %vm1217_vm1, %v4377_v26, 0.0  ;;  %5837 = vmatprep.subr.mxu0 %v5116_v35 }
 0x92e   : > { %v4385_v22 = vadd.f32 %v4384_v62, %v4383_v18  ;;  %v4441_v32 = vpop.permute.xlu1 %4440  ;;  %v5081_v62 = vld [vmem:[%s10264_s2 + $0x488] sm:$0xff]  ;;  %5838 = vmatpush3.msra.mxu0 %v5116_v35 }
 0x92f   : > { %v4368_v54 = vpop.permute.xlu0 %4367  ;;  %v4404_v20 = vsel %vm1217_vm1, %v4397_v2, 0.0 }
 0x930   : > { %v4378_v24 = vmul.f32 %v4368_v54, %v10010_v61  ;;  %v4405_v17 = vadd.f32 %v4404_v20, %v4403_v48 }
 0x932   : > { %v4386_v12 = vsel %vm1217_vm1, %v4378_v24, 0.0  ;;  %v4398_v29 = vmul.f32 %v4378_v24, %v4378_v24 }
 0x933   : > { %v4387_v38 = vadd.f32 %v4386_v12, %v4385_v22  ;;  %v5080_v22 = vld [vmem:[%s10264_s2 + $0x480] sm:$0xff]  ;;  %v5115_v12 = vld [vmem:[%s10264_s2 + $0x598] sm:$0xff] }
 0x934   : > { %v4406_v5 = vsel %vm1217_vm1, %v4398_v29, 0.0  ;;  %5839 = vmatprep.subr.mxu0 %v5115_v12 }
 0x935   : > { %v4388_v46 = vrot.slane %v4387_v38, 4  ;;  %v4407_v8 = vadd.f32 %v4406_v5, %v4405_v17  ;;  %5840 = vmatpush3.msra.mxu0 %v5115_v12 }
 0x937   : > { %v4389_v1 = vadd.f32 %v4388_v46, %v4387_v38  ;;  %v4408_v14 = vrot.slane %v4407_v8, 4 }
 0x939   : > { %v4390_v15 = vrot.slane %v4389_v1, 2  ;;  %v4409_v16 = vadd.f32 %v4408_v14, %v4407_v8  ;;  %v5114_v14 = vld [vmem:[%s10264_s2 + $0x590] sm:$0xff] }
 0x93a   : > { %5841 = vmatprep.subr.mxu0 %v5114_v14 }
 0x93b   : > { %v4391_v7 = vadd.f32 %v4390_v15, %v4389_v1  ;;  %v4410_v45 = vrot.slane %v4409_v16, 2  ;;  %5842 = vmatpush3.msra.mxu0 %v5114_v14 }
 0x93d   : > { %v4392_v10 = vrot.slane %v4391_v7, 1  ;;  %v4411_v53 = vadd.f32 %v4410_v45, %v4409_v16  ;;  %v5113_v45 = vld [vmem:[%s10264_s2 + $0x588] sm:$0xff] }
 0x93e   : > { %5843 = vmatprep.subr.mxu0 %v5113_v45 }
 0x93f   : > { %v4393_v61 = vadd.f32 %v4392_v10, %v4391_v7  ;;  %v4412_v40 = vrot.slane %v4411_v53, 1  ;;  %v5112_v10 = vld [vmem:[%s10264_s2 + $0x580] sm:$0xff]  ;;  %5844 = vmatpush3.msra.mxu0 %v5113_v45 }
 0x940   : > { %5845 = vmatprep.subr.mxu0 %v5112_v10 }
 0x941   : > { %v4413_v36 = vadd.f32 %v4412_v40, %v4411_v53  ;;  %v4414_v44 = vmul.f32 0.025, %v4393_v61  ;;  %5846 = vmatpush3.msra.mxu0 %v5112_v10 }
 0x943   : > { %v4415_v39 = vmul.f32 0.025, %v4413_v36  ;;  %v4416_v37 = vmul.f32 %v4414_v44, %v4414_v44  ;;  %v4422_v9 = vsub.f32 %v4378_v24, %v4414_v44  ;;  %v4419_v56 = vsub.f32 %v10115_v55, %v4414_v44 }
 0x944   : > { %v4418_v49 = vsub.f32 %v10118_v50, %v4414_v44  ;;  %v4421_v27 = vsub.f32 %v4377_v26, %v4414_v44  ;;  %v4420_v55 = vsub.f32 %v10121_v52, %v4414_v44  ;;  %v5082_v52 = vld [vmem:[%s10264_s2 + $0x490] sm:$0xff] }
 0x945   : > { %v4417_v0 = vsub.f32 %v4415_v39, %v4416_v37  ;;  %5427 = vmatpush3.msra.mxu1 %v5082_v52 }
 0x946   : > { %5428 = vmatprep.subr.mxu1 %v5097_v57 }
 0x947   : > { %v4423_v43 = vadd.f32 1e-05, %v4417_v0  ;;  %5429 = vmatpush3.msra.mxu1 %v5081_v62 }
 0x949   : > { %6225 = vrsqrt.f32 %v4423_v43 }
 0x956   : > { %v6226_v11 = vpop.eup %6225 }
 0x957   : > { %v4429_v50 = vmul.f32 %v6226_v11, %v4422_v9  ;;  %v4426_v63 = vmul.f32 %v6226_v11, %v4419_v56  ;;  %v4425_v6 = vmul.f32 %v6226_v11, %v4418_v49  ;;  %v4428_v13 = vmul.f32 %v6226_v11, %v4421_v27 }
 0x958   : > { %v4427_v26 = vmul.f32 %v6226_v11, %v4420_v55  ;;  %v4562_v27 = vrot.slane %v10238_v42, %v10329_v47 }
 0x959   : > { %v4438_v59 = vmul.f32 %v10019_v31, %v4429_v50  ;;  %v4435_v3 = vmul.f32 %v10019_v31, %v4426_v63  ;;  %v4434_v51 = vmul.f32 %v10019_v31, %v4425_v6  ;;  %v4437_v2 = vmul.f32 %v10019_v31, %v4428_v13 }
 0x95a   : > { %v4436_v21 = vmul.f32 %v10019_v31, %v4427_v26  ;;  %v5096_v31 = vld [vmem:[%s10264_s2 + $0x500] sm:$0xff] }
 0x95b   : > { %v4444_v18 = vadd.f32 %v4441_v32, %v4435_v3  ;;  %v4443_v54 = vadd.f32 %v4441_v32, %v4434_v51  ;;  %v4446_v20 = vadd.f32 %v4441_v32, %v4437_v2  ;;  %v4447_v24 = vadd.f32 %v4441_v32, %v4438_v59  ;;  %5430 = vmatprep.subr.mxu1 %v5096_v31 }
 0x95c   : > { %v4445_v48 = vadd.f32 %v4441_v32, %v4436_v21  ;;  %5431 = vmatpush3.msra.mxu1 %v5080_v22  ;;  %v4768_v59 = vrot.slane %v10238_v42, %v10330_v23 }
 0x95d   : > { %vm4449_vm0 = vcmp.ge.f32.partialorder %v4444_v18, 0.0  ;;  %v4458_v29 = vmul.f32 %v4456_v25, %v4444_v18  ;;  %vm4448_vm8 = vcmp.ge.f32.partialorder %v4443_v54, 0.0  ;;  %v4457_v17 = vmul.f32 %v4456_v25, %v4443_v54 }
 0x95e   : > { %vm4451_vm11 = vcmp.ge.f32.partialorder %v4446_v20, 0.0  ;;  %v4460_v38 = vmul.f32 %v4456_v25, %v4446_v20  ;;  %vm4450_vm12 = vcmp.ge.f32.partialorder %v4445_v48, 0.0  ;;  %v4459_v5 = vmul.f32 %v4456_v25, %v4445_v48 }
 0x95f   : > { %v4463_v46 = vsel %vm4449_vm0, %v4444_v18, %v4458_v29  ;;  %v4462_v8 = vsel %vm4448_vm8, %v4443_v54, %v4457_v17  ;;  %vm4452_vm13 = vcmp.ge.f32.partialorder %v4447_v24, 0.0  ;;  %v4461_v1 = vmul.f32 %v4456_v25, %v4447_v24 }
 0x960   : > { %4480 = vrot.lane.b32.xlu0 %v4463_v46, %s6249_s5  ;;  %5076 = vst.msk [vmem:[%s7732_s7 + $0x2a8] sm:$0xff] %vm1217_vm1, %v4463_v46  ;;  %4478 = vrot.lane.b32.xlu1 %v4462_v8, %s6249_s5  ;;  %5075 = vst.msk [vmem:[%s7732_s7 + $0x2a0] sm:$0xff] %vm1217_vm1, %v4462_v8  ;;  %v4465_v15 = vsel %vm4451_vm11, %v4446_v20, %v4460_v38  ;;  %v4464_v16 = vsel %vm4450_vm12, %v4445_v48, %v4459_v5 }
 0x961   : > { %5078 = vst.msk [vmem:[%s7732_s7 + $0x2b8] sm:$0xff] %vm1217_vm1, %v4465_v15  ;;  %5077 = vst.msk [vmem:[%s7732_s7 + $0x2b0] sm:$0xff] %vm1217_vm1, %v4464_v16  ;;  %v4466_v7 = vsel %vm4452_vm13, %v4447_v24, %v4461_v1 }
 0x962   : > { %5079 = vst.msk [vmem:[%s7732_s7 + $0x2c0] sm:$0xff] %vm1217_vm1, %v4466_v7 }
 0x964   : > { %4484 = vrot.lane.b32.xlu0 %v4465_v15, %s6249_s5  ;;  %4482 = vrot.lane.b32.xlu1 %v4464_v16, %s6249_s5 }
 0x968   : > { %4486 = vrot.lane.b32.xlu0 %v4466_v7, %s6249_s5 }
 0x9d2   : > { %v4481_v53 = vpop.permute.xlu0 %4480  ;;  %v4479_v61 = vpop.permute.xlu1 %4478 }
 0x9d3   : > { %4494 = vst.msk [vmem:[#allocation3 + $0x8] sm:$0xff] %vm2079_vm9, %v4481_v53  ;;  %4493 = vst.msk [vmem:[#allocation3] sm:$0xff] %vm2079_vm9, %v4479_v61 }
 0x9d4   : > { %4499 = vst.msk [vmem:[#allocation3 + $0x9] sm:$0x7f] %vm2129_vm10, %v4463_v46  ;;  %4498 = vst.msk [vmem:[#allocation3 + $0x1] sm:$0x7f] %vm2129_vm10, %v4462_v8 }
 0x9d6   : > { %v4485_v40 = vpop.permute.xlu0 %4484  ;;  %v4483_v36 = vpop.permute.xlu1 %4482 }
 0x9d7   : > { %4496 = vst.msk [vmem:[#allocation3 + $0x18] sm:$0xff] %vm2079_vm9, %v4485_v40  ;;  %4495 = vst.msk [vmem:[#allocation3 + $0x10] sm:$0xff] %vm2079_vm9, %v4483_v36 }
 0x9d8   : > { %4501 = vst.msk [vmem:[#allocation3 + $0x19] sm:$0x7f] %vm2129_vm10, %v4465_v15  ;;  %4500 = vst.msk [vmem:[#allocation3 + $0x11] sm:$0x7f] %vm2129_vm10, %v4464_v16 }
 0x9da   : > { %v4487_v44 = vpop.permute.xlu0 %4486 }
 0x9db   : > { %4497 = vst.msk [vmem:[#allocation3 + $0x20] sm:$0xff] %vm2079_vm9, %v4487_v44  ;;  %v4504_v39 = vld [vmem:[#allocation3 + $0x8] sm:$0xff]  ;;  %v4503_v37 = vld [vmem:[#allocation3] sm:$0xff] }
 0x9dc   : > { %4502 = vst.msk [vmem:[#allocation3 + $0x21] sm:$0x7f] %vm2129_vm10, %v4466_v7  ;;  %4627 = vmatprep.mubr.f32.mxu1 %v4504_v39 }
 0x9dd   : > { %4628 = vmatmul.mubr.f32.vlgmr.msra.gmra.mxu1 %v4503_v37 }
 0x9df   : > { %v4506_v0 = vld [vmem:[#allocation3 + $0x18] sm:$0xff]  ;;  %v4505_v43 = vld [vmem:[#allocation3 + $0x10] sm:$0xff] }
 0x9e0   : > { %4632 = vmatprep.mubr.f32.mxu1 %v4506_v0  ;;  %5847 = vmatprep.mubr.f32.mxu0 %v4505_v43 }
 0x9e1   : > { %4633 = vmatmul.mubr.f32.gmra.mxu1 %v4505_v43  ;;  %v4782_v43 = vrot.slane %v10238_v42, %v10331_v4 }
 0x9e3   : > { %v4507_v9 = vld [vmem:[#allocation3 + $0x20] sm:$0xff] }
 0x9e4   : > { %5848 = vmatmul.mubr.f32.vlgmr.msra.gmra.mxu0 %v4507_v9 }
 0xa9d   : > { %v5432_v30 = vpop.f32.mrf.mxu1 }
 0xa9f   : > { %v5433_v60 = vpop.f32.mrf.mxu1 }
 0xaa0   : > { %v5434_v56 = vadd.f32 %v5433_v60, %v5432_v30 }
 0xaa1   : > { %v5435_v49 = vpop.f32.mrf.mxu1 }
 0xaa2   : > { %v4630_v11 = vadd.f32 %v5434_v56, %v4562_v27 }
 0xaa3   : > { %v5436_v41 = vpop.f32.mrf.mxu1 }
 0xaa4   : > { %v5437_v19 = vadd.f32 %v5436_v41, %v5435_v49  ;;  %v5849_v33 = vpop.f32.mrf.mxu0 }
 0xaa6   : > { %v4635_v55 = vadd.f32 %v5437_v19, %v4562_v27  ;;  %v4704_v50 = vpop.f32.mrf.mxu0 }
 0xaa7   : > { %v4705_v63 = vadd.f32 %v4704_v50, %v4630_v11 }
 0xaa8   : > { %v4710_v6 = vadd.f32 %v5849_v33, %v4635_v55 }
 0xaa9   : > { %v5129_v13 = vmul.f32 -1.442695, %v4705_v63 }
 0xaaa   : > { %v5130_v25 = vmul.f32 -1.442695, %v4710_v6 }
 0xaab   : > { %6227 = vpow2.f32 %v5129_v13 }
 0xaac   : > { %6229 = vpow2.f32 %v5130_v25 }
 0xab8   : > { %v6228_v32 = vpop.eup %6227 }
 0xab9   : > { %v6230_v26 = vpop.eup %6229  ;;  %v4719_v28 = vadd.f32 1.0, %v6228_v32 }
 0xaba   : > { %v4720_v52 = vadd.f32 1.0, %v6230_v26 }
 0xabb   : > { %6231 = vrcp.f32 %v4719_v28 }
 0xabc   : > { %6233 = vrcp.f32 %v4720_v52 }
 0xac8   : > { %v6232_v58 = vpop.eup %6231 }
 0xac9   : > { %v6234_v47 = vpop.eup %6233  ;;  %4727 = vrot.lane.b32.xlu1 %v6232_v58, %s6249_s5 }
 0xaca   : > { %4729 = vrot.lane.b32.xlu0 %v6234_v47, %s6249_s5 }
 0xacd   : > { %4772 = vrot.lane.b32.xlu1 %v4768_v59, %s6249_s5 }
 0xace   : > { %3327 = vrot.lane.b32.xlu0 %v9403_v34, %s6249_s5 }
 0xb3b   : > { %v4728_v3 = vpop.permute.xlu1 %4727 }
 0xb3c   : > { %v4733_v51 = vmul.f32 %v4728_v3, %v4705_v63  ;;  %v4730_v2 = vpop.permute.xlu0 %4729 }
 0xb3d   : > { %v4734_v57 = vmul.f32 %v4730_v2, %v4710_v6 }
 0xb3e   : > { %v4735_v21 = vsel %vm1217_vm1, %v4733_v51, 0.0  ;;  %v4744_v62 = vmul.f32 %v4733_v51, %v4733_v51 }
 0xb3f   : > { %v4736_v35 = vsel %vm1217_vm1, %v4734_v57, 0.0  ;;  %v4745_v18 = vmul.f32 %v4734_v57, %v4734_v57  ;;  %v4773_v39 = vpop.permute.xlu1 %4772 }
 0xb40   : > { %v4746_v54 = vsel %vm1217_vm1, %v4744_v62, 0.0  ;;  %v4737_v23 = vadd.f32 %v4736_v35, %v4735_v21  ;;  %v3328_v20 = vpop.permute.xlu0 %3327 }
 0xb41   : > { %v4747_v24 = vsel %vm1217_vm1, %v4745_v18, 0.0 }
 0xb42   : > { %v4738_v48 = vrot.slane %v4737_v23, 4  ;;  %v4748_v31 = vadd.f32 %v4747_v24, %v4746_v54 }
 0xb44   : > { %v4739_v22 = vadd.f32 %v4738_v48, %v4737_v23  ;;  %v4749_v34 = vrot.slane %v4748_v31, 4 }
 0xb46   : > { %v4740_v12 = vrot.slane %v4739_v22, 2  ;;  %v4750_v29 = vadd.f32 %v4749_v34, %v4748_v31 }
 0xb48   : > { %v4741_v17 = vadd.f32 %v4740_v12, %v4739_v22  ;;  %v4751_v38 = vrot.slane %v4750_v29, 2 }
 0xb4a   : > { %v4742_v5 = vrot.slane %v4741_v17, 1  ;;  %v4752_v46 = vadd.f32 %v4751_v38, %v4750_v29 }
 0xb4c   : > { %v4743_v8 = vadd.f32 %v4742_v5, %v4741_v17  ;;  %v4753_v1 = vrot.slane %v4752_v46, 1 }
 0xb4e   : > { %v4754_v14 = vadd.f32 %v4753_v1, %v4752_v46  ;;  %v4755_v15 = vmul.f32 0.0625, %v4743_v8 }
 0xb50   : > { %v4756_v16 = vmul.f32 0.0625, %v4754_v14  ;;  %v4757_v7 = vmul.f32 %v4755_v15, %v4755_v15  ;;  %v4760_v53 = vsub.f32 %v4734_v57, %v4755_v15  ;;  %v4759_v61 = vsub.f32 %v4733_v51, %v4755_v15 }
 0xb52   : > { %v4758_v45 = vsub.f32 %v4756_v16, %v4757_v7 }
 0xb54   : > { %v4761_v10 = vadd.f32 1e-05, %v4758_v45 }
 0xb56   : > { %6235 = vrsqrt.f32 %v4761_v10 }
 0xb63   : > { %v6236_v40 = vpop.eup %6235 }
 0xb64   : > { %v4763_v36 = vmul.f32 %v6236_v40, %v4759_v61  ;;  %v4764_v44 = vmul.f32 %v6236_v40, %v4760_v53 }
 0xb66   : > { %v4769_v37 = vmul.f32 %v4768_v59, %v4763_v36  ;;  %v4770_v0 = vmul.f32 %v4768_v59, %v4764_v44 }
 0xb68   : > { %v4775_v9 = vadd.f32 %v4773_v39, %v4769_v37  ;;  %v4776_v30 = vadd.f32 %v4773_v39, %v4770_v0 }
 0xb6a   : > { %vm4777_vm9 = vcmp.ge.f32.partialorder %v4775_v9, 0.0  ;;  %vm4778_vm10 = vcmp.ge.f32.partialorder %v4776_v30, 0.0  ;;  %v4783_v60 = vmul.f32 %v4782_v43, %v4775_v9  ;;  %v4784_v56 = vmul.f32 %v4782_v43, %v4776_v30 }
 0xb6c   : > { %v4785_v49 = vsel %vm4777_vm9, %v4775_v9, %v4783_v60  ;;  %v4786_v27 = vsel %vm4778_vm10, %v4776_v30, %v4784_v56 }
 0xb6d   : > { %5131 = vst.msk [vmem:[%s7732_s7 + $0x2c8] sm:$0xff] %vm1217_vm1, %v4785_v49  ;;  %5132 = vst.msk [vmem:[%s7732_s7 + $0x2d0] sm:$0xff] %vm1217_vm1, %v4786_v27 }
 0xb6e PF: > { %s14_s15 = sadd.s32 1, %s6245_s15  }
 0xb6f   : > { %p11_p4 = scmp.ge.s32.totalorder %s14_s15, 4  }
 0xb71   :  { %13 = sbr.rel (!%p11_p4) target bundleno = 1 (0x1), region = 77 }

</bundles_post_ra>
